<compile_context>
chip_gen: v5e
topology: v5e:2x2
jax: 0.10.0
libtpu: 0.0.40
codegen_flags: <defaults>
</compile_context>

<pallas_src>
import functools

import jax
import jax.numpy as jnp
from jax.experimental import pallas as pl
from jax.experimental.pallas import tpu as pltpu

PAD = 0


def _vmem_capacity_bytes():
    try:
        return int(pltpu.get_tpu_info().vmem_capacity_bytes)
    except Exception:
        return 128 << 20   # v5e/v6e physical VMEM; conservative fallback


# ----------------------------- GRU kernel ----------------------------------
def _gru_kernel(emb_ref, mask_ref, wih_ref, whh_ref, bi_ref, bhn_ref,
                ctx_ref, gi_ref, *, T, B, H):
    # Hoisted input projection: one big bf16 MXU matmul over all T*B rows
    # (independent of the recurrent state).  r/z parts of b_hh are folded
    # into bi_ref already.
    gi_ref[...] = (
        jnp.dot(emb_ref[...], wih_ref[...], preferred_element_type=jnp.float32)
        + bi_ref[...])

    whh = whh_ref[...]          # [H, 3H] bf16
    bhn = bhn_ref[...]          # [1, H]  f32 (b_hn must stay inside r*(.))

    def step(t, h):
        r0 = t * B
        if not isinstance(r0, int):
            r0 = pl.multiple_of(r0, B)
        gi = gi_ref[pl.ds(r0, B), :]        # [B, 3H] precomputed input gates
        m = mask_ref[pl.ds(r0, B), :]       # [B, 1]  1.0 where PAD
        gh = jnp.dot(h.astype(jnp.bfloat16), whh,
                     preferred_element_type=jnp.float32)      # [B, 3H]
        i_r, i_z, i_n = gi[:, :H], gi[:, H:2 * H], gi[:, 2 * H:]
        h_r, h_z, h_n = gh[:, :H], gh[:, H:2 * H], gh[:, 2 * H:]
        r = jax.nn.sigmoid(i_r + h_r)
        z = jax.nn.sigmoid(i_z + h_z)
        n = jnp.tanh(i_n + r * (h_n + bhn))
        h_new = (1.0 - z) * n + z * h
        # PAD positions: freeze hidden state, output zeros (pack/pad semantics).
        h = jnp.where(m > 0, h, h_new)
        ctx_ref[pl.ds(r0, B), :] = jnp.where(m > 0, 0.0, h).astype(ctx_ref.dtype)
        return h

    h = jnp.zeros((B, H), jnp.float32)
    if T <= 16:                  # short static T: unrolled, LLO-visible
        for t in range(T):
            h = step(t, h)
    else:                        # bound vreg live ranges for long sequences
        jax.lax.fori_loop(0, T, step, h)


# ----------------- linear_logit + tanh + generator kernel -------------------
def _gen_kernel(xcat_ref, wl_ref, bl_ref, wg_ref, mneg_ref, minf_ref, out_ref):
    # tanh(Linear([ctx, emb])) as a single fused bf16 matmul (f32 accumulation).
    pre = (jnp.dot(xcat_ref[...], wl_ref[...], preferred_element_type=jnp.float32)
           + bl_ref[...])
    mid = jnp.tanh(pre).astype(wg_ref.dtype)
    # Tied-weight projection to vocab (no bias), f32 accumulation.
    logits = jnp.dot(mid, wg_ref[...], preferred_element_type=jnp.float32)
    # PAD column -> -1e30 via an additive [1, V] mask (keeps max/exp NaN-free).
    logits = logits + mneg_ref[...]
    m = jnp.max(logits, axis=-1, keepdims=True)
    lse = jnp.log(jnp.sum(jnp.exp(logits - m), axis=-1, keepdims=True)) + m
    # Restore exact reference semantics (-inf PAD column) via a second additive
    # mask, then cast to the (bf16) output dtype at the store.
    out_ref[...] = (logits - lse + minf_ref[...]).astype(out_ref.dtype)


# ------------------------------ params --------------------------------------
def init_params(key, n_words, input_size, hidden_size):
    V, E, H = n_words, input_size, hidden_size
    ks = jax.random.split(key, 7)
    emb = jax.random.normal(ks[0], (V, E), jnp.float32) * 0.1
    emb = emb.at[PAD].set(0.0)                # padding_idx row is zero
    return dict(
        emb=emb,
        w_ih=jax.random.normal(ks[1], (3 * H, E), jnp.float32) * 0.1,   # (r|z|n)
        w_hh=jax.random.normal(ks[2], (3 * H, H), jnp.float32) * 0.1,
        b_ih=jax.random.normal(ks[3], (3 * H,), jnp.float32) * 0.1,
        b_hh=jax.random.normal(ks[4], (3 * H,), jnp.float32) * 0.1,
        w_logit=jax.random.normal(ks[5], (E, H + E), jnp.float32) * 0.1,
        b_logit=jax.random.normal(ks[6], (E,), jnp.float32) * 0.1,
    )


def prepare_params(params):
    """One-time layout/cast of the raw parameters into kernel-ready form."""
    emb = params["emb"]                                    # [V, E] f32 (lookup)
    V, E = emb.shape
    H = params["w_hh"].shape[1]
    b_ih, b_hh = params["b_ih"], params["b_hh"]
    # Fold the r/z halves of b_hh into the hoisted input-projection bias.
    bias_i = b_ih + jnp.concatenate([b_hh[:2 * H], jnp.zeros((H,), b_hh.dtype)])
    mneg = jnp.zeros((1, V), jnp.float32).at[0, PAD].set(-1e30)
    minf = jnp.zeros((1, V), jnp.float32).at[0, PAD].set(-jnp.inf)
    return dict(
        emb=emb,
        w_ih_t=params["w_ih"].T.astype(jnp.bfloat16),       # [E, 3H]
        w_hh_t=params["w_hh"].T.astype(jnp.bfloat16),       # [H, 3H]
        bias_i=bias_i[None, :].astype(jnp.float32),         # [1, 3H]
        b_hn=b_hh[2 * H:][None, :].astype(jnp.float32),     # [1, H]
        wl_t=params["w_logit"].T.astype(jnp.bfloat16),      # [H+E, E] fused
        bl=params["b_logit"][None, :].astype(jnp.float32),  # [1, E]
        wg=emb.T.astype(jnp.bfloat16),                      # [E, V] tied weight
        mneg=mneg, minf=minf,
    )


# ------------------------------ wrapper --------------------------------------
def rnn_decoder_forward(x, kp, *, out_dtype=jnp.bfloat16, single_buffer_weights=True):
    """x: int32 [B, T] token ids. Returns log-probs [B, T, V] in out_dtype."""
    B, T = x.shape
    emb_w = kp["emb"]
    V, E = emb_w.shape
    H = kp["w_hh_t"].shape[0]
    N = B * T
    out_bytes = jnp.dtype(out_dtype).itemsize
    vmem_cap = int(0.75 * _vmem_capacity_bytes())

    # Embedding lookup (glue; add_position_embedding=False, dropout=0.0).
    emb_bm = emb_w[x].astype(jnp.bfloat16)                       # [B, T, E]
    # Time-major flattened views for the recurrent kernel (row = t*B + b).
    emb_tm2d = jnp.transpose(emb_bm, (1, 0, 2)).reshape(N, E)
    mask_tm2d = jnp.transpose(x == PAD, (1, 0)).reshape(N, 1).astype(jnp.float32)

    gru_need = (2 * (N * E * 2 + N * 4 + E * 3 * H * 2 + H * 3 * H * 2
                     + 4 * H * 4 + N * H * 2)
                + N * 3 * H * 4 + (4 << 20))
    gru_vmem = int(min(max(gru_need, 16 << 20), vmem_cap))

    gru = functools.partial(_gru_kernel, T=T, B=B, H=H)
    ctx_tm2d = pl.pallas_call(
        gru,
        out_shape=jax.ShapeDtypeStruct((N, H), jnp.bfloat16),
        grid=(1,),
        in_specs=[
            pl.BlockSpec((N, E), lambda i: (0, 0)),
            pl.BlockSpec((N, 1), lambda i: (0, 0)),
            pl.BlockSpec((E, 3 * H), lambda i: (0, 0)),
            pl.BlockSpec((H, 3 * H), lambda i: (0, 0)),
            pl.BlockSpec((1, 3 * H), lambda i: (0, 0)),
            pl.BlockSpec((1, H), lambda i: (0, 0)),
        ],
        out_specs=pl.BlockSpec((N, H), lambda i: (0, 0)),
        scratch_shapes=[pltpu.VMEM((N, 3 * H), jnp.float32)],   # hoisted gi
        compiler_params=pltpu.CompilerParams(
            dimension_semantics=("arbitrary",),
            vmem_limit_bytes=gru_vmem),
    )(emb_tm2d, mask_tm2d, kp["w_ih_t"], kp["w_hh_t"], kp["bias_i"], kp["b_hn"])

    # Re-lay the SMALL ctx/emb tensors batch-major (row = b*T + t) and do the
    # concat once, so the big [N, V] output already has [B, T, V] layout.
    ctx_bm2d = ctx_tm2d.reshape(T, B, H).transpose(1, 0, 2).reshape(N, H)
    xcat = jnp.concatenate([ctx_bm2d, emb_bm.reshape(N, E)], axis=-1)  # [N, H+E]

    wbuf = 1 if single_buffer_weights else 2

    def gen_vmem(tm):
        return ((2 * tm * (H + E) * 2)                 # xcat tiles (2x buffered)
                + 2 * tm * V * out_bytes               # output tiles (2x buffered)
                + wbuf * ((H + E) * E * 2 + E * V * 2 + (E + 2 * V) * 4)
                + 2 * tm * V * 4                       # f32 logits/exp temporaries
                + (4 << 20))                           # headroom

    # Row tile: biggest that fits the generation's VMEM budget.
    if N < 128:
        TM = -(-N // 16) * 16      # bf16 packs 2 rows/sublane -> 16-row multiple
    else:
        TM = 128
        for cand in (512, 256):
            if cand <= N and gen_vmem(cand) <= vmem_cap:
                TM = cand
                break
    N_pad = -(-N // TM) * TM
    if N_pad != N:
        xcat = jnp.pad(xcat, ((0, N_pad - N), (0, 0)))

    gen_vmem_bytes = int(min(max(gen_vmem(TM), 16 << 20), vmem_cap))

    def _wspec(shape):
        # Grid-invariant weights: single-buffer to reclaim VMEM.
        if single_buffer_weights:
            return pl.BlockSpec(shape, lambda i: (0, 0), pipeline_mode=pl.Buffered(1))
        return pl.BlockSpec(shape, lambda i: (0, 0))

    logprobs_flat = pl.pallas_call(
        _gen_kernel,
        out_shape=jax.ShapeDtypeStruct((N_pad, V), out_dtype),
        grid=(N_pad // TM,),
        in_specs=[
            pl.BlockSpec((TM, H + E), lambda i: (i, 0)),
            _wspec((H + E, E)),
            _wspec((1, E)),
            _wspec((E, V)),
            _wspec((1, V)),
            _wspec((1, V)),
        ],
        out_specs=pl.BlockSpec((TM, V), lambda i: (i, 0)),
        compiler_params=pltpu.CompilerParams(
            dimension_semantics=("parallel",),
            vmem_limit_bytes=gen_vmem_bytes),
    )(xcat, kp["wl_t"], kp["bl"], kp["wg"], kp["mneg"], kp["minf"])

    # Batch-major rows -> reshape is free; drop padded rows.
    return logprobs_flat[:N].reshape(B, T, V)


if __name__ == "__main__":
    B, T = 8, 8
    n_words, input_size, hidden_size = 512, 128, 128

    key = jax.random.PRNGKey(0)
    pkey, xkey = jax.random.split(key)
    params = init_params(pkey, n_words, input_size, hidden_size)
    kp = prepare_params(params)   # one-time weight layout/cast (hoisted)

    # Token ids in [1, V); right-pad some sequences with PAD to exercise masking.
    x = jax.random.randint(xkey, (B, T), 1, n_words, dtype=jnp.int32)
    lengths = jnp.array([8, 7, 6, 5, 8, 4, 3, 8], dtype=jnp.int32)
    pos = jnp.arange(T, dtype=jnp.int32)[None, :]
    x = jnp.where(pos < lengths[:, None], x, PAD)

    try:
        out = jax.jit(rnn_decoder_forward)(x, kp)
        out = jax.block_until_ready(out)
    except Exception:
        # Fallback if this JAX build rejects Buffered(1) single-buffered weights.
        out = jax.jit(functools.partial(rnn_decoder_forward,
                                        single_buffer_weights=False))(x, kp)
        out = jax.block_until_ready(out)

    assert out.shape == (B, T, n_words)
    outf = out.astype(jnp.float32)
    # Rows are proper log-probabilities (bf16 output -> loose tolerance);
    # finite outside the PAD column, exactly -inf at the PAD column.
    assert bool(jnp.allclose(jnp.exp(outf).sum(-1), 1.0, atol=2e-2))
    assert bool(jnp.isfinite(outf[..., 1:]).all())
    assert bool(jnp.all(outf[..., PAD] == -jnp.inf))
    print("KERNEL_OK")
</pallas_src>

<mosaic_0001>
module attributes {stable_mosaic.version = 11 : i64} {
  func.func @_gru_kernel(%arg0: i32, %arg1: memref<64x128xbf16, #tpu.memory_space<vmem>>, %arg2: memref<64x1xf32, #tpu.memory_space<vmem>>, %arg3: memref<128x384xbf16, #tpu.memory_space<vmem>>, %arg4: memref<128x384xbf16, #tpu.memory_space<vmem>>, %arg5: memref<1x384xf32, #tpu.memory_space<vmem>>, %arg6: memref<1x128xf32, #tpu.memory_space<vmem>>, %arg7: memref<64x128xbf16, #tpu.memory_space<vmem>>, %arg8: memref<64x384xf32, #tpu.memory_space<vmem>>) attributes {dimension_semantics = [#tpu.dimension_semantics<arbitrary>], iteration_bounds = array<i64: 1>, scalar_prefetch = 0 : i64, scratch_operands = 1 : i64, tpu.core_type = #tpu.core_type<tc>, window_params = [{pipeline_mode = #tpu.pipeline_mode<synchronous>, transform_indices = @transform_0, window_bounds = array<i64: 64, 128>}, {pipeline_mode = #tpu.pipeline_mode<synchronous>, transform_indices = @transform_1, window_bounds = array<i64: 64, 1>}, {pipeline_mode = #tpu.pipeline_mode<synchronous>, transform_indices = @transform_2, window_bounds = array<i64: 128, 384>}, {pipeline_mode = #tpu.pipeline_mode<synchronous>, transform_indices = @transform_3, window_bounds = array<i64: 128, 384>}, {pipeline_mode = #tpu.pipeline_mode<synchronous>, transform_indices = @transform_4, window_bounds = array<i64: 1, 384>}, {pipeline_mode = #tpu.pipeline_mode<synchronous>, transform_indices = @transform_5, window_bounds = array<i64: 1, 128>}, {pipeline_mode = #tpu.pipeline_mode<synchronous>, transform_indices = @transform_6, window_bounds = array<i64: 64, 128>}]} {
    %c0 = arith.constant 0 : index
    %c0_0 = arith.constant 0 : index
    %0 = vector.load %arg1[%c0, %c0_0] : memref<64x128xbf16, #tpu.memory_space<vmem>>, vector<64x128xbf16>
    %c0_1 = arith.constant 0 : index
    %c0_2 = arith.constant 0 : index
    %1 = vector.load %arg3[%c0_1, %c0_2] : memref<128x384xbf16, #tpu.memory_space<vmem>>, vector<128x384xbf16>
    %cst = arith.constant dense<0.000000e+00> : vector<64x384xf32>
    %2 = tpu.matmul %0, %1, %cst {dimension_numbers = #tpu.dot_dimension_numbers<[1], [0], [0], [1], [0, 0, 1, 1], [], []>} : vector<64x128xbf16>, vector<128x384xbf16>, vector<64x384xf32> -> vector<64x384xf32>
    %c0_3 = arith.constant 0 : index
    %c0_4 = arith.constant 0 : index
    %3 = vector.load %arg5[%c0_3, %c0_4] : memref<1x384xf32, #tpu.memory_space<vmem>>, vector<1x384xf32>
    %4 = vector.broadcast %3 : vector<1x384xf32> to vector<64x384xf32>
    %5 = arith.addf %2, %4 : vector<64x384xf32>
    %c0_5 = arith.constant 0 : index
    %c0_6 = arith.constant 0 : index
    %6 = vector.load %arg8[%c0_5, %c0_6] : memref<64x384xf32, #tpu.memory_space<vmem>>, vector<64x384xf32>
    tpu.vector_store %arg8[%c0_5, %c0_6], %5 {strides = array<i32>} : memref<64x384xf32, #tpu.memory_space<vmem>>, vector<64x384xf32>,
    %c0_7 = arith.constant 0 : index
    %c0_8 = arith.constant 0 : index
    %7 = vector.load %arg4[%c0_7, %c0_8] : memref<128x384xbf16, #tpu.memory_space<vmem>>, vector<128x384xbf16>
    %c0_9 = arith.constant 0 : index
    %c0_10 = arith.constant 0 : index
    %8 = vector.load %arg6[%c0_9, %c0_10] : memref<1x128xf32, #tpu.memory_space<vmem>>, vector<1x128xf32>
    %cst_11 = arith.constant 0.000000e+00 : f32
    %9 = vector.broadcast %cst_11 : f32 to vector<8x128xf32>
    %c0_12 = arith.constant 0 : index
    %c0_13 = arith.constant 0 : index
    %10 = vector.load %arg8[%c0_12, %c0_13] : memref<64x384xf32, #tpu.memory_space<vmem>>, vector<8x384xf32>
    %c0_14 = arith.constant 0 : index
    %c0_15 = arith.constant 0 : index
    %11 = vector.load %arg2[%c0_14, %c0_15] : memref<64x1xf32, #tpu.memory_space<vmem>>, vector<8x1xf32>
    %12 = arith.truncf %9 : vector<8x128xf32> to vector<8x128xbf16>
    %cst_16 = arith.constant dense<0.000000e+00> : vector<8x384xf32>
    %13 = tpu.matmul %12, %7, %cst_16 {dimension_numbers = #tpu.dot_dimension_numbers<[1], [0], [0], [1], [0, 0, 1, 1], [], []>} : vector<8x128xbf16>, vector<128x384xbf16>, vector<8x384xf32> -> vector<8x384xf32>
    %14 = vector.extract_strided_slice %10 {offsets = [0, 0], sizes = [8, 128], strides = [1, 1]} : vector<8x384xf32> to vector<8x128xf32>
    %15 = vector.extract_strided_slice %10 {offsets = [0, 128], sizes = [8, 128], strides = [1, 1]} : vector<8x384xf32> to vector<8x128xf32>
    %16 = vector.extract_strided_slice %10 {offsets = [0, 256], sizes = [8, 128], strides = [1, 1]} : vector<8x384xf32> to vector<8x128xf32>
    %17 = vector.extract_strided_slice %13 {offsets = [0, 0], sizes = [8, 128], strides = [1, 1]} : vector<8x384xf32> to vector<8x128xf32>
    %18 = vector.extract_strided_slice %13 {offsets = [0, 128], sizes = [8, 128], strides = [1, 1]} : vector<8x384xf32> to vector<8x128xf32>
    %19 = vector.extract_strided_slice %13 {offsets = [0, 256], sizes = [8, 128], strides = [1, 1]} : vector<8x384xf32> to vector<8x128xf32>
    %20 = arith.addf %14, %17 : vector<8x128xf32>
    %21 = arith.negf %20 : vector<8x128xf32>
    %22 = math.exp %21 : vector<8x128xf32>
    %cst_17 = arith.constant 1.000000e+00 : f32
    %23 = vector.broadcast %cst_17 : f32 to vector<8x128xf32>
    %24 = arith.addf %23, %22 : vector<8x128xf32>
    %25 = arith.divf %23, %24 : vector<8x128xf32>
    %26 = arith.addf %15, %18 : vector<8x128xf32>
    %27 = arith.negf %26 : vector<8x128xf32>
    %28 = math.exp %27 : vector<8x128xf32>
    %cst_18 = arith.constant 1.000000e+00 : f32
    %29 = vector.broadcast %cst_18 : f32 to vector<8x128xf32>
    %30 = arith.addf %29, %28 : vector<8x128xf32>
    %31 = arith.divf %29, %30 : vector<8x128xf32>
    %32 = vector.broadcast %8 : vector<1x128xf32> to vector<8x128xf32>
    %33 = arith.addf %19, %32 : vector<8x128xf32>
    %34 = arith.mulf %25, %33 : vector<8x128xf32>
    %35 = arith.addf %16, %34 : vector<8x128xf32>
    %36 = math.tanh %35 : vector<8x128xf32>
    %cst_19 = arith.constant 1.000000e+00 : f32
    %37 = vector.broadcast %cst_19 : f32 to vector<8x128xf32>
    %38 = arith.subf %37, %31 : vector<8x128xf32>
    %39 = arith.mulf %38, %36 : vector<8x128xf32>
    %40 = arith.mulf %31, %9 : vector<8x128xf32>
    %41 = arith.addf %39, %40 : vector<8x128xf32>
    %cst_20 = arith.constant 0.000000e+00 : f32
    %42 = vector.broadcast %cst_20 : f32 to vector<8x1xf32>
    %43 = arith.cmpf ogt, %11, %42 : vector<8x1xf32>
    %44 = vector.shape_cast %43 : vector<8x1xi1> to vector<8x1xi1>
    %45 = vector.broadcast %44 : vector<8x1xi1> to vector<8x128xi1>
    %46 = arith.select %45, %9, %41 : vector<8x128xi1>, vector<8x128xf32>
    %cst_21 = arith.constant 0.000000e+00 : f32
    %47 = vector.broadcast %cst_21 : f32 to vector<8x1xf32>
    %48 = arith.cmpf ogt, %11, %47 : vector<8x1xf32>
    %cst_22 = arith.constant 0.000000e+00 : f32
    %49 = vector.shape_cast %48 : vector<8x1xi1> to vector<8x1xi1>
    %50 = vector.broadcast %49 : vector<8x1xi1> to vector<8x128xi1>
    %51 = vector.broadcast %cst_22 : f32 to vector<8x128xf32>
    %52 = arith.select %50, %51, %46 : vector<8x128xi1>, vector<8x128xf32>
    %53 = arith.truncf %52 : vector<8x128xf32> to vector<8x128xbf16>
    %c0_23 = arith.constant 0 : index
    %c0_24 = arith.constant 0 : index
    %54 = vector.load %arg7[%c0_23, %c0_24] : memref<64x128xbf16, #tpu.memory_space<vmem>>, vector<8x128xbf16>
    tpu.vector_store %arg7[%c0_23, %c0_24], %53 {strides = array<i32>} : memref<64x128xbf16, #tpu.memory_space<vmem>>, vector<8x128xbf16>,
    %c8 = arith.constant 8 : index
    %c0_25 = arith.constant 0 : index
    %55 = vector.load %arg8[%c8, %c0_25] : memref<64x384xf32, #tpu.memory_space<vmem>>, vector<8x384xf32>
    %c8_26 = arith.constant 8 : index
    %c0_27 = arith.constant 0 : index
    %56 = vector.load %arg2[%c8_26, %c0_27] : memref<64x1xf32, #tpu.memory_space<vmem>>, vector<8x1xf32>
    %57 = arith.truncf %46 : vector<8x128xf32> to vector<8x128xbf16>
    %cst_28 = arith.constant dense<0.000000e+00> : vector<8x384xf32>
    %58 = tpu.matmul %57, %7, %cst_28 {dimension_numbers = #tpu.dot_dimension_numbers<[1], [0], [0], [1], [0, 0, 1, 1], [], []>} : vector<8x128xbf16>, vector<128x384xbf16>, vector<8x384xf32> -> vector<8x384xf32>
    %59 = vector.extract_strided_slice %55 {offsets = [0, 0], sizes = [8, 128], strides = [1, 1]} : vector<8x384xf32> to vector<8x128xf32>
    %60 = vector.extract_strided_slice %55 {offsets = [0, 128], sizes = [8, 128], strides = [1, 1]} : vector<8x384xf32> to vector<8x128xf32>
    %61 = vector.extract_strided_slice %55 {offsets = [0, 256], sizes = [8, 128], strides = [1, 1]} : vector<8x384xf32> to vector<8x128xf32>
    %62 = vector.extract_strided_slice %58 {offsets = [0, 0], sizes = [8, 128], strides = [1, 1]} : vector<8x384xf32> to vector<8x128xf32>
    %63 = vector.extract_strided_slice %58 {offsets = [0, 128], sizes = [8, 128], strides = [1, 1]} : vector<8x384xf32> to vector<8x128xf32>
    %64 = vector.extract_strided_slice %58 {offsets = [0, 256], sizes = [8, 128], strides = [1, 1]} : vector<8x384xf32> to vector<8x128xf32>
    %65 = arith.addf %59, %62 : vector<8x128xf32>
    %66 = arith.negf %65 : vector<8x128xf32>
    %67 = math.exp %66 : vector<8x128xf32>
    %cst_29 = arith.constant 1.000000e+00 : f32
    %68 = vector.broadcast %cst_29 : f32 to vector<8x128xf32>
    %69 = arith.addf %68, %67 : vector<8x128xf32>
    %70 = arith.divf %68, %69 : vector<8x128xf32>
    %71 = arith.addf %60, %63 : vector<8x128xf32>
    %72 = arith.negf %71 : vector<8x128xf32>
    %73 = math.exp %72 : vector<8x128xf32>
    %cst_30 = arith.constant 1.000000e+00 : f32
    %74 = vector.broadcast %cst_30 : f32 to vector<8x128xf32>
    %75 = arith.addf %74, %73 : vector<8x128xf32>
    %76 = arith.divf %74, %75 : vector<8x128xf32>
    %77 = vector.broadcast %8 : vector<1x128xf32> to vector<8x128xf32>
    %78 = arith.addf %64, %77 : vector<8x128xf32>
    %79 = arith.mulf %70, %78 : vector<8x128xf32>
    %80 = arith.addf %61, %79 : vector<8x128xf32>
    %81 = math.tanh %80 : vector<8x128xf32>
    %cst_31 = arith.constant 1.000000e+00 : f32
    %82 = vector.broadcast %cst_31 : f32 to vector<8x128xf32>
    %83 = arith.subf %82, %76 : vector<8x128xf32>
    %84 = arith.mulf %83, %81 : vector<8x128xf32>
    %85 = arith.mulf %76, %46 : vector<8x128xf32>
    %86 = arith.addf %84, %85 : vector<8x128xf32>
    %cst_32 = arith.constant 0.000000e+00 : f32
    %87 = vector.broadcast %cst_32 : f32 to vector<8x1xf32>
    %88 = arith.cmpf ogt, %56, %87 : vector<8x1xf32>
    %89 = vector.shape_cast %88 : vector<8x1xi1> to vector<8x1xi1>
    %90 = vector.broadcast %89 : vector<8x1xi1> to vector<8x128xi1>
    %91 = arith.select %90, %46, %86 : vector<8x128xi1>, vector<8x128xf32>
    %cst_33 = arith.constant 0.000000e+00 : f32
    %92 = vector.broadcast %cst_33 : f32 to vector<8x1xf32>
    %93 = arith.cmpf ogt, %56, %92 : vector<8x1xf32>
    %cst_34 = arith.constant 0.000000e+00 : f32
    %94 = vector.shape_cast %93 : vector<8x1xi1> to vector<8x1xi1>
    %95 = vector.broadcast %94 : vector<8x1xi1> to vector<8x128xi1>
    %96 = vector.broadcast %cst_34 : f32 to vector<8x128xf32>
    %97 = arith.select %95, %96, %91 : vector<8x128xi1>, vector<8x128xf32>
    %98 = arith.truncf %97 : vector<8x128xf32> to vector<8x128xbf16>
    %c8_35 = arith.constant 8 : index
    %c0_36 = arith.constant 0 : index
    %99 = vector.load %arg7[%c8_35, %c0_36] : memref<64x128xbf16, #tpu.memory_space<vmem>>, vector<8x128xbf16>
    tpu.vector_store %arg7[%c8_35, %c0_36], %98 {strides = array<i32>} : memref<64x128xbf16, #tpu.memory_space<vmem>>, vector<8x128xbf16>,
    %c16 = arith.constant 16 : index
    %c0_37 = arith.constant 0 : index
    %100 = vector.load %arg8[%c16, %c0_37] : memref<64x384xf32, #tpu.memory_space<vmem>>, vector<8x384xf32>
    %c16_38 = arith.constant 16 : index
    %c0_39 = arith.constant 0 : index
    %101 = vector.load %arg2[%c16_38, %c0_39] : memref<64x1xf32, #tpu.memory_space<vmem>>, vector<8x1xf32>
    %102 = arith.truncf %91 : vector<8x128xf32> to vector<8x128xbf16>
    %cst_40 = arith.constant dense<0.000000e+00> : vector<8x384xf32>
    %103 = tpu.matmul %102, %7, %cst_40 {dimension_numbers = #tpu.dot_dimension_numbers<[1], [0], [0], [1], [0, 0, 1, 1], [], []>} : vector<8x128xbf16>, vector<128x384xbf16>, vector<8x384xf32> -> vector<8x384xf32>
    %104 = vector.extract_strided_slice %100 {offsets = [0, 0], sizes = [8, 128], strides = [1, 1]} : vector<8x384xf32> to vector<8x128xf32>
    %105 = vector.extract_strided_slice %100 {offsets = [0, 128], sizes = [8, 128], strides = [1, 1]} : vector<8x384xf32> to vector<8x128xf32>
    %106 = vector.extract_strided_slice %100 {offsets = [0, 256], sizes = [8, 128], strides = [1, 1]} : vector<8x384xf32> to vector<8x128xf32>
    %107 = vector.extract_strided_slice %103 {offsets = [0, 0], sizes = [8, 128], strides = [1, 1]} : vector<8x384xf32> to vector<8x128xf32>
    %108 = vector.extract_strided_slice %103 {offsets = [0, 128], sizes = [8, 128], strides = [1, 1]} : vector<8x384xf32> to vector<8x128xf32>
    %109 = vector.extract_strided_slice %103 {offsets = [0, 256], sizes = [8, 128], strides = [1, 1]} : vector<8x384xf32> to vector<8x128xf32>
    %110 = arith.addf %104, %107 : vector<8x128xf32>
    %111 = arith.negf %110 : vector<8x128xf32>
    %112 = math.exp %111 : vector<8x128xf32>
    %cst_41 = arith.constant 1.000000e+00 : f32
    %113 = vector.broadcast %cst_41 : f32 to vector<8x128xf32>
    %114 = arith.addf %113, %112 : vector<8x128xf32>
    %115 = arith.divf %113, %114 : vector<8x128xf32>
    %116 = arith.addf %105, %108 : vector<8x128xf32>
    %117 = arith.negf %116 : vector<8x128xf32>
    %118 = math.exp %117 : vector<8x128xf32>
    %cst_42 = arith.constant 1.000000e+00 : f32
    %119 = vector.broadcast %cst_42 : f32 to vector<8x128xf32>
    %120 = arith.addf %119, %118 : vector<8x128xf32>
    %121 = arith.divf %119, %120 : vector<8x128xf32>
    %122 = vector.broadcast %8 : vector<1x128xf32> to vector<8x128xf32>
    %123 = arith.addf %109, %122 : vector<8x128xf32>
    %124 = arith.mulf %115, %123 : vector<8x128xf32>
    %125 = arith.addf %106, %124 : vector<8x128xf32>
    %126 = math.tanh %125 : vector<8x128xf32>
    %cst_43 = arith.constant 1.000000e+00 : f32
    %127 = vector.broadcast %cst_43 : f32 to vector<8x128xf32>
    %128 = arith.subf %127, %121 : vector<8x128xf32>
    %129 = arith.mulf %128, %126 : vector<8x128xf32>
    %130 = arith.mulf %121, %91 : vector<8x128xf32>
    %131 = arith.addf %129, %130 : vector<8x128xf32>
    %cst_44 = arith.constant 0.000000e+00 : f32
    %132 = vector.broadcast %cst_44 : f32 to vector<8x1xf32>
    %133 = arith.cmpf ogt, %101, %132 : vector<8x1xf32>
    %134 = vector.shape_cast %133 : vector<8x1xi1> to vector<8x1xi1>
    %135 = vector.broadcast %134 : vector<8x1xi1> to vector<8x128xi1>
    %136 = arith.select %135, %91, %131 : vector<8x128xi1>, vector<8x128xf32>
    %cst_45 = arith.constant 0.000000e+00 : f32
    %137 = vector.broadcast %cst_45 : f32 to vector<8x1xf32>
    %138 = arith.cmpf ogt, %101, %137 : vector<8x1xf32>
    %cst_46 = arith.constant 0.000000e+00 : f32
    %139 = vector.shape_cast %138 : vector<8x1xi1> to vector<8x1xi1>
    %140 = vector.broadcast %139 : vector<8x1xi1> to vector<8x128xi1>
    %141 = vector.broadcast %cst_46 : f32 to vector<8x128xf32>
    %142 = arith.select %140, %141, %136 : vector<8x128xi1>, vector<8x128xf32>
    %143 = arith.truncf %142 : vector<8x128xf32> to vector<8x128xbf16>
    %c16_47 = arith.constant 16 : index
    %c0_48 = arith.constant 0 : index
    %144 = vector.load %arg7[%c16_47, %c0_48] : memref<64x128xbf16, #tpu.memory_space<vmem>>, vector<8x128xbf16>
    tpu.vector_store %arg7[%c16_47, %c0_48], %143 {strides = array<i32>} : memref<64x128xbf16, #tpu.memory_space<vmem>>, vector<8x128xbf16>,
    %c24 = arith.constant 24 : index
    %c0_49 = arith.constant 0 : index
    %145 = vector.load %arg8[%c24, %c0_49] : memref<64x384xf32, #tpu.memory_space<vmem>>, vector<8x384xf32>
    %c24_50 = arith.constant 24 : index
    %c0_51 = arith.constant 0 : index
    %146 = vector.load %arg2[%c24_50, %c0_51] : memref<64x1xf32, #tpu.memory_space<vmem>>, vector<8x1xf32>
    %147 = arith.truncf %136 : vector<8x128xf32> to vector<8x128xbf16>
    %cst_52 = arith.constant dense<0.000000e+00> : vector<8x384xf32>
    %148 = tpu.matmul %147, %7, %cst_52 {dimension_numbers = #tpu.dot_dimension_numbers<[1], [0], [0], [1], [0, 0, 1, 1], [], []>} : vector<8x128xbf16>, vector<128x384xbf16>, vector<8x384xf32> -> vector<8x384xf32>
    %149 = vector.extract_strided_slice %145 {offsets = [0, 0], sizes = [8, 128], strides = [1, 1]} : vector<8x384xf32> to vector<8x128xf32>
    %150 = vector.extract_strided_slice %145 {offsets = [0, 128], sizes = [8, 128], strides = [1, 1]} : vector<8x384xf32> to vector<8x128xf32>
    %151 = vector.extract_strided_slice %145 {offsets = [0, 256], sizes = [8, 128], strides = [1, 1]} : vector<8x384xf32> to vector<8x128xf32>
    %152 = vector.extract_strided_slice %148 {offsets = [0, 0], sizes = [8, 128], strides = [1, 1]} : vector<8x384xf32> to vector<8x128xf32>
    %153 = vector.extract_strided_slice %148 {offsets = [0, 128], sizes = [8, 128], strides = [1, 1]} : vector<8x384xf32> to vector<8x128xf32>
    %154 = vector.extract_strided_slice %148 {offsets = [0, 256], sizes = [8, 128], strides = [1, 1]} : vector<8x384xf32> to vector<8x128xf32>
    %155 = arith.addf %149, %152 : vector<8x128xf32>
    %156 = arith.negf %155 : vector<8x128xf32>
    %157 = math.exp %156 : vector<8x128xf32>
    %cst_53 = arith.constant 1.000000e+00 : f32
    %158 = vector.broadcast %cst_53 : f32 to vector<8x128xf32>
    %159 = arith.addf %158, %157 : vector<8x128xf32>
    %160 = arith.divf %158, %159 : vector<8x128xf32>
    %161 = arith.addf %150, %153 : vector<8x128xf32>
    %162 = arith.negf %161 : vector<8x128xf32>
    %163 = math.exp %162 : vector<8x128xf32>
    %cst_54 = arith.constant 1.000000e+00 : f32
    %164 = vector.broadcast %cst_54 : f32 to vector<8x128xf32>
    %165 = arith.addf %164, %163 : vector<8x128xf32>
    %166 = arith.divf %164, %165 : vector<8x128xf32>
    %167 = vector.broadcast %8 : vector<1x128xf32> to vector<8x128xf32>
    %168 = arith.addf %154, %167 : vector<8x128xf32>
    %169 = arith.mulf %160, %168 : vector<8x128xf32>
    %170 = arith.addf %151, %169 : vector<8x128xf32>
    %171 = math.tanh %170 : vector<8x128xf32>
    %cst_55 = arith.constant 1.000000e+00 : f32
    %172 = vector.broadcast %cst_55 : f32 to vector<8x128xf32>
    %173 = arith.subf %172, %166 : vector<8x128xf32>
    %174 = arith.mulf %173, %171 : vector<8x128xf32>
    %175 = arith.mulf %166, %136 : vector<8x128xf32>
    %176 = arith.addf %174, %175 : vector<8x128xf32>
    %cst_56 = arith.constant 0.000000e+00 : f32
    %177 = vector.broadcast %cst_56 : f32 to vector<8x1xf32>
    %178 = arith.cmpf ogt, %146, %177 : vector<8x1xf32>
    %179 = vector.shape_cast %178 : vector<8x1xi1> to vector<8x1xi1>
    %180 = vector.broadcast %179 : vector<8x1xi1> to vector<8x128xi1>
    %181 = arith.select %180, %136, %176 : vector<8x128xi1>, vector<8x128xf32>
    %cst_57 = arith.constant 0.000000e+00 : f32
    %182 = vector.broadcast %cst_57 : f32 to vector<8x1xf32>
    %183 = arith.cmpf ogt, %146, %182 : vector<8x1xf32>
    %cst_58 = arith.constant 0.000000e+00 : f32
    %184 = vector.shape_cast %183 : vector<8x1xi1> to vector<8x1xi1>
    %185 = vector.broadcast %184 : vector<8x1xi1> to vector<8x128xi1>
    %186 = vector.broadcast %cst_58 : f32 to vector<8x128xf32>
    %187 = arith.select %185, %186, %181 : vector<8x128xi1>, vector<8x128xf32>
    %188 = arith.truncf %187 : vector<8x128xf32> to vector<8x128xbf16>
    %c24_59 = arith.constant 24 : index
    %c0_60 = arith.constant 0 : index
    %189 = vector.load %arg7[%c24_59, %c0_60] : memref<64x128xbf16, #tpu.memory_space<vmem>>, vector<8x128xbf16>
    tpu.vector_store %arg7[%c24_59, %c0_60], %188 {strides = array<i32>} : memref<64x128xbf16, #tpu.memory_space<vmem>>, vector<8x128xbf16>,
    %c32 = arith.constant 32 : index
    %c0_61 = arith.constant 0 : index
    %190 = vector.load %arg8[%c32, %c0_61] : memref<64x384xf32, #tpu.memory_space<vmem>>, vector<8x384xf32>
    %c32_62 = arith.constant 32 : index
    %c0_63 = arith.constant 0 : index
    %191 = vector.load %arg2[%c32_62, %c0_63] : memref<64x1xf32, #tpu.memory_space<vmem>>, vector<8x1xf32>
    %192 = arith.truncf %181 : vector<8x128xf32> to vector<8x128xbf16>
    %cst_64 = arith.constant dense<0.000000e+00> : vector<8x384xf32>
    %193 = tpu.matmul %192, %7, %cst_64 {dimension_numbers = #tpu.dot_dimension_numbers<[1], [0], [0], [1], [0, 0, 1, 1], [], []>} : vector<8x128xbf16>, vector<128x384xbf16>, vector<8x384xf32> -> vector<8x384xf32>
    %194 = vector.extract_strided_slice %190 {offsets = [0, 0], sizes = [8, 128], strides = [1, 1]} : vector<8x384xf32> to vector<8x128xf32>
    %195 = vector.extract_strided_slice %190 {offsets = [0, 128], sizes = [8, 128], strides = [1, 1]} : vector<8x384xf32> to vector<8x128xf32>
    %196 = vector.extract_strided_slice %190 {offsets = [0, 256], sizes = [8, 128], strides = [1, 1]} : vector<8x384xf32> to vector<8x128xf32>
    %197 = vector.extract_strided_slice %193 {offsets = [0, 0], sizes = [8, 128], strides = [1, 1]} : vector<8x384xf32> to vector<8x128xf32>
    %198 = vector.extract_strided_slice %193 {offsets = [0, 128], sizes = [8, 128], strides = [1, 1]} : vector<8x384xf32> to vector<8x128xf32>
    %199 = vector.extract_strided_slice %193 {offsets = [0, 256], sizes = [8, 128], strides = [1, 1]} : vector<8x384xf32> to vector<8x128xf32>
    %200 = arith.addf %194, %197 : vector<8x128xf32>
    %201 = arith.negf %200 : vector<8x128xf32>
    %202 = math.exp %201 : vector<8x128xf32>
    %cst_65 = arith.constant 1.000000e+00 : f32
    %203 = vector.broadcast %cst_65 : f32 to vector<8x128xf32>
    %204 = arith.addf %203, %202 : vector<8x128xf32>
    %205 = arith.divf %203, %204 : vector<8x128xf32>
    %206 = arith.addf %195, %198 : vector<8x128xf32>
    %207 = arith.negf %206 : vector<8x128xf32>
    %208 = math.exp %207 : vector<8x128xf32>
    %cst_66 = arith.constant 1.000000e+00 : f32
    %209 = vector.broadcast %cst_66 : f32 to vector<8x128xf32>
    %210 = arith.addf %209, %208 : vector<8x128xf32>
    %211 = arith.divf %209, %210 : vector<8x128xf32>
    %212 = vector.broadcast %8 : vector<1x128xf32> to vector<8x128xf32>
    %213 = arith.addf %199, %212 : vector<8x128xf32>
    %214 = arith.mulf %205, %213 : vector<8x128xf32>
    %215 = arith.addf %196, %214 : vector<8x128xf32>
    %216 = math.tanh %215 : vector<8x128xf32>
    %cst_67 = arith.constant 1.000000e+00 : f32
    %217 = vector.broadcast %cst_67 : f32 to vector<8x128xf32>
    %218 = arith.subf %217, %211 : vector<8x128xf32>
    %219 = arith.mulf %218, %216 : vector<8x128xf32>
    %220 = arith.mulf %211, %181 : vector<8x128xf32>
    %221 = arith.addf %219, %220 : vector<8x128xf32>
    %cst_68 = arith.constant 0.000000e+00 : f32
    %222 = vector.broadcast %cst_68 : f32 to vector<8x1xf32>
    %223 = arith.cmpf ogt, %191, %222 : vector<8x1xf32>
    %224 = vector.shape_cast %223 : vector<8x1xi1> to vector<8x1xi1>
    %225 = vector.broadcast %224 : vector<8x1xi1> to vector<8x128xi1>
    %226 = arith.select %225, %181, %221 : vector<8x128xi1>, vector<8x128xf32>
    %cst_69 = arith.constant 0.000000e+00 : f32
    %227 = vector.broadcast %cst_69 : f32 to vector<8x1xf32>
    %228 = arith.cmpf ogt, %191, %227 : vector<8x1xf32>
    %cst_70 = arith.constant 0.000000e+00 : f32
    %229 = vector.shape_cast %228 : vector<8x1xi1> to vector<8x1xi1>
    %230 = vector.broadcast %229 : vector<8x1xi1> to vector<8x128xi1>
    %231 = vector.broadcast %cst_70 : f32 to vector<8x128xf32>
    %232 = arith.select %230, %231, %226 : vector<8x128xi1>, vector<8x128xf32>
    %233 = arith.truncf %232 : vector<8x128xf32> to vector<8x128xbf16>
    %c32_71 = arith.constant 32 : index
    %c0_72 = arith.constant 0 : index
    %234 = vector.load %arg7[%c32_71, %c0_72] : memref<64x128xbf16, #tpu.memory_space<vmem>>, vector<8x128xbf16>
    tpu.vector_store %arg7[%c32_71, %c0_72], %233 {strides = array<i32>} : memref<64x128xbf16, #tpu.memory_space<vmem>>, vector<8x128xbf16>,
    %c40 = arith.constant 40 : index
    %c0_73 = arith.constant 0 : index
    %235 = vector.load %arg8[%c40, %c0_73] : memref<64x384xf32, #tpu.memory_space<vmem>>, vector<8x384xf32>
    %c40_74 = arith.constant 40 : index
    %c0_75 = arith.constant 0 : index
    %236 = vector.load %arg2[%c40_74, %c0_75] : memref<64x1xf32, #tpu.memory_space<vmem>>, vector<8x1xf32>
    %237 = arith.truncf %226 : vector<8x128xf32> to vector<8x128xbf16>
    %cst_76 = arith.constant dense<0.000000e+00> : vector<8x384xf32>
    %238 = tpu.matmul %237, %7, %cst_76 {dimension_numbers = #tpu.dot_dimension_numbers<[1], [0], [0], [1], [0, 0, 1, 1], [], []>} : vector<8x128xbf16>, vector<128x384xbf16>, vector<8x384xf32> -> vector<8x384xf32>
    %239 = vector.extract_strided_slice %235 {offsets = [0, 0], sizes = [8, 128], strides = [1, 1]} : vector<8x384xf32> to vector<8x128xf32>
    %240 = vector.extract_strided_slice %235 {offsets = [0, 128], sizes = [8, 128], strides = [1, 1]} : vector<8x384xf32> to vector<8x128xf32>
    %241 = vector.extract_strided_slice %235 {offsets = [0, 256], sizes = [8, 128], strides = [1, 1]} : vector<8x384xf32> to vector<8x128xf32>
    %242 = vector.extract_strided_slice %238 {offsets = [0, 0], sizes = [8, 128], strides = [1, 1]} : vector<8x384xf32> to vector<8x128xf32>
    %243 = vector.extract_strided_slice %238 {offsets = [0, 128], sizes = [8, 128], strides = [1, 1]} : vector<8x384xf32> to vector<8x128xf32>
    %244 = vector.extract_strided_slice %238 {offsets = [0, 256], sizes = [8, 128], strides = [1, 1]} : vector<8x384xf32> to vector<8x128xf32>
    %245 = arith.addf %239, %242 : vector<8x128xf32>
    %246 = arith.negf %245 : vector<8x128xf32>
    %247 = math.exp %246 : vector<8x128xf32>
    %cst_77 = arith.constant 1.000000e+00 : f32
    %248 = vector.broadcast %cst_77 : f32 to vector<8x128xf32>
    %249 = arith.addf %248, %247 : vector<8x128xf32>
    %250 = arith.divf %248, %249 : vector<8x128xf32>
    %251 = arith.addf %240, %243 : vector<8x128xf32>
    %252 = arith.negf %251 : vector<8x128xf32>
    %253 = math.exp %252 : vector<8x128xf32>
    %cst_78 = arith.constant 1.000000e+00 : f32
    %254 = vector.broadcast %cst_78 : f32 to vector<8x128xf32>
    %255 = arith.addf %254, %253 : vector<8x128xf32>
    %256 = arith.divf %254, %255 : vector<8x128xf32>
    %257 = vector.broadcast %8 : vector<1x128xf32> to vector<8x128xf32>
    %258 = arith.addf %244, %257 : vector<8x128xf32>
    %259 = arith.mulf %250, %258 : vector<8x128xf32>
    %260 = arith.addf %241, %259 : vector<8x128xf32>
    %261 = math.tanh %260 : vector<8x128xf32>
    %cst_79 = arith.constant 1.000000e+00 : f32
    %262 = vector.broadcast %cst_79 : f32 to vector<8x128xf32>
    %263 = arith.subf %262, %256 : vector<8x128xf32>
    %264 = arith.mulf %263, %261 : vector<8x128xf32>
    %265 = arith.mulf %256, %226 : vector<8x128xf32>
    %266 = arith.addf %264, %265 : vector<8x128xf32>
    %cst_80 = arith.constant 0.000000e+00 : f32
    %267 = vector.broadcast %cst_80 : f32 to vector<8x1xf32>
    %268 = arith.cmpf ogt, %236, %267 : vector<8x1xf32>
    %269 = vector.shape_cast %268 : vector<8x1xi1> to vector<8x1xi1>
    %270 = vector.broadcast %269 : vector<8x1xi1> to vector<8x128xi1>
    %271 = arith.select %270, %226, %266 : vector<8x128xi1>, vector<8x128xf32>
    %cst_81 = arith.constant 0.000000e+00 : f32
    %272 = vector.broadcast %cst_81 : f32 to vector<8x1xf32>
    %273 = arith.cmpf ogt, %236, %272 : vector<8x1xf32>
    %cst_82 = arith.constant 0.000000e+00 : f32
    %274 = vector.shape_cast %273 : vector<8x1xi1> to vector<8x1xi1>
    %275 = vector.broadcast %274 : vector<8x1xi1> to vector<8x128xi1>
    %276 = vector.broadcast %cst_82 : f32 to vector<8x128xf32>
    %277 = arith.select %275, %276, %271 : vector<8x128xi1>, vector<8x128xf32>
    %278 = arith.truncf %277 : vector<8x128xf32> to vector<8x128xbf16>
    %c40_83 = arith.constant 40 : index
    %c0_84 = arith.constant 0 : index
    %279 = vector.load %arg7[%c40_83, %c0_84] : memref<64x128xbf16, #tpu.memory_space<vmem>>, vector<8x128xbf16>
    tpu.vector_store %arg7[%c40_83, %c0_84], %278 {strides = array<i32>} : memref<64x128xbf16, #tpu.memory_space<vmem>>, vector<8x128xbf16>,
    %c48 = arith.constant 48 : index
    %c0_85 = arith.constant 0 : index
    %280 = vector.load %arg8[%c48, %c0_85] : memref<64x384xf32, #tpu.memory_space<vmem>>, vector<8x384xf32>
    %c48_86 = arith.constant 48 : index
    %c0_87 = arith.constant 0 : index
    %281 = vector.load %arg2[%c48_86, %c0_87] : memref<64x1xf32, #tpu.memory_space<vmem>>, vector<8x1xf32>
    %282 = arith.truncf %271 : vector<8x128xf32> to vector<8x128xbf16>
    %cst_88 = arith.constant dense<0.000000e+00> : vector<8x384xf32>
    %283 = tpu.matmul %282, %7, %cst_88 {dimension_numbers = #tpu.dot_dimension_numbers<[1], [0], [0], [1], [0, 0, 1, 1], [], []>} : vector<8x128xbf16>, vector<128x384xbf16>, vector<8x384xf32> -> vector<8x384xf32>
    %284 = vector.extract_strided_slice %280 {offsets = [0, 0], sizes = [8, 128], strides = [1, 1]} : vector<8x384xf32> to vector<8x128xf32>
    %285 = vector.extract_strided_slice %280 {offsets = [0, 128], sizes = [8, 128], strides = [1, 1]} : vector<8x384xf32> to vector<8x128xf32>
    %286 = vector.extract_strided_slice %280 {offsets = [0, 256], sizes = [8, 128], strides = [1, 1]} : vector<8x384xf32> to vector<8x128xf32>
    %287 = vector.extract_strided_slice %283 {offsets = [0, 0], sizes = [8, 128], strides = [1, 1]} : vector<8x384xf32> to vector<8x128xf32>
    %288 = vector.extract_strided_slice %283 {offsets = [0, 128], sizes = [8, 128], strides = [1, 1]} : vector<8x384xf32> to vector<8x128xf32>
    %289 = vector.extract_strided_slice %283 {offsets = [0, 256], sizes = [8, 128], strides = [1, 1]} : vector<8x384xf32> to vector<8x128xf32>
    %290 = arith.addf %284, %287 : vector<8x128xf32>
    %291 = arith.negf %290 : vector<8x128xf32>
    %292 = math.exp %291 : vector<8x128xf32>
    %cst_89 = arith.constant 1.000000e+00 : f32
    %293 = vector.broadcast %cst_89 : f32 to vector<8x128xf32>
    %294 = arith.addf %293, %292 : vector<8x128xf32>
    %295 = arith.divf %293, %294 : vector<8x128xf32>
    %296 = arith.addf %285, %288 : vector<8x128xf32>
    %297 = arith.negf %296 : vector<8x128xf32>
    %298 = math.exp %297 : vector<8x128xf32>
    %cst_90 = arith.constant 1.000000e+00 : f32
    %299 = vector.broadcast %cst_90 : f32 to vector<8x128xf32>
    %300 = arith.addf %299, %298 : vector<8x128xf32>
    %301 = arith.divf %299, %300 : vector<8x128xf32>
    %302 = vector.broadcast %8 : vector<1x128xf32> to vector<8x128xf32>
    %303 = arith.addf %289, %302 : vector<8x128xf32>
    %304 = arith.mulf %295, %303 : vector<8x128xf32>
    %305 = arith.addf %286, %304 : vector<8x128xf32>
    %306 = math.tanh %305 : vector<8x128xf32>
    %cst_91 = arith.constant 1.000000e+00 : f32
    %307 = vector.broadcast %cst_91 : f32 to vector<8x128xf32>
    %308 = arith.subf %307, %301 : vector<8x128xf32>
    %309 = arith.mulf %308, %306 : vector<8x128xf32>
    %310 = arith.mulf %301, %271 : vector<8x128xf32>
    %311 = arith.addf %309, %310 : vector<8x128xf32>
    %cst_92 = arith.constant 0.000000e+00 : f32
    %312 = vector.broadcast %cst_92 : f32 to vector<8x1xf32>
    %313 = arith.cmpf ogt, %281, %312 : vector<8x1xf32>
    %314 = vector.shape_cast %313 : vector<8x1xi1> to vector<8x1xi1>
    %315 = vector.broadcast %314 : vector<8x1xi1> to vector<8x128xi1>
    %316 = arith.select %315, %271, %311 : vector<8x128xi1>, vector<8x128xf32>
    %cst_93 = arith.constant 0.000000e+00 : f32
    %317 = vector.broadcast %cst_93 : f32 to vector<8x1xf32>
    %318 = arith.cmpf ogt, %281, %317 : vector<8x1xf32>
    %cst_94 = arith.constant 0.000000e+00 : f32
    %319 = vector.shape_cast %318 : vector<8x1xi1> to vector<8x1xi1>
    %320 = vector.broadcast %319 : vector<8x1xi1> to vector<8x128xi1>
    %321 = vector.broadcast %cst_94 : f32 to vector<8x128xf32>
    %322 = arith.select %320, %321, %316 : vector<8x128xi1>, vector<8x128xf32>
    %323 = arith.truncf %322 : vector<8x128xf32> to vector<8x128xbf16>
    %c48_95 = arith.constant 48 : index
    %c0_96 = arith.constant 0 : index
    %324 = vector.load %arg7[%c48_95, %c0_96] : memref<64x128xbf16, #tpu.memory_space<vmem>>, vector<8x128xbf16>
    tpu.vector_store %arg7[%c48_95, %c0_96], %323 {strides = array<i32>} : memref<64x128xbf16, #tpu.memory_space<vmem>>, vector<8x128xbf16>,
    %c56 = arith.constant 56 : index
    %c0_97 = arith.constant 0 : index
    %325 = vector.load %arg8[%c56, %c0_97] : memref<64x384xf32, #tpu.memory_space<vmem>>, vector<8x384xf32>
    %c56_98 = arith.constant 56 : index
    %c0_99 = arith.constant 0 : index
    %326 = vector.load %arg2[%c56_98, %c0_99] : memref<64x1xf32, #tpu.memory_space<vmem>>, vector<8x1xf32>
    %327 = arith.truncf %316 : vector<8x128xf32> to vector<8x128xbf16>
    %cst_100 = arith.constant dense<0.000000e+00> : vector<8x384xf32>
    %328 = tpu.matmul %327, %7, %cst_100 {dimension_numbers = #tpu.dot_dimension_numbers<[1], [0], [0], [1], [0, 0, 1, 1], [], []>} : vector<8x128xbf16>, vector<128x384xbf16>, vector<8x384xf32> -> vector<8x384xf32>
    %329 = vector.extract_strided_slice %325 {offsets = [0, 0], sizes = [8, 128], strides = [1, 1]} : vector<8x384xf32> to vector<8x128xf32>
    %330 = vector.extract_strided_slice %325 {offsets = [0, 128], sizes = [8, 128], strides = [1, 1]} : vector<8x384xf32> to vector<8x128xf32>
    %331 = vector.extract_strided_slice %325 {offsets = [0, 256], sizes = [8, 128], strides = [1, 1]} : vector<8x384xf32> to vector<8x128xf32>
    %332 = vector.extract_strided_slice %328 {offsets = [0, 0], sizes = [8, 128], strides = [1, 1]} : vector<8x384xf32> to vector<8x128xf32>
    %333 = vector.extract_strided_slice %328 {offsets = [0, 128], sizes = [8, 128], strides = [1, 1]} : vector<8x384xf32> to vector<8x128xf32>
    %334 = vector.extract_strided_slice %328 {offsets = [0, 256], sizes = [8, 128], strides = [1, 1]} : vector<8x384xf32> to vector<8x128xf32>
    %335 = arith.addf %329, %332 : vector<8x128xf32>
    %336 = arith.negf %335 : vector<8x128xf32>
    %337 = math.exp %336 : vector<8x128xf32>
    %cst_101 = arith.constant 1.000000e+00 : f32
    %338 = vector.broadcast %cst_101 : f32 to vector<8x128xf32>
    %339 = arith.addf %338, %337 : vector<8x128xf32>
    %340 = arith.divf %338, %339 : vector<8x128xf32>
    %341 = arith.addf %330, %333 : vector<8x128xf32>
    %342 = arith.negf %341 : vector<8x128xf32>
    %343 = math.exp %342 : vector<8x128xf32>
    %cst_102 = arith.constant 1.000000e+00 : f32
    %344 = vector.broadcast %cst_102 : f32 to vector<8x128xf32>
    %345 = arith.addf %344, %343 : vector<8x128xf32>
    %346 = arith.divf %344, %345 : vector<8x128xf32>
    %347 = vector.broadcast %8 : vector<1x128xf32> to vector<8x128xf32>
    %348 = arith.addf %334, %347 : vector<8x128xf32>
    %349 = arith.mulf %340, %348 : vector<8x128xf32>
    %350 = arith.addf %331, %349 : vector<8x128xf32>
    %351 = math.tanh %350 : vector<8x128xf32>
    %cst_103 = arith.constant 1.000000e+00 : f32
    %352 = vector.broadcast %cst_103 : f32 to vector<8x128xf32>
    %353 = arith.subf %352, %346 : vector<8x128xf32>
    %354 = arith.mulf %353, %351 : vector<8x128xf32>
    %355 = arith.mulf %346, %316 : vector<8x128xf32>
    %356 = arith.addf %354, %355 : vector<8x128xf32>
    %cst_104 = arith.constant 0.000000e+00 : f32
    %357 = vector.broadcast %cst_104 : f32 to vector<8x1xf32>
    %358 = arith.cmpf ogt, %326, %357 : vector<8x1xf32>
    %359 = vector.shape_cast %358 : vector<8x1xi1> to vector<8x1xi1>
    %360 = vector.broadcast %359 : vector<8x1xi1> to vector<8x128xi1>
    %361 = arith.select %360, %316, %356 : vector<8x128xi1>, vector<8x128xf32>
    %cst_105 = arith.constant 0.000000e+00 : f32
    %362 = vector.broadcast %cst_105 : f32 to vector<8x1xf32>
    %363 = arith.cmpf ogt, %326, %362 : vector<8x1xf32>
    %cst_106 = arith.constant 0.000000e+00 : f32
    %364 = vector.shape_cast %363 : vector<8x1xi1> to vector<8x1xi1>
    %365 = vector.broadcast %364 : vector<8x1xi1> to vector<8x128xi1>
    %366 = vector.broadcast %cst_106 : f32 to vector<8x128xf32>
    %367 = arith.select %365, %366, %361 : vector<8x128xi1>, vector<8x128xf32>
    %368 = arith.truncf %367 : vector<8x128xf32> to vector<8x128xbf16>
    %c56_107 = arith.constant 56 : index
    %c0_108 = arith.constant 0 : index
    %369 = vector.load %arg7[%c56_107, %c0_108] : memref<64x128xbf16, #tpu.memory_space<vmem>>, vector<8x128xbf16>
    tpu.vector_store %arg7[%c56_107, %c0_108], %368 {strides = array<i32>} : memref<64x128xbf16, #tpu.memory_space<vmem>>, vector<8x128xbf16>,
    return
  }
  func.func @transform_0(%arg0: i32) -> (i32, i32) {
    %c0_i32 = arith.constant 0 : i32
    %c0_i32_0 = arith.constant 0 : i32
    %c0_i32_1 = arith.constant 0 : i32
    return %c0_i32, %c0_i32_0 : i32, i32
  }
  func.func @transform_1(%arg0: i32) -> (i32, i32) {
    %c0_i32 = arith.constant 0 : i32
    %c0_i32_0 = arith.constant 0 : i32
    %c0_i32_1 = arith.constant 0 : i32
    return %c0_i32, %c0_i32_0 : i32, i32
  }
  func.func @transform_2(%arg0: i32) -> (i32, i32) {
    %c0_i32 = arith.constant 0 : i32
    %c0_i32_0 = arith.constant 0 : i32
    %c0_i32_1 = arith.constant 0 : i32
    return %c0_i32, %c0_i32_0 : i32, i32
  }
  func.func @transform_3(%arg0: i32) -> (i32, i32) {
    %c0_i32 = arith.constant 0 : i32
    %c0_i32_0 = arith.constant 0 : i32
    %c0_i32_1 = arith.constant 0 : i32
    return %c0_i32, %c0_i32_0 : i32, i32
  }
  func.func @transform_4(%arg0: i32) -> (i32, i32) {
    %c0_i32 = arith.constant 0 : i32
    %c0_i32_0 = arith.constant 0 : i32
    %c0_i32_1 = arith.constant 0 : i32
    return %c0_i32, %c0_i32_0 : i32, i32
  }
  func.func @transform_5(%arg0: i32) -> (i32, i32) {
    %c0_i32 = arith.constant 0 : i32
    %c0_i32_0 = arith.constant 0 : i32
    %c0_i32_1 = arith.constant 0 : i32
    return %c0_i32, %c0_i32_0 : i32, i32
  }
  func.func @transform_6(%arg0: i32) -> (i32, i32) {
    %c0_i32 = arith.constant 0 : i32
    %c0_i32_0 = arith.constant 0 : i32
    %c0_i32_1 = arith.constant 0 : i32
    return %c0_i32, %c0_i32_0 : i32, i32
  }
}

module attributes {stable_mosaic.version = 11 : i64} {
  func.func @_gen_kernel(%arg0: i32, %arg1: memref<64x256xbf16, #tpu.memory_space<vmem>>, %arg2: memref<256x128xbf16, #tpu.memory_space<vmem>>, %arg3: memref<1x128xf32, #tpu.memory_space<vmem>>, %arg4: memref<128x512xbf16, #tpu.memory_space<vmem>>, %arg5: memref<1x512xf32, #tpu.memory_space<vmem>>, %arg6: memref<1x512xf32, #tpu.memory_space<vmem>>, %arg7: memref<64x512xbf16, #tpu.memory_space<vmem>>) attributes {dimension_semantics = [#tpu.dimension_semantics<parallel>], iteration_bounds = array<i64: 1>, scalar_prefetch = 0 : i64, scratch_operands = 0 : i64, tpu.core_type = #tpu.core_type<tc>, window_params = [{transform_indices = @transform_0, window_bounds = array<i64: 64, 256>}, {pipeline_mode = #tpu.pipeline_mode<synchronous>, transform_indices = @transform_1, window_bounds = array<i64: 256, 128>}, {pipeline_mode = #tpu.pipeline_mode<synchronous>, transform_indices = @transform_2, window_bounds = array<i64: 1, 128>}, {pipeline_mode = #tpu.pipeline_mode<synchronous>, transform_indices = @transform_3, window_bounds = array<i64: 128, 512>}, {pipeline_mode = #tpu.pipeline_mode<synchronous>, transform_indices = @transform_4, window_bounds = array<i64: 1, 512>}, {pipeline_mode = #tpu.pipeline_mode<synchronous>, transform_indices = @transform_5, window_bounds = array<i64: 1, 512>}, {transform_indices = @transform_6, window_bounds = array<i64: 64, 512>}]} {
    %c0 = arith.constant 0 : index
    %c0_0 = arith.constant 0 : index
    %0 = vector.load %arg1[%c0, %c0_0] : memref<64x256xbf16, #tpu.memory_space<vmem>>, vector<64x256xbf16>
    %c0_1 = arith.constant 0 : index
    %c0_2 = arith.constant 0 : index
    %1 = vector.load %arg2[%c0_1, %c0_2] : memref<256x128xbf16, #tpu.memory_space<vmem>>, vector<256x128xbf16>
    %cst = arith.constant dense<0.000000e+00> : vector<64x128xf32>
    %2 = tpu.matmul %0, %1, %cst {dimension_numbers = #tpu.dot_dimension_numbers<[1], [0], [0], [1], [0, 0, 1, 1], [], []>} : vector<64x256xbf16>, vector<256x128xbf16>, vector<64x128xf32> -> vector<64x128xf32>
    %c0_3 = arith.constant 0 : index
    %c0_4 = arith.constant 0 : index
    %3 = vector.load %arg3[%c0_3, %c0_4] : memref<1x128xf32, #tpu.memory_space<vmem>>, vector<1x128xf32>
    %4 = vector.broadcast %3 : vector<1x128xf32> to vector<64x128xf32>
    %5 = arith.addf %2, %4 : vector<64x128xf32>
    %6 = math.tanh %5 : vector<64x128xf32>
    %7 = arith.truncf %6 : vector<64x128xf32> to vector<64x128xbf16>
    %c0_5 = arith.constant 0 : index
    %c0_6 = arith.constant 0 : index
    %8 = vector.load %arg4[%c0_5, %c0_6] : memref<128x512xbf16, #tpu.memory_space<vmem>>, vector<128x512xbf16>
    %cst_7 = arith.constant dense<0.000000e+00> : vector<64x512xf32>
    %9 = tpu.matmul %7, %8, %cst_7 {dimension_numbers = #tpu.dot_dimension_numbers<[1], [0], [0], [1], [0, 0, 1, 1], [], []>} : vector<64x128xbf16>, vector<128x512xbf16>, vector<64x512xf32> -> vector<64x512xf32>
    %c0_8 = arith.constant 0 : index
    %c0_9 = arith.constant 0 : index
    %10 = vector.load %arg5[%c0_8, %c0_9] : memref<1x512xf32, #tpu.memory_space<vmem>>, vector<1x512xf32>
    %11 = vector.broadcast %10 : vector<1x512xf32> to vector<64x512xf32>
    %12 = arith.addf %9, %11 : vector<64x512xf32>
    %cst_10 = arith.constant dense<0xFF800000> : vector<64xf32>
    %13 = vector.multi_reduction <maximumf>, %12, %cst_10 [1] : vector<64x512xf32> to vector<64xf32>
    %14 = vector.shape_cast %13 : vector<64xf32> to vector<64x1xf32>
    %15 = vector.broadcast %14 : vector<64x1xf32> to vector<64x512xf32>
    %16 = arith.subf %12, %15 : vector<64x512xf32>
    %17 = math.exp %16 : vector<64x512xf32>
    %cst_11 = arith.constant dense<0.000000e+00> : vector<64xf32>
    %18 = vector.multi_reduction <add>, %17, %cst_11 [1] : vector<64x512xf32> to vector<64xf32>
    %19 = vector.shape_cast %18 : vector<64xf32> to vector<64x1xf32>
    %20 = math.log %19 : vector<64x1xf32>
    %21 = arith.addf %20, %14 : vector<64x1xf32>
    %22 = vector.broadcast %21 : vector<64x1xf32> to vector<64x512xf32>
    %23 = arith.subf %12, %22 : vector<64x512xf32>
    %c0_12 = arith.constant 0 : index
    %c0_13 = arith.constant 0 : index
    %24 = vector.load %arg6[%c0_12, %c0_13] : memref<1x512xf32, #tpu.memory_space<vmem>>, vector<1x512xf32>
    %25 = vector.broadcast %24 : vector<1x512xf32> to vector<64x512xf32>
    %26 = arith.addf %23, %25 : vector<64x512xf32>
    %27 = arith.truncf %26 : vector<64x512xf32> to vector<64x512xbf16>
    %c0_14 = arith.constant 0 : index
    %c0_15 = arith.constant 0 : index
    %28 = vector.load %arg7[%c0_14, %c0_15] : memref<64x512xbf16, #tpu.memory_space<vmem>>, vector<64x512xbf16>
    tpu.vector_store %arg7[%c0_14, %c0_15], %27 {strides = array<i32>} : memref<64x512xbf16, #tpu.memory_space<vmem>>, vector<64x512xbf16>,
    return
  }
  func.func @transform_0(%arg0: i32) -> (i32, i32) {
    %c0_i32 = arith.constant 0 : i32
    %c0_i32_0 = arith.constant 0 : i32
    return %arg0, %c0_i32 : i32, i32
  }
  func.func @transform_1(%arg0: i32) -> (i32, i32) {
    %c0_i32 = arith.constant 0 : i32
    %c0_i32_0 = arith.constant 0 : i32
    %c0_i32_1 = arith.constant 0 : i32
    return %c0_i32, %c0_i32_0 : i32, i32
  }
  func.func @transform_2(%arg0: i32) -> (i32, i32) {
    %c0_i32 = arith.constant 0 : i32
    %c0_i32_0 = arith.constant 0 : i32
    %c0_i32_1 = arith.constant 0 : i32
    return %c0_i32, %c0_i32_0 : i32, i32
  }
  func.func @transform_3(%arg0: i32) -> (i32, i32) {
    %c0_i32 = arith.constant 0 : i32
    %c0_i32_0 = arith.constant 0 : i32
    %c0_i32_1 = arith.constant 0 : i32
    return %c0_i32, %c0_i32_0 : i32, i32
  }
  func.func @transform_4(%arg0: i32) -> (i32, i32) {
    %c0_i32 = arith.constant 0 : i32
    %c0_i32_0 = arith.constant 0 : i32
    %c0_i32_1 = arith.constant 0 : i32
    return %c0_i32, %c0_i32_0 : i32, i32
  }
  func.func @transform_5(%arg0: i32) -> (i32, i32) {
    %c0_i32 = arith.constant 0 : i32
    %c0_i32_0 = arith.constant 0 : i32
    %c0_i32_1 = arith.constant 0 : i32
    return %c0_i32, %c0_i32_0 : i32, i32
  }
  func.func @transform_6(%arg0: i32) -> (i32, i32) {
    %c0_i32 = arith.constant 0 : i32
    %c0_i32_0 = arith.constant 0 : i32
    return %arg0, %c0_i32 : i32, i32
  }
}

module attributes {stable_mosaic.version = 11 : i64} {
  func.func @_gru_kernel(%arg0: i32, %arg1: memref<64x128xbf16, #tpu.memory_space<vmem>>, %arg2: memref<64x1xf32, #tpu.memory_space<vmem>>, %arg3: memref<128x384xbf16, #tpu.memory_space<vmem>>, %arg4: memref<128x384xbf16, #tpu.memory_space<vmem>>, %arg5: memref<1x384xf32, #tpu.memory_space<vmem>>, %arg6: memref<1x128xf32, #tpu.memory_space<vmem>>, %arg7: memref<64x128xbf16, #tpu.memory_space<vmem>>, %arg8: memref<64x384xf32, #tpu.memory_space<vmem>>) attributes {dimension_semantics = [#tpu.dimension_semantics<arbitrary>], iteration_bounds = array<i64: 1>, scalar_prefetch = 0 : i64, scratch_operands = 1 : i64, tpu.core_type = #tpu.core_type<tc>, window_params = [{pipeline_mode = #tpu.pipeline_mode<synchronous>, transform_indices = @transform_0, window_bounds = array<i64: 64, 128>}, {pipeline_mode = #tpu.pipeline_mode<synchronous>, transform_indices = @transform_1, window_bounds = array<i64: 64, 1>}, {pipeline_mode = #tpu.pipeline_mode<synchronous>, transform_indices = @transform_2, window_bounds = array<i64: 128, 384>}, {pipeline_mode = #tpu.pipeline_mode<synchronous>, transform_indices = @transform_3, window_bounds = array<i64: 128, 384>}, {pipeline_mode = #tpu.pipeline_mode<synchronous>, transform_indices = @transform_4, window_bounds = array<i64: 1, 384>}, {pipeline_mode = #tpu.pipeline_mode<synchronous>, transform_indices = @transform_5, window_bounds = array<i64: 1, 128>}, {pipeline_mode = #tpu.pipeline_mode<synchronous>, transform_indices = @transform_6, window_bounds = array<i64: 64, 128>}]} {
    %c0 = arith.constant 0 : index
    %c0_0 = arith.constant 0 : index
    %0 = vector.load %arg1[%c0, %c0_0] : memref<64x128xbf16, #tpu.memory_space<vmem>>, vector<64x128xbf16>
    %c0_1 = arith.constant 0 : index
    %c0_2 = arith.constant 0 : index
    %1 = vector.load %arg3[%c0_1, %c0_2] : memref<128x384xbf16, #tpu.memory_space<vmem>>, vector<128x384xbf16>
    %cst = arith.constant dense<0.000000e+00> : vector<64x384xf32>
    %2 = tpu.matmul %0, %1, %cst {dimension_numbers = #tpu.dot_dimension_numbers<[1], [0], [0], [1], [0, 0, 1, 1], [], []>} : vector<64x128xbf16>, vector<128x384xbf16>, vector<64x384xf32> -> vector<64x384xf32>
    %c0_3 = arith.constant 0 : index
    %c0_4 = arith.constant 0 : index
    %3 = vector.load %arg5[%c0_3, %c0_4] : memref<1x384xf32, #tpu.memory_space<vmem>>, vector<1x384xf32>
    %4 = vector.broadcast %3 : vector<1x384xf32> to vector<64x384xf32>
    %5 = arith.addf %2, %4 : vector<64x384xf32>
    %c0_5 = arith.constant 0 : index
    %c0_6 = arith.constant 0 : index
    %6 = vector.load %arg8[%c0_5, %c0_6] : memref<64x384xf32, #tpu.memory_space<vmem>>, vector<64x384xf32>
    tpu.vector_store %arg8[%c0_5, %c0_6], %5 {strides = array<i32>} : memref<64x384xf32, #tpu.memory_space<vmem>>, vector<64x384xf32>,
    %c0_7 = arith.constant 0 : index
    %c0_8 = arith.constant 0 : index
    %7 = vector.load %arg4[%c0_7, %c0_8] : memref<128x384xbf16, #tpu.memory_space<vmem>>, vector<128x384xbf16>
    %c0_9 = arith.constant 0 : index
    %c0_10 = arith.constant 0 : index
    %8 = vector.load %arg6[%c0_9, %c0_10] : memref<1x128xf32, #tpu.memory_space<vmem>>, vector<1x128xf32>
    %cst_11 = arith.constant 0.000000e+00 : f32
    %9 = vector.broadcast %cst_11 : f32 to vector<8x128xf32>
    %c0_12 = arith.constant 0 : index
    %c0_13 = arith.constant 0 : index
    %10 = vector.load %arg8[%c0_12, %c0_13] : memref<64x384xf32, #tpu.memory_space<vmem>>, vector<8x384xf32>
    %c0_14 = arith.constant 0 : index
    %c0_15 = arith.constant 0 : index
    %11 = vector.load %arg2[%c0_14, %c0_15] : memref<64x1xf32, #tpu.memory_space<vmem>>, vector<8x1xf32>
    %12 = arith.truncf %9 : vector<8x128xf32> to vector<8x128xbf16>
    %cst_16 = arith.constant dense<0.000000e+00> : vector<8x384xf32>
    %13 = tpu.matmul %12, %7, %cst_16 {dimension_numbers = #tpu.dot_dimension_numbers<[1], [0], [0], [1], [0, 0, 1, 1], [], []>} : vector<8x128xbf16>, vector<128x384xbf16>, vector<8x384xf32> -> vector<8x384xf32>
    %14 = vector.extract_strided_slice %10 {offsets = [0, 0], sizes = [8, 128], strides = [1, 1]} : vector<8x384xf32> to vector<8x128xf32>
    %15 = vector.extract_strided_slice %10 {offsets = [0, 128], sizes = [8, 128], strides = [1, 1]} : vector<8x384xf32> to vector<8x128xf32>
    %16 = vector.extract_strided_slice %10 {offsets = [0, 256], sizes = [8, 128], strides = [1, 1]} : vector<8x384xf32> to vector<8x128xf32>
    %17 = vector.extract_strided_slice %13 {offsets = [0, 0], sizes = [8, 128], strides = [1, 1]} : vector<8x384xf32> to vector<8x128xf32>
    %18 = vector.extract_strided_slice %13 {offsets = [0, 128], sizes = [8, 128], strides = [1, 1]} : vector<8x384xf32> to vector<8x128xf32>
    %19 = vector.extract_strided_slice %13 {offsets = [0, 256], sizes = [8, 128], strides = [1, 1]} : vector<8x384xf32> to vector<8x128xf32>
    %20 = arith.addf %14, %17 : vector<8x128xf32>
    %21 = arith.negf %20 : vector<8x128xf32>
    %22 = math.exp %21 : vector<8x128xf32>
    %cst_17 = arith.constant 1.000000e+00 : f32
    %23 = vector.broadcast %cst_17 : f32 to vector<8x128xf32>
    %24 = arith.addf %23, %22 : vector<8x128xf32>
    %25 = arith.divf %23, %24 : vector<8x128xf32>
    %26 = arith.addf %15, %18 : vector<8x128xf32>
    %27 = arith.negf %26 : vector<8x128xf32>
    %28 = math.exp %27 : vector<8x128xf32>
    %cst_18 = arith.constant 1.000000e+00 : f32
    %29 = vector.broadcast %cst_18 : f32 to vector<8x128xf32>
    %30 = arith.addf %29, %28 : vector<8x128xf32>
    %31 = arith.divf %29, %30 : vector<8x128xf32>
    %32 = vector.broadcast %8 : vector<1x128xf32> to vector<8x128xf32>
    %33 = arith.addf %19, %32 : vector<8x128xf32>
    %34 = arith.mulf %25, %33 : vector<8x128xf32>
    %35 = arith.addf %16, %34 : vector<8x128xf32>
    %36 = math.tanh %35 : vector<8x128xf32>
    %cst_19 = arith.constant 1.000000e+00 : f32
    %37 = vector.broadcast %cst_19 : f32 to vector<8x128xf32>
    %38 = arith.subf %37, %31 : vector<8x128xf32>
    %39 = arith.mulf %38, %36 : vector<8x128xf32>
    %40 = arith.mulf %31, %9 : vector<8x128xf32>
    %41 = arith.addf %39, %40 : vector<8x128xf32>
    %cst_20 = arith.constant 0.000000e+00 : f32
    %42 = vector.broadcast %cst_20 : f32 to vector<8x1xf32>
    %43 = arith.cmpf ogt, %11, %42 : vector<8x1xf32>
    %44 = vector.shape_cast %43 : vector<8x1xi1> to vector<8x1xi1>
    %45 = vector.broadcast %44 : vector<8x1xi1> to vector<8x128xi1>
    %46 = arith.select %45, %9, %41 : vector<8x128xi1>, vector<8x128xf32>
    %cst_21 = arith.constant 0.000000e+00 : f32
    %47 = vector.broadcast %cst_21 : f32 to vector<8x1xf32>
    %48 = arith.cmpf ogt, %11, %47 : vector<8x1xf32>
    %cst_22 = arith.constant 0.000000e+00 : f32
    %49 = vector.shape_cast %48 : vector<8x1xi1> to vector<8x1xi1>
    %50 = vector.broadcast %49 : vector<8x1xi1> to vector<8x128xi1>
    %51 = vector.broadcast %cst_22 : f32 to vector<8x128xf32>
    %52 = arith.select %50, %51, %46 : vector<8x128xi1>, vector<8x128xf32>
    %53 = arith.truncf %52 : vector<8x128xf32> to vector<8x128xbf16>
    %c0_23 = arith.constant 0 : index
    %c0_24 = arith.constant 0 : index
    %54 = vector.load %arg7[%c0_23, %c0_24] : memref<64x128xbf16, #tpu.memory_space<vmem>>, vector<8x128xbf16>
    tpu.vector_store %arg7[%c0_23, %c0_24], %53 {strides = array<i32>} : memref<64x128xbf16, #tpu.memory_space<vmem>>, vector<8x128xbf16>,
    %c8 = arith.constant 8 : index
    %c0_25 = arith.constant 0 : index
    %55 = vector.load %arg8[%c8, %c0_25] : memref<64x384xf32, #tpu.memory_space<vmem>>, vector<8x384xf32>
    %c8_26 = arith.constant 8 : index
    %c0_27 = arith.constant 0 : index
    %56 = vector.load %arg2[%c8_26, %c0_27] : memref<64x1xf32, #tpu.memory_space<vmem>>, vector<8x1xf32>
    %57 = arith.truncf %46 : vector<8x128xf32> to vector<8x128xbf16>
    %cst_28 = arith.constant dense<0.000000e+00> : vector<8x384xf32>
    %58 = tpu.matmul %57, %7, %cst_28 {dimension_numbers = #tpu.dot_dimension_numbers<[1], [0], [0], [1], [0, 0, 1, 1], [], []>} : vector<8x128xbf16>, vector<128x384xbf16>, vector<8x384xf32> -> vector<8x384xf32>
    %59 = vector.extract_strided_slice %55 {offsets = [0, 0], sizes = [8, 128], strides = [1, 1]} : vector<8x384xf32> to vector<8x128xf32>
    %60 = vector.extract_strided_slice %55 {offsets = [0, 128], sizes = [8, 128], strides = [1, 1]} : vector<8x384xf32> to vector<8x128xf32>
    %61 = vector.extract_strided_slice %55 {offsets = [0, 256], sizes = [8, 128], strides = [1, 1]} : vector<8x384xf32> to vector<8x128xf32>
    %62 = vector.extract_strided_slice %58 {offsets = [0, 0], sizes = [8, 128], strides = [1, 1]} : vector<8x384xf32> to vector<8x128xf32>
    %63 = vector.extract_strided_slice %58 {offsets = [0, 128], sizes = [8, 128], strides = [1, 1]} : vector<8x384xf32> to vector<8x128xf32>
    %64 = vector.extract_strided_slice %58 {offsets = [0, 256], sizes = [8, 128], strides = [1, 1]} : vector<8x384xf32> to vector<8x128xf32>
    %65 = arith.addf %59, %62 : vector<8x128xf32>
    %66 = arith.negf %65 : vector<8x128xf32>
    %67 = math.exp %66 : vector<8x128xf32>
    %cst_29 = arith.constant 1.000000e+00 : f32
    %68 = vector.broadcast %cst_29 : f32 to vector<8x128xf32>
    %69 = arith.addf %68, %67 : vector<8x128xf32>
    %70 = arith.divf %68, %69 : vector<8x128xf32>
    %71 = arith.addf %60, %63 : vector<8x128xf32>
    %72 = arith.negf %71 : vector<8x128xf32>
    %73 = math.exp %72 : vector<8x128xf32>
    %cst_30 = arith.constant 1.000000e+00 : f32
    %74 = vector.broadcast %cst_30 : f32 to vector<8x128xf32>
    %75 = arith.addf %74, %73 : vector<8x128xf32>
    %76 = arith.divf %74, %75 : vector<8x128xf32>
    %77 = vector.broadcast %8 : vector<1x128xf32> to vector<8x128xf32>
    %78 = arith.addf %64, %77 : vector<8x128xf32>
    %79 = arith.mulf %70, %78 : vector<8x128xf32>
    %80 = arith.addf %61, %79 : vector<8x128xf32>
    %81 = math.tanh %80 : vector<8x128xf32>
    %cst_31 = arith.constant 1.000000e+00 : f32
    %82 = vector.broadcast %cst_31 : f32 to vector<8x128xf32>
    %83 = arith.subf %82, %76 : vector<8x128xf32>
    %84 = arith.mulf %83, %81 : vector<8x128xf32>
    %85 = arith.mulf %76, %46 : vector<8x128xf32>
    %86 = arith.addf %84, %85 : vector<8x128xf32>
    %cst_32 = arith.constant 0.000000e+00 : f32
    %87 = vector.broadcast %cst_32 : f32 to vector<8x1xf32>
    %88 = arith.cmpf ogt, %56, %87 : vector<8x1xf32>
    %89 = vector.shape_cast %88 : vector<8x1xi1> to vector<8x1xi1>
    %90 = vector.broadcast %89 : vector<8x1xi1> to vector<8x128xi1>
    %91 = arith.select %90, %46, %86 : vector<8x128xi1>, vector<8x128xf32>
    %cst_33 = arith.constant 0.000000e+00 : f32
    %92 = vector.broadcast %cst_33 : f32 to vector<8x1xf32>
    %93 = arith.cmpf ogt, %56, %92 : vector<8x1xf32>
    %cst_34 = arith.constant 0.000000e+00 : f32
    %94 = vector.shape_cast %93 : vector<8x1xi1> to vector<8x1xi1>
    %95 = vector.broadcast %94 : vector<8x1xi1> to vector<8x128xi1>
    %96 = vector.broadcast %cst_34 : f32 to vector<8x128xf32>
    %97 = arith.select %95, %96, %91 : vector<8x128xi1>, vector<8x128xf32>
    %98 = arith.truncf %97 : vector<8x128xf32> to vector<8x128xbf16>
    %c8_35 = arith.constant 8 : index
    %c0_36 = arith.constant 0 : index
    %99 = vector.load %arg7[%c8_35, %c0_36] : memref<64x128xbf16, #tpu.memory_space<vmem>>, vector<8x128xbf16>
    tpu.vector_store %arg7[%c8_35, %c0_36], %98 {strides = array<i32>} : memref<64x128xbf16, #tpu.memory_space<vmem>>, vector<8x128xbf16>,
    %c16 = arith.constant 16 : index
    %c0_37 = arith.constant 0 : index
    %100 = vector.load %arg8[%c16, %c0_37] : memref<64x384xf32, #tpu.memory_space<vmem>>, vector<8x384xf32>
    %c16_38 = arith.constant 16 : index
    %c0_39 = arith.constant 0 : index
    %101 = vector.load %arg2[%c16_38, %c0_39] : memref<64x1xf32, #tpu.memory_space<vmem>>, vector<8x1xf32>
    %102 = arith.truncf %91 : vector<8x128xf32> to vector<8x128xbf16>
    %cst_40 = arith.constant dense<0.000000e+00> : vector<8x384xf32>
    %103 = tpu.matmul %102, %7, %cst_40 {dimension_numbers = #tpu.dot_dimension_numbers<[1], [0], [0], [1], [0, 0, 1, 1], [], []>} : vector<8x128xbf16>, vector<128x384xbf16>, vector<8x384xf32> -> vector<8x384xf32>
    %104 = vector.extract_strided_slice %100 {offsets = [0, 0], sizes = [8, 128], strides = [1, 1]} : vector<8x384xf32> to vector<8x128xf32>
    %105 = vector.extract_strided_slice %100 {offsets = [0, 128], sizes = [8, 128], strides = [1, 1]} : vector<8x384xf32> to vector<8x128xf32>
    %106 = vector.extract_strided_slice %100 {offsets = [0, 256], sizes = [8, 128], strides = [1, 1]} : vector<8x384xf32> to vector<8x128xf32>
    %107 = vector.extract_strided_slice %103 {offsets = [0, 0], sizes = [8, 128], strides = [1, 1]} : vector<8x384xf32> to vector<8x128xf32>
    %108 = vector.extract_strided_slice %103 {offsets = [0, 128], sizes = [8, 128], strides = [1, 1]} : vector<8x384xf32> to vector<8x128xf32>
    %109 = vector.extract_strided_slice %103 {offsets = [0, 256], sizes = [8, 128], strides = [1, 1]} : vector<8x384xf32> to vector<8x128xf32>
    %110 = arith.addf %104, %107 : vector<8x128xf32>
    %111 = arith.negf %110 : vector<8x128xf32>
    %112 = math.exp %111 : vector<8x128xf32>
    %cst_41 = arith.constant 1.000000e+00 : f32
    %113 = vector.broadcast %cst_41 : f32 to vector<8x128xf32>
    %114 = arith.addf %113, %112 : vector<8x128xf32>
    %115 = arith.divf %113, %114 : vector<8x128xf32>
    %116 = arith.addf %105, %108 : vector<8x128xf32>
    %117 = arith.negf %116 : vector<8x128xf32>
    %118 = math.exp %117 : vector<8x128xf32>
    %cst_42 = arith.constant 1.000000e+00 : f32
    %119 = vector.broadcast %cst_42 : f32 to vector<8x128xf32>
    %120 = arith.addf %119, %118 : vector<8x128xf32>
    %121 = arith.divf %119, %120 : vector<8x128xf32>
    %122 = vector.broadcast %8 : vector<1x128xf32> to vector<8x128xf32>
    %123 = arith.addf %109, %122 : vector<8x128xf32>
    %124 = arith.mulf %115, %123 : vector<8x128xf32>
    %125 = arith.addf %106, %124 : vector<8x128xf32>
    %126 = math.tanh %125 : vector<8x128xf32>
    %cst_43 = arith.constant 1.000000e+00 : f32
    %127 = vector.broadcast %cst_43 : f32 to vector<8x128xf32>
    %128 = arith.subf %127, %121 : vector<8x128xf32>
    %129 = arith.mulf %128, %126 : vector<8x128xf32>
    %130 = arith.mulf %121, %91 : vector<8x128xf32>
    %131 = arith.addf %129, %130 : vector<8x128xf32>
    %cst_44 = arith.constant 0.000000e+00 : f32
    %132 = vector.broadcast %cst_44 : f32 to vector<8x1xf32>
    %133 = arith.cmpf ogt, %101, %132 : vector<8x1xf32>
    %134 = vector.shape_cast %133 : vector<8x1xi1> to vector<8x1xi1>
    %135 = vector.broadcast %134 : vector<8x1xi1> to vector<8x128xi1>
    %136 = arith.select %135, %91, %131 : vector<8x128xi1>, vector<8x128xf32>
    %cst_45 = arith.constant 0.000000e+00 : f32
    %137 = vector.broadcast %cst_45 : f32 to vector<8x1xf32>
    %138 = arith.cmpf ogt, %101, %137 : vector<8x1xf32>
    %cst_46 = arith.constant 0.000000e+00 : f32
    %139 = vector.shape_cast %138 : vector<8x1xi1> to vector<8x1xi1>
    %140 = vector.broadcast %139 : vector<8x1xi1> to vector<8x128xi1>
    %141 = vector.broadcast %cst_46 : f32 to vector<8x128xf32>
    %142 = arith.select %140, %141, %136 : vector<8x128xi1>, vector<8x128xf32>
    %143 = arith.truncf %142 : vector<8x128xf32> to vector<8x128xbf16>
    %c16_47 = arith.constant 16 : index
    %c0_48 = arith.constant 0 : index
    %144 = vector.load %arg7[%c16_47, %c0_48] : memref<64x128xbf16, #tpu.memory_space<vmem>>, vector<8x128xbf16>
    tpu.vector_store %arg7[%c16_47, %c0_48], %143 {strides = array<i32>} : memref<64x128xbf16, #tpu.memory_space<vmem>>, vector<8x128xbf16>,
    %c24 = arith.constant 24 : index
    %c0_49 = arith.constant 0 : index
    %145 = vector.load %arg8[%c24, %c0_49] : memref<64x384xf32, #tpu.memory_space<vmem>>, vector<8x384xf32>
    %c24_50 = arith.constant 24 : index
    %c0_51 = arith.constant 0 : index
    %146 = vector.load %arg2[%c24_50, %c0_51] : memref<64x1xf32, #tpu.memory_space<vmem>>, vector<8x1xf32>
    %147 = arith.truncf %136 : vector<8x128xf32> to vector<8x128xbf16>
    %cst_52 = arith.constant dense<0.000000e+00> : vector<8x384xf32>
    %148 = tpu.matmul %147, %7, %cst_52 {dimension_numbers = #tpu.dot_dimension_numbers<[1], [0], [0], [1], [0, 0, 1, 1], [], []>} : vector<8x128xbf16>, vector<128x384xbf16>, vector<8x384xf32> -> vector<8x384xf32>
    %149 = vector.extract_strided_slice %145 {offsets = [0, 0], sizes = [8, 128], strides = [1, 1]} : vector<8x384xf32> to vector<8x128xf32>
    %150 = vector.extract_strided_slice %145 {offsets = [0, 128], sizes = [8, 128], strides = [1, 1]} : vector<8x384xf32> to vector<8x128xf32>
    %151 = vector.extract_strided_slice %145 {offsets = [0, 256], sizes = [8, 128], strides = [1, 1]} : vector<8x384xf32> to vector<8x128xf32>
    %152 = vector.extract_strided_slice %148 {offsets = [0, 0], sizes = [8, 128], strides = [1, 1]} : vector<8x384xf32> to vector<8x128xf32>
    %153 = vector.extract_strided_slice %148 {offsets = [0, 128], sizes = [8, 128], strides = [1, 1]} : vector<8x384xf32> to vector<8x128xf32>
    %154 = vector.extract_strided_slice %148 {offsets = [0, 256], sizes = [8, 128], strides = [1, 1]} : vector<8x384xf32> to vector<8x128xf32>
    %155 = arith.addf %149, %152 : vector<8x128xf32>
    %156 = arith.negf %155 : vector<8x128xf32>
    %157 = math.exp %156 : vector<8x128xf32>
    %cst_53 = arith.constant 1.000000e+00 : f32
    %158 = vector.broadcast %cst_53 : f32 to vector<8x128xf32>
    %159 = arith.addf %158, %157 : vector<8x128xf32>
    %160 = arith.divf %158, %159 : vector<8x128xf32>
    %161 = arith.addf %150, %153 : vector<8x128xf32>
    %162 = arith.negf %161 : vector<8x128xf32>
    %163 = math.exp %162 : vector<8x128xf32>
    %cst_54 = arith.constant 1.000000e+00 : f32
    %164 = vector.broadcast %cst_54 : f32 to vector<8x128xf32>
    %165 = arith.addf %164, %163 : vector<8x128xf32>
    %166 = arith.divf %164, %165 : vector<8x128xf32>
    %167 = vector.broadcast %8 : vector<1x128xf32> to vector<8x128xf32>
    %168 = arith.addf %154, %167 : vector<8x128xf32>
    %169 = arith.mulf %160, %168 : vector<8x128xf32>
    %170 = arith.addf %151, %169 : vector<8x128xf32>
    %171 = math.tanh %170 : vector<8x128xf32>
    %cst_55 = arith.constant 1.000000e+00 : f32
    %172 = vector.broadcast %cst_55 : f32 to vector<8x128xf32>
    %173 = arith.subf %172, %166 : vector<8x128xf32>
    %174 = arith.mulf %173, %171 : vector<8x128xf32>
    %175 = arith.mulf %166, %136 : vector<8x128xf32>
    %176 = arith.addf %174, %175 : vector<8x128xf32>
    %cst_56 = arith.constant 0.000000e+00 : f32
    %177 = vector.broadcast %cst_56 : f32 to vector<8x1xf32>
    %178 = arith.cmpf ogt, %146, %177 : vector<8x1xf32>
    %179 = vector.shape_cast %178 : vector<8x1xi1> to vector<8x1xi1>
    %180 = vector.broadcast %179 : vector<8x1xi1> to vector<8x128xi1>
    %181 = arith.select %180, %136, %176 : vector<8x128xi1>, vector<8x128xf32>
    %cst_57 = arith.constant 0.000000e+00 : f32
    %182 = vector.broadcast %cst_57 : f32 to vector<8x1xf32>
    %183 = arith.cmpf ogt, %146, %182 : vector<8x1xf32>
    %cst_58 = arith.constant 0.000000e+00 : f32
    %184 = vector.shape_cast %183 : vector<8x1xi1> to vector<8x1xi1>
    %185 = vector.broadcast %184 : vector<8x1xi1> to vector<8x128xi1>
    %186 = vector.broadcast %cst_58 : f32 to vector<8x128xf32>
    %187 = arith.select %185, %186, %181 : vector<8x128xi1>, vector<8x128xf32>
    %188 = arith.truncf %187 : vector<8x128xf32> to vector<8x128xbf16>
    %c24_59 = arith.constant 24 : index
    %c0_60 = arith.constant 0 : index
    %189 = vector.load %arg7[%c24_59, %c0_60] : memref<64x128xbf16, #tpu.memory_space<vmem>>, vector<8x128xbf16>
    tpu.vector_store %arg7[%c24_59, %c0_60], %188 {strides = array<i32>} : memref<64x128xbf16, #tpu.memory_space<vmem>>, vector<8x128xbf16>,
    %c32 = arith.constant 32 : index
    %c0_61 = arith.constant 0 : index
    %190 = vector.load %arg8[%c32, %c0_61] : memref<64x384xf32, #tpu.memory_space<vmem>>, vector<8x384xf32>
    %c32_62 = arith.constant 32 : index
    %c0_63 = arith.constant 0 : index
    %191 = vector.load %arg2[%c32_62, %c0_63] : memref<64x1xf32, #tpu.memory_space<vmem>>, vector<8x1xf32>
    %192 = arith.truncf %181 : vector<8x128xf32> to vector<8x128xbf16>
    %cst_64 = arith.constant dense<0.000000e+00> : vector<8x384xf32>
    %193 = tpu.matmul %192, %7, %cst_64 {dimension_numbers = #tpu.dot_dimension_numbers<[1], [0], [0], [1], [0, 0, 1, 1], [], []>} : vector<8x128xbf16>, vector<128x384xbf16>, vector<8x384xf32> -> vector<8x384xf32>
    %194 = vector.extract_strided_slice %190 {offsets = [0, 0], sizes = [8, 128], strides = [1, 1]} : vector<8x384xf32> to vector<8x128xf32>
    %195 = vector.extract_strided_slice %190 {offsets = [0, 128], sizes = [8, 128], strides = [1, 1]} : vector<8x384xf32> to vector<8x128xf32>
    %196 = vector.extract_strided_slice %190 {offsets = [0, 256], sizes = [8, 128], strides = [1, 1]} : vector<8x384xf32> to vector<8x128xf32>
    %197 = vector.extract_strided_slice %193 {offsets = [0, 0], sizes = [8, 128], strides = [1, 1]} : vector<8x384xf32> to vector<8x128xf32>
    %198 = vector.extract_strided_slice %193 {offsets = [0, 128], sizes = [8, 128], strides = [1, 1]} : vector<8x384xf32> to vector<8x128xf32>
    %199 = vector.extract_strided_slice %193 {offsets = [0, 256], sizes = [8, 128], strides = [1, 1]} : vector<8x384xf32> to vector<8x128xf32>
    %200 = arith.addf %194, %197 : vector<8x128xf32>
    %201 = arith.negf %200 : vector<8x128xf32>
    %202 = math.exp %201 : vector<8x128xf32>
    %cst_65 = arith.constant 1.000000e+00 : f32
    %203 = vector.broadcast %cst_65 : f32 to vector<8x128xf32>
    %204 = arith.addf %203, %202 : vector<8x128xf32>
    %205 = arith.divf %203, %204 : vector<8x128xf32>
    %206 = arith.addf %195, %198 : vector<8x128xf32>
    %207 = arith.negf %206 : vector<8x128xf32>
    %208 = math.exp %207 : vector<8x128xf32>
    %cst_66 = arith.constant 1.000000e+00 : f32
    %209 = vector.broadcast %cst_66 : f32 to vector<8x128xf32>
    %210 = arith.addf %209, %208 : vector<8x128xf32>
    %211 = arith.divf %209, %210 : vector<8x128xf32>
    %212 = vector.broadcast %8 : vector<1x128xf32> to vector<8x128xf32>
    %213 = arith.addf %199, %212 : vector<8x128xf32>
    %214 = arith.mulf %205, %213 : vector<8x128xf32>
    %215 = arith.addf %196, %214 : vector<8x128xf32>
    %216 = math.tanh %215 : vector<8x128xf32>
    %cst_67 = arith.constant 1.000000e+00 : f32
    %217 = vector.broadcast %cst_67 : f32 to vector<8x128xf32>
    %218 = arith.subf %217, %211 : vector<8x128xf32>
    %219 = arith.mulf %218, %216 : vector<8x128xf32>
    %220 = arith.mulf %211, %181 : vector<8x128xf32>
    %221 = arith.addf %219, %220 : vector<8x128xf32>
    %cst_68 = arith.constant 0.000000e+00 : f32
    %222 = vector.broadcast %cst_68 : f32 to vector<8x1xf32>
    %223 = arith.cmpf ogt, %191, %222 : vector<8x1xf32>
    %224 = vector.shape_cast %223 : vector<8x1xi1> to vector<8x1xi1>
    %225 = vector.broadcast %224 : vector<8x1xi1> to vector<8x128xi1>
    %226 = arith.select %225, %181, %221 : vector<8x128xi1>, vector<8x128xf32>
    %cst_69 = arith.constant 0.000000e+00 : f32
    %227 = vector.broadcast %cst_69 : f32 to vector<8x1xf32>
    %228 = arith.cmpf ogt, %191, %227 : vector<8x1xf32>
    %cst_70 = arith.constant 0.000000e+00 : f32
    %229 = vector.shape_cast %228 : vector<8x1xi1> to vector<8x1xi1>
    %230 = vector.broadcast %229 : vector<8x1xi1> to vector<8x128xi1>
    %231 = vector.broadcast %cst_70 : f32 to vector<8x128xf32>
    %232 = arith.select %230, %231, %226 : vector<8x128xi1>, vector<8x128xf32>
    %233 = arith.truncf %232 : vector<8x128xf32> to vector<8x128xbf16>
    %c32_71 = arith.constant 32 : index
    %c0_72 = arith.constant 0 : index
    %234 = vector.load %arg7[%c32_71, %c0_72] : memref<64x128xbf16, #tpu.memory_space<vmem>>, vector<8x128xbf16>
    tpu.vector_store %arg7[%c32_71, %c0_72], %233 {strides = array<i32>} : memref<64x128xbf16, #tpu.memory_space<vmem>>, vector<8x128xbf16>,
    %c40 = arith.constant 40 : index
    %c0_73 = arith.constant 0 : index
    %235 = vector.load %arg8[%c40, %c0_73] : memref<64x384xf32, #tpu.memory_space<vmem>>, vector<8x384xf32>
    %c40_74 = arith.constant 40 : index
    %c0_75 = arith.constant 0 : index
    %236 = vector.load %arg2[%c40_74, %c0_75] : memref<64x1xf32, #tpu.memory_space<vmem>>, vector<8x1xf32>
    %237 = arith.truncf %226 : vector<8x128xf32> to vector<8x128xbf16>
    %cst_76 = arith.constant dense<0.000000e+00> : vector<8x384xf32>
    %238 = tpu.matmul %237, %7, %cst_76 {dimension_numbers = #tpu.dot_dimension_numbers<[1], [0], [0], [1], [0, 0, 1, 1], [], []>} : vector<8x128xbf16>, vector<128x384xbf16>, vector<8x384xf32> -> vector<8x384xf32>
    %239 = vector.extract_strided_slice %235 {offsets = [0, 0], sizes = [8, 128], strides = [1, 1]} : vector<8x384xf32> to vector<8x128xf32>
    %240 = vector.extract_strided_slice %235 {offsets = [0, 128], sizes = [8, 128], strides = [1, 1]} : vector<8x384xf32> to vector<8x128xf32>
    %241 = vector.extract_strided_slice %235 {offsets = [0, 256], sizes = [8, 128], strides = [1, 1]} : vector<8x384xf32> to vector<8x128xf32>
    %242 = vector.extract_strided_slice %238 {offsets = [0, 0], sizes = [8, 128], strides = [1, 1]} : vector<8x384xf32> to vector<8x128xf32>
    %243 = vector.extract_strided_slice %238 {offsets = [0, 128], sizes = [8, 128], strides = [1, 1]} : vector<8x384xf32> to vector<8x128xf32>
    %244 = vector.extract_strided_slice %238 {offsets = [0, 256], sizes = [8, 128], strides = [1, 1]} : vector<8x384xf32> to vector<8x128xf32>
    %245 = arith.addf %239, %242 : vector<8x128xf32>
    %246 = arith.negf %245 : vector<8x128xf32>
    %247 = math.exp %246 : vector<8x128xf32>
    %cst_77 = arith.constant 1.000000e+00 : f32
    %248 = vector.broadcast %cst_77 : f32 to vector<8x128xf32>
    %249 = arith.addf %248, %247 : vector<8x128xf32>
    %250 = arith.divf %248, %249 : vector<8x128xf32>
    %251 = arith.addf %240, %243 : vector<8x128xf32>
    %252 = arith.negf %251 : vector<8x128xf32>
    %253 = math.exp %252 : vector<8x128xf32>
    %cst_78 = arith.constant 1.000000e+00 : f32
    %254 = vector.broadcast %cst_78 : f32 to vector<8x128xf32>
    %255 = arith.addf %254, %253 : vector<8x128xf32>
    %256 = arith.divf %254, %255 : vector<8x128xf32>
    %257 = vector.broadcast %8 : vector<1x128xf32> to vector<8x128xf32>
    %258 = arith.addf %244, %257 : vector<8x128xf32>
    %259 = arith.mulf %250, %258 : vector<8x128xf32>
    %260 = arith.addf %241, %259 : vector<8x128xf32>
    %261 = math.tanh %260 : vector<8x128xf32>
    %cst_79 = arith.constant 1.000000e+00 : f32
    %262 = vector.broadcast %cst_79 : f32 to vector<8x128xf32>
    %263 = arith.subf %262, %256 : vector<8x128xf32>
    %264 = arith.mulf %263, %261 : vector<8x128xf32>
    %265 = arith.mulf %256, %226 : vector<8x128xf32>
    %266 = arith.addf %264, %265 : vector<8x128xf32>
    %cst_80 = arith.constant 0.000000e+00 : f32
    %267 = vector.broadcast %cst_80 : f32 to vector<8x1xf32>
    %268 = arith.cmpf ogt, %236, %267 : vector<8x1xf32>
    %269 = vector.shape_cast %268 : vector<8x1xi1> to vector<8x1xi1>
    %270 = vector.broadcast %269 : vector<8x1xi1> to vector<8x128xi1>
    %271 = arith.select %270, %226, %266 : vector<8x128xi1>, vector<8x128xf32>
    %cst_81 = arith.constant 0.000000e+00 : f32
    %272 = vector.broadcast %cst_81 : f32 to vector<8x1xf32>
    %273 = arith.cmpf ogt, %236, %272 : vector<8x1xf32>
    %cst_82 = arith.constant 0.000000e+00 : f32
    %274 = vector.shape_cast %273 : vector<8x1xi1> to vector<8x1xi1>
    %275 = vector.broadcast %274 : vector<8x1xi1> to vector<8x128xi1>
    %276 = vector.broadcast %cst_82 : f32 to vector<8x128xf32>
    %277 = arith.select %275, %276, %271 : vector<8x128xi1>, vector<8x128xf32>
    %278 = arith.truncf %277 : vector<8x128xf32> to vector<8x128xbf16>
    %c40_83 = arith.constant 40 : index
    %c0_84 = arith.constant 0 : index
    %279 = vector.load %arg7[%c40_83, %c0_84] : memref<64x128xbf16, #tpu.memory_space<vmem>>, vector<8x128xbf16>
    tpu.vector_store %arg7[%c40_83, %c0_84], %278 {strides = array<i32>} : memref<64x128xbf16, #tpu.memory_space<vmem>>, vector<8x128xbf16>,
    %c48 = arith.constant 48 : index
    %c0_85 = arith.constant 0 : index
    %280 = vector.load %arg8[%c48, %c0_85] : memref<64x384xf32, #tpu.memory_space<vmem>>, vector<8x384xf32>
    %c48_86 = arith.constant 48 : index
    %c0_87 = arith.constant 0 : index
    %281 = vector.load %arg2[%c48_86, %c0_87] : memref<64x1xf32, #tpu.memory_space<vmem>>, vector<8x1xf32>
    %282 = arith.truncf %271 : vector<8x128xf32> to vector<8x128xbf16>
    %cst_88 = arith.constant dense<0.000000e+00> : vector<8x384xf32>
    %283 = tpu.matmul %282, %7, %cst_88 {dimension_numbers = #tpu.dot_dimension_numbers<[1], [0], [0], [1], [0, 0, 1, 1], [], []>} : vector<8x128xbf16>, vector<128x384xbf16>, vector<8x384xf32> -> vector<8x384xf32>
    %284 = vector.extract_strided_slice %280 {offsets = [0, 0], sizes = [8, 128], strides = [1, 1]} : vector<8x384xf32> to vector<8x128xf32>
    %285 = vector.extract_strided_slice %280 {offsets = [0, 128], sizes = [8, 128], strides = [1, 1]} : vector<8x384xf32> to vector<8x128xf32>
    %286 = vector.extract_strided_slice %280 {offsets = [0, 256], sizes = [8, 128], strides = [1, 1]} : vector<8x384xf32> to vector<8x128xf32>
    %287 = vector.extract_strided_slice %283 {offsets = [0, 0], sizes = [8, 128], strides = [1, 1]} : vector<8x384xf32> to vector<8x128xf32>
    %288 = vector.extract_strided_slice %283 {offsets = [0, 128], sizes = [8, 128], strides = [1, 1]} : vector<8x384xf32> to vector<8x128xf32>
    %289 = vector.extract_strided_slice %283 {offsets = [0, 256], sizes = [8, 128], strides = [1, 1]} : vector<8x384xf32> to vector<8x128xf32>
    %290 = arith.addf %284, %287 : vector<8x128xf32>
    %291 = arith.negf %290 : vector<8x128xf32>
    %292 = math.exp %291 : vector<8x128xf32>
    %cst_89 = arith.constant 1.000000e+00 : f32
    %293 = vector.broadcast %cst_89 : f32 to vector<8x128xf32>
    %294 = arith.addf %293, %292 : vector<8x128xf32>
    %295 = arith.divf %293, %294 : vector<8x128xf32>
    %296 = arith.addf %285, %288 : vector<8x128xf32>
    %297 = arith.negf %296 : vector<8x128xf32>
    %298 = math.exp %297 : vector<8x128xf32>
    %cst_90 = arith.constant 1.000000e+00 : f32
    %299 = vector.broadcast %cst_90 : f32 to vector<8x128xf32>
    %300 = arith.addf %299, %298 : vector<8x128xf32>
    %301 = arith.divf %299, %300 : vector<8x128xf32>
    %302 = vector.broadcast %8 : vector<1x128xf32> to vector<8x128xf32>
    %303 = arith.addf %289, %302 : vector<8x128xf32>
    %304 = arith.mulf %295, %303 : vector<8x128xf32>
    %305 = arith.addf %286, %304 : vector<8x128xf32>
    %306 = math.tanh %305 : vector<8x128xf32>
    %cst_91 = arith.constant 1.000000e+00 : f32
    %307 = vector.broadcast %cst_91 : f32 to vector<8x128xf32>
    %308 = arith.subf %307, %301 : vector<8x128xf32>
    %309 = arith.mulf %308, %306 : vector<8x128xf32>
    %310 = arith.mulf %301, %271 : vector<8x128xf32>
    %311 = arith.addf %309, %310 : vector<8x128xf32>
    %cst_92 = arith.constant 0.000000e+00 : f32
    %312 = vector.broadcast %cst_92 : f32 to vector<8x1xf32>
    %313 = arith.cmpf ogt, %281, %312 : vector<8x1xf32>
    %314 = vector.shape_cast %313 : vector<8x1xi1> to vector<8x1xi1>
    %315 = vector.broadcast %314 : vector<8x1xi1> to vector<8x128xi1>
    %316 = arith.select %315, %271, %311 : vector<8x128xi1>, vector<8x128xf32>
    %cst_93 = arith.constant 0.000000e+00 : f32
    %317 = vector.broadcast %cst_93 : f32 to vector<8x1xf32>
    %318 = arith.cmpf ogt, %281, %317 : vector<8x1xf32>
    %cst_94 = arith.constant 0.000000e+00 : f32
    %319 = vector.shape_cast %318 : vector<8x1xi1> to vector<8x1xi1>
    %320 = vector.broadcast %319 : vector<8x1xi1> to vector<8x128xi1>
    %321 = vector.broadcast %cst_94 : f32 to vector<8x128xf32>
    %322 = arith.select %320, %321, %316 : vector<8x128xi1>, vector<8x128xf32>
    %323 = arith.truncf %322 : vector<8x128xf32> to vector<8x128xbf16>
    %c48_95 = arith.constant 48 : index
    %c0_96 = arith.constant 0 : index
    %324 = vector.load %arg7[%c48_95, %c0_96] : memref<64x128xbf16, #tpu.memory_space<vmem>>, vector<8x128xbf16>
    tpu.vector_store %arg7[%c48_95, %c0_96], %323 {strides = array<i32>} : memref<64x128xbf16, #tpu.memory_space<vmem>>, vector<8x128xbf16>,
    %c56 = arith.constant 56 : index
    %c0_97 = arith.constant 0 : index
    %325 = vector.load %arg8[%c56, %c0_97] : memref<64x384xf32, #tpu.memory_space<vmem>>, vector<8x384xf32>
    %c56_98 = arith.constant 56 : index
    %c0_99 = arith.constant 0 : index
    %326 = vector.load %arg2[%c56_98, %c0_99] : memref<64x1xf32, #tpu.memory_space<vmem>>, vector<8x1xf32>
    %327 = arith.truncf %316 : vector<8x128xf32> to vector<8x128xbf16>
    %cst_100 = arith.constant dense<0.000000e+00> : vector<8x384xf32>
    %328 = tpu.matmul %327, %7, %cst_100 {dimension_numbers = #tpu.dot_dimension_numbers<[1], [0], [0], [1], [0, 0, 1, 1], [], []>} : vector<8x128xbf16>, vector<128x384xbf16>, vector<8x384xf32> -> vector<8x384xf32>
    %329 = vector.extract_strided_slice %325 {offsets = [0, 0], sizes = [8, 128], strides = [1, 1]} : vector<8x384xf32> to vector<8x128xf32>
    %330 = vector.extract_strided_slice %325 {offsets = [0, 128], sizes = [8, 128], strides = [1, 1]} : vector<8x384xf32> to vector<8x128xf32>
    %331 = vector.extract_strided_slice %325 {offsets = [0, 256], sizes = [8, 128], strides = [1, 1]} : vector<8x384xf32> to vector<8x128xf32>
    %332 = vector.extract_strided_slice %328 {offsets = [0, 0], sizes = [8, 128], strides = [1, 1]} : vector<8x384xf32> to vector<8x128xf32>
    %333 = vector.extract_strided_slice %328 {offsets = [0, 128], sizes = [8, 128], strides = [1, 1]} : vector<8x384xf32> to vector<8x128xf32>
    %334 = vector.extract_strided_slice %328 {offsets = [0, 256], sizes = [8, 128], strides = [1, 1]} : vector<8x384xf32> to vector<8x128xf32>
    %335 = arith.addf %329, %332 : vector<8x128xf32>
    %336 = arith.negf %335 : vector<8x128xf32>
    %337 = math.exp %336 : vector<8x128xf32>
    %cst_101 = arith.constant 1.000000e+00 : f32
    %338 = vector.broadcast %cst_101 : f32 to vector<8x128xf32>
    %339 = arith.addf %338, %337 : vector<8x128xf32>
    %340 = arith.divf %338, %339 : vector<8x128xf32>
    %341 = arith.addf %330, %333 : vector<8x128xf32>
    %342 = arith.negf %341 : vector<8x128xf32>
    %343 = math.exp %342 : vector<8x128xf32>
    %cst_102 = arith.constant 1.000000e+00 : f32
    %344 = vector.broadcast %cst_102 : f32 to vector<8x128xf32>
    %345 = arith.addf %344, %343 : vector<8x128xf32>
    %346 = arith.divf %344, %345 : vector<8x128xf32>
    %347 = vector.broadcast %8 : vector<1x128xf32> to vector<8x128xf32>
    %348 = arith.addf %334, %347 : vector<8x128xf32>
    %349 = arith.mulf %340, %348 : vector<8x128xf32>
    %350 = arith.addf %331, %349 : vector<8x128xf32>
    %351 = math.tanh %350 : vector<8x128xf32>
    %cst_103 = arith.constant 1.000000e+00 : f32
    %352 = vector.broadcast %cst_103 : f32 to vector<8x128xf32>
    %353 = arith.subf %352, %346 : vector<8x128xf32>
    %354 = arith.mulf %353, %351 : vector<8x128xf32>
    %355 = arith.mulf %346, %316 : vector<8x128xf32>
    %356 = arith.addf %354, %355 : vector<8x128xf32>
    %cst_104 = arith.constant 0.000000e+00 : f32
    %357 = vector.broadcast %cst_104 : f32 to vector<8x1xf32>
    %358 = arith.cmpf ogt, %326, %357 : vector<8x1xf32>
    %359 = vector.shape_cast %358 : vector<8x1xi1> to vector<8x1xi1>
    %360 = vector.broadcast %359 : vector<8x1xi1> to vector<8x128xi1>
    %361 = arith.select %360, %316, %356 : vector<8x128xi1>, vector<8x128xf32>
    %cst_105 = arith.constant 0.000000e+00 : f32
    %362 = vector.broadcast %cst_105 : f32 to vector<8x1xf32>
    %363 = arith.cmpf ogt, %326, %362 : vector<8x1xf32>
    %cst_106 = arith.constant 0.000000e+00 : f32
    %364 = vector.shape_cast %363 : vector<8x1xi1> to vector<8x1xi1>
    %365 = vector.broadcast %364 : vector<8x1xi1> to vector<8x128xi1>
    %366 = vector.broadcast %cst_106 : f32 to vector<8x128xf32>
    %367 = arith.select %365, %366, %361 : vector<8x128xi1>, vector<8x128xf32>
    %368 = arith.truncf %367 : vector<8x128xf32> to vector<8x128xbf16>
    %c56_107 = arith.constant 56 : index
    %c0_108 = arith.constant 0 : index
    %369 = vector.load %arg7[%c56_107, %c0_108] : memref<64x128xbf16, #tpu.memory_space<vmem>>, vector<8x128xbf16>
    tpu.vector_store %arg7[%c56_107, %c0_108], %368 {strides = array<i32>} : memref<64x128xbf16, #tpu.memory_space<vmem>>, vector<8x128xbf16>,
    return
  }
  func.func @transform_0(%arg0: i32) -> (i32, i32) {
    %c0_i32 = arith.constant 0 : i32
    %c0_i32_0 = arith.constant 0 : i32
    %c0_i32_1 = arith.constant 0 : i32
    return %c0_i32, %c0_i32_0 : i32, i32
  }
  func.func @transform_1(%arg0: i32) -> (i32, i32) {
    %c0_i32 = arith.constant 0 : i32
    %c0_i32_0 = arith.constant 0 : i32
    %c0_i32_1 = arith.constant 0 : i32
    return %c0_i32, %c0_i32_0 : i32, i32
  }
  func.func @transform_2(%arg0: i32) -> (i32, i32) {
    %c0_i32 = arith.constant 0 : i32
    %c0_i32_0 = arith.constant 0 : i32
    %c0_i32_1 = arith.constant 0 : i32
    return %c0_i32, %c0_i32_0 : i32, i32
  }
  func.func @transform_3(%arg0: i32) -> (i32, i32) {
    %c0_i32 = arith.constant 0 : i32
    %c0_i32_0 = arith.constant 0 : i32
    %c0_i32_1 = arith.constant 0 : i32
    return %c0_i32, %c0_i32_0 : i32, i32
  }
  func.func @transform_4(%arg0: i32) -> (i32, i32) {
    %c0_i32 = arith.constant 0 : i32
    %c0_i32_0 = arith.constant 0 : i32
    %c0_i32_1 = arith.constant 0 : i32
    return %c0_i32, %c0_i32_0 : i32, i32
  }
  func.func @transform_5(%arg0: i32) -> (i32, i32) {
    %c0_i32 = arith.constant 0 : i32
    %c0_i32_0 = arith.constant 0 : i32
    %c0_i32_1 = arith.constant 0 : i32
    return %c0_i32, %c0_i32_0 : i32, i32
  }
  func.func @transform_6(%arg0: i32) -> (i32, i32) {
    %c0_i32 = arith.constant 0 : i32
    %c0_i32_0 = arith.constant 0 : i32
    %c0_i32_1 = arith.constant 0 : i32
    return %c0_i32, %c0_i32_0 : i32, i32
  }
}

module attributes {stable_mosaic.version = 11 : i64} {
  func.func @_gen_kernel(%arg0: i32, %arg1: memref<64x256xbf16, #tpu.memory_space<vmem>>, %arg2: memref<256x128xbf16, #tpu.memory_space<vmem>>, %arg3: memref<1x128xf32, #tpu.memory_space<vmem>>, %arg4: memref<128x512xbf16, #tpu.memory_space<vmem>>, %arg5: memref<1x512xf32, #tpu.memory_space<vmem>>, %arg6: memref<1x512xf32, #tpu.memory_space<vmem>>, %arg7: memref<64x512xbf16, #tpu.memory_space<vmem>>) attributes {dimension_semantics = [#tpu.dimension_semantics<parallel>], iteration_bounds = array<i64: 1>, scalar_prefetch = 0 : i64, scratch_operands = 0 : i64, tpu.core_type = #tpu.core_type<tc>, window_params = [{transform_indices = @transform_0, window_bounds = array<i64: 64, 256>}, {pipeline_mode = #tpu.pipeline_mode<synchronous>, transform_indices = @transform_1, window_bounds = array<i64: 256, 128>}, {pipeline_mode = #tpu.pipeline_mode<synchronous>, transform_indices = @transform_2, window_bounds = array<i64: 1, 128>}, {pipeline_mode = #tpu.pipeline_mode<synchronous>, transform_indices = @transform_3, window_bounds = array<i64: 128, 512>}, {pipeline_mode = #tpu.pipeline_mode<synchronous>, transform_indices = @transform_4, window_bounds = array<i64: 1, 512>}, {pipeline_mode = #tpu.pipeline_mode<synchronous>, transform_indices = @transform_5, window_bounds = array<i64: 1, 512>}, {transform_indices = @transform_6, window_bounds = array<i64: 64, 512>}]} {
    %c0 = arith.constant 0 : index
    %c0_0 = arith.constant 0 : index
    %0 = vector.load %arg1[%c0, %c0_0] : memref<64x256xbf16, #tpu.memory_space<vmem>>, vector<64x256xbf16>
    %c0_1 = arith.constant 0 : index
    %c0_2 = arith.constant 0 : index
    %1 = vector.load %arg2[%c0_1, %c0_2] : memref<256x128xbf16, #tpu.memory_space<vmem>>, vector<256x128xbf16>
    %cst = arith.constant dense<0.000000e+00> : vector<64x128xf32>
    %2 = tpu.matmul %0, %1, %cst {dimension_numbers = #tpu.dot_dimension_numbers<[1], [0], [0], [1], [0, 0, 1, 1], [], []>} : vector<64x256xbf16>, vector<256x128xbf16>, vector<64x128xf32> -> vector<64x128xf32>
    %c0_3 = arith.constant 0 : index
    %c0_4 = arith.constant 0 : index
    %3 = vector.load %arg3[%c0_3, %c0_4] : memref<1x128xf32, #tpu.memory_space<vmem>>, vector<1x128xf32>
    %4 = vector.broadcast %3 : vector<1x128xf32> to vector<64x128xf32>
    %5 = arith.addf %2, %4 : vector<64x128xf32>
    %6 = math.tanh %5 : vector<64x128xf32>
    %7 = arith.truncf %6 : vector<64x128xf32> to vector<64x128xbf16>
    %c0_5 = arith.constant 0 : index
    %c0_6 = arith.constant 0 : index
    %8 = vector.load %arg4[%c0_5, %c0_6] : memref<128x512xbf16, #tpu.memory_space<vmem>>, vector<128x512xbf16>
    %cst_7 = arith.constant dense<0.000000e+00> : vector<64x512xf32>
    %9 = tpu.matmul %7, %8, %cst_7 {dimension_numbers = #tpu.dot_dimension_numbers<[1], [0], [0], [1], [0, 0, 1, 1], [], []>} : vector<64x128xbf16>, vector<128x512xbf16>, vector<64x512xf32> -> vector<64x512xf32>
    %c0_8 = arith.constant 0 : index
    %c0_9 = arith.constant 0 : index
    %10 = vector.load %arg5[%c0_8, %c0_9] : memref<1x512xf32, #tpu.memory_space<vmem>>, vector<1x512xf32>
    %11 = vector.broadcast %10 : vector<1x512xf32> to vector<64x512xf32>
    %12 = arith.addf %9, %11 : vector<64x512xf32>
    %cst_10 = arith.constant dense<0xFF800000> : vector<64xf32>
    %13 = vector.multi_reduction <maximumf>, %12, %cst_10 [1] : vector<64x512xf32> to vector<64xf32>
    %14 = vector.shape_cast %13 : vector<64xf32> to vector<64x1xf32>
    %15 = vector.broadcast %14 : vector<64x1xf32> to vector<64x512xf32>
    %16 = arith.subf %12, %15 : vector<64x512xf32>
    %17 = math.exp %16 : vector<64x512xf32>
    %cst_11 = arith.constant dense<0.000000e+00> : vector<64xf32>
    %18 = vector.multi_reduction <add>, %17, %cst_11 [1] : vector<64x512xf32> to vector<64xf32>
    %19 = vector.shape_cast %18 : vector<64xf32> to vector<64x1xf32>
    %20 = math.log %19 : vector<64x1xf32>
    %21 = arith.addf %20, %14 : vector<64x1xf32>
    %22 = vector.broadcast %21 : vector<64x1xf32> to vector<64x512xf32>
    %23 = arith.subf %12, %22 : vector<64x512xf32>
    %c0_12 = arith.constant 0 : index
    %c0_13 = arith.constant 0 : index
    %24 = vector.load %arg6[%c0_12, %c0_13] : memref<1x512xf32, #tpu.memory_space<vmem>>, vector<1x512xf32>
    %25 = vector.broadcast %24 : vector<1x512xf32> to vector<64x512xf32>
    %26 = arith.addf %23, %25 : vector<64x512xf32>
    %27 = arith.truncf %26 : vector<64x512xf32> to vector<64x512xbf16>
    %c0_14 = arith.constant 0 : index
    %c0_15 = arith.constant 0 : index
    %28 = vector.load %arg7[%c0_14, %c0_15] : memref<64x512xbf16, #tpu.memory_space<vmem>>, vector<64x512xbf16>
    tpu.vector_store %arg7[%c0_14, %c0_15], %27 {strides = array<i32>} : memref<64x512xbf16, #tpu.memory_space<vmem>>, vector<64x512xbf16>,
    return
  }
  func.func @transform_0(%arg0: i32) -> (i32, i32) {
    %c0_i32 = arith.constant 0 : i32
    %c0_i32_0 = arith.constant 0 : i32
    return %arg0, %c0_i32 : i32, i32
  }
  func.func @transform_1(%arg0: i32) -> (i32, i32) {
    %c0_i32 = arith.constant 0 : i32
    %c0_i32_0 = arith.constant 0 : i32
    %c0_i32_1 = arith.constant 0 : i32
    return %c0_i32, %c0_i32_0 : i32, i32
  }
  func.func @transform_2(%arg0: i32) -> (i32, i32) {
    %c0_i32 = arith.constant 0 : i32
    %c0_i32_0 = arith.constant 0 : i32
    %c0_i32_1 = arith.constant 0 : i32
    return %c0_i32, %c0_i32_0 : i32, i32
  }
  func.func @transform_3(%arg0: i32) -> (i32, i32) {
    %c0_i32 = arith.constant 0 : i32
    %c0_i32_0 = arith.constant 0 : i32
    %c0_i32_1 = arith.constant 0 : i32
    return %c0_i32, %c0_i32_0 : i32, i32
  }
  func.func @transform_4(%arg0: i32) -> (i32, i32) {
    %c0_i32 = arith.constant 0 : i32
    %c0_i32_0 = arith.constant 0 : i32
    %c0_i32_1 = arith.constant 0 : i32
    return %c0_i32, %c0_i32_0 : i32, i32
  }
  func.func @transform_5(%arg0: i32) -> (i32, i32) {
    %c0_i32 = arith.constant 0 : i32
    %c0_i32_0 = arith.constant 0 : i32
    %c0_i32_1 = arith.constant 0 : i32
    return %c0_i32, %c0_i32_0 : i32, i32
  }
  func.func @transform_6(%arg0: i32) -> (i32, i32) {
    %c0_i32 = arith.constant 0 : i32
    %c0_i32_0 = arith.constant 0 : i32
    return %arg0, %c0_i32 : i32, i32
  }
}

</mosaic_0001>

<bundles_post_ra>
// kernel: rnn_decoder_forward.3
= control target key start
LH: loop header
LB: loop body
LE: loop exit
PB: predicated region body
PF: predicated region fallthrough
CT: control target
= control target key end

     0   :  { %11 = vsyncpa [#allocation3], 0  ;;  %s1976_s0 = inlined_call_operand.vmem [shape: bf16[64,256], index: 0, kind: input, shape index: {}]   ;;  %s1977_s1 = inlined_call_operand.hbm [shape: bf16[256,128], index: 1, kind: input, shape index: {}]   ;;  %s1978_s2 = inlined_call_operand.vmem [shape: f32[1,128], index: 2, kind: input, shape index: {}]   ;;  %s1979_s3 = inlined_call_operand.vmem [shape: bf16[128,512], index: 3, kind: input, shape index: {}]   ;;  %s1980_s4 = inlined_call_operand.vmem [shape: f32[1,512], index: 4, kind: input, shape index: {}]   ;;  %s1981_s5 = inlined_call_operand.vmem [shape: f32[1,512], index: 5, kind: input, shape index: {}]   ;;  %s1982_s6 = inlined_call_operand.hbm [shape: bf16[64,512], index: 6, kind: output, shape index: {}]  }
   0x1   :  { %12 = vsyncpa [#allocation4], 0  ;;  %s19_s23 = sshll.u32 %s1977_s1, 4  ;;  %s1384_s24 = smov [#allocation2]   ;;  %s20_s23 = int_to_ptr.hbm [resolvable:$true] %s19_s23 }
   0x2   :  { %s21_s25 = sshll.u32 %s1384_s24, 4  ;;  %s1385_s26 = smov 64   ;;  %s22_s25 = int_to_ptr.vmem [resolvable:$true] %s21_s25 }
   0x3   :  { %s1386_s27 = smov 4  }
   0x4   :  { %27 = dma.hbm_to_vmem [thread:$0]  %s20_s23, 2048, %s22_s25, [#allocation3], %s1385_s26, %s1385_s26, %s1386_s27  }
   0x5   :  { %1380 = dma.done.wait [#allocation3], 2048  }
   0x6   :  { %1381 = vsyncadd [#allocation3], 4294965248  ;;  %v1172_v0 = vld [vmem:[#allocation2 + $0x38] sm:$0xff]  ;;  %v1171_v2 = vld [vmem:[#allocation2 + $0x30] sm:$0xff]  ;;  %s920_s15 = sshll.u32 %s1982_s6, 4  ;;  %s1388_s16 = smov 256   ;;  %s921_s15 = int_to_ptr.hbm [resolvable:$true] %s920_s15 }
   0x7   :  { %v1180_v1 = vld [vmem:[#allocation2 + $0x78] sm:$0xff]  ;;  %220 = vmatpush.bf16.msra.mxu0 %v1172_v0  ;;  %v1179_v3 = vld [vmem:[#allocation2 + $0x70] sm:$0xff]  ;;  %1213 = vmatpush.bf16.msra.mxu2 %v1172_v0  ;;  %v1170_v4 = vld [vmem:[#allocation2 + $0x28] sm:$0xff]  ;;  %s1389_s17 = smov 16  }
   0x8   :  { %249 = vmatpush.bf16.msra.mxu1 %v1180_v1  ;;  %1221 = vmatpush.bf16.msra.mxu3 %v1180_v1  ;;  %v1178_v5 = vld [vmem:[#allocation2 + $0x68] sm:$0xff]  ;;  %v1169_v6 = vld [vmem:[#allocation2 + $0x20] sm:$0xff]  ;;  %v1168_v8 = vld [vmem:[#allocation2 + $0x18] sm:$0xff] }
   0x9   :  { %v1177_v7 = vld [vmem:[#allocation2 + $0x60] sm:$0xff]  ;;  %v1176_v9 = vld [vmem:[#allocation2 + $0x58] sm:$0xff]  ;;  %v1167_v10 = vld [vmem:[#allocation2 + $0x10] sm:$0xff] }
   0xa   :  { %v1175_v11 = vld [vmem:[#allocation2 + $0x50] sm:$0xff]  ;;  %v1166_v12 = vld [vmem:[#allocation2 + $0x8] sm:$0xff]  ;;  %v1165_v14 = vld [vmem:[#allocation2] sm:$0xff] }
   0xb   :  { %221 = vmatpush.bf16.msra.mxu0 %v1171_v2  ;;  %1214 = vmatpush.bf16.msra.mxu2 %v1171_v2  ;;  %v1174_v13 = vld [vmem:[#allocation2 + $0x48] sm:$0xff]  ;;  %v1173_v15 = vld [vmem:[#allocation2 + $0x40] sm:$0xff]  ;;  %v1211_v21 = vld [vmem:[%s1979_s3 + $0xec] sm:$0xf0] }
   0xc   :  { %250 = vmatpush.bf16.msra.mxu1 %v1179_v3  ;;  %1222 = vmatpush.bf16.msra.mxu3 %v1179_v3  ;;  %v935_v16 = vld [vmem:[%s1976_s0] sm:$0xf]  ;;  %v1158_v17 = vld [vmem:[%s1976_s0 + $0x4] sm:$0xf0]  ;;  %v1157_v18 = vld [vmem:[%s1976_s0 + $0x4] sm:$0xf] }
   0xd   :  { %v937_v19 = vld [vmem:[%s1976_s0 + $0x8] sm:$0xf0]  ;;  %v1143_v20 = vld [vmem:[%s1979_s3 + $0xe0] sm:$0xf]  ;;  %v1209_v22 = vld [vmem:[%s1979_s3 + $0xe4] sm:$0xf]  ;;  %v936_v35 = vor.u32 %v1158_v17, %v935_v16 }
   0xe   :  { %v1145_v23 = vld [vmem:[%s1979_s3 + $0xf0] sm:$0xf0]  ;;  %v951_v24 = vld [vmem:[%s1976_s0 + $0x20] sm:$0xf]  ;;  %v1162_v25 = vld [vmem:[%s1976_s0 + $0x24] sm:$0xf0]  ;;  %v1144_v30 = vor.u32 %v1211_v21, %v1143_v20  ;;  %v940_v36 = vor.u32 %v1157_v18, %v937_v19 }
   0xf   :  { %222 = vmatpush.bf16.msra.mxu0 %v1170_v4  ;;  %1215 = vmatpush.bf16.msra.mxu2 %v1170_v4  ;;  %v1161_v26 = vld [vmem:[%s1976_s0 + $0x24] sm:$0xf]  ;;  %v953_v27 = vld [vmem:[%s1976_s0 + $0x28] sm:$0xf0]  ;;  %v1151_v28 = vld [vmem:[%s1979_s3 + $0xe8] sm:$0xf]  ;;  %v1148_v31 = vor.u32 %v1209_v22, %v1145_v23  ;;  %v952_v40 = vor.u32 %v1162_v25, %v951_v24 }
  0x10   :  { %251 = vmatpush.bf16.msra.mxu1 %v1178_v5  ;;  %1223 = vmatpush.bf16.msra.mxu3 %v1178_v5  ;;  %v1212_v29 = vld [vmem:[%s1979_s3 + $0xf4] sm:$0xf0]  ;;  %v1210_v32 = vld [vmem:[%s1979_s3 + $0xec] sm:$0xf]  ;;  %v1153_v33 = vld [vmem:[%s1979_s3 + $0xf8] sm:$0xf0]  ;;  %v956_v41 = vor.u32 %v1161_v26, %v953_v27 }
  0x11   :  { %v1127_v34 = vld [vmem:[%s1979_s3 + $0xc0] sm:$0xf]  ;;  %v1207_v37 = vld [vmem:[%s1979_s3 + $0xcc] sm:$0xf0]  ;;  %v1205_v38 = vld [vmem:[%s1979_s3 + $0xc4] sm:$0xf]  ;;  %v1152_v42 = vor.u32 %v1212_v29, %v1151_v28  ;;  %v1156_v43 = vor.u32 %v1210_v32, %v1153_v33 }
  0x12   :  { %v1129_v39 = vld [vmem:[%s1979_s3 + $0xd0] sm:$0xf0]  ;;  %v1135_v44 = vld [vmem:[%s1979_s3 + $0xc8] sm:$0xf]  ;;  %v1208_v45 = vld [vmem:[%s1979_s3 + $0xd4] sm:$0xf0]  ;;  %v1128_v46 = vor.u32 %v1207_v37, %v1127_v34 }
  0x13   :  { %223 = vmatpush.bf16.msra.mxu0 %v1169_v6  ;;  %1216 = vmatpush.bf16.msra.mxu2 %v1169_v6  ;;  %v1132_v47 = vor.u32 %v1205_v38, %v1129_v39  ;;  %v1206_v48 = vld [vmem:[%s1979_s3 + $0xcc] sm:$0xf]  ;;  %v1137_v49 = vld [vmem:[%s1979_s3 + $0xd8] sm:$0xf0]  ;;  %v1111_v50 = vld [vmem:[%s1979_s3 + $0xa0] sm:$0xf]  ;;  %v1136_v54 = vor.u32 %v1208_v45, %v1135_v44 }
  0x14   :  { %252 = vmatpush.bf16.msra.mxu1 %v1177_v7  ;;  %1224 = vmatpush.bf16.msra.mxu3 %v1177_v7  ;;  %v1203_v51 = vld [vmem:[%s1979_s3 + $0xac] sm:$0xf0]  ;;  %v1201_v52 = vld [vmem:[%s1979_s3 + $0xa4] sm:$0xf]  ;;  %v1113_v53 = vld [vmem:[%s1979_s3 + $0xb0] sm:$0xf0]  ;;  %v1140_v55 = vor.u32 %v1206_v48, %v1137_v49 }
  0x15   :  { %v1119_v56 = vld [vmem:[%s1979_s3 + $0xa8] sm:$0xf]  ;;  %v1112_v57 = vor.u32 %v1203_v51, %v1111_v50  ;;  %v1116_v58 = vor.u32 %v1201_v52, %v1113_v53  ;;  %v1204_v59 = vld [vmem:[%s1979_s3 + $0xb4] sm:$0xf0]  ;;  %v1202_v60 = vld [vmem:[%s1979_s3 + $0xac] sm:$0xf] }
  0x16   :  { %v1121_v61 = vld [vmem:[%s1979_s3 + $0xb8] sm:$0xf0]  ;;  %v1120_v62 = vor.u32 %v1204_v59, %v1119_v56  ;;  %v943_v0 = vld [vmem:[%s1976_s0 + $0x10] sm:$0xf]  ;;  %v1160_v1 = vld [vmem:[%s1976_s0 + $0x14] sm:$0xf0] }
  0x17   :  { %224 = vmatpush.bf16.msra.mxu0 %v1168_v8  ;;  %1217 = vmatpush.bf16.msra.mxu2 %v1168_v8  ;;  %v1124_v63 = vor.u32 %v1202_v60, %v1121_v61  ;;  %v1159_v2 = vld [vmem:[%s1976_s0 + $0x14] sm:$0xf]  ;;  %v945_v3 = vld [vmem:[%s1976_s0 + $0x18] sm:$0xf0]  ;;  %v959_v4 = vld [vmem:[%s1976_s0 + $0x30] sm:$0xf]  ;;  %v944_v8 = vor.u32 %v1160_v1, %v943_v0 }
  0x18   :  { %253 = vmatpush.bf16.msra.mxu1 %v1176_v9  ;;  %1225 = vmatpush.bf16.msra.mxu3 %v1176_v9  ;;  %v1164_v5 = vld [vmem:[%s1976_s0 + $0x34] sm:$0xf0]  ;;  %v1163_v6 = vld [vmem:[%s1976_s0 + $0x34] sm:$0xf]  ;;  %v961_v7 = vld [vmem:[%s1976_s0 + $0x38] sm:$0xf0]  ;;  %v948_v9 = vor.u32 %v1159_v2, %v945_v3 }
  0x19   :  { %v1097_v16 = vld [vmem:[%s1979_s3 + $0x90] sm:$0xf0]  ;;  %v1103_v17 = vld [vmem:[%s1979_s3 + $0x88] sm:$0xf]  ;;  %v1200_v18 = vld [vmem:[%s1979_s3 + $0x94] sm:$0xf0] }
  0x1a   :  { %v1104_v20 = vor.u32 %v1200_v18, %v1103_v17  ;;  %v1198_v21 = vld [vmem:[%s1979_s3 + $0x8c] sm:$0xf]  ;;  %v1105_v22 = vld [vmem:[%s1979_s3 + $0x98] sm:$0xf0]  ;;  %v1079_v24 = vld [vmem:[%s1979_s3 + $0x60] sm:$0xf] }
  0x1b   :  { %225 = vmatpush.bf16.msra.mxu0 %v1167_v10  ;;  %1218 = vmatpush.bf16.msra.mxu2 %v1167_v10  ;;  %v960_v10 = vor.u32 %v1164_v5, %v959_v4  ;;  %v1108_v23 = vor.u32 %v1198_v21, %v1105_v22  ;;  %v1195_v25 = vld [vmem:[%s1979_s3 + $0x6c] sm:$0xf0]  ;;  %v1193_v26 = vld [vmem:[%s1979_s3 + $0x64] sm:$0xf]  ;;  %v1081_v28 = vld [vmem:[%s1979_s3 + $0x70] sm:$0xf0] }
  0x1c   :  { %254 = vmatpush.bf16.msra.mxu1 %v1175_v11  ;;  %1226 = vmatpush.bf16.msra.mxu3 %v1175_v11  ;;  %v964_v11 = vor.u32 %v1163_v6, %v961_v7  ;;  %v1080_v27 = vor.u32 %v1195_v25, %v1079_v24  ;;  %v1087_v29 = vld [vmem:[%s1979_s3 + $0x68] sm:$0xf]  ;;  %v1194_v33 = vld [vmem:[%s1979_s3 + $0x6c] sm:$0xf]  ;;  %v1089_v34 = vld [vmem:[%s1979_s3 + $0x78] sm:$0xf0] }
  0x1d   :  { %v1191_v37 = vld [vmem:[%s1979_s3 + $0x4c] sm:$0xf0]  ;;  %v1189_v38 = vld [vmem:[%s1979_s3 + $0x44] sm:$0xf]  ;;  %v1190_v45 = vld [vmem:[%s1979_s3 + $0x4c] sm:$0xf] }
  0x1e   :  { %v1047_v48 = vld [vmem:[%s1979_s3 + $0x20] sm:$0xf]  ;;  %v1187_v49 = vld [vmem:[%s1979_s3 + $0x2c] sm:$0xf0]  ;;  %v1185_v50 = vld [vmem:[%s1979_s3 + $0x24] sm:$0xf] }
  0x1f   :  { %226 = vmatpush.bf16.msra.mxu0 %v1166_v12  ;;  %1219 = vmatpush.bf16.msra.mxu2 %v1166_v12  ;;  %v1095_v12 = vld [vmem:[%s1979_s3 + $0x80] sm:$0xf]  ;;  %v1048_v51 = vor.u32 %v1187_v49, %v1047_v48  ;;  %v1049_v52 = vld [vmem:[%s1979_s3 + $0x30] sm:$0xf0]  ;;  %v1055_v53 = vld [vmem:[%s1979_s3 + $0x28] sm:$0xf] }
  0x20   :  { %255 = vmatpush.bf16.msra.mxu1 %v1174_v13  ;;  %1227 = vmatpush.bf16.msra.mxu3 %v1174_v13  ;;  %v1199_v13 = vld [vmem:[%s1979_s3 + $0x8c] sm:$0xf0]  ;;  %v1031_v60 = vld [vmem:[%s1979_s3] sm:$0xf]  ;;  %v1033_v0 = vld [vmem:[%s1979_s3 + $0x10] sm:$0xf0] }
  0x21   :  { %v1183_v61 = vld [vmem:[%s1979_s3 + $0xc] sm:$0xf0]  ;;  %v1039_v1 = vld [vmem:[%s1979_s3 + $0x8] sm:$0xf]  ;;  %v1184_v2 = vld [vmem:[%s1979_s3 + $0x14] sm:$0xf0] }
  0x22   :  { %v1040_v4 = vor.u32 %v1184_v2, %v1039_v1  ;;  %v1182_v5 = vld [vmem:[%s1979_s3 + $0xc] sm:$0xf]  ;;  %v1041_v6 = vld [vmem:[%s1979_s3 + $0x18] sm:$0xf0] }
  0x23   :  { %227 = vmatpush.bf16.msra.mxu0 %v1165_v14  ;;  %1220 = vmatpush.bf16.msra.mxu2 %v1165_v14  ;;  %v1197_v14 = vld [vmem:[%s1979_s3 + $0x84] sm:$0xf]  ;;  %v1044_v7 = vor.u32 %v1182_v5, %v1041_v6 }
  0x24   :  { %256 = vmatpush.bf16.msra.mxu1 %v1173_v15  ;;  %1228 = vmatpush.bf16.msra.mxu3 %v1173_v15  ;;  %v1096_v15 = vor.u32 %v1199_v13, %v1095_v12  ;;  %v1100_v19 = vor.u32 %v1197_v14, %v1097_v16 }
  0x26   :  { %228 = vmatmul.bf16.vlgmr.msra.gmra.mxu0 %v936_v35  ;;  %238 = vmatmul.bf16.vlgmr.msra.gmra.mxu2 %v952_v40  ;;  %v1092_v35 = vor.u32 %v1194_v33, %v1089_v34  ;;  %v1065_v40 = vld [vmem:[%s1979_s3 + $0x50] sm:$0xf0] }
  0x27   :  { %492 = vmatpush.bf16.msrb.mxu2 %v1144_v30  ;;  %257 = vmatmul.bf16.vlgmr.msra.gmra.mxu1 %v940_v36  ;;  %v1196_v30 = vld [vmem:[%s1979_s3 + $0x74] sm:$0xf0]  ;;  %v1063_v36 = vld [vmem:[%s1979_s3 + $0x40] sm:$0xf] }
  0x28   :  { %521 = vmatpush.bf16.msrb.mxu3 %v1148_v31  ;;  %550 = vmatpush.bf16.msrb.mxu0 %v1152_v42  ;;  %v1084_v31 = vor.u32 %v1193_v26, %v1081_v28  ;;  %v1088_v32 = vor.u32 %v1196_v30, %v1087_v29  ;;  %v1064_v39 = vor.u32 %v1191_v37, %v1063_v36  ;;  %v1192_v42 = vld [vmem:[%s1979_s3 + $0x54] sm:$0xf0] }
  0x29   :  { %267 = vmatmul.bf16.vlgmr.msra.gmra.mxu3 %v956_v41  ;;  %579 = vmatpush.bf16.msrb.mxu1 %v1156_v43  ;;  %v1071_v41 = vld [vmem:[%s1979_s3 + $0x48] sm:$0xf]  ;;  %v1068_v43 = vor.u32 %v1189_v38, %v1065_v40 }
  0x2a   :  { %v1072_v44 = vor.u32 %v1192_v42, %v1071_v41 }
  0x2b   :  { %493 = vmatpush.bf16.msrb.mxu2 %v1128_v46  ;;  %v1073_v46 = vld [vmem:[%s1979_s3 + $0x58] sm:$0xf0] }
  0x2c   :  { %522 = vmatpush.bf16.msrb.mxu3 %v1132_v47  ;;  %551 = vmatpush.bf16.msrb.mxu0 %v1136_v54  ;;  %v1076_v47 = vor.u32 %v1190_v45, %v1073_v46  ;;  %v1188_v54 = vld [vmem:[%s1979_s3 + $0x34] sm:$0xf0] }
  0x2d   :  { %580 = vmatpush.bf16.msrb.mxu1 %v1140_v55  ;;  %v1052_v55 = vor.u32 %v1185_v50, %v1049_v52  ;;  %v1056_v56 = vor.u32 %v1188_v54, %v1055_v53 }
  0x2f   :  { %494 = vmatpush.bf16.msrb.mxu2 %v1112_v57  ;;  %v1186_v57 = vld [vmem:[%s1979_s3 + $0x2c] sm:$0xf] }
  0x30   :  { %523 = vmatpush.bf16.msrb.mxu3 %v1116_v58  ;;  %552 = vmatpush.bf16.msrb.mxu0 %v1120_v62  ;;  %v1057_v58 = vld [vmem:[%s1979_s3 + $0x38] sm:$0xf0]  ;;  %v1181_v62 = vld [vmem:[%s1979_s3 + $0x4] sm:$0xf] }
  0x31   :  { %581 = vmatpush.bf16.msrb.mxu1 %v1124_v63  ;;  %v1060_v59 = vor.u32 %v1186_v57, %v1057_v58  ;;  %v1032_v63 = vor.u32 %v1183_v61, %v1031_v60  ;;  %v1036_v3 = vor.u32 %v1181_v62, %v1033_v0 }
  0x33   :  { %495 = vmatpush.bf16.msrb.mxu2 %v1096_v15 }
  0x34   :  { %524 = vmatpush.bf16.msrb.mxu3 %v1100_v19  ;;  %553 = vmatpush.bf16.msrb.mxu0 %v1104_v20 }
  0x35   :  { %582 = vmatpush.bf16.msrb.mxu1 %v1108_v23 }
  0x36   :  { %233 = vmatmul.bf16.gmra.mxu0 %v944_v8  ;;  %243 = vmatmul.bf16.gmra.mxu2 %v960_v10  ;;  %v1235_v8 = vld [vmem:[%s1978_s2] ss:$0 sm:$0xff] }
  0x37   :  { %262 = vmatmul.bf16.gmra.mxu1 %v948_v9  ;;  %496 = vmatpush.bf16.msrb.mxu2 %v1080_v27 }
  0x38   :  { %525 = vmatpush.bf16.msrb.mxu3 %v1084_v31  ;;  %554 = vmatpush.bf16.msrb.mxu0 %v1088_v32 }
  0x39   :  { %272 = vmatmul.bf16.gmra.mxu3 %v964_v11  ;;  %583 = vmatpush.bf16.msrb.mxu1 %v1092_v35 }
  0x3b   :  { %497 = vmatpush.bf16.msrb.mxu2 %v1064_v39 }
  0x3c   :  { %526 = vmatpush.bf16.msrb.mxu3 %v1068_v43  ;;  %555 = vmatpush.bf16.msrb.mxu0 %v1072_v44 }
  0x3d   :  { %584 = vmatpush.bf16.msrb.mxu1 %v1076_v47 }
  0x3f   :  { %498 = vmatpush.bf16.msrb.mxu2 %v1048_v51 }
  0x40   :  { %527 = vmatpush.bf16.msrb.mxu3 %v1052_v55  ;;  %556 = vmatpush.bf16.msrb.mxu0 %v1056_v56  ;;  %v322_v55 = vld [vmem:[%s1980_s4] sm:$0xf] }
  0x41   :  { %585 = vmatpush.bf16.msrb.mxu1 %v1060_v59  ;;  %v1674_v56 = vperm.slane %v322_v55, 0  ;;  %v1676_v57 = vperm.slane %v322_v55, 1  ;;  %v1678_v58 = vperm.slane %v322_v55, 2  ;;  %v1680_v61 = vperm.slane %v322_v55, 3 }
  0x43   :  { %499 = vmatpush.bf16.msrb.mxu2 %v1032_v63 }
  0x44   :  { %528 = vmatpush.bf16.msrb.mxu3 %v1036_v3  ;;  %557 = vmatpush.bf16.msrb.mxu0 %v1040_v4 }
  0x45   :  { %586 = vmatpush.bf16.msrb.mxu1 %v1044_v7 }
  0xa3   :  { %v229_v9 = vpop.f32.mrf.mxu0 }
  0xa4   :  { %v258_v10 = vpop.f32.mrf.mxu1  ;;  %v230_v11 = vadd.f32 %v1235_v8, %v229_v9 }
  0xa6   :  { %v259_v12 = vadd.f32 %v258_v10, %v230_v11 }
  0xa8   :  { %1236 = vtanh.f32 %v259_v12 }
  0xa9   :  { %v239_v20 = vpop.f32.mrf.mxu2 }
  0xaa   :  { %v240_v33 = vadd.f32 %v1235_v8, %v239_v20 }
  0xab   :  { %v231_v13 = vpop.f32.mrf.mxu0 }
  0xac   :  { %v260_v14 = vpop.f32.mrf.mxu1  ;;  %v232_v15 = vadd.f32 %v1235_v8, %v231_v13  ;;  %v268_v24 = vpop.f32.mrf.mxu3 }
  0xad   :  { %v269_v37 = vadd.f32 %v268_v24, %v240_v33 }
  0xae   :  { %v261_v16 = vadd.f32 %v260_v14, %v232_v15  ;;  %v1237_v19 = vpop.eup %1236 }
  0xb0   :  { %1238 = vtanh.f32 %v261_v16 }
  0xb1   :  { %v241_v30 = vpop.f32.mrf.mxu2 }
  0xb2   :  { %v242_v35 = vadd.f32 %v1235_v8, %v241_v30 }
  0xb3   :  { %v234_v17 = vpop.f32.mrf.mxu0 }
  0xb4   :  { %v263_v18 = vpop.f32.mrf.mxu1  ;;  %v235_v22 = vadd.f32 %v1235_v8, %v234_v17  ;;  %v270_v31 = vpop.f32.mrf.mxu3 }
  0xb5   :  { %v271_v39 = vadd.f32 %v270_v31, %v242_v35 }
  0xb6   :  { %v1239_v21 = vpop.eup %1238  ;;  %v264_v25 = vadd.f32 %v263_v18, %v235_v22 }
  0xb7   :  { %v286_v23 = vpack.c.bf16 %v1239_v21, %v1237_v19 }
  0xb8   :  { %1240 = vtanh.f32 %v264_v25 }
  0xb9   :  { %500 = vmatmul.bf16.vlgmr.msrb.gmra.mxu2 %v286_v23  ;;  %529 = vmatmul.bf16.vlgmr.msrb.gmra.mxu3 %v286_v23  ;;  %v244_v38 = vpop.f32.mrf.mxu2 }
  0xba   :  { %558 = vmatmul.bf16.vlgmr.msrb.gmra.mxu0 %v286_v23  ;;  %587 = vmatmul.bf16.vlgmr.msrb.gmra.mxu1 %v286_v23  ;;  %v245_v44 = vadd.f32 %v1235_v8, %v244_v38 }
  0xbb   :  { %v236_v26 = vpop.f32.mrf.mxu0 }
  0xbc   :  { %v237_v27 = vadd.f32 %v1235_v8, %v236_v26  ;;  %v265_v28 = vpop.f32.mrf.mxu1  ;;  %v273_v40 = vpop.f32.mrf.mxu3 }
  0xbd   :  { %v274_v48 = vadd.f32 %v273_v40, %v245_v44 }
  0xbe   :  { %v266_v29 = vadd.f32 %v265_v28, %v237_v27  ;;  %v1241_v32 = vpop.eup %1240 }
  0xc0   :  { %1242 = vtanh.f32 %v266_v29 }
  0xc1   :  { %1244 = vtanh.f32 %v269_v37  ;;  %v246_v42 = vpop.f32.mrf.mxu2 }
  0xc2   :  { %1246 = vtanh.f32 %v271_v39  ;;  %v247_v45 = vadd.f32 %v1235_v8, %v246_v42 }
  0xc3   :  { %1248 = vtanh.f32 %v274_v48 }
  0xc4   :  { %v275_v46 = vpop.f32.mrf.mxu3 }
  0xc5   :  { %v276_v49 = vadd.f32 %v275_v46, %v247_v45 }
  0xc6   :  { %v1243_v34 = vpop.eup %1242 }
  0xc7   :  { %v287_v36 = vpack.c.bf16 %v1243_v34, %v1241_v32  ;;  %v1245_v41 = vpop.eup %1244  ;;  %1250 = vtanh.f32 %v276_v49 }
  0xc8   :  { %v1247_v43 = vpop.eup %1246 }
  0xc9   :  { %505 = vmatmul.bf16.gmra.mxu2 %v287_v36  ;;  %534 = vmatmul.bf16.gmra.mxu3 %v287_v36  ;;  %v288_v47 = vpack.c.bf16 %v1247_v43, %v1245_v41  ;;  %v1249_v50 = vpop.eup %1248 }
  0xca   :  { %563 = vmatmul.bf16.gmra.mxu0 %v287_v36  ;;  %592 = vmatmul.bf16.gmra.mxu1 %v287_v36 }
  0xcd   :  { %v1251_v51 = vpop.eup %1250 }
  0xce   :  { %v289_v52 = vpack.c.bf16 %v1251_v51, %v1249_v50 }
  0xd9   :  { %510 = vmatmul.bf16.gmra.mxu2 %v288_v47  ;;  %539 = vmatmul.bf16.gmra.mxu3 %v288_v47 }
  0xda   :  { %568 = vmatmul.bf16.gmra.mxu0 %v288_v47  ;;  %597 = vmatmul.bf16.gmra.mxu1 %v288_v47 }
  0xe9   :  { %515 = vmatmul.bf16.gmra.mxu2 %v289_v52  ;;  %544 = vmatmul.bf16.gmra.mxu3 %v289_v52 }
  0xea   :  { %573 = vmatmul.bf16.gmra.mxu0 %v289_v52  ;;  %602 = vmatmul.bf16.gmra.mxu1 %v289_v52 }
 0x137   :  { %v559_v53 = vpop.f32.mrf.mxu0  ;;  %v588_v54 = vpop.f32.mrf.mxu1 }
 0x138   :  { %v1689_v0 = vadd.f32 %v559_v53, %v1678_v58  ;;  %v1694_v4 = vadd.f32 %v588_v54, %v1680_v61 }
 0x13c   :  { %v501_v59 = vpop.f32.mrf.mxu2  ;;  %v530_v60 = vpop.f32.mrf.mxu3 }
 0x13d   :  { %v1683_v62 = vadd.f32 %v501_v59, %v1674_v56  ;;  %v1686_v63 = vadd.f32 %v530_v60, %v1676_v57 }
 0x13f   :  { %v561_v1 = vpop.f32.mrf.mxu0  ;;  %v590_v2 = vpop.f32.mrf.mxu1  ;;  %v608_v3 = vmax.f32 %v1683_v62, %v1686_v63 }
 0x140   :  { %v1705_v11 = vadd.f32 %v561_v1, %v1678_v58  ;;  %v1710_v15 = vadd.f32 %v590_v2, %v1680_v61 }
 0x141   :  { %v609_v5 = vmax.f32 %v608_v3, %v1689_v0 }
 0x143   :  { %v610_v6 = vmax.f32 %v609_v5, %v1694_v4 }
 0x144   :  { %v503_v7 = vpop.f32.mrf.mxu2  ;;  %v532_v8 = vpop.f32.mrf.mxu3 }
 0x145   :  { %v1699_v9 = vadd.f32 %v503_v7, %v1674_v56  ;;  %v1702_v10 = vadd.f32 %v532_v8, %v1676_v57  ;;  %611 = vmax.xlane.f32.xlu0 %v610_v6 }
 0x147   :  { %v613_v12 = vmax.f32 %v1699_v9, %v1702_v10  ;;  %v564_v13 = vpop.f32.mrf.mxu0  ;;  %v593_v14 = vpop.f32.mrf.mxu1 }
 0x148   :  { %v1721_v22 = vadd.f32 %v564_v13, %v1678_v58  ;;  %v1726_v26 = vadd.f32 %v593_v14, %v1680_v61 }
 0x149   :  { %v614_v16 = vmax.f32 %v613_v12, %v1705_v11 }
 0x14b   :  { %v615_v17 = vmax.f32 %v614_v16, %v1710_v15 }
 0x14c   :  { %v506_v18 = vpop.f32.mrf.mxu2  ;;  %v535_v19 = vpop.f32.mrf.mxu3 }
 0x14d   :  { %v1715_v20 = vadd.f32 %v506_v18, %v1674_v56  ;;  %v1718_v21 = vadd.f32 %v535_v19, %v1676_v57  ;;  %616 = vmax.xlane.f32.xlu0 %v615_v17 }
 0x14f   :  { %v566_v23 = vpop.f32.mrf.mxu0  ;;  %v595_v24 = vpop.f32.mrf.mxu1  ;;  %v618_v25 = vmax.f32 %v1715_v20, %v1718_v21 }
 0x150   :  { %v1737_v33 = vadd.f32 %v566_v23, %v1678_v58  ;;  %v1742_v37 = vadd.f32 %v595_v24, %v1680_v61 }
 0x151   :  { %v619_v27 = vmax.f32 %v618_v25, %v1721_v22 }
 0x153   :  { %v620_v28 = vmax.f32 %v619_v27, %v1726_v26 }
 0x154   :  { %v508_v29 = vpop.f32.mrf.mxu2  ;;  %v537_v30 = vpop.f32.mrf.mxu3 }
 0x155   :  { %v1731_v31 = vadd.f32 %v508_v29, %v1674_v56  ;;  %v1734_v32 = vadd.f32 %v537_v30, %v1676_v57  ;;  %621 = vmax.xlane.f32.xlu1 %v620_v28 }
 0x157   :  { %v623_v34 = vmax.f32 %v1731_v31, %v1734_v32  ;;  %v569_v35 = vpop.f32.mrf.mxu0  ;;  %v598_v36 = vpop.f32.mrf.mxu1 }
 0x158   :  { %v1753_v44 = vadd.f32 %v569_v35, %v1678_v58  ;;  %v1758_v47 = vadd.f32 %v598_v36, %v1680_v61 }
 0x159   :  { %v624_v38 = vmax.f32 %v623_v34, %v1737_v33 }
 0x15b   :  { %v625_v39 = vmax.f32 %v624_v38, %v1742_v37 }
 0x15c   :  { %v511_v40 = vpop.f32.mrf.mxu2  ;;  %v540_v41 = vpop.f32.mrf.mxu3 }
 0x15d   :  { %v1747_v42 = vadd.f32 %v511_v40, %v1674_v56  ;;  %v1750_v43 = vadd.f32 %v540_v41, %v1676_v57  ;;  %626 = vmax.xlane.f32.xlu1 %v625_v39 }
 0x15f   :  { %v571_v45 = vpop.f32.mrf.mxu0  ;;  %v628_v46 = vmax.f32 %v1747_v42, %v1750_v43  ;;  %v600_v48 = vpop.f32.mrf.mxu1 }
 0x160   :  { %v1769_v55 = vadd.f32 %v571_v45, %v1678_v58  ;;  %v1774_v60 = vadd.f32 %v600_v48, %v1680_v61 }
 0x161   :  { %v629_v49 = vmax.f32 %v628_v46, %v1753_v44 }
 0x163   :  { %v630_v50 = vmax.f32 %v629_v49, %v1758_v47 }
 0x164   :  { %v513_v51 = vpop.f32.mrf.mxu2  ;;  %v542_v52 = vpop.f32.mrf.mxu3 }
 0x165   :  { %v1763_v53 = vadd.f32 %v513_v51, %v1674_v56  ;;  %v1766_v54 = vadd.f32 %v542_v52, %v1676_v57  ;;  %631 = vmax.xlane.f32.xlu2 %v630_v50 }
 0x167   :  { %v633_v59 = vmax.f32 %v1763_v53, %v1766_v54  ;;  %v574_v1 = vpop.f32.mrf.mxu0  ;;  %v603_v3 = vpop.f32.mrf.mxu1 }
 0x168   :  { %v1785_v13 = vadd.f32 %v574_v1, %v1678_v58  ;;  %v1790_v16 = vadd.f32 %v603_v3, %v1680_v61 }
 0x169   :  { %v634_v2 = vmax.f32 %v633_v59, %v1769_v55 }
 0x16b   :  { %v635_v5 = vmax.f32 %v634_v2, %v1774_v60 }
 0x16c   :  { %v516_v6 = vpop.f32.mrf.mxu2  ;;  %v545_v7 = vpop.f32.mrf.mxu3 }
 0x16d   :  { %v1779_v8 = vadd.f32 %v516_v6, %v1674_v56  ;;  %v1782_v12 = vadd.f32 %v545_v7, %v1676_v57  ;;  %636 = vmax.xlane.f32.xlu2 %v635_v5 }
 0x16f   :  { %v638_v14 = vmax.f32 %v1779_v8, %v1782_v12  ;;  %v576_v18 = vpop.f32.mrf.mxu0  ;;  %v605_v28 = vpop.f32.mrf.mxu1 }
 0x170   :  { %v1801_v29 = vadd.f32 %v576_v18, %v1678_v58  ;;  %v1806_v34 = vadd.f32 %v605_v28, %v1680_v61 }
 0x171   :  { %v639_v17 = vmax.f32 %v638_v14, %v1785_v13 }
 0x173   :  { %v640_v19 = vmax.f32 %v639_v17, %v1790_v16 }
 0x174   :  { %v518_v23 = vpop.f32.mrf.mxu2  ;;  %v547_v24 = vpop.f32.mrf.mxu3 }
 0x175   :  { %v1795_v25 = vadd.f32 %v518_v23, %v1674_v56  ;;  %v1798_v27 = vadd.f32 %v547_v24, %v1676_v57  ;;  %641 = vmax.xlane.f32.xlu0 %v640_v19 }
 0x177   :  { %v643_v30 = vmax.f32 %v1795_v25, %v1798_v27 }
 0x179   :  { %v644_v35 = vmax.f32 %v643_v30, %v1801_v29 }
 0x17b   :  { %v645_v36 = vmax.f32 %v644_v35, %v1806_v34 }
 0x17d   :  { %646 = vmax.xlane.f32.xlu1 %v645_v36 }
 0x1b8   :  { %v1810_v56 = vpop.xlane.xlu0 %611 }
 0x1b9   :  { %v648_v57 = vsub.f32 %v1683_v62, %v1810_v56  ;;  %v649_v58 = vsub.f32 %v1686_v63, %v1810_v56  ;;  %v650_v38 = vsub.f32 %v1689_v0, %v1810_v56  ;;  %v651_v61 = vsub.f32 %v1694_v4, %v1810_v56 }
 0x1bb   :  { %v680_v39 = vmul.f32 1.442695, %v648_v57  ;;  %v682_v40 = vmul.f32 1.442695, %v649_v58  ;;  %v684_v41 = vmul.f32 1.442695, %v650_v38 }
 0x1bc   :  { %v686_v45 = vmul.f32 1.442695, %v651_v61 }
 0x1bd   :  { %1252 = vpow2.f32 %v680_v39 }
 0x1be   :  { %1254 = vpow2.f32 %v682_v40 }
 0x1bf   :  { %1256 = vpow2.f32 %v684_v41 }
 0x1c0   :  { %v1820_v46 = vpop.xlane.xlu0 %616  ;;  %1258 = vpow2.f32 %v686_v45 }
 0x1c1   :  { %v652_v48 = vsub.f32 %v1699_v9, %v1820_v46  ;;  %v653_v49 = vsub.f32 %v1702_v10, %v1820_v46  ;;  %v654_v50 = vsub.f32 %v1705_v11, %v1820_v46  ;;  %v655_v52 = vsub.f32 %v1710_v15, %v1820_v46 }
 0x1c3   :  { %v1253_v51 = vpop.eup %1252  ;;  %v688_v59 = vmul.f32 1.442695, %v652_v48  ;;  %v690_v1 = vmul.f32 1.442695, %v653_v49  ;;  %v692_v3 = vmul.f32 1.442695, %v654_v50 }
 0x1c4   :  { %v1255_v2 = vpop.eup %1254  ;;  %v694_v14 = vmul.f32 1.442695, %v655_v52 }
 0x1c5   :  { %1260 = vpow2.f32 %v688_v59  ;;  %v744_v5 = vadd.f32 %v1255_v2, %v1253_v51  ;;  %v1257_v6 = vpop.eup %1256 }
 0x1c6   :  { %1262 = vpow2.f32 %v690_v1  ;;  %v1259_v18 = vpop.eup %1258 }
 0x1c7   :  { %v745_v7 = vadd.f32 %v1257_v6, %v744_v5  ;;  %1264 = vpow2.f32 %v692_v3 }
 0x1c8   :  { %v1830_v17 = vpop.xlane.xlu1 %621  ;;  %1266 = vpow2.f32 %v694_v14 }
 0x1c9   :  { %v656_v19 = vsub.f32 %v1715_v20, %v1830_v17  ;;  %v657_v23 = vsub.f32 %v1718_v21, %v1830_v17  ;;  %v658_v24 = vsub.f32 %v1721_v22, %v1830_v17  ;;  %v746_v28 = vadd.f32 %v1259_v18, %v745_v7 }
 0x1ca   :  { %v659_v35 = vsub.f32 %v1726_v26, %v1830_v17 }
 0x1cb   :  { %v1261_v30 = vpop.eup %1260  ;;  %v696_v36 = vmul.f32 1.442695, %v656_v19  ;;  %v698_v57 = vmul.f32 1.442695, %v657_v23  ;;  %v700_v38 = vmul.f32 1.442695, %v658_v24  ;;  %747 = vadd.xlane.f32.xlu2 %v746_v28 }
 0x1cc   :  { %v1263_v58 = vpop.eup %1262  ;;  %v702_v41 = vmul.f32 1.442695, %v659_v35 }
 0x1cd   :  { %1268 = vpow2.f32 %v696_v36  ;;  %v749_v61 = vadd.f32 %v1263_v58, %v1261_v30  ;;  %v1265_v39 = vpop.eup %1264 }
 0x1ce   :  { %1270 = vpow2.f32 %v698_v57  ;;  %v1267_v48 = vpop.eup %1266 }
 0x1cf   :  { %v750_v40 = vadd.f32 %v1265_v39, %v749_v61  ;;  %1272 = vpow2.f32 %v700_v38 }
 0x1d0   :  { %v1840_v45 = vpop.xlane.xlu1 %626  ;;  %1274 = vpow2.f32 %v702_v41 }
 0x1d1   :  { %v660_v49 = vsub.f32 %v1731_v31, %v1840_v45  ;;  %v661_v50 = vsub.f32 %v1734_v32, %v1840_v45  ;;  %v662_v51 = vsub.f32 %v1737_v33, %v1840_v45  ;;  %v751_v52 = vadd.f32 %v1267_v48, %v750_v40 }
 0x1d2   :  { %v663_v1 = vsub.f32 %v1742_v37, %v1840_v45 }
 0x1d3   :  { %v1269_v59 = vpop.eup %1268  ;;  %v704_v2 = vmul.f32 1.442695, %v660_v49  ;;  %v706_v3 = vmul.f32 1.442695, %v661_v50  ;;  %v708_v6 = vmul.f32 1.442695, %v662_v51  ;;  %752 = vadd.xlane.f32.xlu0 %v751_v52 }
 0x1d4   :  { %v1271_v5 = vpop.eup %1270  ;;  %v710_v19 = vmul.f32 1.442695, %v663_v1 }
 0x1d5   :  { %1276 = vpow2.f32 %v704_v2  ;;  %v754_v7 = vadd.f32 %v1271_v5, %v1269_v59  ;;  %v1273_v14 = vpop.eup %1272 }
 0x1d6   :  { %1278 = vpow2.f32 %v706_v3  ;;  %v1275_v24 = vpop.eup %1274 }
 0x1d7   :  { %v755_v18 = vadd.f32 %v1273_v14, %v754_v7  ;;  %1280 = vpow2.f32 %v708_v6 }
 0x1d8   :  { %v1850_v23 = vpop.xlane.xlu2 %631  ;;  %1282 = vpow2.f32 %v710_v19 }
 0x1d9   :  { %v664_v28 = vsub.f32 %v1747_v42, %v1850_v23  ;;  %v665_v30 = vsub.f32 %v1750_v43, %v1850_v23  ;;  %v666_v35 = vsub.f32 %v1753_v44, %v1850_v23  ;;  %v756_v36 = vadd.f32 %v1275_v24, %v755_v18 }
 0x1da   :  { %v667_v58 = vsub.f32 %v1758_v47, %v1850_v23 }
 0x1db   :  { %v1277_v57 = vpop.eup %1276  ;;  %v712_v38 = vmul.f32 1.442695, %v664_v28  ;;  %v714_v61 = vmul.f32 1.442695, %v665_v30  ;;  %v716_v40 = vmul.f32 1.442695, %v666_v35  ;;  %757 = vadd.xlane.f32.xlu1 %v756_v36 }
 0x1dc   :  { %v1279_v39 = vpop.eup %1278  ;;  %v718_v50 = vmul.f32 1.442695, %v667_v58 }
 0x1dd   :  { %1284 = vpow2.f32 %v712_v38  ;;  %v759_v41 = vadd.f32 %v1279_v39, %v1277_v57  ;;  %v1281_v48 = vpop.eup %1280 }
 0x1de   :  { %1286 = vpow2.f32 %v714_v61  ;;  %v1283_v52 = vpop.eup %1282 }
 0x1df   :  { %v760_v49 = vadd.f32 %v1281_v48, %v759_v41  ;;  %1288 = vpow2.f32 %v716_v40 }
 0x1e0   :  { %v1860_v51 = vpop.xlane.xlu2 %636  ;;  %1290 = vpow2.f32 %v718_v50 }
 0x1e1   :  { %v668_v59 = vsub.f32 %v1763_v53, %v1860_v51  ;;  %v669_v1 = vsub.f32 %v1766_v54, %v1860_v51  ;;  %v670_v2 = vsub.f32 %v1769_v55, %v1860_v51  ;;  %v761_v3 = vadd.f32 %v1283_v52, %v760_v49 }
 0x1e2   :  { %v671_v6 = vsub.f32 %v1774_v60, %v1860_v51 }
 0x1e3   :  { %v1285_v5 = vpop.eup %1284  ;;  %v720_v7 = vmul.f32 1.442695, %v668_v59  ;;  %v722_v14 = vmul.f32 1.442695, %v669_v1  ;;  %v724_v19 = vmul.f32 1.442695, %v670_v2  ;;  %762 = vadd.xlane.f32.xlu2 %v761_v3 }
 0x1e4   :  { %v1287_v18 = vpop.eup %1286  ;;  %v726_v35 = vmul.f32 1.442695, %v671_v6 }
 0x1e5   :  { %1292 = vpow2.f32 %v720_v7  ;;  %v764_v24 = vadd.f32 %v1287_v18, %v1285_v5  ;;  %v1289_v28 = vpop.eup %1288 }
 0x1e6   :  { %1294 = vpow2.f32 %v722_v14  ;;  %v1291_v57 = vpop.eup %1290 }
 0x1e7   :  { %v765_v30 = vadd.f32 %v1289_v28, %v764_v24  ;;  %1296 = vpow2.f32 %v724_v19 }
 0x1e8   :  { %v1870_v36 = vpop.xlane.xlu0 %641  ;;  %1298 = vpow2.f32 %v726_v35 }
 0x1e9   :  { %v672_v58 = vsub.f32 %v1779_v8, %v1870_v36  ;;  %v673_v38 = vsub.f32 %v1782_v12, %v1870_v36  ;;  %v674_v61 = vsub.f32 %v1785_v13, %v1870_v36  ;;  %v675_v39 = vsub.f32 %v1790_v16, %v1870_v36 }
 0x1ea   :  { %v766_v40 = vadd.f32 %v1291_v57, %v765_v30 }
 0x1eb   :  { %v1293_v41 = vpop.eup %1292  ;;  %v728_v48 = vmul.f32 1.442695, %v672_v58  ;;  %v730_v49 = vmul.f32 1.442695, %v673_v38  ;;  %v732_v52 = vmul.f32 1.442695, %v674_v61 }
 0x1ec   :  { %v1295_v50 = vpop.eup %1294  ;;  %767 = vadd.xlane.f32.xlu0 %v766_v40  ;;  %v734_v2 = vmul.f32 1.442695, %v675_v39 }
 0x1ed   :  { %1300 = vpow2.f32 %v728_v48  ;;  %v769_v59 = vadd.f32 %v1295_v50, %v1293_v41  ;;  %v1297_v1 = vpop.eup %1296 }
 0x1ee   :  { %1302 = vpow2.f32 %v730_v49  ;;  %v1299_v6 = vpop.eup %1298 }
 0x1ef   :  { %v770_v3 = vadd.f32 %v1297_v1, %v769_v59  ;;  %1304 = vpow2.f32 %v732_v52 }
 0x1f0   :  { %v1880_v5 = vpop.xlane.xlu1 %646  ;;  %1306 = vpow2.f32 %v734_v2 }
 0x1f1   :  { %v676_v7 = vsub.f32 %v1795_v25, %v1880_v5  ;;  %v677_v14 = vsub.f32 %v1798_v27, %v1880_v5  ;;  %v678_v18 = vsub.f32 %v1801_v29, %v1880_v5  ;;  %v679_v19 = vsub.f32 %v1806_v34, %v1880_v5 }
 0x1f2   :  { %v771_v24 = vadd.f32 %v1299_v6, %v770_v3 }
 0x1f3   :  { %v1301_v28 = vpop.eup %1300  ;;  %v736_v30 = vmul.f32 1.442695, %v676_v7  ;;  %v738_v35 = vmul.f32 1.442695, %v677_v14  ;;  %v740_v58 = vmul.f32 1.442695, %v678_v18 }
 0x1f4   :  { %v1303_v57 = vpop.eup %1302  ;;  %772 = vadd.xlane.f32.xlu1 %v771_v24  ;;  %v742_v39 = vmul.f32 1.442695, %v679_v19  ;;  %v840_v7 = vld [vmem:[%s1981_s5] sm:$0xf]  ;;  %s1387_s5 = smov [#allocation5]  }
 0x1f5   :  { %1308 = vpow2.f32 %v736_v30  ;;  %v774_v38 = vadd.f32 %v1303_v57, %v1301_v28  ;;  %v1305_v61 = vpop.eup %1304  ;;  %v1893_v24 = vperm.slane %v840_v7, 0  ;;  %v1895_v28 = vperm.slane %v840_v7, 1  ;;  %s918_s0 = sshll.u32 %s1387_s5, 4  ;;  %s919_s0 = int_to_ptr.vmem [resolvable:$true] %s918_s0 }
 0x1f6   :  { %1310 = vpow2.f32 %v738_v35  ;;  %v1307_v41 = vpop.eup %1306  ;;  %v1897_v30 = vperm.slane %v840_v7, 2  ;;  %v1899_v35 = vperm.slane %v840_v7, 3 }
 0x1f7   :  { %v775_v40 = vadd.f32 %v1305_v61, %v774_v38  ;;  %1312 = vpow2.f32 %v740_v58 }
 0x1f8   :  { %1314 = vpow2.f32 %v742_v39 }
 0x1f9   :  { %v776_v48 = vadd.f32 %v1307_v41, %v775_v40 }
 0x1fb   :  { %v1309_v49 = vpop.eup %1308  ;;  %777 = vadd.xlane.f32.xlu2 %v776_v48 }
 0x1fc   :  { %v1311_v50 = vpop.eup %1310 }
 0x1fd   :  { %v779_v52 = vadd.f32 %v1311_v50, %v1309_v49  ;;  %v1313_v59 = vpop.eup %1312 }
 0x1fe   :  { %v1315_v2 = vpop.eup %1314 }
 0x1ff   :  { %v780_v1 = vadd.f32 %v1313_v59, %v779_v52 }
 0x201   :  { %v781_v3 = vadd.f32 %v1315_v2, %v780_v1 }
 0x203   :  { %782 = vadd.xlane.f32.xlu0 %v781_v3 }
 0x23e   :  { %v748_v6 = vpop.xlane.xlu2 %747 }
 0x23f   :  { %1316 = vlog2.f32 %v748_v6 }
 0x245   :  { %v1317_v14 = vpop.eup %1316 }
 0x246   :  { %v785_v18 = vmul.f32 0.6931472, %v1317_v14  ;;  %v753_v19 = vpop.xlane.xlu0 %752 }
 0x247   :  { %1318 = vlog2.f32 %v753_v19 }
 0x248   :  { %v800_v57 = vadd.f32 %v785_v18, %v1810_v56 }
 0x24a   :  { %v808_v58 = vsub.f32 %v1683_v62, %v800_v57  ;;  %v809_v38 = vsub.f32 %v1686_v63, %v800_v57  ;;  %v810_v61 = vsub.f32 %v1689_v0, %v800_v57  ;;  %v811_v39 = vsub.f32 %v1694_v4, %v800_v57 }
 0x24c   :  { %v850_v40 = vadd.f32 %v1893_v24, %v808_v58  ;;  %v851_v41 = vadd.f32 %v1895_v28, %v809_v38  ;;  %v852_v48 = vadd.f32 %v1897_v30, %v810_v61  ;;  %v853_v49 = vadd.f32 %v1899_v35, %v811_v39 }
 0x24d   :  { %v1319_v50 = vpop.eup %1318 }
 0x24e   :  { %v882_v52 = vpack.c.bf16 %v851_v41, %v850_v40  ;;  %v883_v59 = vpack.c.bf16 %v853_v49, %v852_v48  ;;  %v787_v56 = vmul.f32 0.6931472, %v1319_v50  ;;  %v758_v1 = vpop.xlane.xlu1 %757 }
 0x24f   :  { %1320 = vlog2.f32 %v758_v1 }
 0x250   :  { %898 = vst [vmem:[#allocation5] sm:$0xff] %v882_v52  ;;  %v801_v62 = vadd.f32 %v787_v56, %v1820_v46 }
 0x251   :  { %899 = vst [vmem:[#allocation5 + $0x8] sm:$0xff] %v883_v59 }
 0x252   :  { %v812_v63 = vsub.f32 %v1699_v9, %v801_v62  ;;  %v813_v0 = vsub.f32 %v1702_v10, %v801_v62  ;;  %v814_v4 = vsub.f32 %v1705_v11, %v801_v62  ;;  %v815_v2 = vsub.f32 %v1710_v15, %v801_v62 }
 0x254   :  { %v854_v3 = vadd.f32 %v1893_v24, %v812_v63  ;;  %v855_v6 = vadd.f32 %v1895_v28, %v813_v0  ;;  %v856_v7 = vadd.f32 %v1897_v30, %v814_v4  ;;  %v857_v14 = vadd.f32 %v1899_v35, %v815_v2 }
 0x255   :  { %v1321_v18 = vpop.eup %1320 }
 0x256   :  { %v884_v19 = vpack.c.bf16 %v855_v6, %v854_v3  ;;  %v885_v46 = vpack.c.bf16 %v857_v14, %v856_v7  ;;  %v789_v57 = vmul.f32 0.6931472, %v1321_v18  ;;  %v763_v58 = vpop.xlane.xlu2 %762 }
 0x257   :  { %1322 = vlog2.f32 %v763_v58 }
 0x258   :  { %900 = vst [vmem:[#allocation5 + $0x10] sm:$0xff] %v884_v19  ;;  %v802_v9 = vadd.f32 %v789_v57, %v1830_v17 }
 0x259   :  { %901 = vst [vmem:[#allocation5 + $0x18] sm:$0xff] %v885_v46 }
 0x25a   :  { %v816_v10 = vsub.f32 %v1715_v20, %v802_v9  ;;  %v817_v11 = vsub.f32 %v1718_v21, %v802_v9  ;;  %v818_v15 = vsub.f32 %v1721_v22, %v802_v9  ;;  %v819_v38 = vsub.f32 %v1726_v26, %v802_v9 }
 0x25c   :  { %v858_v61 = vadd.f32 %v1893_v24, %v816_v10  ;;  %v859_v39 = vadd.f32 %v1895_v28, %v817_v11  ;;  %v860_v40 = vadd.f32 %v1897_v30, %v818_v15  ;;  %v861_v41 = vadd.f32 %v1899_v35, %v819_v38 }
 0x25d   :  { %v1323_v48 = vpop.eup %1322 }
 0x25e   :  { %v886_v49 = vpack.c.bf16 %v859_v39, %v858_v61  ;;  %v887_v17 = vpack.c.bf16 %v861_v41, %v860_v40  ;;  %v791_v50 = vmul.f32 0.6931472, %v1323_v48 }
 0x25f   :  { %v768_v52 = vpop.xlane.xlu0 %767 }
 0x260   :  { %1324 = vlog2.f32 %v768_v52  ;;  %902 = vst [vmem:[#allocation5 + $0x20] sm:$0xff] %v886_v49  ;;  %v803_v20 = vadd.f32 %v791_v50, %v1840_v45 }
 0x261   :  { %903 = vst [vmem:[#allocation5 + $0x28] sm:$0xff] %v887_v17 }
 0x262   :  { %v820_v21 = vsub.f32 %v1731_v31, %v803_v20  ;;  %v821_v22 = vsub.f32 %v1734_v32, %v803_v20  ;;  %v822_v26 = vsub.f32 %v1737_v33, %v803_v20  ;;  %v823_v59 = vsub.f32 %v1742_v37, %v803_v20 }
 0x264   :  { %v862_v56 = vadd.f32 %v1893_v24, %v820_v21  ;;  %v863_v1 = vadd.f32 %v1895_v28, %v821_v22  ;;  %v864_v62 = vadd.f32 %v1897_v30, %v822_v26  ;;  %v865_v63 = vadd.f32 %v1899_v35, %v823_v59 }
 0x266   :  { %v1325_v0 = vpop.eup %1324  ;;  %v888_v4 = vpack.c.bf16 %v863_v1, %v862_v56  ;;  %v889_v45 = vpack.c.bf16 %v865_v63, %v864_v62 }
 0x267   :  { %v793_v2 = vmul.f32 0.6931472, %v1325_v0  ;;  %v773_v3 = vpop.xlane.xlu1 %772 }
 0x268   :  { %1326 = vlog2.f32 %v773_v3  ;;  %904 = vst [vmem:[#allocation5 + $0x30] sm:$0xff] %v888_v4 }
 0x269   :  { %v804_v31 = vadd.f32 %v793_v2, %v1850_v23  ;;  %905 = vst [vmem:[#allocation5 + $0x38] sm:$0xff] %v889_v45 }
 0x26b   :  { %v824_v32 = vsub.f32 %v1747_v42, %v804_v31  ;;  %v825_v33 = vsub.f32 %v1750_v43, %v804_v31  ;;  %v826_v37 = vsub.f32 %v1753_v44, %v804_v31  ;;  %v827_v6 = vsub.f32 %v1758_v47, %v804_v31 }
 0x26d   :  { %v866_v7 = vadd.f32 %v1893_v24, %v824_v32  ;;  %v867_v14 = vadd.f32 %v1895_v28, %v825_v33  ;;  %v868_v18 = vadd.f32 %v1897_v30, %v826_v37  ;;  %v869_v19 = vadd.f32 %v1899_v35, %v827_v6 }
 0x26e   :  { %v1327_v46 = vpop.eup %1326  ;;  %v778_v57 = vpop.xlane.xlu2 %777 }
 0x26f   :  { %v890_v23 = vpack.c.bf16 %v867_v14, %v866_v7  ;;  %v891_v58 = vpack.c.bf16 %v869_v19, %v868_v18  ;;  %v795_v9 = vmul.f32 0.6931472, %v1327_v46  ;;  %1328 = vlog2.f32 %v778_v57 }
 0x271   :  { %906 = vst [vmem:[#allocation5 + $0x40] sm:$0xff] %v890_v23  ;;  %v805_v42 = vadd.f32 %v795_v9, %v1860_v51 }
 0x272   :  { %907 = vst [vmem:[#allocation5 + $0x48] sm:$0xff] %v891_v58 }
 0x273   :  { %v828_v43 = vsub.f32 %v1763_v53, %v805_v42  ;;  %v829_v44 = vsub.f32 %v1766_v54, %v805_v42  ;;  %v830_v47 = vsub.f32 %v1769_v55, %v805_v42  ;;  %v831_v10 = vsub.f32 %v1774_v60, %v805_v42 }
 0x275   :  { %v1329_v11 = vpop.eup %1328  ;;  %v870_v15 = vadd.f32 %v1893_v24, %v828_v43  ;;  %v871_v38 = vadd.f32 %v1895_v28, %v829_v44  ;;  %v872_v61 = vadd.f32 %v1897_v30, %v830_v47  ;;  %v873_v39 = vadd.f32 %v1899_v35, %v831_v10 }
 0x276   :  { %v797_v40 = vmul.f32 0.6931472, %v1329_v11  ;;  %v783_v51 = vpop.xlane.xlu0 %782 }
 0x277   :  { %v892_v41 = vpack.c.bf16 %v871_v38, %v870_v15  ;;  %v893_v48 = vpack.c.bf16 %v873_v39, %v872_v61  ;;  %1330 = vlog2.f32 %v783_v51 }
 0x278   :  { %v806_v53 = vadd.f32 %v797_v40, %v1870_v36 }
 0x279   :  { %908 = vst [vmem:[#allocation5 + $0x50] sm:$0xff] %v892_v41 }
 0x27a   :  { %909 = vst [vmem:[#allocation5 + $0x58] sm:$0xff] %v893_v48  ;;  %v832_v54 = vsub.f32 %v1779_v8, %v806_v53  ;;  %v833_v55 = vsub.f32 %v1782_v12, %v806_v53  ;;  %v834_v60 = vsub.f32 %v1785_v13, %v806_v53  ;;  %v835_v49 = vsub.f32 %v1790_v16, %v806_v53 }
 0x27c   :  { %v874_v17 = vadd.f32 %v1893_v24, %v832_v54  ;;  %v875_v50 = vadd.f32 %v1895_v28, %v833_v55  ;;  %v876_v52 = vadd.f32 %v1897_v30, %v834_v60  ;;  %v877_v20 = vadd.f32 %v1899_v35, %v835_v49 }
 0x27d   :  { %v1331_v21 = vpop.eup %1330 }
 0x27e   :  { %v894_v36 = vpack.c.bf16 %v875_v50, %v874_v17  ;;  %v895_v22 = vpack.c.bf16 %v877_v20, %v876_v52  ;;  %v799_v26 = vmul.f32 0.6931472, %v1331_v21 }
 0x280   :  { %910 = vst [vmem:[#allocation5 + $0x60] sm:$0xff] %v894_v36  ;;  %v807_v8 = vadd.f32 %v799_v26, %v1880_v5 }
 0x281   :  { %911 = vst [vmem:[#allocation5 + $0x68] sm:$0xff] %v895_v22 }
 0x282   :  { %v836_v12 = vsub.f32 %v1795_v25, %v807_v8  ;;  %v837_v13 = vsub.f32 %v1798_v27, %v807_v8  ;;  %v838_v16 = vsub.f32 %v1801_v29, %v807_v8  ;;  %v839_v59 = vsub.f32 %v1806_v34, %v807_v8 }
 0x284   :  { %v878_v56 = vadd.f32 %v1893_v24, %v836_v12  ;;  %v879_v1 = vadd.f32 %v1895_v28, %v837_v13  ;;  %v880_v5 = vadd.f32 %v1897_v30, %v838_v16  ;;  %v881_v25 = vadd.f32 %v1899_v35, %v839_v59 }
 0x286   :  { %v896_v62 = vpack.c.bf16 %v879_v1, %v878_v56  ;;  %v897_v27 = vpack.c.bf16 %v881_v25, %v880_v5 }
 0x288   :  { %912 = vst [vmem:[#allocation5 + $0x70] sm:$0xff] %v896_v62 }
 0x289   :  { %913 = vst [vmem:[#allocation5 + $0x78] sm:$0xff] %v897_v27 }
 0x28a   :  { %926 = dma.vmem_to_hbm [thread:$0]  %s919_s0, 2048, %s921_s15, [#allocation4], %s1388_s16, %s1388_s16, %s1389_s17  }
 0x28b   :  { %1382 = dma.done.wait [#allocation4], 2048  }
 0x28c   :  { %1383 = vsyncadd [#allocation4], 4294965248 }
 0x28d   :  { %931 = vsyncpa [#allocation3], 1 }
 0x28e   :  { %932 = vsyncpa [#allocation4], 1 }

// kernel: rnn_decoder_forward.2
= control target key start
LH: loop header
LB: loop body
LE: loop exit
PB: predicated region body
PF: predicated region fallthrough
CT: control target
= control target key end

     0   :  { %v2484_v28 = vmov 0   ;;  %s2477_s2 = inlined_call_operand.vmem [shape: bf16[128,384], index: 2, kind: input, shape index: {}]   ;;  %s2478_s3 = inlined_call_operand.vmem [shape: bf16[128,384], index: 3, kind: input, shape index: {}]   ;;  %s2479_s0 = inlined_call_operand.vmem [shape: bf16[64,128], index: 0, kind: input, shape index: {}]   ;;  %s2480_s1 = inlined_call_operand.vmem [shape: f32[64,1], index: 1, kind: input, shape index: {}]   ;;  %s2481_s5 = inlined_call_operand.vmem [shape: f32[1,128], index: 5, kind: input, shape index: {}]   ;;  %s2482_s4 = inlined_call_operand.vmem [shape: f32[1,384], index: 4, kind: input, shape index: {}]   ;;  %s2483_s6 = inlined_call_operand.vmem [shape: bf16[64,128], index: 6, kind: output, shape index: {}]  }
   0x1   :  { %v1417_v0 = vld [vmem:[%s2477_s2 + $0xa8] sm:$0xf]  ;;  %v1580_v1 = vld [vmem:[%s2477_s2 + $0xb0] sm:$0xf0]  ;;  %v1405_v5 = vld [vmem:[%s2477_s2 + $0x90] sm:$0xf]  ;;  %1607 = vset.pattern.permute.xlu0 %v2484_v28  ;;  %1608 = vset.pattern.permute.xlu1 %v2484_v28 }
   0x2   :  { %v1513_v2 = vld [vmem:[%s2478_s3 + $0xa8] sm:$0xf]  ;;  %v1418_v3 = vor.u32 %v1580_v1, %v1417_v0  ;;  %v1604_v4 = vld [vmem:[%s2478_s3 + $0xb0] sm:$0xf0]  ;;  %v1577_v6 = vld [vmem:[%s2477_s2 + $0x98] sm:$0xf0]  ;;  %1609 = vset.pattern.permute.xlu2 %v2484_v28 }
   0x3   :  { %v1746_v7 = vor.u32 %v1604_v4, %v1513_v2  ;;  %v1501_v8 = vld [vmem:[%s2478_s3 + $0x90] sm:$0xf]  ;;  %v1601_v9 = vld [vmem:[%s2478_s3 + $0x98] sm:$0xf0]  ;;  %v1406_v10 = vor.u32 %v1577_v6, %v1405_v5  ;;  %v1393_v12 = vld [vmem:[%s2477_s2 + $0x78] sm:$0xf] }
   0x4   :  { %224 = vmatpush.bf16.msra.mxu0 %v1418_v3  ;;  %v1755_v11 = vor.u32 %v1601_v9, %v1501_v8  ;;  %v1574_v13 = vld [vmem:[%s2477_s2 + $0x80] sm:$0xf0]  ;;  %v1489_v14 = vld [vmem:[%s2478_s3 + $0x78] sm:$0xf]  ;;  %v1381_v18 = vld [vmem:[%s2477_s2 + $0x60] sm:$0xf] }
   0x5   :  { %500 = vmatpush.bf16.msra.mxu3 %v1746_v7  ;;  %v1598_v15 = vld [vmem:[%s2478_s3 + $0x80] sm:$0xf0]  ;;  %v1394_v16 = vor.u32 %v1574_v13, %v1393_v12  ;;  %v1571_v19 = vld [vmem:[%s2477_s2 + $0x68] sm:$0xf0]  ;;  %v1477_v20 = vld [vmem:[%s2478_s3 + $0x60] sm:$0xf] }
   0x6   :  { %v1770_v17 = vor.u32 %v1598_v15, %v1489_v14  ;;  %v1595_v21 = vld [vmem:[%s2478_s3 + $0x68] sm:$0xf0]  ;;  %v1382_v22 = vor.u32 %v1571_v19, %v1381_v18  ;;  %v1369_v23 = vld [vmem:[%s2477_s2 + $0x48] sm:$0xf]  ;;  %v1568_v25 = vld [vmem:[%s2477_s2 + $0x50] sm:$0xf0] }
   0x7   :  { %v1788_v24 = vor.u32 %v1595_v21, %v1477_v20  ;;  %v1579_v26 = vld [vmem:[%s2477_s2 + $0xac] sm:$0xf]  ;;  %v1419_v27 = vld [vmem:[%s2477_s2 + $0xb4] sm:$0xf0]  ;;  %v1465_v29 = vld [vmem:[%s2478_s3 + $0x48] sm:$0xf]  ;;  %v1370_v34 = vor.u32 %v1568_v25, %v1369_v23 }
   0x8   :  { %225 = vmatpush.bf16.msra.mxu0 %v1406_v10  ;;  %v1592_v30 = vld [vmem:[%s2478_s3 + $0x50] sm:$0xf0]  ;;  %v1422_v31 = vor.u32 %v1579_v26, %v1419_v27  ;;  %v1407_v33 = vld [vmem:[%s2477_s2 + $0x9c] sm:$0xf0]  ;;  %v1357_v35 = vld [vmem:[%s2477_s2 + $0x30] sm:$0xf] }
   0x9   :  { %501 = vmatpush.bf16.msra.mxu3 %v1755_v11  ;;  %v1576_v32 = vld [vmem:[%s2477_s2 + $0x94] sm:$0xf]  ;;  %v1818_v37 = vor.u32 %v1592_v30, %v1465_v29  ;;  %v1565_v38 = vld [vmem:[%s2477_s2 + $0x38] sm:$0xf0]  ;;  %v1395_v40 = vld [vmem:[%s2477_s2 + $0x84] sm:$0xf0] }
   0xa   :  { %253 = vmatpush.bf16.msra.mxu1 %v1422_v31  ;;  %v1410_v36 = vor.u32 %v1576_v32, %v1407_v33  ;;  %v1573_v39 = vld [vmem:[%s2477_s2 + $0x7c] sm:$0xf]  ;;  %v1453_v41 = vld [vmem:[%s2478_s3 + $0x30] sm:$0xf]  ;;  %v1358_v43 = vor.u32 %v1565_v38, %v1357_v35  ;;  %v1345_v44 = vld [vmem:[%s2477_s2 + $0x18] sm:$0xf] }
   0xb   :  { %v1589_v42 = vld [vmem:[%s2478_s3 + $0x38] sm:$0xf0]  ;;  %v1562_v45 = vld [vmem:[%s2477_s2 + $0x20] sm:$0xf0]  ;;  %v1398_v46 = vor.u32 %v1573_v39, %v1395_v40  ;;  %v1441_v48 = vld [vmem:[%s2478_s3 + $0x18] sm:$0xf] }
   0xc   :  { %226 = vmatpush.bf16.msra.mxu0 %v1394_v16  ;;  %v1842_v47 = vor.u32 %v1589_v42, %v1453_v41  ;;  %v1570_v49 = vld [vmem:[%s2477_s2 + $0x64] sm:$0xf]  ;;  %v1383_v50 = vld [vmem:[%s2477_s2 + $0x6c] sm:$0xf0]  ;;  %v1581_v53 = vld [vmem:[%s2477_s2 + $0xb8] sm:$0xf0]  ;;  %v1346_v55 = vor.u32 %v1562_v45, %v1345_v44 }
   0xd   :  { %502 = vmatpush.bf16.msra.mxu3 %v1770_v17  ;;  %v1586_v51 = vld [vmem:[%s2478_s3 + $0x20] sm:$0xf0]  ;;  %v1425_v52 = vld [vmem:[%s2477_s2 + $0xb0] sm:$0xf]  ;;  %v1333_v56 = vld [vmem:[%s2477_s2] sm:$0xf]  ;;  %v1386_v59 = vor.u32 %v1570_v49, %v1383_v50 }
   0xe   :  { %254 = vmatpush.bf16.msra.mxu1 %v1410_v36  ;;  %v1426_v54 = vor.u32 %v1581_v53, %v1425_v52  ;;  %v1559_v57 = vld [vmem:[%s2477_s2 + $0x8] sm:$0xf0]  ;;  %v1429_v58 = vld [vmem:[%s2478_s3] sm:$0xf]  ;;  %v1872_v60 = vor.u32 %v1586_v51, %v1441_v48  ;;  %v1371_v63 = vld [vmem:[%s2477_s2 + $0x54] sm:$0xf0] }
   0xf   :  { %v1583_v61 = vld [vmem:[%s2478_s3 + $0x8] sm:$0xf0]  ;;  %v1521_v0 = vld [vmem:[%s2478_s3 + $0xb0] sm:$0xf]  ;;  %v1605_v1 = vld [vmem:[%s2478_s3 + $0xb8] sm:$0xf0]  ;;  %v1334_v6 = vor.u32 %v1559_v57, %v1333_v56 }
  0x10   :  { %227 = vmatpush.bf16.msra.mxu0 %v1382_v22  ;;  %v1567_v62 = vld [vmem:[%s2477_s2 + $0x4c] sm:$0xf]  ;;  %282 = vmatpush.bf16.msra.mxu2 %v1426_v54  ;;  %v1413_v2 = vld [vmem:[%s2477_s2 + $0x98] sm:$0xf]  ;;  %v1578_v5 = vld [vmem:[%s2477_s2 + $0xa0] sm:$0xf0]  ;;  %v1902_v10 = vor.u32 %v1583_v61, %v1429_v58  ;;  %v1904_v12 = vor.u32 %v1605_v1, %v1521_v0 }
  0x11   :  { %503 = vmatpush.bf16.msra.mxu3 %v1788_v24  ;;  %v1603_v3 = vld [vmem:[%s2478_s3 + $0xac] sm:$0xf]  ;;  %v1515_v4 = vld [vmem:[%s2478_s3 + $0xb4] sm:$0xf0]  ;;  %v1374_v8 = vor.u32 %v1567_v62, %v1371_v63  ;;  %v1414_v9 = vor.u32 %v1578_v5, %v1413_v2  ;;  %v1564_v14 = vld [vmem:[%s2477_s2 + $0x34] sm:$0xf] }
  0x12   :  { %255 = vmatpush.bf16.msra.mxu1 %v1398_v46  ;;  %v1509_v13 = vld [vmem:[%s2478_s3 + $0x98] sm:$0xf]  ;;  %v1359_v15 = vld [vmem:[%s2477_s2 + $0x3c] sm:$0xf0]  ;;  %v1915_v16 = vor.u32 %v1603_v3, %v1515_v4  ;;  %v1602_v18 = vld [vmem:[%s2478_s3 + $0xa0] sm:$0xf0] }
  0x13   :  { %v1401_v19 = vld [vmem:[%s2477_s2 + $0x80] sm:$0xf]  ;;  %v1575_v20 = vld [vmem:[%s2477_s2 + $0x88] sm:$0xf0]  ;;  %v1600_v22 = vld [vmem:[%s2478_s3 + $0x94] sm:$0xf]  ;;  %v1362_v26 = vor.u32 %v1564_v14, %v1359_v15  ;;  %v1939_v27 = vor.u32 %v1602_v18, %v1509_v13 }
  0x14   :  { %228 = vmatpush.bf16.msra.mxu0 %v1370_v34  ;;  %283 = vmatpush.bf16.msra.mxu2 %v1414_v9  ;;  %v1929_v21 = vld [vmem:[%s2479_s0] sm:$0xff]  ;;  %v1402_v25 = vor.u32 %v1575_v20, %v1401_v19  ;;  %v1561_v30 = vld [vmem:[%s2477_s2 + $0x1c] sm:$0xf]  ;;  %v1347_v31 = vld [vmem:[%s2477_s2 + $0x24] sm:$0xf0] }
  0x15   :  { %504 = vmatpush.bf16.msra.mxu3 %v1818_v37  ;;  %v1503_v23 = vld [vmem:[%s2478_s3 + $0x9c] sm:$0xf0]  ;;  %v1599_v33 = vld [vmem:[%s2478_s3 + $0x88] sm:$0xf0]  ;;  %v1389_v34 = vld [vmem:[%s2477_s2 + $0x68] sm:$0xf]  ;;  %v1350_v41 = vor.u32 %v1561_v30, %v1347_v31 }
  0x16   :  { %256 = vmatpush.bf16.msra.mxu1 %v1386_v59  ;;  %v1497_v29 = vld [vmem:[%s2478_s3 + $0x80] sm:$0xf]  ;;  %v1951_v32 = vor.u32 %v1600_v22, %v1503_v23  ;;  %v1572_v35 = vld [vmem:[%s2477_s2 + $0x70] sm:$0xf0]  ;;  %v1597_v36 = vld [vmem:[%s2478_s3 + $0x7c] sm:$0xf] }
  0x17   :  { %v1491_v38 = vld [vmem:[%s2478_s3 + $0x84] sm:$0xf0]  ;;  %v1390_v39 = vor.u32 %v1572_v35, %v1389_v34  ;;  %v1377_v40 = vld [vmem:[%s2477_s2 + $0x50] sm:$0xf]  ;;  %v1569_v42 = vld [vmem:[%s2477_s2 + $0x58] sm:$0xf0] }
  0x18   :  { %229 = vmatpush.bf16.msra.mxu0 %v1358_v43  ;;  %284 = vmatpush.bf16.msra.mxu2 %v1402_v25  ;;  %v1977_v43 = vor.u32 %v1599_v33, %v1497_v29  ;;  %v1558_v44 = vld [vmem:[%s2477_s2 + $0x4] sm:$0xf]  ;;  %v1335_v45 = vld [vmem:[%s2477_s2 + $0xc] sm:$0xf0]  ;;  %v1986_v46 = vor.u32 %v1597_v36, %v1491_v38  ;;  %v1485_v49 = vld [vmem:[%s2478_s3 + $0x68] sm:$0xf]  ;;  %v1378_v51 = vor.u32 %v1569_v42, %v1377_v40 }
  0x19   :  { %505 = vmatpush.bf16.msra.mxu3 %v1842_v47  ;;  %v1594_v48 = vld [vmem:[%s2478_s3 + $0x64] sm:$0xf]  ;;  %v1596_v50 = vld [vmem:[%s2478_s3 + $0x70] sm:$0xf0]  ;;  %v1479_v52 = vld [vmem:[%s2478_s3 + $0x6c] sm:$0xf0] }
  0x1a   :  { %257 = vmatpush.bf16.msra.mxu1 %v1374_v8  ;;  %v1365_v53 = vld [vmem:[%s2477_s2 + $0x38] sm:$0xf]  ;;  %v1566_v54 = vld [vmem:[%s2477_s2 + $0x40] sm:$0xf0]  ;;  %v2007_v56 = vor.u32 %v1596_v50, %v1485_v49  ;;  %v2010_v57 = vor.u32 %v1594_v48, %v1479_v52  ;;  %v1591_v58 = vld [vmem:[%s2478_s3 + $0x4c] sm:$0xf] }
  0x1b   :  { %v1473_v59 = vld [vmem:[%s2478_s3 + $0x50] sm:$0xf]  ;;  %v1593_v61 = vld [vmem:[%s2478_s3 + $0x58] sm:$0xf0]  ;;  %v1366_v62 = vor.u32 %v1566_v54, %v1365_v53  ;;  %v1467_v63 = vld [vmem:[%s2478_s3 + $0x54] sm:$0xf0] }
  0x1c   :  { %230 = vmatpush.bf16.msra.mxu0 %v1346_v55  ;;  %285 = vmatpush.bf16.msra.mxu2 %v1390_v39  ;;  %v1338_v55 = vor.u32 %v1558_v44, %v1335_v45  ;;  %v1353_v0 = vld [vmem:[%s2477_s2 + $0x20] sm:$0xf]  ;;  %v1563_v1 = vld [vmem:[%s2477_s2 + $0x28] sm:$0xf0]  ;;  %v2031_v2 = vor.u32 %v1593_v61, %v1473_v59  ;;  %v2035_v3 = vor.u32 %v1591_v58, %v1467_v63  ;;  %v1461_v4 = vld [vmem:[%s2478_s3 + $0x38] sm:$0xf] }
  0x1d   :  { %506 = vmatpush.bf16.msra.mxu3 %v1872_v60  ;;  %v1590_v5 = vld [vmem:[%s2478_s3 + $0x40] sm:$0xf0]  ;;  %v1555_v8 = vld [vmem:[%s2479_s0 + $0x8] sm:$0xff]  ;;  %v1588_v9 = vld [vmem:[%s2478_s3 + $0x34] sm:$0xf] }
  0x1e   :  { %258 = vmatpush.bf16.msra.mxu1 %v1362_v26  ;;  %v1455_v13 = vld [vmem:[%s2478_s3 + $0x3c] sm:$0xf0]  ;;  %v2054_v14 = vor.u32 %v1590_v5, %v1461_v4  ;;  %v1585_v18 = vld [vmem:[%s2478_s3 + $0x1c] sm:$0xf]  ;;  %v1341_v19 = vld [vmem:[%s2477_s2 + $0x8] sm:$0xf] }
  0x1f   :  { %v2058_v15 = vor.u32 %v1588_v9, %v1455_v13  ;;  %v1560_v20 = vld [vmem:[%s2477_s2 + $0x10] sm:$0xf0]  ;;  %v1443_v22 = vld [vmem:[%s2478_s3 + $0x24] sm:$0xf0]  ;;  %v1449_v23 = vld [vmem:[%s2478_s3 + $0x20] sm:$0xf] }
  0x20   :  { %231 = vmatpush.bf16.msra.mxu0 %v1334_v6  ;;  %286 = vmatpush.bf16.msra.mxu2 %v1378_v51  ;;  %v1354_v6 = vor.u32 %v1563_v1, %v1353_v0  ;;  %v1587_v25 = vld [vmem:[%s2478_s3 + $0x28] sm:$0xf0]  ;;  %v1342_v26 = vor.u32 %v1560_v20, %v1341_v19  ;;  %v2083_v30 = vor.u32 %v1585_v18, %v1443_v22  ;;  %v1437_v31 = vld [vmem:[%s2478_s3 + $0x8] sm:$0xf]  ;;  %v1584_v33 = vld [vmem:[%s2478_s3 + $0x10] sm:$0xf0] }
  0x21   :  { %507 = vmatpush.bf16.msra.mxu3 %v1902_v10  ;;  %v2079_v29 = vor.u32 %v1587_v25, %v1449_v23  ;;  %v1582_v34 = vld [vmem:[%s2478_s3 + $0x4] sm:$0xf]  ;;  %v1431_v35 = vld [vmem:[%s2478_s3 + $0xc] sm:$0xf0]  ;;  %v2100_v36 = vor.u32 %v1584_v33, %v1437_v31  ;;  %v1557_v45 = vld [vmem:[%s2479_s0 + $0x18] sm:$0xff] }
  0x22   :  { %259 = vmatpush.bf16.msra.mxu1 %v1350_v41  ;;  %v2103_v38 = vor.u32 %v1582_v34, %v1431_v35  ;;  %v371_v39 = vld [vmem:[%s2480_s1] sm:$0xff]  ;;  %v602_v41 = vld [vmem:[%s2480_s1 + $0x8] sm:$0xff]  ;;  %v1111_v44 = vld [vmem:[%s2480_s1 + $0x30] sm:$0xff] }
  0x23   :  { %232 = vmatmul.bf16.vlgmr.msra.gmra.mxu0 %v1929_v21  ;;  %vm590_vm0 = vcmp.gt.f32.partialorder %v371_v39, 0.0  ;;  %vm690_vm1 = vcmp.gt.f32.partialorder %v602_v41, 0.0  ;;  %vm1200_vm2 = vcmp.gt.f32.partialorder %v1111_v44, 0.0  ;;  %v64_v50 = vld [vmem:[%s2482_s4] sm:$0x7] }
  0x24   :  { %526 = vmatpush.bf16.msrb.mxu0 %v1904_v12  ;;  %508 = vmatmul.bf16.vlgmr.msra.gmra.mxu3 %v2484_v28  ;;  %v591_v40 = vsel %vm590_vm0, 1, %v2484_v28  ;;  %v691_v42 = vsel %vm690_vm1, 1, %v2484_v28  ;;  %v1201_v48 = vsel %vm1200_vm2, 1, %v2484_v28  ;;  %v66_v51 = vperm.slane %v64_v50, 0 }
  0x25   :  { %513 = vmatpush.bf16.msrb.mxu3 %v1915_v16  ;;  %287 = vmatpush.bf16.msra.mxu2 %v1366_v62  ;;  %v2196_v5 = vperm.slane %v64_v50, 1  ;;  %v2201_v19 = vperm.slane %v64_v50, 2 }
  0x26   :  { %260 = vmatpush.bf16.msra.mxu1 %v1338_v55  ;;  %593 = vperm.xlu0 %1607, %v591_v40  }
  0x27   :  { %2487 = vst [vmem:[#allocation3_spill] sm:$0xff] %v2201_v19 }
  0x28   :  { %527 = vmatpush.bf16.msrb.mxu0 %v1939_v27 }
  0x29   :  { %514 = vmatpush.bf16.msrb.mxu3 %v1951_v32  ;;  %261 = vmatmul.bf16.vlgmr.msra.gmra.mxu1 %v1929_v21 }
  0x2a   :  { %603 = vmatpush.bf16.msrb.mxu1 %v1746_v7  ;;  %288 = vmatpush.bf16.msra.mxu2 %v1354_v6 }
  0x2c   :  { %528 = vmatpush.bf16.msrb.mxu0 %v1977_v43 }
  0x2d   :  { %515 = vmatpush.bf16.msrb.mxu3 %v1986_v46 }
  0x2e   :  { %604 = vmatpush.bf16.msrb.mxu1 %v1755_v11  ;;  %289 = vmatpush.bf16.msra.mxu2 %v1342_v26 }
  0x2f   :  { %693 = vperm.xlu0 %1607, %v691_v42  }
  0x30   :  { %529 = vmatpush.bf16.msrb.mxu0 %v2007_v56 }
  0x31   :  { %516 = vmatpush.bf16.msrb.mxu3 %v2010_v57  ;;  %290 = vmatmul.bf16.vlgmr.msra.gmra.mxu2 %v1929_v21  ;;  %v1556_v21 = vld [vmem:[%s2479_s0 + $0x10] sm:$0xff] }
  0x32   :  { %605 = vmatpush.bf16.msrb.mxu1 %v1770_v17  ;;  %616 = vmatpush.bf16.msrb.mxu2 %v1915_v16 }
  0x33   :  { %237 = vmatmul.bf16.gmra.mxu0 %v1555_v8 }
  0x34   :  { %530 = vmatpush.bf16.msrb.mxu0 %v2031_v2 }
  0x35   :  { %517 = vmatpush.bf16.msrb.mxu3 %v2035_v3 }
  0x36   :  { %606 = vmatpush.bf16.msrb.mxu1 %v1788_v24  ;;  %617 = vmatpush.bf16.msrb.mxu2 %v1951_v32 }
  0x37   :  { %1203 = vperm.xlu0 %1607, %v1201_v48  }
  0x38   :  { %531 = vmatpush.bf16.msrb.mxu0 %v2054_v14 }
  0x39   :  { %518 = vmatpush.bf16.msrb.mxu3 %v2058_v15  ;;  %266 = vmatmul.bf16.gmra.mxu1 %v1555_v8 }
  0x3a   :  { %607 = vmatpush.bf16.msrb.mxu1 %v1818_v37  ;;  %618 = vmatpush.bf16.msrb.mxu2 %v1986_v46 }
  0x3c   :  { %532 = vmatpush.bf16.msrb.mxu0 %v2079_v29 }
  0x3d   :  { %519 = vmatpush.bf16.msrb.mxu3 %v2083_v30 }
  0x3e   :  { %608 = vmatpush.bf16.msrb.mxu1 %v1842_v47  ;;  %619 = vmatpush.bf16.msrb.mxu2 %v2010_v57 }
  0x40   :  { %533 = vmatpush.bf16.msrb.mxu0 %v2100_v36 }
  0x41   :  { %520 = vmatpush.bf16.msrb.mxu3 %v2103_v38  ;;  %295 = vmatmul.bf16.gmra.mxu2 %v1555_v8 }
  0x42   :  { %609 = vmatpush.bf16.msrb.mxu1 %v1872_v60  ;;  %620 = vmatpush.bf16.msrb.mxu2 %v2035_v3 }
  0x43   :  { %242 = vmatmul.bf16.gmra.mxu0 %v1556_v21 }
  0x44   :  { %705 = vmatpush.bf16.msra.mxu0 %v1746_v7  ;;  %521 = vmatmul.bf16.vlgmr.msrb.gmra.mxu3 %v2484_v28 }
  0x45   :  { %629 = vmatpush.bf16.msra.mxu3 %v1904_v12 }
  0x46   :  { %610 = vmatpush.bf16.msrb.mxu1 %v1902_v10  ;;  %621 = vmatpush.bf16.msrb.mxu2 %v2058_v15 }
  0x48   :  { %706 = vmatpush.bf16.msra.mxu0 %v1755_v11 }
  0x49   :  { %630 = vmatpush.bf16.msra.mxu3 %v1939_v27  ;;  %271 = vmatmul.bf16.gmra.mxu1 %v1556_v21 }
  0x4a   :  { %718 = vmatpush.bf16.msra.mxu1 %v1915_v16  ;;  %622 = vmatpush.bf16.msrb.mxu2 %v2083_v30 }
  0x4c   :  { %707 = vmatpush.bf16.msra.mxu0 %v1770_v17 }
  0x4d   :  { %631 = vmatpush.bf16.msra.mxu3 %v1977_v43 }
  0x4e   :  { %719 = vmatpush.bf16.msra.mxu1 %v1951_v32  ;;  %623 = vmatpush.bf16.msrb.mxu2 %v2103_v38 }
  0x50   :  { %708 = vmatpush.bf16.msra.mxu0 %v1788_v24 }
  0x51   :  { %632 = vmatpush.bf16.msra.mxu3 %v2007_v56  ;;  %300 = vmatmul.bf16.gmra.mxu2 %v1556_v21 }
  0x52   :  { %731 = vmatpush.bf16.msra.mxu2 %v1904_v12  ;;  %720 = vmatpush.bf16.msra.mxu1 %v1986_v46 }
  0x53   :  { %247 = vmatmul.bf16.gmra.mxu0 %v1557_v45 }
  0x54   :  { %709 = vmatpush.bf16.msra.mxu0 %v1818_v37 }
  0x55   :  { %633 = vmatpush.bf16.msra.mxu3 %v2031_v2 }
  0x56   :  { %732 = vmatpush.bf16.msra.mxu2 %v1939_v27  ;;  %721 = vmatpush.bf16.msra.mxu1 %v2010_v57 }
  0x58   :  { %710 = vmatpush.bf16.msra.mxu0 %v1842_v47 }
  0x59   :  { %634 = vmatpush.bf16.msra.mxu3 %v2054_v14  ;;  %276 = vmatmul.bf16.gmra.mxu1 %v1557_v45 }
  0x5a   :  { %733 = vmatpush.bf16.msra.mxu2 %v1977_v43  ;;  %722 = vmatpush.bf16.msra.mxu1 %v2035_v3 }
  0x5c   :  { %711 = vmatpush.bf16.msra.mxu0 %v1872_v60 }
  0x5d   :  { %635 = vmatpush.bf16.msra.mxu3 %v2079_v29 }
  0x5e   :  { %734 = vmatpush.bf16.msra.mxu2 %v2007_v56  ;;  %723 = vmatpush.bf16.msra.mxu1 %v2058_v15 }
  0x60   :  { %712 = vmatpush.bf16.msra.mxu0 %v1902_v10 }
  0x61   :  { %636 = vmatpush.bf16.msra.mxu3 %v2100_v36  ;;  %305 = vmatmul.bf16.gmra.mxu2 %v1557_v45 }
  0x62   :  { %735 = vmatpush.bf16.msra.mxu2 %v2031_v2  ;;  %724 = vmatpush.bf16.msra.mxu1 %v2083_v30 }
  0x63   :  { %534 = vmatmul.bf16.vlgmr.msrb.gmra.mxu0 %v2484_v28 }
  0x64   :  { %820 = vmatpush.bf16.msrb.mxu0 %v1915_v16 }
  0x65   :  { %807 = vmatpush.bf16.msrb.mxu3 %v1746_v7 }
  0x66   :  { %736 = vmatpush.bf16.msra.mxu2 %v2054_v14  ;;  %725 = vmatpush.bf16.msra.mxu1 %v2103_v38 }
  0x68   :  { %821 = vmatpush.bf16.msrb.mxu0 %v1951_v32 }
  0x69   :  { %808 = vmatpush.bf16.msrb.mxu3 %v1755_v11 }
  0x6a   :  { %737 = vmatpush.bf16.msra.mxu2 %v2079_v29 }
  0x6c   :  { %822 = vmatpush.bf16.msrb.mxu0 %v1986_v46 }
  0x6d   :  { %809 = vmatpush.bf16.msrb.mxu3 %v1770_v17 }
  0x6e   :  { %738 = vmatpush.bf16.msra.mxu2 %v2100_v36 }
  0x70   :  { %823 = vmatpush.bf16.msrb.mxu0 %v2010_v57 }
  0x71   :  { %810 = vmatpush.bf16.msrb.mxu3 %v1788_v24 }
  0x74   :  { %824 = vmatpush.bf16.msrb.mxu0 %v2035_v3 }
  0x75   :  { %811 = vmatpush.bf16.msrb.mxu3 %v1818_v37 }
  0x78   :  { %825 = vmatpush.bf16.msrb.mxu0 %v2058_v15 }
  0x79   :  { %812 = vmatpush.bf16.msrb.mxu3 %v1842_v47 }
  0x7c   :  { %826 = vmatpush.bf16.msrb.mxu0 %v2083_v30 }
  0x7d   :  { %813 = vmatpush.bf16.msrb.mxu3 %v1872_v60 }
  0x80   :  { %827 = vmatpush.bf16.msrb.mxu0 %v2103_v38 }
  0x81   :  { %814 = vmatpush.bf16.msrb.mxu3 %v1902_v10 }
  0xa0   :  { %v233_v49 = vpop.f32.mrf.mxu0 }
  0xa1   :  { %v234_v55 = vadd.f32 %v233_v49, %v66_v51 }
  0xa6   :  { %v262_v6 = vpop.f32.mrf.mxu1 }
  0xa7   :  { %v509_v52 = vpop.f32.mrf.mxu3  ;;  %v263_v18 = vadd.f32 %v262_v6, %v2196_v5  ;;  %v2218_v6 = vld [vmem:[%s2481_s5] ss:$0 sm:$0xff] }
  0xa8   :  { %v235_v53 = vpop.f32.mrf.mxu0  ;;  %v539_v61 = vadd.f32 %v509_v52, %v234_v55 }
  0xa9   :  { %v2190_v54 = vadd.f32 %v235_v53, %v66_v51 }
  0xaa   :  { %v1523_v63 = vmul.f32 -1.442695, %v539_v61 }
  0xac   :  { %1611 = vpow2.f32 %v1523_v63 }
  0xaf   :  { %v511_v58 = vpop.f32.mrf.mxu3 }
  0xb0   :  { %v238_v59 = vpop.f32.mrf.mxu0 }
  0xb1   :  { %v2192_v62 = vadd.f32 %v238_v59, %v66_v51 }
  0xb2   :  { %v1612_v8 = vpop.eup %1611 }
  0xb3   :  { %v543_v20 = vadd.f32 1.0, %v1612_v8 }
  0xb4   :  { %v291_v4 = vpop.f32.mrf.mxu2 }
  0xb5   :  { %1613 = vrcp.f32 %v543_v20  ;;  %v555_v63 = vand.u32 2147483648, %v543_v20  ;;  %vm549_vm4 = vweird.f32 %v543_v20 }
  0xb8   :  { %v240_v0 = vpop.f32.mrf.mxu0 }
  0xb9   :  { %v2194_v1 = vadd.f32 %v240_v0, %v66_v51  ;;  %v553_v0 = vand.u32 2147483647, %v543_v20 }
  0xbb   :  { %v1614_v35 = vpop.eup %1613  ;;  %vm554_vm6 = vcmp.eq.f32.partialorder %v553_v0, 8.507059e+37 }
  0xbc   :  { %v293_v23 = vpop.f32.mrf.mxu2  ;;  %v545_v40 = vmul.f32 %v1614_v35, %v543_v20  ;;  %vm550_vm3 = vweird.f32 %v1614_v35 }
  0xbd   :  { %v2204_v26 = vadd.f32 %v293_v23, %v2201_v19  ;;  %vm551_vm5 = vmor %vm549_vm4, %vm550_vm3  ;;  %v556_v23 = vor.u32 1.1754944e-38, %v555_v63 }
  0xbe   :  { %v546_v45 = vsub.f32 1.0, %v545_v40 }
  0xc0   :  { %v243_v9 = vpop.f32.mrf.mxu0  ;;  %v547_v50 = vmul.f32 %v1614_v35, %v546_v45 }
  0xc1   :  { %v2198_v13 = vadd.f32 %v243_v9, %v66_v51 }
  0xc2   :  { %v548_v61 = vadd.f32 %v1614_v35, %v547_v50 }
  0xc4   :  { %v296_v48 = vpop.f32.mrf.mxu2 }
  0xc5   :  { %v2211_v49 = vadd.f32 %v296_v48, %v2201_v19 }
  0xc7   :  { %v522_v22 = vpop.f32.mrf.mxu3 }
  0xc8   :  { %v559_v25 = vadd.f32 %v522_v22, %v263_v18  ;;  %v245_v33 = vpop.f32.mrf.mxu0  ;;  %v552_v22 = vsel %vm551_vm5, %v1614_v35, %v548_v61 }
  0xc9   :  { %v2206_v34 = vadd.f32 %v245_v33, %v66_v51  ;;  %v557_v20 = vsel %vm554_vm6, %v556_v23, %v552_v22 }
  0xca   :  { %v1524_v31 = vmul.f32 -1.442695, %v559_v25  ;;  %v292_v25 = vadd.f32 %v291_v4, %v2201_v19 }
  0xcc   :  { %1615 = vpow2.f32 %v1524_v31  ;;  %v298_v8 = vpop.f32.mrf.mxu2 }
  0xcd   :  { %v2221_v18 = vadd.f32 %v298_v8, %v2201_v19 }
  0xcf   :  { %v524_v21 = vpop.f32.mrf.mxu3 }
  0xd0   :  { %v248_v42 = vpop.f32.mrf.mxu0 }
  0xd1   :  { %v2208_v44 = vadd.f32 %v248_v42, %v66_v51 }
  0xd2   :  { %v1616_v39 = vpop.eup %1615 }
  0xd3   :  { %v563_v41 = vadd.f32 1.0, %v1616_v39 }
  0xd4   :  { %v301_v45 = vpop.f32.mrf.mxu2 }
  0xd5   :  { %1617 = vrcp.f32 %v563_v41  ;;  %vm569_vm7 = vweird.f32 %v563_v41  ;;  %v575_v21 = vand.u32 2147483648, %v563_v41  ;;  %v573_v40 = vand.u32 2147483647, %v563_v41 }
  0xd6   :  { %v2226_v35 = vadd.f32 %v301_v45, %v2201_v19 }
  0xd7   :  { %v576_v50 = vor.u32 1.1754944e-38, %v575_v21  ;;  %vm574_vm10 = vcmp.eq.f32.partialorder %v573_v40, 8.507059e+37 }
  0xd8   :  { %v250_v53 = vpop.f32.mrf.mxu0 }
  0xd9   :  { %v2213_v58 = vadd.f32 %v250_v53, %v66_v51 }
  0xdb   :  { %v1618_v52 = vpop.eup %1617  ;;  %2488 = vst [vmem:[#allocation4_spill] sm:$0xff] %v2213_v58 }
  0xdc   :  { %v565_v55 = vmul.f32 %v1618_v52, %v563_v41  ;;  %vm570_vm8 = vweird.f32 %v1618_v52  ;;  %v303_v63 = vpop.f32.mrf.mxu2 }
  0xdd   :  { %vm571_vm9 = vmor %vm569_vm7, %vm570_vm8  ;;  %v2229_v8 = vadd.f32 %v303_v63, %v2201_v19 }
  0xde   :  { %v566_v59 = vsub.f32 1.0, %v565_v55  ;;  %v594_v55 = vpop.permute.xlu0 %593 }
  0xdf   :  { %vm595_vm11 = vcmp.eq.s32.totalorder %v594_v55, 1 }
  0xe0   :  { %v567_v9 = vmul.f32 %v1618_v52, %v566_v59  ;;  %v535_v51 = vpop.f32.mrf.mxu0  ;;  %vm1525_vm12 = vmneg %vm595_vm11 }
  0xe1   :  { %v582_v31 = vadd.f32 %v2218_v6, %v535_v51  ;;  %vm1527_vm13 = vmpackc.low %vm1525_vm12, %vm1525_vm12 }
  0xe2   :  { %v568_v33 = vadd.f32 %v1618_v52, %v567_v9 }
  0xe3   :  { %v583_v39 = vmul.f32 %v582_v31, %v557_v20  ;;  %v264_v31 = vpop.f32.mrf.mxu1 }
  0xe4   :  { %v572_v48 = vsel %vm571_vm9, %v1618_v52, %v568_v33  ;;  %v306_v23 = vpop.f32.mrf.mxu2 }
  0xe5   :  { %v584_v42 = vadd.f32 %v583_v39, %v292_v25  ;;  %v577_v53 = vsel %vm574_vm10, %v576_v50, %v572_v48  ;;  %v2240_v25 = vadd.f32 %v306_v23, %v2201_v19 }
  0xe6   :  { %v586_v59 = vsub.f32 1.0, %v577_v53  ;;  %v588_v41 = vmul.f32 0.0, %v577_v53  ;;  %v265_v53 = vadd.f32 %v264_v31, %v2196_v5 }
  0xe7   :  { %1619 = vtanh.f32 %v584_v42 }
  0xe8   :  { %v537_v4 = vpop.f32.mrf.mxu0 }
  0xeb   :  { %v2265_v20 = vpop.f32.mrf.mxu1 }
  0xec   :  { %v2277_v45 = vpop.f32.mrf.mxu2 }
  0xed   :  { %v1620_v61 = vpop.eup %1619  ;;  %2490 = vst [vmem:[#allocation6_spill] sm:$0xff] %v2277_v45 }
  0xee   :  { %v587_v0 = vmul.f32 %v1620_v61, %v586_v59 }
  0xf0   :  { %v589_v52 = vadd.f32 %v588_v41, %v587_v0 }
  0xf2   :  { %v2231_v9 = vsel %vm595_vm11, 0.0, %v589_v52  ;;  %v1528_v22 = vpack.c.bf16 %v589_v52, %v589_v52 }
  0xf3   :  { %v597_v51 = vpack.c.bf16 %v2231_v9, %v2231_v9  ;;  %v2267_v33 = vpop.f32.mrf.mxu1 }
  0xf4   :  { %1529 = vmatmul.msk.bf16.vlgmr.msrb.gmra.mxu1 %vm1527_vm13, %v1528_v22  ;;  %1534 = vmatmul.msk.bf16.vlgmr.msrb.gmra.mxu2 %vm1527_vm13, %v1528_v22 }
  0xf5   :  { %598 = vst [vmem:[%s2483_s6] sm:$0xf] %v597_v51  ;;  %1539 = vmatmul.msk.bf16.vlgmr.msra.gmra.mxu3 %vm1527_vm13, %v1528_v22  ;;  %833 = vmatpush.bf16.msrb.mxu1 %v1904_v12 }
  0xf6   :  { %909 = vmatpush.bf16.msrb.mxu2 %v1746_v7  ;;  %922 = vmatpush.bf16.msra.mxu3 %v1915_v16 }
  0xf9   :  { %834 = vmatpush.bf16.msrb.mxu1 %v1939_v27 }
  0xfa   :  { %910 = vmatpush.bf16.msrb.mxu2 %v1755_v11  ;;  %923 = vmatpush.bf16.msra.mxu3 %v1951_v32 }
  0xfb   :  { %v2269_v21 = vpop.f32.mrf.mxu1 }
  0xfd   :  { %835 = vmatpush.bf16.msrb.mxu1 %v1977_v43 }
  0xfe   :  { %911 = vmatpush.bf16.msrb.mxu2 %v1770_v17  ;;  %924 = vmatpush.bf16.msra.mxu3 %v1986_v46 }
 0x101   :  { %836 = vmatpush.bf16.msrb.mxu1 %v2007_v56 }
 0x102   :  { %912 = vmatpush.bf16.msrb.mxu2 %v1788_v24  ;;  %925 = vmatpush.bf16.msra.mxu3 %v2010_v57 }
 0x103   :  { %v2271_v39 = vpop.f32.mrf.mxu1 }
 0x105   :  { %837 = vmatpush.bf16.msrb.mxu1 %v2031_v2 }
 0x106   :  { %913 = vmatpush.bf16.msrb.mxu2 %v1818_v37  ;;  %926 = vmatpush.bf16.msra.mxu3 %v2035_v3 }
 0x109   :  { %838 = vmatpush.bf16.msrb.mxu1 %v2054_v14 }
 0x10a   :  { %914 = vmatpush.bf16.msrb.mxu2 %v1842_v47  ;;  %927 = vmatpush.bf16.msra.mxu3 %v2058_v15 }
 0x10b   :  { %v2273_v40 = vpop.f32.mrf.mxu1 }
 0x10d   :  { %839 = vmatpush.bf16.msrb.mxu1 %v2079_v29 }
 0x10e   :  { %915 = vmatpush.bf16.msrb.mxu2 %v1872_v60  ;;  %928 = vmatpush.bf16.msra.mxu3 %v2083_v30 }
 0x111   :  { %840 = vmatpush.bf16.msrb.mxu1 %v2100_v36 }
 0x112   :  { %916 = vmatpush.bf16.msrb.mxu2 %v1902_v10  ;;  %929 = vmatpush.bf16.msra.mxu3 %v2103_v38 }
 0x113   :  { %v2275_v42 = vpop.f32.mrf.mxu1 }
 0x114   :  { %2489 = vst [vmem:[#allocation5_spill] sm:$0xff] %v2275_v42 }
 0x171   :  { %v612_v48 = vpop.f32.mrf.mxu1 }
 0x172   :  { %v642_v50 = vadd.f32 %v612_v48, %v2190_v54  ;;  %v703_v54 = vld [vmem:[%s2480_s1 + $0x10] sm:$0xff] }
 0x173   :  { %vm792_vm14 = vcmp.gt.f32.partialorder %v703_v54, 0.0 }
 0x174   :  { %v1540_v4 = vmul.f32 -1.442695, %v642_v50  ;;  %v2491_v50 = vmov 0  }
 0x176   :  { %1621 = vpow2.f32 %v1540_v4  ;;  %v793_v4 = vsel %vm792_vm14, 1, %v2491_v50 }
 0x177   :  { %v625_v55 = vpop.f32.mrf.mxu2  ;;  %795 = vperm.xlu1 %1608, %v793_v4  }
 0x178   :  { %v662_v59 = vadd.f32 %v625_v55, %v265_v53  ;;  %v638_v61 = vpop.f32.mrf.mxu3  ;;  %v805_v53 = vld [vmem:[%s2480_s1 + $0x18] sm:$0xff] }
 0x179   :  { %v614_v63 = vpop.f32.mrf.mxu1  ;;  %vm894_vm15 = vcmp.gt.f32.partialorder %v805_v53, 0.0  ;;  %v682_v58 = vadd.f32 %v2218_v6, %v638_v61 }
 0x17a   :  { %v1541_v0 = vmul.f32 -1.442695, %v662_v59 }
 0x17c   :  { %v1622_v41 = vpop.eup %1621  ;;  %1623 = vpow2.f32 %v1541_v0 }
 0x17d   :  { %v646_v52 = vadd.f32 1.0, %v1622_v41 }
 0x17f   :  { %1625 = vrcp.f32 %v646_v52  ;;  %v627_v22 = vpop.f32.mrf.mxu2  ;;  %v658_v59 = vand.u32 2147483648, %v646_v52  ;;  %v656_v0 = vand.u32 2147483647, %v646_v52  ;;  %vm652_vm1 = vweird.f32 %v646_v52 }
 0x180   :  { %v640_v51 = vpop.f32.mrf.mxu3 }
 0x181   :  { %v659_v54 = vor.u32 1.1754944e-38, %v658_v59  ;;  %vm657_vm3 = vcmp.eq.f32.partialorder %v656_v0, 8.507059e+37 }
 0x182   :  { %v1624_v23 = vpop.eup %1623 }
 0x183   :  { %v666_v28 = vadd.f32 1.0, %v1624_v23  ;;  %v895_v23 = vsel %vm894_vm15, 1, %v2491_v50 }
 0x184   :  { %897 = vperm.xlu1 %1608, %v895_v23   ;;  %v694_v23 = vpop.permute.xlu0 %693 }
 0x185   :  { %v1626_v31 = vpop.eup %1625  ;;  %1627 = vrcp.f32 %v666_v28  ;;  %vm672_vm6 = vweird.f32 %v666_v28  ;;  %vm695_vm9 = vcmp.eq.s32.totalorder %v694_v23, 1 }
 0x186   :  { %v648_v48 = vmul.f32 %v1626_v31, %v646_v52  ;;  %vm653_vm0 = vweird.f32 %v1626_v31  ;;  %v676_v52 = vand.u32 2147483647, %v666_v28 }
 0x187   :  { %vm654_vm2 = vmor %vm652_vm1, %vm653_vm0 }
 0x188   :  { %v649_v55 = vsub.f32 1.0, %v648_v48  ;;  %v1213_v48 = vld [vmem:[%s2480_s1 + $0x38] sm:$0xff]  ;;  %vm677_vm8 = vcmp.eq.f32.partialorder %v676_v52, 8.507059e+37 }
 0x189   :  { %vm1302_vm5 = vcmp.gt.f32.partialorder %v1213_v48, 0.0 }
 0x18a   :  { %v650_v63 = vmul.f32 %v1626_v31, %v649_v55  ;;  %v678_v55 = vand.u32 2147483648, %v666_v28  ;;  %v1303_v61 = vsel %vm1302_vm5, 1, %v2491_v50 }
 0x18b   :  { %v1628_v41 = vpop.eup %1627 }
 0x18c   :  { %v668_v22 = vmul.f32 %v1628_v41, %v666_v28  ;;  %v651_v51 = vadd.f32 %v1626_v31, %v650_v63  ;;  %vm673_vm4 = vweird.f32 %v1628_v41  ;;  %1305 = vperm.xlu1 %1608, %v1303_v61  }
 0x18d   :  { %vm674_vm7 = vmor %vm672_vm6, %vm673_vm4 }
 0x18e   :  { %v669_v45 = vsub.f32 1.0, %v668_v22  ;;  %v655_v19 = vsel %vm654_vm2, %v1626_v31, %v651_v51  ;;  %v679_v31 = vor.u32 1.1754944e-38, %v678_v55 }
 0x18f   :  { %v660_v4 = vsel %vm657_vm3, %v659_v54, %v655_v19 }
 0x190   :  { %v670_v53 = vmul.f32 %v1628_v41, %v669_v45  ;;  %v683_v63 = vmul.f32 %v682_v58, %v660_v4 }
 0x192   :  { %v671_v42 = vadd.f32 %v1628_v41, %v670_v53  ;;  %v684_v59 = vadd.f32 %v683_v63, %v2204_v26 }
 0x194   :  { %v675_v0 = vsel %vm674_vm7, %v1628_v41, %v671_v42  ;;  %1629 = vtanh.f32 %v684_v59 }
 0x195   :  { %v680_v22 = vsel %vm677_vm8, %v679_v31, %v675_v0 }
 0x196   :  { %v686_v19 = vsub.f32 1.0, %v680_v22  ;;  %v688_v58 = vmul.f32 %v680_v22, %v2231_v9 }
 0x19a   :  { %v1630_v45 = vpop.eup %1629 }
 0x19b   :  { %v687_v51 = vmul.f32 %v1630_v45, %v686_v19 }
 0x19d   :  { %v689_v54 = vadd.f32 %v688_v58, %v687_v51 }
 0x19f   :  { %v697_v28 = vsel %vm695_vm9, 0.0, %v689_v54  ;;  %v2297_v26 = vsel %vm695_vm9, %v2231_v9, %v689_v54  ;;  %v268_v9 = vadd.f32 %v2265_v20, %v2196_v5 }
 0x1a0   :  { %v698_v48 = vpack.c.bf16 %v697_v28, %v697_v28  ;;  %v704_v42 = vpack.c.bf16 %v2297_v26, %v2297_v26 }
 0x1a2   :  { %699 = vst [vmem:[%s2483_s6 + $0x4] sm:$0xf] %v698_v48  ;;  %713 = vmatmul.bf16.vlgmr.msra.gmra.mxu0 %v704_v42  ;;  %726 = vmatmul.bf16.vlgmr.msra.gmra.mxu1 %v704_v42 }
 0x1a3   :  { %739 = vmatmul.bf16.vlgmr.msra.gmra.mxu2 %v704_v42  ;;  %935 = vmatpush.bf16.msra.mxu0 %v1904_v12 }
 0x1a4   :  { %1011 = vmatpush.bf16.msra.mxu1 %v1746_v7  ;;  %1024 = vmatpush.bf16.msra.mxu2 %v1915_v16 }
 0x1a7   :  { %936 = vmatpush.bf16.msra.mxu0 %v1939_v27 }
 0x1a8   :  { %1012 = vmatpush.bf16.msra.mxu1 %v1755_v11  ;;  %1025 = vmatpush.bf16.msra.mxu2 %v1951_v32 }
 0x1ab   :  { %937 = vmatpush.bf16.msra.mxu0 %v1977_v43 }
 0x1ac   :  { %1013 = vmatpush.bf16.msra.mxu1 %v1770_v17  ;;  %1026 = vmatpush.bf16.msra.mxu2 %v1986_v46 }
 0x1af   :  { %938 = vmatpush.bf16.msra.mxu0 %v2007_v56 }
 0x1b0   :  { %1014 = vmatpush.bf16.msra.mxu1 %v1788_v24  ;;  %1027 = vmatpush.bf16.msra.mxu2 %v2010_v57 }
 0x1b3   :  { %939 = vmatpush.bf16.msra.mxu0 %v2031_v2 }
 0x1b4   :  { %1015 = vmatpush.bf16.msra.mxu1 %v1818_v37  ;;  %1028 = vmatpush.bf16.msra.mxu2 %v2035_v3 }
 0x1b7   :  { %940 = vmatpush.bf16.msra.mxu0 %v2054_v14 }
 0x1b8   :  { %1016 = vmatpush.bf16.msra.mxu1 %v1842_v47  ;;  %1029 = vmatpush.bf16.msra.mxu2 %v2058_v15 }
 0x1bb   :  { %941 = vmatpush.bf16.msra.mxu0 %v2079_v29 }
 0x1bc   :  { %1017 = vmatpush.bf16.msra.mxu1 %v1872_v60  ;;  %1030 = vmatpush.bf16.msra.mxu2 %v2083_v30 }
 0x1bf   :  { %942 = vmatpush.bf16.msra.mxu0 %v2100_v36 }
 0x1c0   :  { %1018 = vmatpush.bf16.msra.mxu1 %v1902_v10  ;;  %1031 = vmatpush.bf16.msra.mxu2 %v2103_v38 }
 0x21f   :  { %v714_v41 = vpop.f32.mrf.mxu0  ;;  %v727_v4 = vpop.f32.mrf.mxu1 }
 0x220   :  { %v744_v53 = vadd.f32 %v714_v41, %v2192_v62  ;;  %v764_v55 = vadd.f32 %v727_v4, %v268_v9 }
 0x222   :  { %v1542_v63 = vmul.f32 -1.442695, %v744_v53  ;;  %v1543_v52 = vmul.f32 -1.442695, %v764_v55 }
 0x224   :  { %1631 = vpow2.f32 %v1542_v63 }
 0x225   :  { %1633 = vpow2.f32 %v1543_v52 }
 0x226   :  { %v740_v59 = vpop.f32.mrf.mxu2 }
 0x227   :  { %v716_v31 = vpop.f32.mrf.mxu0  ;;  %v729_v0 = vpop.f32.mrf.mxu1  ;;  %v784_v63 = vadd.f32 %v2218_v6, %v740_v59 }
 0x22a   :  { %v1632_v61 = vpop.eup %1631 }
 0x22b   :  { %v1634_v22 = vpop.eup %1633  ;;  %v748_v19 = vadd.f32 1.0, %v1632_v61 }
 0x22c   :  { %v768_v45 = vadd.f32 1.0, %v1634_v22 }
 0x22d   :  { %1635 = vrcp.f32 %v748_v19  ;;  %v760_v48 = vand.u32 2147483648, %v748_v19  ;;  %v758_v9 = vand.u32 2147483647, %v748_v19  ;;  %vm754_vm11 = vweird.f32 %v748_v19 }
 0x22e   :  { %1637 = vrcp.f32 %v768_v45  ;;  %v742_v51 = vpop.f32.mrf.mxu2  ;;  %v780_v61 = vand.u32 2147483648, %v768_v45  ;;  %vm774_vm15 = vweird.f32 %v768_v45  ;;  %v778_v22 = vand.u32 2147483647, %v768_v45 }
 0x22f   :  { %v761_v53 = vor.u32 1.1754944e-38, %v760_v48  ;;  %vm759_vm13 = vcmp.eq.f32.partialorder %v758_v9, 8.507059e+37 }
 0x230   :  { %vm779_vm1 = vcmp.eq.f32.partialorder %v778_v22, 8.507059e+37 }
 0x233   :  { %v1636_v20 = vpop.eup %1635 }
 0x234   :  { %v1638_v58 = vpop.eup %1637  ;;  %v750_v23 = vmul.f32 %v1636_v20, %v748_v19  ;;  %vm755_vm10 = vweird.f32 %v1636_v20 }
 0x235   :  { %v770_v54 = vmul.f32 %v1638_v58, %v768_v45  ;;  %vm756_vm12 = vmor %vm754_vm11, %vm755_vm10  ;;  %vm775_vm14 = vweird.f32 %v1638_v58 }
 0x236   :  { %v751_v62 = vsub.f32 1.0, %v750_v23  ;;  %vm776_vm0 = vmor %vm774_vm15, %vm775_vm14 }
 0x237   :  { %v771_v28 = vsub.f32 1.0, %v770_v54  ;;  %v781_v54 = vor.u32 1.1754944e-38, %v780_v61 }
 0x238   :  { %v752_v42 = vmul.f32 %v1636_v20, %v751_v62 }
 0x239   :  { %v772_v41 = vmul.f32 %v1638_v58, %v771_v28  ;;  %v796_v28 = vpop.permute.xlu1 %795 }
 0x23a   :  { %v753_v4 = vadd.f32 %v1636_v20, %v752_v42  ;;  %vm797_vm2 = vcmp.eq.s32.totalorder %v796_v28, 1 }
 0x23b   :  { %v773_v31 = vadd.f32 %v1638_v58, %v772_v41 }
 0x23c   :  { %v757_v55 = vsel %vm756_vm12, %v1636_v20, %v753_v4 }
 0x23d   :  { %v762_v52 = vsel %vm759_vm13, %v761_v53, %v757_v55  ;;  %v777_v23 = vsel %vm776_vm0, %v1638_v58, %v773_v31 }
 0x23e   :  { %v785_v0 = vmul.f32 %v784_v63, %v762_v52  ;;  %v782_v19 = vsel %vm779_vm1, %v781_v54, %v777_v23 }
 0x23f   :  { %v788_v62 = vsub.f32 1.0, %v782_v19  ;;  %v790_v59 = vmul.f32 %v782_v19, %v2297_v26 }
 0x240   :  { %v786_v51 = vadd.f32 %v785_v0, %v2211_v49 }
 0x242   :  { %1639 = vtanh.f32 %v786_v51 }
 0x248   :  { %v1640_v20 = vpop.eup %1639 }
 0x249   :  { %v789_v48 = vmul.f32 %v1640_v20, %v788_v62  ;;  %v907_v20 = vld [vmem:[%s2480_s1 + $0x20] sm:$0xff] }
 0x24a   :  { %vm996_vm3 = vcmp.gt.f32.partialorder %v907_v20, 0.0 }
 0x24b   :  { %v791_v42 = vadd.f32 %v790_v59, %v789_v48  ;;  %v1009_v48 = vld [vmem:[%s2480_s1 + $0x28] sm:$0xff] }
 0x24c   :  { %vm1098_vm4 = vcmp.gt.f32.partialorder %v1009_v48, 0.0 }
 0x24d   :  { %v2335_v9 = vsel %vm797_vm2, %v2297_v26, %v791_v42  ;;  %v799_v45 = vsel %vm797_vm2, 0.0, %v791_v42  ;;  %v270_v26 = vadd.f32 %v2267_v33, %v2196_v5 }
 0x24e   :  { %v800_v41 = vpack.c.bf16 %v799_v45, %v799_v45  ;;  %v806_v49 = vpack.c.bf16 %v2335_v9, %v2335_v9 }
 0x250   :  { %801 = vst [vmem:[%s2483_s6 + $0x8] sm:$0xf] %v800_v41  ;;  %815 = vmatmul.bf16.vlgmr.msrb.gmra.mxu3 %v806_v49  ;;  %828 = vmatmul.bf16.vlgmr.msrb.gmra.mxu0 %v806_v49 }
 0x251   :  { %841 = vmatmul.bf16.vlgmr.msrb.gmra.mxu1 %v806_v49  ;;  %1037 = vmatpush.bf16.msrb.mxu3 %v1904_v12 }
 0x252   :  { %1113 = vmatpush.bf16.msrb.mxu0 %v1746_v7  ;;  %1126 = vmatpush.bf16.msrb.mxu1 %v1915_v16 }
 0x255   :  { %1038 = vmatpush.bf16.msrb.mxu3 %v1939_v27 }
 0x256   :  { %1114 = vmatpush.bf16.msrb.mxu0 %v1755_v11  ;;  %1127 = vmatpush.bf16.msrb.mxu1 %v1951_v32 }
 0x259   :  { %1039 = vmatpush.bf16.msrb.mxu3 %v1977_v43 }
 0x25a   :  { %1115 = vmatpush.bf16.msrb.mxu0 %v1770_v17  ;;  %1128 = vmatpush.bf16.msrb.mxu1 %v1986_v46 }
 0x25d   :  { %1040 = vmatpush.bf16.msrb.mxu3 %v2007_v56 }
 0x25e   :  { %1116 = vmatpush.bf16.msrb.mxu0 %v1788_v24  ;;  %1129 = vmatpush.bf16.msrb.mxu1 %v2010_v57 }
 0x261   :  { %1041 = vmatpush.bf16.msrb.mxu3 %v2031_v2 }
 0x262   :  { %1117 = vmatpush.bf16.msrb.mxu0 %v1818_v37  ;;  %1130 = vmatpush.bf16.msrb.mxu1 %v2035_v3 }
 0x265   :  { %1042 = vmatpush.bf16.msrb.mxu3 %v2054_v14 }
 0x266   :  { %1118 = vmatpush.bf16.msrb.mxu0 %v1842_v47  ;;  %1131 = vmatpush.bf16.msrb.mxu1 %v2058_v15 }
 0x269   :  { %1043 = vmatpush.bf16.msrb.mxu3 %v2079_v29 }
 0x26a   :  { %1119 = vmatpush.bf16.msrb.mxu0 %v1872_v60  ;;  %1132 = vmatpush.bf16.msrb.mxu1 %v2083_v30 }
 0x26d   :  { %1044 = vmatpush.bf16.msrb.mxu3 %v2100_v36 }
 0x26e   :  { %1120 = vmatpush.bf16.msrb.mxu0 %v1902_v10  ;;  %1133 = vmatpush.bf16.msrb.mxu1 %v2103_v38 }
 0x2cd   :  { %v829_v58 = vpop.f32.mrf.mxu0 }
 0x2ce   :  { %v866_v4 = vadd.f32 %v829_v58, %v270_v26  ;;  %v842_v53 = vpop.f32.mrf.mxu1 }
 0x2d0   :  { %v1545_v55 = vmul.f32 -1.442695, %v866_v4  ;;  %v1099_v4 = vsel %vm1098_vm4, 1, %v2491_v50 }
 0x2d2   :  { %1641 = vpow2.f32 %v1545_v55 }
 0x2d3   :  { %v816_v63 = vpop.f32.mrf.mxu3 }
 0x2d4   :  { %v846_v52 = vadd.f32 %v816_v63, %v2194_v1  ;;  %v997_v1 = vsel %vm996_vm3, 1, %v2491_v50 }
 0x2d5   :  { %v831_v31 = vpop.f32.mrf.mxu0  ;;  %999 = vperm.xlu2 %1609, %v997_v1  }
 0x2d6   :  { %v1544_v0 = vmul.f32 -1.442695, %v846_v52  ;;  %v844_v61 = vpop.f32.mrf.mxu1  ;;  %v886_v52 = vadd.f32 %v2218_v6, %v842_v53 }
 0x2d8   :  { %v1642_v22 = vpop.eup %1641  ;;  %1643 = vpow2.f32 %v1544_v0 }
 0x2d9   :  { %v870_v51 = vadd.f32 1.0, %v1642_v22 }
 0x2db   :  { %v818_v23 = vpop.f32.mrf.mxu3  ;;  %1645 = vrcp.f32 %v870_v51  ;;  %v882_v22 = vand.u32 2147483648, %v870_v51  ;;  %vm876_vm10 = vweird.f32 %v870_v51 }
 0x2dd   :  { %1101 = vperm.xlu2 %1609, %v1099_v4   ;;  %v883_v20 = vor.u32 1.1754944e-38, %v882_v22 }
 0x2de   :  { %v1644_v54 = vpop.eup %1643 }
 0x2df   :  { %v850_v19 = vadd.f32 1.0, %v1644_v54  ;;  %v880_v54 = vand.u32 2147483647, %v870_v51 }
 0x2e1   :  { %1647 = vrcp.f32 %v850_v19  ;;  %v1646_v33 = vpop.eup %1645  ;;  %v862_v41 = vand.u32 2147483648, %v850_v19  ;;  %v860_v26 = vand.u32 2147483647, %v850_v19  ;;  %vm856_vm6 = vweird.f32 %v850_v19 }
 0x2e2   :  { %v872_v62 = vmul.f32 %v1646_v33, %v870_v51  ;;  %vm877_vm9 = vweird.f32 %v1646_v33  ;;  %vm881_vm12 = vcmp.eq.f32.partialorder %v880_v54, 8.507059e+37 }
 0x2e3   :  { %v863_v63 = vor.u32 1.1754944e-38, %v862_v41  ;;  %vm861_vm8 = vcmp.eq.f32.partialorder %v860_v26, 8.507059e+37  ;;  %vm878_vm11 = vmor %vm876_vm10, %vm877_vm9 }
 0x2e4   :  { %v873_v42 = vsub.f32 1.0, %v872_v62 }
 0x2e6   :  { %v874_v58 = vmul.f32 %v1646_v33, %v873_v42 }
 0x2e7   :  { %v1648_v28 = vpop.eup %1647 }
 0x2e8   :  { %v852_v59 = vmul.f32 %v1648_v28, %v850_v19  ;;  %vm857_vm5 = vweird.f32 %v1648_v28  ;;  %v875_v0 = vadd.f32 %v1646_v33, %v874_v58 }
 0x2e9   :  { %vm858_vm7 = vmor %vm856_vm6, %vm857_vm5 }
 0x2ea   :  { %v853_v45 = vsub.f32 1.0, %v852_v59  ;;  %v879_v50 = vsel %vm878_vm11, %v1646_v33, %v875_v0  ;;  %v898_v59 = vpop.permute.xlu1 %897 }
 0x2eb   :  { %v884_v19 = vsel %vm881_vm12, %v883_v20, %v879_v50  ;;  %vm899_vm13 = vcmp.eq.s32.totalorder %v898_v59, 1 }
 0x2ec   :  { %v854_v49 = vmul.f32 %v1648_v28, %v853_v45  ;;  %v890_v1 = vsub.f32 1.0, %v884_v19  ;;  %v892_v48 = vmul.f32 %v884_v19, %v2335_v9 }
 0x2ee   :  { %v855_v55 = vadd.f32 %v1648_v28, %v854_v49 }
 0x2f0   :  { %v859_v31 = vsel %vm858_vm7, %v1648_v28, %v855_v55 }
 0x2f1   :  { %v864_v61 = vsel %vm861_vm8, %v863_v63, %v859_v31 }
 0x2f2   :  { %v887_v23 = vmul.f32 %v886_v52, %v864_v61 }
 0x2f4   :  { %v888_v62 = vadd.f32 %v887_v23, %v2221_v18 }
 0x2f6   :  { %1649 = vtanh.f32 %v888_v62 }
 0x2fc   :  { %v1650_v53 = vpop.eup %1649 }
 0x2fd   :  { %v891_v28 = vmul.f32 %v1650_v53, %v890_v1 }
 0x2ff   :  { %v893_v42 = vadd.f32 %v892_v48, %v891_v28 }
 0x301   :  { %v2381_v45 = vsel %vm899_vm13, %v2335_v9, %v893_v42  ;;  %v901_v51 = vsel %vm899_vm13, 0.0, %v893_v42 }
 0x302   :  { %v902_v41 = vpack.c.bf16 %v901_v51, %v901_v51  ;;  %v908_v18 = vpack.c.bf16 %v2381_v45, %v2381_v45 }
 0x304   :  { %903 = vst [vmem:[%s2483_s6 + $0xc] sm:$0xf] %v902_v41  ;;  %917 = vmatmul.bf16.vlgmr.msrb.gmra.mxu2 %v908_v18  ;;  %930 = vmatmul.bf16.vlgmr.msra.gmra.mxu3 %v908_v18 }
 0x305   :  { %943 = vmatmul.bf16.vlgmr.msra.gmra.mxu0 %v908_v18  ;;  %1139 = vmatpush.bf16.msrb.mxu2 %v1904_v12 }
 0x306   :  { %1215 = vmatpush.bf16.msra.mxu3 %v1746_v7  ;;  %1228 = vmatpush.bf16.msra.mxu0 %v1915_v16 }
 0x309   :  { %1140 = vmatpush.bf16.msrb.mxu2 %v1939_v27 }
 0x30a   :  { %1216 = vmatpush.bf16.msra.mxu3 %v1755_v11  ;;  %1229 = vmatpush.bf16.msra.mxu0 %v1951_v32  ;;  %v273_v11 = vadd.f32 %v2269_v21, %v2196_v5 }
 0x30d   :  { %1141 = vmatpush.bf16.msrb.mxu2 %v1977_v43 }
 0x30e   :  { %1217 = vmatpush.bf16.msra.mxu3 %v1770_v17  ;;  %1230 = vmatpush.bf16.msra.mxu0 %v1986_v46 }
 0x311   :  { %1142 = vmatpush.bf16.msrb.mxu2 %v2007_v56 }
 0x312   :  { %1218 = vmatpush.bf16.msra.mxu3 %v1788_v24  ;;  %1231 = vmatpush.bf16.msra.mxu0 %v2010_v57 }
 0x315   :  { %1143 = vmatpush.bf16.msrb.mxu2 %v2031_v2 }
 0x316   :  { %1219 = vmatpush.bf16.msra.mxu3 %v1818_v37  ;;  %1232 = vmatpush.bf16.msra.mxu0 %v2035_v3 }
 0x319   :  { %1144 = vmatpush.bf16.msrb.mxu2 %v2054_v14 }
 0x31a   :  { %1220 = vmatpush.bf16.msra.mxu3 %v1842_v47  ;;  %1233 = vmatpush.bf16.msra.mxu0 %v2058_v15 }
 0x31d   :  { %1145 = vmatpush.bf16.msrb.mxu2 %v2079_v29 }
 0x31e   :  { %1221 = vmatpush.bf16.msra.mxu3 %v1872_v60  ;;  %1234 = vmatpush.bf16.msra.mxu0 %v2083_v30 }
 0x321   :  { %1146 = vmatpush.bf16.msrb.mxu2 %v2100_v36 }
 0x322   :  { %1222 = vmatpush.bf16.msra.mxu3 %v1902_v10  ;;  %1235 = vmatpush.bf16.msra.mxu0 %v2103_v38 }
 0x32f   :  { %v1000_v48 = vpop.permute.xlu2 %999 }
 0x330   :  { %vm1001_vm6 = vcmp.eq.s32.totalorder %v1000_v48, 1 }
 0x382   :  { %v944_v7 = vpop.f32.mrf.mxu0 }
 0x383   :  { %v988_v31 = vadd.f32 %v2218_v6, %v944_v7 }
 0x387   :  { %v918_v17 = vpop.f32.mrf.mxu2  ;;  %v931_v24 = vpop.f32.mrf.mxu3 }
 0x388   :  { %v948_v37 = vadd.f32 %v918_v17, %v2198_v13  ;;  %v968_v47 = vadd.f32 %v931_v24, %v273_v11 }
 0x38a   :  { %v1546_v16 = vmul.f32 -1.442695, %v948_v37  ;;  %v1547_v32 = vmul.f32 -1.442695, %v968_v47  ;;  %v946_v60 = vpop.f32.mrf.mxu0 }
 0x38c   :  { %1651 = vpow2.f32 %v1546_v16 }
 0x38d   :  { %1653 = vpow2.f32 %v1547_v32 }
 0x38f   :  { %v920_v46 = vpop.f32.mrf.mxu2  ;;  %v933_v57 = vpop.f32.mrf.mxu3 }
 0x392   :  { %v1652_v3 = vpop.eup %1651 }
 0x393   :  { %v1654_v10 = vpop.eup %1653  ;;  %v952_v15 = vadd.f32 1.0, %v1652_v3 }
 0x394   :  { %v972_v30 = vadd.f32 1.0, %v1654_v10 }
 0x395   :  { %1655 = vrcp.f32 %v952_v15  ;;  %v964_v13 = vand.u32 2147483648, %v952_v15  ;;  %v962_v4 = vand.u32 2147483647, %v952_v15  ;;  %vm958_vm15 = vweird.f32 %v952_v15 }
 0x396   :  { %1657 = vrcp.f32 %v972_v30  ;;  %v984_v23 = vand.u32 2147483648, %v972_v30  ;;  %vm978_vm3 = vweird.f32 %v972_v30  ;;  %v982_v62 = vand.u32 2147483647, %v972_v30 }
 0x397   :  { %v965_v52 = vor.u32 1.1754944e-38, %v964_v13  ;;  %vm963_vm1 = vcmp.eq.f32.partialorder %v962_v4, 8.507059e+37 }
 0x398   :  { %v985_v19 = vor.u32 1.1754944e-38, %v984_v23  ;;  %vm983_vm5 = vcmp.eq.f32.partialorder %v982_v62, 8.507059e+37 }
 0x39b   :  { %v1656_v38 = vpop.eup %1655 }
 0x39c   :  { %v1658_v21 = vpop.eup %1657  ;;  %v954_v9 = vmul.f32 %v1656_v38, %v952_v15  ;;  %vm959_vm14 = vweird.f32 %v1656_v38 }
 0x39d   :  { %v974_v33 = vmul.f32 %v1658_v21, %v972_v30  ;;  %vm960_vm0 = vmor %vm958_vm15, %vm959_vm14  ;;  %vm979_vm2 = vweird.f32 %v1658_v21 }
 0x39e   :  { %v955_v49 = vsub.f32 1.0, %v954_v9  ;;  %vm980_vm4 = vmor %vm978_vm3, %vm979_vm2 }
 0x39f   :  { %v975_v26 = vsub.f32 1.0, %v974_v33 }
 0x3a0   :  { %v956_v58 = vmul.f32 %v1656_v38, %v955_v49 }
 0x3a1   :  { %v976_v55 = vmul.f32 %v1658_v21, %v975_v26 }
 0x3a2   :  { %v957_v63 = vadd.f32 %v1656_v38, %v956_v58 }
 0x3a3   :  { %v977_v22 = vadd.f32 %v1658_v21, %v976_v55 }
 0x3a4   :  { %v961_v0 = vsel %vm960_vm0, %v1656_v38, %v957_v63 }
 0x3a5   :  { %v966_v61 = vsel %vm963_vm1, %v965_v52, %v961_v0  ;;  %v981_v20 = vsel %vm980_vm4, %v1658_v21, %v977_v22  ;;  %v1102_v22 = vpop.permute.xlu2 %1101 }
 0x3a6   :  { %v989_v54 = vmul.f32 %v988_v31, %v966_v61  ;;  %v986_v1 = vsel %vm983_vm5, %v985_v19, %v981_v20  ;;  %vm1103_vm15 = vcmp.eq.s32.totalorder %v1102_v22, 1  ;;  %v278_v19 = vadd.f32 %v2273_v40, %v2196_v5 }
 0x3a7   :  { %v992_v53 = vsub.f32 1.0, %v986_v1  ;;  %v994_v42 = vmul.f32 %v986_v1, %v2381_v45 }
 0x3a8   :  { %v990_v50 = vadd.f32 %v989_v54, %v2226_v35 }
 0x3aa   :  { %1659 = vtanh.f32 %v990_v50 }
 0x3b0   :  { %v1660_v28 = vpop.eup %1659 }
 0x3b1   :  { %v993_v59 = vmul.f32 %v1660_v28, %v992_v53 }
 0x3b3   :  { %v995_v51 = vadd.f32 %v994_v42, %v993_v59 }
 0x3b5   :  { %v2419_v41 = vsel %vm1001_vm6, %v2381_v45, %v995_v51  ;;  %v1003_v18 = vsel %vm1001_vm6, 0.0, %v995_v51 }
 0x3b6   :  { %v1004_v7 = vpack.c.bf16 %v1003_v18, %v1003_v18  ;;  %v1010_v35 = vpack.c.bf16 %v2419_v41, %v2419_v41 }
 0x3b8   :  { %1005 = vst [vmem:[%s2483_s6 + $0x10] sm:$0xf] %v1004_v7  ;;  %1019 = vmatmul.bf16.vlgmr.msra.gmra.mxu1 %v1010_v35  ;;  %1032 = vmatmul.bf16.vlgmr.msra.gmra.mxu2 %v1010_v35 }
 0x3b9   :  { %1045 = vmatmul.bf16.vlgmr.msrb.gmra.mxu3 %v1010_v35  ;;  %1241 = vmatpush.bf16.msra.mxu1 %v1904_v12  ;;  %v275_v12 = vadd.f32 %v2271_v39, %v2196_v5 }
 0x3bd   :  { %1242 = vmatpush.bf16.msra.mxu1 %v1939_v27 }
 0x3c1   :  { %1243 = vmatpush.bf16.msra.mxu1 %v1977_v43 }
 0x3c5   :  { %1244 = vmatpush.bf16.msra.mxu1 %v2007_v56 }
 0x3c9   :  { %1245 = vmatpush.bf16.msra.mxu1 %v2031_v2 }
 0x3cd   :  { %1246 = vmatpush.bf16.msra.mxu1 %v2054_v14 }
 0x3d1   :  { %1247 = vmatpush.bf16.msra.mxu1 %v2079_v29 }
 0x3d5   :  { %1248 = vmatpush.bf16.msra.mxu1 %v2100_v36 }
 0x435   :  { %v1020_v45 = vpop.f32.mrf.mxu1 }
 0x436   :  { %v1050_v11 = vadd.f32 %v1020_v45, %v2206_v34 }
 0x438   :  { %v1548_v17 = vmul.f32 -1.442695, %v1050_v11 }
 0x43a   :  { %1661 = vpow2.f32 %v1548_v17 }
 0x43b   :  { %v1033_v27 = vpop.f32.mrf.mxu2 }
 0x43c   :  { %v1070_v43 = vadd.f32 %v1033_v27, %v275_v12  ;;  %v1046_v24 = vpop.f32.mrf.mxu3 }
 0x43d   :  { %v1022_v56 = vpop.f32.mrf.mxu1  ;;  %v1090_v9 = vadd.f32 %v2218_v6, %v1046_v24 }
 0x43e   :  { %v1549_v37 = vmul.f32 -1.442695, %v1070_v43 }
 0x440   :  { %v1662_v2 = vpop.eup %1661  ;;  %1663 = vpow2.f32 %v1549_v37 }
 0x441   :  { %v1054_v14 = vadd.f32 1.0, %v1662_v2 }
 0x443   :  { %1665 = vrcp.f32 %v1054_v14  ;;  %v1035_v29 = vpop.f32.mrf.mxu2  ;;  %v1066_v46 = vand.u32 2147483648, %v1054_v14  ;;  %v1064_v57 = vand.u32 2147483647, %v1054_v14  ;;  %vm1060_vm8 = vweird.f32 %v1054_v14 }
 0x444   :  { %v1048_v47 = vpop.f32.mrf.mxu3 }
 0x445   :  { %v1067_v30 = vor.u32 1.1754944e-38, %v1066_v46  ;;  %vm1065_vm10 = vcmp.eq.f32.partialorder %v1064_v57, 8.507059e+37 }
 0x446   :  { %v1664_v36 = vpop.eup %1663 }
 0x447   :  { %v1074_v16 = vadd.f32 1.0, %v1664_v36 }
 0x449   :  { %v1666_v32 = vpop.eup %1665  ;;  %1667 = vrcp.f32 %v1074_v16  ;;  %v1086_v13 = vand.u32 2147483648, %v1074_v16  ;;  %v1084_v58 = vand.u32 2147483647, %v1074_v16  ;;  %vm1080_vm12 = vweird.f32 %v1074_v16 }
 0x44a   :  { %v1056_v34 = vmul.f32 %v1666_v32, %v1054_v14  ;;  %vm1061_vm7 = vweird.f32 %v1666_v32 }
 0x44b   :  { %vm1062_vm9 = vmor %vm1060_vm8, %vm1061_vm7  ;;  %v1087_v63 = vor.u32 1.1754944e-38, %v1086_v13  ;;  %vm1085_vm14 = vcmp.eq.f32.partialorder %v1084_v58, 8.507059e+37 }
 0x44c   :  { %v1057_v60 = vsub.f32 1.0, %v1056_v34 }
 0x44e   :  { %v1058_v39 = vmul.f32 %v1666_v32, %v1057_v60 }
 0x44f   :  { %v1668_v3 = vpop.eup %1667 }
 0x450   :  { %v1076_v10 = vmul.f32 %v1668_v3, %v1074_v16  ;;  %v1059_v15 = vadd.f32 %v1666_v32, %v1058_v39  ;;  %vm1081_vm11 = vweird.f32 %v1668_v3  ;;  %v2454_v16 = vld [vmem:[%s2481_s5] ss:$0 sm:$0xff] }
 0x451   :  { %vm1082_vm13 = vmor %vm1080_vm12, %vm1081_vm11 }
 0x452   :  { %v1077_v38 = vsub.f32 1.0, %v1076_v10  ;;  %v1063_v21 = vsel %vm1062_vm9, %v1666_v32, %v1059_v15 }
 0x453   :  { %v1068_v33 = vsel %vm1065_vm10, %v1067_v30, %v1063_v21 }
 0x454   :  { %v1078_v49 = vmul.f32 %v1668_v3, %v1077_v38  ;;  %v1091_v26 = vmul.f32 %v1090_v9, %v1068_v33  ;;  %v1204_v9 = vpop.permute.xlu0 %1203 }
 0x455   :  { %vm1205_vm8 = vcmp.eq.s32.totalorder %v1204_v9, 1 }
 0x456   :  { %v1079_v4 = vadd.f32 %v1668_v3, %v1078_v49  ;;  %v1092_v55 = vadd.f32 %v1091_v26, %v2229_v8 }
 0x458   :  { %v1083_v52 = vsel %vm1082_vm13, %v1668_v3, %v1079_v4  ;;  %1669 = vtanh.f32 %v1092_v55  ;;  %v2492_v55 = vld [vmem:[#allocation5_spill] sm:$0xff] }
 0x459   :  { %v1088_v31 = vsel %vm1085_vm14, %v1087_v63, %v1083_v52  ;;  %v280_v63 = vadd.f32 %v2492_v55, %v2196_v5 }
 0x45a   :  { %v1094_v0 = vsub.f32 1.0, %v1088_v31  ;;  %v1096_v23 = vmul.f32 %v1088_v31, %v2419_v41 }
 0x45e   :  { %v1670_v61 = vpop.eup %1669 }
 0x45f   :  { %v1095_v6 = vmul.f32 %v1670_v61, %v1094_v0 }
 0x461   :  { %v1097_v54 = vadd.f32 %v1096_v23, %v1095_v6  ;;  %v2493_v6 = vld [vmem:[#allocation4_spill] sm:$0xff] }
 0x463   :  { %v1105_v62 = vsel %vm1103_vm15, 0.0, %v1097_v54  ;;  %v2441_v50 = vsel %vm1103_vm15, %v2419_v41, %v1097_v54 }
 0x464   :  { %v1106_v20 = vpack.c.bf16 %v1105_v62, %v1105_v62  ;;  %v1112_v8 = vpack.c.bf16 %v2441_v50, %v2441_v50 }
 0x466   :  { %1107 = vst [vmem:[%s2483_s6 + $0x14] sm:$0xf] %v1106_v20  ;;  %1121 = vmatmul.bf16.vlgmr.msrb.gmra.mxu0 %v1112_v8  ;;  %1134 = vmatmul.bf16.vlgmr.msrb.gmra.mxu1 %v1112_v8 }
 0x467   :  { %1147 = vmatmul.bf16.vlgmr.msrb.gmra.mxu2 %v1112_v8 }
 0x4e3   :  { %v1122_v1 = vpop.f32.mrf.mxu0  ;;  %v1135_v53 = vpop.f32.mrf.mxu1 }
 0x4e4   :  { %v1152_v28 = vadd.f32 %v1122_v1, %v2208_v44  ;;  %v1172_v48 = vadd.f32 %v1135_v53, %v278_v19 }
 0x4e6   :  { %v1550_v59 = vmul.f32 -1.442695, %v1152_v28  ;;  %v1551_v42 = vmul.f32 -1.442695, %v1172_v48 }
 0x4e8   :  { %1671 = vpow2.f32 %v1550_v59 }
 0x4e9   :  { %1673 = vpow2.f32 %v1551_v42 }
 0x4ea   :  { %v1148_v51 = vpop.f32.mrf.mxu2 }
 0x4eb   :  { %v1124_v41 = vpop.f32.mrf.mxu0  ;;  %v1137_v18 = vpop.f32.mrf.mxu1  ;;  %v1192_v32 = vadd.f32 %v2454_v16, %v1148_v51 }
 0x4ee   :  { %v1672_v7 = vpop.eup %1671 }
 0x4ef   :  { %v1674_v35 = vpop.eup %1673  ;;  %v1156_v45 = vadd.f32 1.0, %v1672_v7 }
 0x4f0   :  { %v1176_v11 = vadd.f32 1.0, %v1674_v35 }
 0x4f1   :  { %1675 = vrcp.f32 %v1156_v45  ;;  %v1168_v56 = vand.u32 2147483648, %v1156_v45  ;;  %v1166_v2 = vand.u32 2147483647, %v1156_v45  ;;  %vm1162_vm1 = vweird.f32 %v1156_v45 }
 0x4f2   :  { %1677 = vrcp.f32 %v1176_v11  ;;  %v1150_v17 = vpop.f32.mrf.mxu2  ;;  %v1188_v46 = vand.u32 2147483648, %v1176_v11  ;;  %vm1182_vm5 = vweird.f32 %v1176_v11  ;;  %v1186_v57 = vand.u32 2147483647, %v1176_v11 }
 0x4f3   :  { %v1169_v47 = vor.u32 1.1754944e-38, %v1168_v56  ;;  %vm1167_vm3 = vcmp.eq.f32.partialorder %v1166_v2, 8.507059e+37 }
 0x4f4   :  { %v1189_v15 = vor.u32 1.1754944e-38, %v1188_v46  ;;  %vm1187_vm7 = vcmp.eq.f32.partialorder %v1186_v57, 8.507059e+37 }
 0x4f7   :  { %v1676_v40 = vpop.eup %1675 }
 0x4f8   :  { %v1678_v12 = vpop.eup %1677  ;;  %v1158_v27 = vmul.f32 %v1676_v40, %v1156_v45  ;;  %vm1163_vm0 = vweird.f32 %v1676_v40 }
 0x4f9   :  { %v1178_v43 = vmul.f32 %v1678_v12, %v1176_v11  ;;  %vm1164_vm2 = vmor %vm1162_vm1, %vm1163_vm0  ;;  %vm1183_vm4 = vweird.f32 %v1678_v12 }
 0x4fa   :  { %v1159_v44 = vsub.f32 1.0, %v1158_v27  ;;  %vm1184_vm6 = vmor %vm1182_vm5, %vm1183_vm4 }
 0x4fb   :  { %v1179_v24 = vsub.f32 1.0, %v1178_v43  ;;  %v2494_v43 = vld [vmem:[#allocation3_spill] sm:$0xff] }
 0x4fc   :  { %v1160_v37 = vmul.f32 %v1676_v40, %v1159_v44  ;;  %v2495_v44 = vld [vmem:[#allocation6_spill] sm:$0xff] }
 0x4fd   :  { %v1180_v14 = vmul.f32 %v1678_v12, %v1179_v24  ;;  %v309_v24 = vadd.f32 %v2495_v44, %v2494_v43 }
 0x4fe   :  { %v1161_v29 = vadd.f32 %v1676_v40, %v1160_v37 }
 0x4ff   :  { %v1181_v34 = vadd.f32 %v1678_v12, %v1180_v14 }
 0x500   :  { %v1165_v36 = vsel %vm1164_vm2, %v1676_v40, %v1161_v29 }
 0x501   :  { %v1170_v60 = vsel %vm1167_vm3, %v1169_v47, %v1165_v36  ;;  %v1185_v10 = vsel %vm1184_vm6, %v1678_v12, %v1181_v34  ;;  %v1306_v34 = vpop.permute.xlu1 %1305 }
 0x502   :  { %v1193_v39 = vmul.f32 %v1192_v32, %v1170_v60  ;;  %v1190_v30 = vsel %vm1187_vm7, %v1189_v15, %v1185_v10  ;;  %vm1307_vm1 = vcmp.eq.s32.totalorder %v1306_v34, 1 }
 0x503   :  { %v1196_v38 = vsub.f32 1.0, %v1190_v30  ;;  %v1198_v49 = vmul.f32 %v1190_v30, %v2441_v50 }
 0x504   :  { %v1194_v3 = vadd.f32 %v1193_v39, %v2240_v25 }
 0x506   :  { %1679 = vtanh.f32 %v1194_v3 }
 0x50c   :  { %v1680_v21 = vpop.eup %1679 }
 0x50d   :  { %v1197_v33 = vmul.f32 %v1680_v21, %v1196_v38 }
 0x50f   :  { %v1199_v13 = vadd.f32 %v1198_v49, %v1197_v33 }
 0x511   :  { %v2460_v26 = vsel %vm1205_vm8, %v2441_v50, %v1199_v13  ;;  %v1207_v58 = vsel %vm1205_vm8, 0.0, %v1199_v13 }
 0x512   :  { %v1208_v4 = vpack.c.bf16 %v1207_v58, %v1207_v58  ;;  %v1214_v25 = vpack.c.bf16 %v2460_v26, %v2460_v26 }
 0x514   :  { %1209 = vst [vmem:[%s2483_s6 + $0x18] sm:$0xf] %v1208_v4  ;;  %1223 = vmatmul.bf16.vlgmr.msra.gmra.mxu3 %v1214_v25  ;;  %1236 = vmatmul.bf16.vlgmr.msra.gmra.mxu0 %v1214_v25 }
 0x515   :  { %1249 = vmatmul.bf16.vlgmr.msra.gmra.mxu1 %v1214_v25 }
 0x591   :  { %v1237_v52 = vpop.f32.mrf.mxu0 }
 0x592   :  { %v1274_v31 = vadd.f32 %v1237_v52, %v280_v63  ;;  %v1250_v0 = vpop.f32.mrf.mxu1 }
 0x593   :  { %v1294_v17 = vadd.f32 %v2454_v16, %v1250_v0 }
 0x594   :  { %v1553_v61 = vmul.f32 -1.442695, %v1274_v31 }
 0x596   :  { %1681 = vpow2.f32 %v1553_v61 }
 0x597   :  { %v1224_v22 = vpop.f32.mrf.mxu3 }
 0x598   :  { %v1254_v23 = vadd.f32 %v1224_v22, %v2493_v6 }
 0x599   :  { %v1239_v54 = vpop.f32.mrf.mxu0 }
 0x59a   :  { %v1552_v62 = vmul.f32 -1.442695, %v1254_v23  ;;  %v1252_v50 = vpop.f32.mrf.mxu1 }
 0x59c   :  { %v1682_v20 = vpop.eup %1681  ;;  %1683 = vpow2.f32 %v1552_v62 }
 0x59d   :  { %v1278_v8 = vadd.f32 1.0, %v1682_v20 }
 0x59f   :  { %v1226_v19 = vpop.f32.mrf.mxu3  ;;  %1685 = vrcp.f32 %v1278_v8  ;;  %v1290_v56 = vand.u32 2147483648, %v1278_v8  ;;  %vm1284_vm14 = vweird.f32 %v1278_v8  ;;  %v1288_v2 = vand.u32 2147483647, %v1278_v8 }
 0x5a1   :  { %v1291_v47 = vor.u32 1.1754944e-38, %v1290_v56  ;;  %vm1289_vm0 = vcmp.eq.f32.partialorder %v1288_v2, 8.507059e+37 }
 0x5a2   :  { %v1684_v1 = vpop.eup %1683 }
 0x5a3   :  { %v1258_v53 = vadd.f32 1.0, %v1684_v1 }
 0x5a5   :  { %1687 = vrcp.f32 %v1258_v53  ;;  %v1686_v5 = vpop.eup %1685  ;;  %v1270_v41 = vand.u32 2147483648, %v1258_v53  ;;  %v1268_v7 = vand.u32 2147483647, %v1258_v53  ;;  %vm1264_vm10 = vweird.f32 %v1258_v53 }
 0x5a6   :  { %v1280_v28 = vmul.f32 %v1686_v5, %v1278_v8  ;;  %vm1285_vm13 = vweird.f32 %v1686_v5 }
 0x5a7   :  { %v1271_v11 = vor.u32 1.1754944e-38, %v1270_v41  ;;  %vm1269_vm12 = vcmp.eq.f32.partialorder %v1268_v7, 8.507059e+37  ;;  %vm1286_vm15 = vmor %vm1284_vm14, %vm1285_vm13 }
 0x5a8   :  { %v1281_v42 = vsub.f32 1.0, %v1280_v28 }
 0x5aa   :  { %v1282_v35 = vmul.f32 %v1686_v5, %v1281_v42 }
 0x5ab   :  { %v1688_v48 = vpop.eup %1687 }
 0x5ac   :  { %v1260_v59 = vmul.f32 %v1688_v48, %v1258_v53  ;;  %vm1265_vm9 = vweird.f32 %v1688_v48  ;;  %v1283_v12 = vadd.f32 %v1686_v5, %v1282_v35 }
 0x5ad   :  { %vm1266_vm11 = vmor %vm1264_vm10, %vm1265_vm9 }
 0x5ae   :  { %v1261_v51 = vsub.f32 1.0, %v1260_v59  ;;  %v1287_v29 = vsel %vm1286_vm15, %v1686_v5, %v1283_v12 }
 0x5af   :  { %v1292_v36 = vsel %vm1289_vm0, %v1291_v47, %v1287_v29 }
 0x5b0   :  { %v1262_v18 = vmul.f32 %v1688_v48, %v1261_v51  ;;  %v1298_v16 = vsub.f32 1.0, %v1292_v36  ;;  %v1300_v60 = vmul.f32 %v1292_v36, %v2460_v26 }
 0x5b2   :  { %v1263_v45 = vadd.f32 %v1688_v48, %v1262_v18 }
 0x5b4   :  { %v1267_v40 = vsel %vm1266_vm11, %v1688_v48, %v1263_v45 }
 0x5b5   :  { %v1272_v27 = vsel %vm1269_vm12, %v1271_v11, %v1267_v40 }
 0x5b6   :  { %v1295_v37 = vmul.f32 %v1294_v17, %v1272_v27 }
 0x5b8   :  { %v1296_v14 = vadd.f32 %v1295_v37, %v309_v24 }
 0x5ba   :  { %1689 = vtanh.f32 %v1296_v14 }
 0x5c0   :  { %v1690_v32 = vpop.eup %1689 }
 0x5c1   :  { %v1299_v46 = vmul.f32 %v1690_v32, %v1298_v16 }
 0x5c3   :  { %v1301_v39 = vadd.f32 %v1300_v60, %v1299_v46 }
 0x5c5   :  { %v1308_v57 = vsel %vm1307_vm1, 0.0, %v1301_v39 }
 0x5c6   :  { %v1309_v3 = vpack.c.bf16 %v1308_v57, %v1308_v57 }
 0x5c8   :  { %1310 = vst [vmem:[%s2483_s6 + $0x1c] sm:$0xf] %v1309_v3 }

// kernel: rnn_decoder_forward.3
= control target key start
LH: loop header
LB: loop body
LE: loop exit
PB: predicated region body
PF: predicated region fallthrough
CT: control target
= control target key end

     0   :  { %11 = vsyncpa [#allocation3], 0  ;;  %s1976_s0 = inlined_call_operand.vmem [shape: bf16[64,256], index: 0, kind: input, shape index: {}]   ;;  %s1977_s1 = inlined_call_operand.hbm [shape: bf16[256,128], index: 1, kind: input, shape index: {}]   ;;  %s1978_s2 = inlined_call_operand.vmem [shape: f32[1,128], index: 2, kind: input, shape index: {}]   ;;  %s1979_s3 = inlined_call_operand.vmem [shape: bf16[128,512], index: 3, kind: input, shape index: {}]   ;;  %s1980_s4 = inlined_call_operand.vmem [shape: f32[1,512], index: 4, kind: input, shape index: {}]   ;;  %s1981_s5 = inlined_call_operand.vmem [shape: f32[1,512], index: 5, kind: input, shape index: {}]   ;;  %s1982_s6 = inlined_call_operand.hbm [shape: bf16[64,512], index: 6, kind: output, shape index: {}]  }
   0x1   :  { %12 = vsyncpa [#allocation4], 0  ;;  %s19_s23 = sshll.u32 %s1977_s1, 4  ;;  %s1384_s24 = smov [#allocation2]   ;;  %s20_s23 = int_to_ptr.hbm [resolvable:$true] %s19_s23 }
   0x2   :  { %s21_s25 = sshll.u32 %s1384_s24, 4  ;;  %s1385_s26 = smov 64   ;;  %s22_s25 = int_to_ptr.vmem [resolvable:$true] %s21_s25 }
   0x3   :  { %s1386_s27 = smov 4  }
   0x4   :  { %27 = dma.hbm_to_vmem [thread:$0]  %s20_s23, 2048, %s22_s25, [#allocation3], %s1385_s26, %s1385_s26, %s1386_s27  }
   0x5   :  { %1380 = dma.done.wait [#allocation3], 2048  }
   0x6   :  { %1381 = vsyncadd [#allocation3], 4294965248  ;;  %v1172_v0 = vld [vmem:[#allocation2 + $0x38] sm:$0xff]  ;;  %v1171_v2 = vld [vmem:[#allocation2 + $0x30] sm:$0xff]  ;;  %s920_s15 = sshll.u32 %s1982_s6, 4  ;;  %s1388_s16 = smov 256   ;;  %s921_s15 = int_to_ptr.hbm [resolvable:$true] %s920_s15 }
   0x7   :  { %v1180_v1 = vld [vmem:[#allocation2 + $0x78] sm:$0xff]  ;;  %220 = vmatpush.bf16.msra.mxu0 %v1172_v0  ;;  %v1179_v3 = vld [vmem:[#allocation2 + $0x70] sm:$0xff]  ;;  %1213 = vmatpush.bf16.msra.mxu2 %v1172_v0  ;;  %v1170_v4 = vld [vmem:[#allocation2 + $0x28] sm:$0xff]  ;;  %s1389_s17 = smov 16  }
   0x8   :  { %249 = vmatpush.bf16.msra.mxu1 %v1180_v1  ;;  %1221 = vmatpush.bf16.msra.mxu3 %v1180_v1  ;;  %v1178_v5 = vld [vmem:[#allocation2 + $0x68] sm:$0xff]  ;;  %v1169_v6 = vld [vmem:[#allocation2 + $0x20] sm:$0xff]  ;;  %v1168_v8 = vld [vmem:[#allocation2 + $0x18] sm:$0xff] }
   0x9   :  { %v1177_v7 = vld [vmem:[#allocation2 + $0x60] sm:$0xff]  ;;  %v1176_v9 = vld [vmem:[#allocation2 + $0x58] sm:$0xff]  ;;  %v1167_v10 = vld [vmem:[#allocation2 + $0x10] sm:$0xff] }
   0xa   :  { %v1175_v11 = vld [vmem:[#allocation2 + $0x50] sm:$0xff]  ;;  %v1166_v12 = vld [vmem:[#allocation2 + $0x8] sm:$0xff]  ;;  %v1165_v14 = vld [vmem:[#allocation2] sm:$0xff] }
   0xb   :  { %221 = vmatpush.bf16.msra.mxu0 %v1171_v2  ;;  %1214 = vmatpush.bf16.msra.mxu2 %v1171_v2  ;;  %v1174_v13 = vld [vmem:[#allocation2 + $0x48] sm:$0xff]  ;;  %v1173_v15 = vld [vmem:[#allocation2 + $0x40] sm:$0xff]  ;;  %v1211_v21 = vld [vmem:[%s1979_s3 + $0xec] sm:$0xf0] }
   0xc   :  { %250 = vmatpush.bf16.msra.mxu1 %v1179_v3  ;;  %1222 = vmatpush.bf16.msra.mxu3 %v1179_v3  ;;  %v935_v16 = vld [vmem:[%s1976_s0] sm:$0xf]  ;;  %v1158_v17 = vld [vmem:[%s1976_s0 + $0x4] sm:$0xf0]  ;;  %v1157_v18 = vld [vmem:[%s1976_s0 + $0x4] sm:$0xf] }
   0xd   :  { %v937_v19 = vld [vmem:[%s1976_s0 + $0x8] sm:$0xf0]  ;;  %v1143_v20 = vld [vmem:[%s1979_s3 + $0xe0] sm:$0xf]  ;;  %v1209_v22 = vld [vmem:[%s1979_s3 + $0xe4] sm:$0xf]  ;;  %v936_v35 = vor.u32 %v1158_v17, %v935_v16 }
   0xe   :  { %v1145_v23 = vld [vmem:[%s1979_s3 + $0xf0] sm:$0xf0]  ;;  %v951_v24 = vld [vmem:[%s1976_s0 + $0x20] sm:$0xf]  ;;  %v1162_v25 = vld [vmem:[%s1976_s0 + $0x24] sm:$0xf0]  ;;  %v1144_v30 = vor.u32 %v1211_v21, %v1143_v20  ;;  %v940_v36 = vor.u32 %v1157_v18, %v937_v19 }
   0xf   :  { %222 = vmatpush.bf16.msra.mxu0 %v1170_v4  ;;  %1215 = vmatpush.bf16.msra.mxu2 %v1170_v4  ;;  %v1161_v26 = vld [vmem:[%s1976_s0 + $0x24] sm:$0xf]  ;;  %v953_v27 = vld [vmem:[%s1976_s0 + $0x28] sm:$0xf0]  ;;  %v1151_v28 = vld [vmem:[%s1979_s3 + $0xe8] sm:$0xf]  ;;  %v1148_v31 = vor.u32 %v1209_v22, %v1145_v23  ;;  %v952_v40 = vor.u32 %v1162_v25, %v951_v24 }
  0x10   :  { %251 = vmatpush.bf16.msra.mxu1 %v1178_v5  ;;  %1223 = vmatpush.bf16.msra.mxu3 %v1178_v5  ;;  %v1212_v29 = vld [vmem:[%s1979_s3 + $0xf4] sm:$0xf0]  ;;  %v1210_v32 = vld [vmem:[%s1979_s3 + $0xec] sm:$0xf]  ;;  %v1153_v33 = vld [vmem:[%s1979_s3 + $0xf8] sm:$0xf0]  ;;  %v956_v41 = vor.u32 %v1161_v26, %v953_v27 }
  0x11   :  { %v1127_v34 = vld [vmem:[%s1979_s3 + $0xc0] sm:$0xf]  ;;  %v1207_v37 = vld [vmem:[%s1979_s3 + $0xcc] sm:$0xf0]  ;;  %v1205_v38 = vld [vmem:[%s1979_s3 + $0xc4] sm:$0xf]  ;;  %v1152_v42 = vor.u32 %v1212_v29, %v1151_v28  ;;  %v1156_v43 = vor.u32 %v1210_v32, %v1153_v33 }
  0x12   :  { %v1129_v39 = vld [vmem:[%s1979_s3 + $0xd0] sm:$0xf0]  ;;  %v1135_v44 = vld [vmem:[%s1979_s3 + $0xc8] sm:$0xf]  ;;  %v1208_v45 = vld [vmem:[%s1979_s3 + $0xd4] sm:$0xf0]  ;;  %v1128_v46 = vor.u32 %v1207_v37, %v1127_v34 }
  0x13   :  { %223 = vmatpush.bf16.msra.mxu0 %v1169_v6  ;;  %1216 = vmatpush.bf16.msra.mxu2 %v1169_v6  ;;  %v1132_v47 = vor.u32 %v1205_v38, %v1129_v39  ;;  %v1206_v48 = vld [vmem:[%s1979_s3 + $0xcc] sm:$0xf]  ;;  %v1137_v49 = vld [vmem:[%s1979_s3 + $0xd8] sm:$0xf0]  ;;  %v1111_v50 = vld [vmem:[%s1979_s3 + $0xa0] sm:$0xf]  ;;  %v1136_v54 = vor.u32 %v1208_v45, %v1135_v44 }
  0x14   :  { %252 = vmatpush.bf16.msra.mxu1 %v1177_v7  ;;  %1224 = vmatpush.bf16.msra.mxu3 %v1177_v7  ;;  %v1203_v51 = vld [vmem:[%s1979_s3 + $0xac] sm:$0xf0]  ;;  %v1201_v52 = vld [vmem:[%s1979_s3 + $0xa4] sm:$0xf]  ;;  %v1113_v53 = vld [vmem:[%s1979_s3 + $0xb0] sm:$0xf0]  ;;  %v1140_v55 = vor.u32 %v1206_v48, %v1137_v49 }
  0x15   :  { %v1119_v56 = vld [vmem:[%s1979_s3 + $0xa8] sm:$0xf]  ;;  %v1112_v57 = vor.u32 %v1203_v51, %v1111_v50  ;;  %v1116_v58 = vor.u32 %v1201_v52, %v1113_v53  ;;  %v1204_v59 = vld [vmem:[%s1979_s3 + $0xb4] sm:$0xf0]  ;;  %v1202_v60 = vld [vmem:[%s1979_s3 + $0xac] sm:$0xf] }
  0x16   :  { %v1121_v61 = vld [vmem:[%s1979_s3 + $0xb8] sm:$0xf0]  ;;  %v1120_v62 = vor.u32 %v1204_v59, %v1119_v56  ;;  %v943_v0 = vld [vmem:[%s1976_s0 + $0x10] sm:$0xf]  ;;  %v1160_v1 = vld [vmem:[%s1976_s0 + $0x14] sm:$0xf0] }
  0x17   :  { %224 = vmatpush.bf16.msra.mxu0 %v1168_v8  ;;  %1217 = vmatpush.bf16.msra.mxu2 %v1168_v8  ;;  %v1124_v63 = vor.u32 %v1202_v60, %v1121_v61  ;;  %v1159_v2 = vld [vmem:[%s1976_s0 + $0x14] sm:$0xf]  ;;  %v945_v3 = vld [vmem:[%s1976_s0 + $0x18] sm:$0xf0]  ;;  %v959_v4 = vld [vmem:[%s1976_s0 + $0x30] sm:$0xf]  ;;  %v944_v8 = vor.u32 %v1160_v1, %v943_v0 }
  0x18   :  { %253 = vmatpush.bf16.msra.mxu1 %v1176_v9  ;;  %1225 = vmatpush.bf16.msra.mxu3 %v1176_v9  ;;  %v1164_v5 = vld [vmem:[%s1976_s0 + $0x34] sm:$0xf0]  ;;  %v1163_v6 = vld [vmem:[%s1976_s0 + $0x34] sm:$0xf]  ;;  %v961_v7 = vld [vmem:[%s1976_s0 + $0x38] sm:$0xf0]  ;;  %v948_v9 = vor.u32 %v1159_v2, %v945_v3 }
  0x19   :  { %v1097_v16 = vld [vmem:[%s1979_s3 + $0x90] sm:$0xf0]  ;;  %v1103_v17 = vld [vmem:[%s1979_s3 + $0x88] sm:$0xf]  ;;  %v1200_v18 = vld [vmem:[%s1979_s3 + $0x94] sm:$0xf0] }
  0x1a   :  { %v1104_v20 = vor.u32 %v1200_v18, %v1103_v17  ;;  %v1198_v21 = vld [vmem:[%s1979_s3 + $0x8c] sm:$0xf]  ;;  %v1105_v22 = vld [vmem:[%s1979_s3 + $0x98] sm:$0xf0]  ;;  %v1079_v24 = vld [vmem:[%s1979_s3 + $0x60] sm:$0xf] }
  0x1b   :  { %225 = vmatpush.bf16.msra.mxu0 %v1167_v10  ;;  %1218 = vmatpush.bf16.msra.mxu2 %v1167_v10  ;;  %v960_v10 = vor.u32 %v1164_v5, %v959_v4  ;;  %v1108_v23 = vor.u32 %v1198_v21, %v1105_v22  ;;  %v1195_v25 = vld [vmem:[%s1979_s3 + $0x6c] sm:$0xf0]  ;;  %v1193_v26 = vld [vmem:[%s1979_s3 + $0x64] sm:$0xf]  ;;  %v1081_v28 = vld [vmem:[%s1979_s3 + $0x70] sm:$0xf0] }
  0x1c   :  { %254 = vmatpush.bf16.msra.mxu1 %v1175_v11  ;;  %1226 = vmatpush.bf16.msra.mxu3 %v1175_v11  ;;  %v964_v11 = vor.u32 %v1163_v6, %v961_v7  ;;  %v1080_v27 = vor.u32 %v1195_v25, %v1079_v24  ;;  %v1087_v29 = vld [vmem:[%s1979_s3 + $0x68] sm:$0xf]  ;;  %v1194_v33 = vld [vmem:[%s1979_s3 + $0x6c] sm:$0xf]  ;;  %v1089_v34 = vld [vmem:[%s1979_s3 + $0x78] sm:$0xf0] }
  0x1d   :  { %v1191_v37 = vld [vmem:[%s1979_s3 + $0x4c] sm:$0xf0]  ;;  %v1189_v38 = vld [vmem:[%s1979_s3 + $0x44] sm:$0xf]  ;;  %v1190_v45 = vld [vmem:[%s1979_s3 + $0x4c] sm:$0xf] }
  0x1e   :  { %v1047_v48 = vld [vmem:[%s1979_s3 + $0x20] sm:$0xf]  ;;  %v1187_v49 = vld [vmem:[%s1979_s3 + $0x2c] sm:$0xf0]  ;;  %v1185_v50 = vld [vmem:[%s1979_s3 + $0x24] sm:$0xf] }
  0x1f   :  { %226 = vmatpush.bf16.msra.mxu0 %v1166_v12  ;;  %1219 = vmatpush.bf16.msra.mxu2 %v1166_v12  ;;  %v1095_v12 = vld [vmem:[%s1979_s3 + $0x80] sm:$0xf]  ;;  %v1048_v51 = vor.u32 %v1187_v49, %v1047_v48  ;;  %v1049_v52 = vld [vmem:[%s1979_s3 + $0x30] sm:$0xf0]  ;;  %v1055_v53 = vld [vmem:[%s1979_s3 + $0x28] sm:$0xf] }
  0x20   :  { %255 = vmatpush.bf16.msra.mxu1 %v1174_v13  ;;  %1227 = vmatpush.bf16.msra.mxu3 %v1174_v13  ;;  %v1199_v13 = vld [vmem:[%s1979_s3 + $0x8c] sm:$0xf0]  ;;  %v1031_v60 = vld [vmem:[%s1979_s3] sm:$0xf]  ;;  %v1033_v0 = vld [vmem:[%s1979_s3 + $0x10] sm:$0xf0] }
  0x21   :  { %v1183_v61 = vld [vmem:[%s1979_s3 + $0xc] sm:$0xf0]  ;;  %v1039_v1 = vld [vmem:[%s1979_s3 + $0x8] sm:$0xf]  ;;  %v1184_v2 = vld [vmem:[%s1979_s3 + $0x14] sm:$0xf0] }
  0x22   :  { %v1040_v4 = vor.u32 %v1184_v2, %v1039_v1  ;;  %v1182_v5 = vld [vmem:[%s1979_s3 + $0xc] sm:$0xf]  ;;  %v1041_v6 = vld [vmem:[%s1979_s3 + $0x18] sm:$0xf0] }
  0x23   :  { %227 = vmatpush.bf16.msra.mxu0 %v1165_v14  ;;  %1220 = vmatpush.bf16.msra.mxu2 %v1165_v14  ;;  %v1197_v14 = vld [vmem:[%s1979_s3 + $0x84] sm:$0xf]  ;;  %v1044_v7 = vor.u32 %v1182_v5, %v1041_v6 }
  0x24   :  { %256 = vmatpush.bf16.msra.mxu1 %v1173_v15  ;;  %1228 = vmatpush.bf16.msra.mxu3 %v1173_v15  ;;  %v1096_v15 = vor.u32 %v1199_v13, %v1095_v12  ;;  %v1100_v19 = vor.u32 %v1197_v14, %v1097_v16 }
  0x26   :  { %228 = vmatmul.bf16.vlgmr.msra.gmra.mxu0 %v936_v35  ;;  %238 = vmatmul.bf16.vlgmr.msra.gmra.mxu2 %v952_v40  ;;  %v1092_v35 = vor.u32 %v1194_v33, %v1089_v34  ;;  %v1065_v40 = vld [vmem:[%s1979_s3 + $0x50] sm:$0xf0] }
  0x27   :  { %492 = vmatpush.bf16.msrb.mxu2 %v1144_v30  ;;  %257 = vmatmul.bf16.vlgmr.msra.gmra.mxu1 %v940_v36  ;;  %v1196_v30 = vld [vmem:[%s1979_s3 + $0x74] sm:$0xf0]  ;;  %v1063_v36 = vld [vmem:[%s1979_s3 + $0x40] sm:$0xf] }
  0x28   :  { %521 = vmatpush.bf16.msrb.mxu3 %v1148_v31  ;;  %550 = vmatpush.bf16.msrb.mxu0 %v1152_v42  ;;  %v1084_v31 = vor.u32 %v1193_v26, %v1081_v28  ;;  %v1088_v32 = vor.u32 %v1196_v30, %v1087_v29  ;;  %v1064_v39 = vor.u32 %v1191_v37, %v1063_v36  ;;  %v1192_v42 = vld [vmem:[%s1979_s3 + $0x54] sm:$0xf0] }
  0x29   :  { %267 = vmatmul.bf16.vlgmr.msra.gmra.mxu3 %v956_v41  ;;  %579 = vmatpush.bf16.msrb.mxu1 %v1156_v43  ;;  %v1071_v41 = vld [vmem:[%s1979_s3 + $0x48] sm:$0xf]  ;;  %v1068_v43 = vor.u32 %v1189_v38, %v1065_v40 }
  0x2a   :  { %v1072_v44 = vor.u32 %v1192_v42, %v1071_v41 }
  0x2b   :  { %493 = vmatpush.bf16.msrb.mxu2 %v1128_v46  ;;  %v1073_v46 = vld [vmem:[%s1979_s3 + $0x58] sm:$0xf0] }
  0x2c   :  { %522 = vmatpush.bf16.msrb.mxu3 %v1132_v47  ;;  %551 = vmatpush.bf16.msrb.mxu0 %v1136_v54  ;;  %v1076_v47 = vor.u32 %v1190_v45, %v1073_v46  ;;  %v1188_v54 = vld [vmem:[%s1979_s3 + $0x34] sm:$0xf0] }
  0x2d   :  { %580 = vmatpush.bf16.msrb.mxu1 %v1140_v55  ;;  %v1052_v55 = vor.u32 %v1185_v50, %v1049_v52  ;;  %v1056_v56 = vor.u32 %v1188_v54, %v1055_v53 }
  0x2f   :  { %494 = vmatpush.bf16.msrb.mxu2 %v1112_v57  ;;  %v1186_v57 = vld [vmem:[%s1979_s3 + $0x2c] sm:$0xf] }
  0x30   :  { %523 = vmatpush.bf16.msrb.mxu3 %v1116_v58  ;;  %552 = vmatpush.bf16.msrb.mxu0 %v1120_v62  ;;  %v1057_v58 = vld [vmem:[%s1979_s3 + $0x38] sm:$0xf0]  ;;  %v1181_v62 = vld [vmem:[%s1979_s3 + $0x4] sm:$0xf] }
  0x31   :  { %581 = vmatpush.bf16.msrb.mxu1 %v1124_v63  ;;  %v1060_v59 = vor.u32 %v1186_v57, %v1057_v58  ;;  %v1032_v63 = vor.u32 %v1183_v61, %v1031_v60  ;;  %v1036_v3 = vor.u32 %v1181_v62, %v1033_v0 }
  0x33   :  { %495 = vmatpush.bf16.msrb.mxu2 %v1096_v15 }
  0x34   :  { %524 = vmatpush.bf16.msrb.mxu3 %v1100_v19  ;;  %553 = vmatpush.bf16.msrb.mxu0 %v1104_v20 }
  0x35   :  { %582 = vmatpush.bf16.msrb.mxu1 %v1108_v23 }
  0x36   :  { %233 = vmatmul.bf16.gmra.mxu0 %v944_v8  ;;  %243 = vmatmul.bf16.gmra.mxu2 %v960_v10  ;;  %v1235_v8 = vld [vmem:[%s1978_s2] ss:$0 sm:$0xff] }
  0x37   :  { %262 = vmatmul.bf16.gmra.mxu1 %v948_v9  ;;  %496 = vmatpush.bf16.msrb.mxu2 %v1080_v27 }
  0x38   :  { %525 = vmatpush.bf16.msrb.mxu3 %v1084_v31  ;;  %554 = vmatpush.bf16.msrb.mxu0 %v1088_v32 }
  0x39   :  { %272 = vmatmul.bf16.gmra.mxu3 %v964_v11  ;;  %583 = vmatpush.bf16.msrb.mxu1 %v1092_v35 }
  0x3b   :  { %497 = vmatpush.bf16.msrb.mxu2 %v1064_v39 }
  0x3c   :  { %526 = vmatpush.bf16.msrb.mxu3 %v1068_v43  ;;  %555 = vmatpush.bf16.msrb.mxu0 %v1072_v44 }
  0x3d   :  { %584 = vmatpush.bf16.msrb.mxu1 %v1076_v47 }
  0x3f   :  { %498 = vmatpush.bf16.msrb.mxu2 %v1048_v51 }
  0x40   :  { %527 = vmatpush.bf16.msrb.mxu3 %v1052_v55  ;;  %556 = vmatpush.bf16.msrb.mxu0 %v1056_v56  ;;  %v322_v55 = vld [vmem:[%s1980_s4] sm:$0xf] }
  0x41   :  { %585 = vmatpush.bf16.msrb.mxu1 %v1060_v59  ;;  %v1674_v56 = vperm.slane %v322_v55, 0  ;;  %v1676_v57 = vperm.slane %v322_v55, 1  ;;  %v1678_v58 = vperm.slane %v322_v55, 2  ;;  %v1680_v61 = vperm.slane %v322_v55, 3 }
  0x43   :  { %499 = vmatpush.bf16.msrb.mxu2 %v1032_v63 }
  0x44   :  { %528 = vmatpush.bf16.msrb.mxu3 %v1036_v3  ;;  %557 = vmatpush.bf16.msrb.mxu0 %v1040_v4 }
  0x45   :  { %586 = vmatpush.bf16.msrb.mxu1 %v1044_v7 }
  0xa3   :  { %v229_v9 = vpop.f32.mrf.mxu0 }
  0xa4   :  { %v258_v10 = vpop.f32.mrf.mxu1  ;;  %v230_v11 = vadd.f32 %v1235_v8, %v229_v9 }
  0xa6   :  { %v259_v12 = vadd.f32 %v258_v10, %v230_v11 }
  0xa8   :  { %1236 = vtanh.f32 %v259_v12 }
  0xa9   :  { %v239_v20 = vpop.f32.mrf.mxu2 }
  0xaa   :  { %v240_v33 = vadd.f32 %v1235_v8, %v239_v20 }
  0xab   :  { %v231_v13 = vpop.f32.mrf.mxu0 }
  0xac   :  { %v260_v14 = vpop.f32.mrf.mxu1  ;;  %v232_v15 = vadd.f32 %v1235_v8, %v231_v13  ;;  %v268_v24 = vpop.f32.mrf.mxu3 }
  0xad   :  { %v269_v37 = vadd.f32 %v268_v24, %v240_v33 }
  0xae   :  { %v261_v16 = vadd.f32 %v260_v14, %v232_v15  ;;  %v1237_v19 = vpop.eup %1236 }
  0xb0   :  { %1238 = vtanh.f32 %v261_v16 }
  0xb1   :  { %v241_v30 = vpop.f32.mrf.mxu2 }
  0xb2   :  { %v242_v35 = vadd.f32 %v1235_v8, %v241_v30 }
  0xb3   :  { %v234_v17 = vpop.f32.mrf.mxu0 }
  0xb4   :  { %v263_v18 = vpop.f32.mrf.mxu1  ;;  %v235_v22 = vadd.f32 %v1235_v8, %v234_v17  ;;  %v270_v31 = vpop.f32.mrf.mxu3 }
  0xb5   :  { %v271_v39 = vadd.f32 %v270_v31, %v242_v35 }
  0xb6   :  { %v1239_v21 = vpop.eup %1238  ;;  %v264_v25 = vadd.f32 %v263_v18, %v235_v22 }
  0xb7   :  { %v286_v23 = vpack.c.bf16 %v1239_v21, %v1237_v19 }
  0xb8   :  { %1240 = vtanh.f32 %v264_v25 }
  0xb9   :  { %500 = vmatmul.bf16.vlgmr.msrb.gmra.mxu2 %v286_v23  ;;  %529 = vmatmul.bf16.vlgmr.msrb.gmra.mxu3 %v286_v23  ;;  %v244_v38 = vpop.f32.mrf.mxu2 }
  0xba   :  { %558 = vmatmul.bf16.vlgmr.msrb.gmra.mxu0 %v286_v23  ;;  %587 = vmatmul.bf16.vlgmr.msrb.gmra.mxu1 %v286_v23  ;;  %v245_v44 = vadd.f32 %v1235_v8, %v244_v38 }
  0xbb   :  { %v236_v26 = vpop.f32.mrf.mxu0 }
  0xbc   :  { %v237_v27 = vadd.f32 %v1235_v8, %v236_v26  ;;  %v265_v28 = vpop.f32.mrf.mxu1  ;;  %v273_v40 = vpop.f32.mrf.mxu3 }
  0xbd   :  { %v274_v48 = vadd.f32 %v273_v40, %v245_v44 }
  0xbe   :  { %v266_v29 = vadd.f32 %v265_v28, %v237_v27  ;;  %v1241_v32 = vpop.eup %1240 }
  0xc0   :  { %1242 = vtanh.f32 %v266_v29 }
  0xc1   :  { %1244 = vtanh.f32 %v269_v37  ;;  %v246_v42 = vpop.f32.mrf.mxu2 }
  0xc2   :  { %1246 = vtanh.f32 %v271_v39  ;;  %v247_v45 = vadd.f32 %v1235_v8, %v246_v42 }
  0xc3   :  { %1248 = vtanh.f32 %v274_v48 }
  0xc4   :  { %v275_v46 = vpop.f32.mrf.mxu3 }
  0xc5   :  { %v276_v49 = vadd.f32 %v275_v46, %v247_v45 }
  0xc6   :  { %v1243_v34 = vpop.eup %1242 }
  0xc7   :  { %v287_v36 = vpack.c.bf16 %v1243_v34, %v1241_v32  ;;  %v1245_v41 = vpop.eup %1244  ;;  %1250 = vtanh.f32 %v276_v49 }
  0xc8   :  { %v1247_v43 = vpop.eup %1246 }
  0xc9   :  { %505 = vmatmul.bf16.gmra.mxu2 %v287_v36  ;;  %534 = vmatmul.bf16.gmra.mxu3 %v287_v36  ;;  %v288_v47 = vpack.c.bf16 %v1247_v43, %v1245_v41  ;;  %v1249_v50 = vpop.eup %1248 }
  0xca   :  { %563 = vmatmul.bf16.gmra.mxu0 %v287_v36  ;;  %592 = vmatmul.bf16.gmra.mxu1 %v287_v36 }
  0xcd   :  { %v1251_v51 = vpop.eup %1250 }
  0xce   :  { %v289_v52 = vpack.c.bf16 %v1251_v51, %v1249_v50 }
  0xd9   :  { %510 = vmatmul.bf16.gmra.mxu2 %v288_v47  ;;  %539 = vmatmul.bf16.gmra.mxu3 %v288_v47 }
  0xda   :  { %568 = vmatmul.bf16.gmra.mxu0 %v288_v47  ;;  %597 = vmatmul.bf16.gmra.mxu1 %v288_v47 }
  0xe9   :  { %515 = vmatmul.bf16.gmra.mxu2 %v289_v52  ;;  %544 = vmatmul.bf16.gmra.mxu3 %v289_v52 }
  0xea   :  { %573 = vmatmul.bf16.gmra.mxu0 %v289_v52  ;;  %602 = vmatmul.bf16.gmra.mxu1 %v289_v52 }
 0x137   :  { %v559_v53 = vpop.f32.mrf.mxu0  ;;  %v588_v54 = vpop.f32.mrf.mxu1 }
 0x138   :  { %v1689_v0 = vadd.f32 %v559_v53, %v1678_v58  ;;  %v1694_v4 = vadd.f32 %v588_v54, %v1680_v61 }
 0x13c   :  { %v501_v59 = vpop.f32.mrf.mxu2  ;;  %v530_v60 = vpop.f32.mrf.mxu3 }
 0x13d   :  { %v1683_v62 = vadd.f32 %v501_v59, %v1674_v56  ;;  %v1686_v63 = vadd.f32 %v530_v60, %v1676_v57 }
 0x13f   :  { %v561_v1 = vpop.f32.mrf.mxu0  ;;  %v590_v2 = vpop.f32.mrf.mxu1  ;;  %v608_v3 = vmax.f32 %v1683_v62, %v1686_v63 }
 0x140   :  { %v1705_v11 = vadd.f32 %v561_v1, %v1678_v58  ;;  %v1710_v15 = vadd.f32 %v590_v2, %v1680_v61 }
 0x141   :  { %v609_v5 = vmax.f32 %v608_v3, %v1689_v0 }
 0x143   :  { %v610_v6 = vmax.f32 %v609_v5, %v1694_v4 }
 0x144   :  { %v503_v7 = vpop.f32.mrf.mxu2  ;;  %v532_v8 = vpop.f32.mrf.mxu3 }
 0x145   :  { %v1699_v9 = vadd.f32 %v503_v7, %v1674_v56  ;;  %v1702_v10 = vadd.f32 %v532_v8, %v1676_v57  ;;  %611 = vmax.xlane.f32.xlu0 %v610_v6 }
 0x147   :  { %v613_v12 = vmax.f32 %v1699_v9, %v1702_v10  ;;  %v564_v13 = vpop.f32.mrf.mxu0  ;;  %v593_v14 = vpop.f32.mrf.mxu1 }
 0x148   :  { %v1721_v22 = vadd.f32 %v564_v13, %v1678_v58  ;;  %v1726_v26 = vadd.f32 %v593_v14, %v1680_v61 }
 0x149   :  { %v614_v16 = vmax.f32 %v613_v12, %v1705_v11 }
 0x14b   :  { %v615_v17 = vmax.f32 %v614_v16, %v1710_v15 }
 0x14c   :  { %v506_v18 = vpop.f32.mrf.mxu2  ;;  %v535_v19 = vpop.f32.mrf.mxu3 }
 0x14d   :  { %v1715_v20 = vadd.f32 %v506_v18, %v1674_v56  ;;  %v1718_v21 = vadd.f32 %v535_v19, %v1676_v57  ;;  %616 = vmax.xlane.f32.xlu0 %v615_v17 }
 0x14f   :  { %v566_v23 = vpop.f32.mrf.mxu0  ;;  %v595_v24 = vpop.f32.mrf.mxu1  ;;  %v618_v25 = vmax.f32 %v1715_v20, %v1718_v21 }
 0x150   :  { %v1737_v33 = vadd.f32 %v566_v23, %v1678_v58  ;;  %v1742_v37 = vadd.f32 %v595_v24, %v1680_v61 }
 0x151   :  { %v619_v27 = vmax.f32 %v618_v25, %v1721_v22 }
 0x153   :  { %v620_v28 = vmax.f32 %v619_v27, %v1726_v26 }
 0x154   :  { %v508_v29 = vpop.f32.mrf.mxu2  ;;  %v537_v30 = vpop.f32.mrf.mxu3 }
 0x155   :  { %v1731_v31 = vadd.f32 %v508_v29, %v1674_v56  ;;  %v1734_v32 = vadd.f32 %v537_v30, %v1676_v57  ;;  %621 = vmax.xlane.f32.xlu1 %v620_v28 }
 0x157   :  { %v623_v34 = vmax.f32 %v1731_v31, %v1734_v32  ;;  %v569_v35 = vpop.f32.mrf.mxu0  ;;  %v598_v36 = vpop.f32.mrf.mxu1 }
 0x158   :  { %v1753_v44 = vadd.f32 %v569_v35, %v1678_v58  ;;  %v1758_v47 = vadd.f32 %v598_v36, %v1680_v61 }
 0x159   :  { %v624_v38 = vmax.f32 %v623_v34, %v1737_v33 }
 0x15b   :  { %v625_v39 = vmax.f32 %v624_v38, %v1742_v37 }
 0x15c   :  { %v511_v40 = vpop.f32.mrf.mxu2  ;;  %v540_v41 = vpop.f32.mrf.mxu3 }
 0x15d   :  { %v1747_v42 = vadd.f32 %v511_v40, %v1674_v56  ;;  %v1750_v43 = vadd.f32 %v540_v41, %v1676_v57  ;;  %626 = vmax.xlane.f32.xlu1 %v625_v39 }
 0x15f   :  { %v571_v45 = vpop.f32.mrf.mxu0  ;;  %v628_v46 = vmax.f32 %v1747_v42, %v1750_v43  ;;  %v600_v48 = vpop.f32.mrf.mxu1 }
 0x160   :  { %v1769_v55 = vadd.f32 %v571_v45, %v1678_v58  ;;  %v1774_v60 = vadd.f32 %v600_v48, %v1680_v61 }
 0x161   :  { %v629_v49 = vmax.f32 %v628_v46, %v1753_v44 }
 0x163   :  { %v630_v50 = vmax.f32 %v629_v49, %v1758_v47 }
 0x164   :  { %v513_v51 = vpop.f32.mrf.mxu2  ;;  %v542_v52 = vpop.f32.mrf.mxu3 }
 0x165   :  { %v1763_v53 = vadd.f32 %v513_v51, %v1674_v56  ;;  %v1766_v54 = vadd.f32 %v542_v52, %v1676_v57  ;;  %631 = vmax.xlane.f32.xlu2 %v630_v50 }
 0x167   :  { %v633_v59 = vmax.f32 %v1763_v53, %v1766_v54  ;;  %v574_v1 = vpop.f32.mrf.mxu0  ;;  %v603_v3 = vpop.f32.mrf.mxu1 }
 0x168   :  { %v1785_v13 = vadd.f32 %v574_v1, %v1678_v58  ;;  %v1790_v16 = vadd.f32 %v603_v3, %v1680_v61 }
 0x169   :  { %v634_v2 = vmax.f32 %v633_v59, %v1769_v55 }
 0x16b   :  { %v635_v5 = vmax.f32 %v634_v2, %v1774_v60 }
 0x16c   :  { %v516_v6 = vpop.f32.mrf.mxu2  ;;  %v545_v7 = vpop.f32.mrf.mxu3 }
 0x16d   :  { %v1779_v8 = vadd.f32 %v516_v6, %v1674_v56  ;;  %v1782_v12 = vadd.f32 %v545_v7, %v1676_v57  ;;  %636 = vmax.xlane.f32.xlu2 %v635_v5 }
 0x16f   :  { %v638_v14 = vmax.f32 %v1779_v8, %v1782_v12  ;;  %v576_v18 = vpop.f32.mrf.mxu0  ;;  %v605_v28 = vpop.f32.mrf.mxu1 }
 0x170   :  { %v1801_v29 = vadd.f32 %v576_v18, %v1678_v58  ;;  %v1806_v34 = vadd.f32 %v605_v28, %v1680_v61 }
 0x171   :  { %v639_v17 = vmax.f32 %v638_v14, %v1785_v13 }
 0x173   :  { %v640_v19 = vmax.f32 %v639_v17, %v1790_v16 }
 0x174   :  { %v518_v23 = vpop.f32.mrf.mxu2  ;;  %v547_v24 = vpop.f32.mrf.mxu3 }
 0x175   :  { %v1795_v25 = vadd.f32 %v518_v23, %v1674_v56  ;;  %v1798_v27 = vadd.f32 %v547_v24, %v1676_v57  ;;  %641 = vmax.xlane.f32.xlu0 %v640_v19 }
 0x177   :  { %v643_v30 = vmax.f32 %v1795_v25, %v1798_v27 }
 0x179   :  { %v644_v35 = vmax.f32 %v643_v30, %v1801_v29 }
 0x17b   :  { %v645_v36 = vmax.f32 %v644_v35, %v1806_v34 }
 0x17d   :  { %646 = vmax.xlane.f32.xlu1 %v645_v36 }
 0x1b8   :  { %v1810_v56 = vpop.xlane.xlu0 %611 }
 0x1b9   :  { %v648_v57 = vsub.f32 %v1683_v62, %v1810_v56  ;;  %v649_v58 = vsub.f32 %v1686_v63, %v1810_v56  ;;  %v650_v38 = vsub.f32 %v1689_v0, %v1810_v56  ;;  %v651_v61 = vsub.f32 %v1694_v4, %v1810_v56 }
 0x1bb   :  { %v680_v39 = vmul.f32 1.442695, %v648_v57  ;;  %v682_v40 = vmul.f32 1.442695, %v649_v58  ;;  %v684_v41 = vmul.f32 1.442695, %v650_v38 }
 0x1bc   :  { %v686_v45 = vmul.f32 1.442695, %v651_v61 }
 0x1bd   :  { %1252 = vpow2.f32 %v680_v39 }
 0x1be   :  { %1254 = vpow2.f32 %v682_v40 }
 0x1bf   :  { %1256 = vpow2.f32 %v684_v41 }
 0x1c0   :  { %v1820_v46 = vpop.xlane.xlu0 %616  ;;  %1258 = vpow2.f32 %v686_v45 }
 0x1c1   :  { %v652_v48 = vsub.f32 %v1699_v9, %v1820_v46  ;;  %v653_v49 = vsub.f32 %v1702_v10, %v1820_v46  ;;  %v654_v50 = vsub.f32 %v1705_v11, %v1820_v46  ;;  %v655_v52 = vsub.f32 %v1710_v15, %v1820_v46 }
 0x1c3   :  { %v1253_v51 = vpop.eup %1252  ;;  %v688_v59 = vmul.f32 1.442695, %v652_v48  ;;  %v690_v1 = vmul.f32 1.442695, %v653_v49  ;;  %v692_v3 = vmul.f32 1.442695, %v654_v50 }
 0x1c4   :  { %v1255_v2 = vpop.eup %1254  ;;  %v694_v14 = vmul.f32 1.442695, %v655_v52 }
 0x1c5   :  { %1260 = vpow2.f32 %v688_v59  ;;  %v744_v5 = vadd.f32 %v1255_v2, %v1253_v51  ;;  %v1257_v6 = vpop.eup %1256 }
 0x1c6   :  { %1262 = vpow2.f32 %v690_v1  ;;  %v1259_v18 = vpop.eup %1258 }
 0x1c7   :  { %v745_v7 = vadd.f32 %v1257_v6, %v744_v5  ;;  %1264 = vpow2.f32 %v692_v3 }
 0x1c8   :  { %v1830_v17 = vpop.xlane.xlu1 %621  ;;  %1266 = vpow2.f32 %v694_v14 }
 0x1c9   :  { %v656_v19 = vsub.f32 %v1715_v20, %v1830_v17  ;;  %v657_v23 = vsub.f32 %v1718_v21, %v1830_v17  ;;  %v658_v24 = vsub.f32 %v1721_v22, %v1830_v17  ;;  %v746_v28 = vadd.f32 %v1259_v18, %v745_v7 }
 0x1ca   :  { %v659_v35 = vsub.f32 %v1726_v26, %v1830_v17 }
 0x1cb   :  { %v1261_v30 = vpop.eup %1260  ;;  %v696_v36 = vmul.f32 1.442695, %v656_v19  ;;  %v698_v57 = vmul.f32 1.442695, %v657_v23  ;;  %v700_v38 = vmul.f32 1.442695, %v658_v24  ;;  %747 = vadd.xlane.f32.xlu2 %v746_v28 }
 0x1cc   :  { %v1263_v58 = vpop.eup %1262  ;;  %v702_v41 = vmul.f32 1.442695, %v659_v35 }
 0x1cd   :  { %1268 = vpow2.f32 %v696_v36  ;;  %v749_v61 = vadd.f32 %v1263_v58, %v1261_v30  ;;  %v1265_v39 = vpop.eup %1264 }
 0x1ce   :  { %1270 = vpow2.f32 %v698_v57  ;;  %v1267_v48 = vpop.eup %1266 }
 0x1cf   :  { %v750_v40 = vadd.f32 %v1265_v39, %v749_v61  ;;  %1272 = vpow2.f32 %v700_v38 }
 0x1d0   :  { %v1840_v45 = vpop.xlane.xlu1 %626  ;;  %1274 = vpow2.f32 %v702_v41 }
 0x1d1   :  { %v660_v49 = vsub.f32 %v1731_v31, %v1840_v45  ;;  %v661_v50 = vsub.f32 %v1734_v32, %v1840_v45  ;;  %v662_v51 = vsub.f32 %v1737_v33, %v1840_v45  ;;  %v751_v52 = vadd.f32 %v1267_v48, %v750_v40 }
 0x1d2   :  { %v663_v1 = vsub.f32 %v1742_v37, %v1840_v45 }
 0x1d3   :  { %v1269_v59 = vpop.eup %1268  ;;  %v704_v2 = vmul.f32 1.442695, %v660_v49  ;;  %v706_v3 = vmul.f32 1.442695, %v661_v50  ;;  %v708_v6 = vmul.f32 1.442695, %v662_v51  ;;  %752 = vadd.xlane.f32.xlu0 %v751_v52 }
 0x1d4   :  { %v1271_v5 = vpop.eup %1270  ;;  %v710_v19 = vmul.f32 1.442695, %v663_v1 }
 0x1d5   :  { %1276 = vpow2.f32 %v704_v2  ;;  %v754_v7 = vadd.f32 %v1271_v5, %v1269_v59  ;;  %v1273_v14 = vpop.eup %1272 }
 0x1d6   :  { %1278 = vpow2.f32 %v706_v3  ;;  %v1275_v24 = vpop.eup %1274 }
 0x1d7   :  { %v755_v18 = vadd.f32 %v1273_v14, %v754_v7  ;;  %1280 = vpow2.f32 %v708_v6 }
 0x1d8   :  { %v1850_v23 = vpop.xlane.xlu2 %631  ;;  %1282 = vpow2.f32 %v710_v19 }
 0x1d9   :  { %v664_v28 = vsub.f32 %v1747_v42, %v1850_v23  ;;  %v665_v30 = vsub.f32 %v1750_v43, %v1850_v23  ;;  %v666_v35 = vsub.f32 %v1753_v44, %v1850_v23  ;;  %v756_v36 = vadd.f32 %v1275_v24, %v755_v18 }
 0x1da   :  { %v667_v58 = vsub.f32 %v1758_v47, %v1850_v23 }
 0x1db   :  { %v1277_v57 = vpop.eup %1276  ;;  %v712_v38 = vmul.f32 1.442695, %v664_v28  ;;  %v714_v61 = vmul.f32 1.442695, %v665_v30  ;;  %v716_v40 = vmul.f32 1.442695, %v666_v35  ;;  %757 = vadd.xlane.f32.xlu1 %v756_v36 }
 0x1dc   :  { %v1279_v39 = vpop.eup %1278  ;;  %v718_v50 = vmul.f32 1.442695, %v667_v58 }
 0x1dd   :  { %1284 = vpow2.f32 %v712_v38  ;;  %v759_v41 = vadd.f32 %v1279_v39, %v1277_v57  ;;  %v1281_v48 = vpop.eup %1280 }
 0x1de   :  { %1286 = vpow2.f32 %v714_v61  ;;  %v1283_v52 = vpop.eup %1282 }
 0x1df   :  { %v760_v49 = vadd.f32 %v1281_v48, %v759_v41  ;;  %1288 = vpow2.f32 %v716_v40 }
 0x1e0   :  { %v1860_v51 = vpop.xlane.xlu2 %636  ;;  %1290 = vpow2.f32 %v718_v50 }
 0x1e1   :  { %v668_v59 = vsub.f32 %v1763_v53, %v1860_v51  ;;  %v669_v1 = vsub.f32 %v1766_v54, %v1860_v51  ;;  %v670_v2 = vsub.f32 %v1769_v55, %v1860_v51  ;;  %v761_v3 = vadd.f32 %v1283_v52, %v760_v49 }
 0x1e2   :  { %v671_v6 = vsub.f32 %v1774_v60, %v1860_v51 }
 0x1e3   :  { %v1285_v5 = vpop.eup %1284  ;;  %v720_v7 = vmul.f32 1.442695, %v668_v59  ;;  %v722_v14 = vmul.f32 1.442695, %v669_v1  ;;  %v724_v19 = vmul.f32 1.442695, %v670_v2  ;;  %762 = vadd.xlane.f32.xlu2 %v761_v3 }
 0x1e4   :  { %v1287_v18 = vpop.eup %1286  ;;  %v726_v35 = vmul.f32 1.442695, %v671_v6 }
 0x1e5   :  { %1292 = vpow2.f32 %v720_v7  ;;  %v764_v24 = vadd.f32 %v1287_v18, %v1285_v5  ;;  %v1289_v28 = vpop.eup %1288 }
 0x1e6   :  { %1294 = vpow2.f32 %v722_v14  ;;  %v1291_v57 = vpop.eup %1290 }
 0x1e7   :  { %v765_v30 = vadd.f32 %v1289_v28, %v764_v24  ;;  %1296 = vpow2.f32 %v724_v19 }
 0x1e8   :  { %v1870_v36 = vpop.xlane.xlu0 %641  ;;  %1298 = vpow2.f32 %v726_v35 }
 0x1e9   :  { %v672_v58 = vsub.f32 %v1779_v8, %v1870_v36  ;;  %v673_v38 = vsub.f32 %v1782_v12, %v1870_v36  ;;  %v674_v61 = vsub.f32 %v1785_v13, %v1870_v36  ;;  %v675_v39 = vsub.f32 %v1790_v16, %v1870_v36 }
 0x1ea   :  { %v766_v40 = vadd.f32 %v1291_v57, %v765_v30 }
 0x1eb   :  { %v1293_v41 = vpop.eup %1292  ;;  %v728_v48 = vmul.f32 1.442695, %v672_v58  ;;  %v730_v49 = vmul.f32 1.442695, %v673_v38  ;;  %v732_v52 = vmul.f32 1.442695, %v674_v61 }
 0x1ec   :  { %v1295_v50 = vpop.eup %1294  ;;  %767 = vadd.xlane.f32.xlu0 %v766_v40  ;;  %v734_v2 = vmul.f32 1.442695, %v675_v39 }
 0x1ed   :  { %1300 = vpow2.f32 %v728_v48  ;;  %v769_v59 = vadd.f32 %v1295_v50, %v1293_v41  ;;  %v1297_v1 = vpop.eup %1296 }
 0x1ee   :  { %1302 = vpow2.f32 %v730_v49  ;;  %v1299_v6 = vpop.eup %1298 }
 0x1ef   :  { %v770_v3 = vadd.f32 %v1297_v1, %v769_v59  ;;  %1304 = vpow2.f32 %v732_v52 }
 0x1f0   :  { %v1880_v5 = vpop.xlane.xlu1 %646  ;;  %1306 = vpow2.f32 %v734_v2 }
 0x1f1   :  { %v676_v7 = vsub.f32 %v1795_v25, %v1880_v5  ;;  %v677_v14 = vsub.f32 %v1798_v27, %v1880_v5  ;;  %v678_v18 = vsub.f32 %v1801_v29, %v1880_v5  ;;  %v679_v19 = vsub.f32 %v1806_v34, %v1880_v5 }
 0x1f2   :  { %v771_v24 = vadd.f32 %v1299_v6, %v770_v3 }
 0x1f3   :  { %v1301_v28 = vpop.eup %1300  ;;  %v736_v30 = vmul.f32 1.442695, %v676_v7  ;;  %v738_v35 = vmul.f32 1.442695, %v677_v14  ;;  %v740_v58 = vmul.f32 1.442695, %v678_v18 }
 0x1f4   :  { %v1303_v57 = vpop.eup %1302  ;;  %772 = vadd.xlane.f32.xlu1 %v771_v24  ;;  %v742_v39 = vmul.f32 1.442695, %v679_v19  ;;  %v840_v7 = vld [vmem:[%s1981_s5] sm:$0xf]  ;;  %s1387_s5 = smov [#allocation5]  }
 0x1f5   :  { %1308 = vpow2.f32 %v736_v30  ;;  %v774_v38 = vadd.f32 %v1303_v57, %v1301_v28  ;;  %v1305_v61 = vpop.eup %1304  ;;  %v1893_v24 = vperm.slane %v840_v7, 0  ;;  %v1895_v28 = vperm.slane %v840_v7, 1  ;;  %s918_s0 = sshll.u32 %s1387_s5, 4  ;;  %s919_s0 = int_to_ptr.vmem [resolvable:$true] %s918_s0 }
 0x1f6   :  { %1310 = vpow2.f32 %v738_v35  ;;  %v1307_v41 = vpop.eup %1306  ;;  %v1897_v30 = vperm.slane %v840_v7, 2  ;;  %v1899_v35 = vperm.slane %v840_v7, 3 }
 0x1f7   :  { %v775_v40 = vadd.f32 %v1305_v61, %v774_v38  ;;  %1312 = vpow2.f32 %v740_v58 }
 0x1f8   :  { %1314 = vpow2.f32 %v742_v39 }
 0x1f9   :  { %v776_v48 = vadd.f32 %v1307_v41, %v775_v40 }
 0x1fb   :  { %v1309_v49 = vpop.eup %1308  ;;  %777 = vadd.xlane.f32.xlu2 %v776_v48 }
 0x1fc   :  { %v1311_v50 = vpop.eup %1310 }
 0x1fd   :  { %v779_v52 = vadd.f32 %v1311_v50, %v1309_v49  ;;  %v1313_v59 = vpop.eup %1312 }
 0x1fe   :  { %v1315_v2 = vpop.eup %1314 }
 0x1ff   :  { %v780_v1 = vadd.f32 %v1313_v59, %v779_v52 }
 0x201   :  { %v781_v3 = vadd.f32 %v1315_v2, %v780_v1 }
 0x203   :  { %782 = vadd.xlane.f32.xlu0 %v781_v3 }
 0x23e   :  { %v748_v6 = vpop.xlane.xlu2 %747 }
 0x23f   :  { %1316 = vlog2.f32 %v748_v6 }
 0x245   :  { %v1317_v14 = vpop.eup %1316 }
 0x246   :  { %v785_v18 = vmul.f32 0.6931472, %v1317_v14  ;;  %v753_v19 = vpop.xlane.xlu0 %752 }
 0x247   :  { %1318 = vlog2.f32 %v753_v19 }
 0x248   :  { %v800_v57 = vadd.f32 %v785_v18, %v1810_v56 }
 0x24a   :  { %v808_v58 = vsub.f32 %v1683_v62, %v800_v57  ;;  %v809_v38 = vsub.f32 %v1686_v63, %v800_v57  ;;  %v810_v61 = vsub.f32 %v1689_v0, %v800_v57  ;;  %v811_v39 = vsub.f32 %v1694_v4, %v800_v57 }
 0x24c   :  { %v850_v40 = vadd.f32 %v1893_v24, %v808_v58  ;;  %v851_v41 = vadd.f32 %v1895_v28, %v809_v38  ;;  %v852_v48 = vadd.f32 %v1897_v30, %v810_v61  ;;  %v853_v49 = vadd.f32 %v1899_v35, %v811_v39 }
 0x24d   :  { %v1319_v50 = vpop.eup %1318 }
 0x24e   :  { %v882_v52 = vpack.c.bf16 %v851_v41, %v850_v40  ;;  %v883_v59 = vpack.c.bf16 %v853_v49, %v852_v48  ;;  %v787_v56 = vmul.f32 0.6931472, %v1319_v50  ;;  %v758_v1 = vpop.xlane.xlu1 %757 }
 0x24f   :  { %1320 = vlog2.f32 %v758_v1 }
 0x250   :  { %898 = vst [vmem:[#allocation5] sm:$0xff] %v882_v52  ;;  %v801_v62 = vadd.f32 %v787_v56, %v1820_v46 }
 0x251   :  { %899 = vst [vmem:[#allocation5 + $0x8] sm:$0xff] %v883_v59 }
 0x252   :  { %v812_v63 = vsub.f32 %v1699_v9, %v801_v62  ;;  %v813_v0 = vsub.f32 %v1702_v10, %v801_v62  ;;  %v814_v4 = vsub.f32 %v1705_v11, %v801_v62  ;;  %v815_v2 = vsub.f32 %v1710_v15, %v801_v62 }
 0x254   :  { %v854_v3 = vadd.f32 %v1893_v24, %v812_v63  ;;  %v855_v6 = vadd.f32 %v1895_v28, %v813_v0  ;;  %v856_v7 = vadd.f32 %v1897_v30, %v814_v4  ;;  %v857_v14 = vadd.f32 %v1899_v35, %v815_v2 }
 0x255   :  { %v1321_v18 = vpop.eup %1320 }
 0x256   :  { %v884_v19 = vpack.c.bf16 %v855_v6, %v854_v3  ;;  %v885_v46 = vpack.c.bf16 %v857_v14, %v856_v7  ;;  %v789_v57 = vmul.f32 0.6931472, %v1321_v18  ;;  %v763_v58 = vpop.xlane.xlu2 %762 }
 0x257   :  { %1322 = vlog2.f32 %v763_v58 }
 0x258   :  { %900 = vst [vmem:[#allocation5 + $0x10] sm:$0xff] %v884_v19  ;;  %v802_v9 = vadd.f32 %v789_v57, %v1830_v17 }
 0x259   :  { %901 = vst [vmem:[#allocation5 + $0x18] sm:$0xff] %v885_v46 }
 0x25a   :  { %v816_v10 = vsub.f32 %v1715_v20, %v802_v9  ;;  %v817_v11 = vsub.f32 %v1718_v21, %v802_v9  ;;  %v818_v15 = vsub.f32 %v1721_v22, %v802_v9  ;;  %v819_v38 = vsub.f32 %v1726_v26, %v802_v9 }
 0x25c   :  { %v858_v61 = vadd.f32 %v1893_v24, %v816_v10  ;;  %v859_v39 = vadd.f32 %v1895_v28, %v817_v11  ;;  %v860_v40 = vadd.f32 %v1897_v30, %v818_v15  ;;  %v861_v41 = vadd.f32 %v1899_v35, %v819_v38 }
 0x25d   :  { %v1323_v48 = vpop.eup %1322 }
 0x25e   :  { %v886_v49 = vpack.c.bf16 %v859_v39, %v858_v61  ;;  %v887_v17 = vpack.c.bf16 %v861_v41, %v860_v40  ;;  %v791_v50 = vmul.f32 0.6931472, %v1323_v48 }
 0x25f   :  { %v768_v52 = vpop.xlane.xlu0 %767 }
 0x260   :  { %1324 = vlog2.f32 %v768_v52  ;;  %902 = vst [vmem:[#allocation5 + $0x20] sm:$0xff] %v886_v49  ;;  %v803_v20 = vadd.f32 %v791_v50, %v1840_v45 }
 0x261   :  { %903 = vst [vmem:[#allocation5 + $0x28] sm:$0xff] %v887_v17 }
 0x262   :  { %v820_v21 = vsub.f32 %v1731_v31, %v803_v20  ;;  %v821_v22 = vsub.f32 %v1734_v32, %v803_v20  ;;  %v822_v26 = vsub.f32 %v1737_v33, %v803_v20  ;;  %v823_v59 = vsub.f32 %v1742_v37, %v803_v20 }
 0x264   :  { %v862_v56 = vadd.f32 %v1893_v24, %v820_v21  ;;  %v863_v1 = vadd.f32 %v1895_v28, %v821_v22  ;;  %v864_v62 = vadd.f32 %v1897_v30, %v822_v26  ;;  %v865_v63 = vadd.f32 %v1899_v35, %v823_v59 }
 0x266   :  { %v1325_v0 = vpop.eup %1324  ;;  %v888_v4 = vpack.c.bf16 %v863_v1, %v862_v56  ;;  %v889_v45 = vpack.c.bf16 %v865_v63, %v864_v62 }
 0x267   :  { %v793_v2 = vmul.f32 0.6931472, %v1325_v0  ;;  %v773_v3 = vpop.xlane.xlu1 %772 }
 0x268   :  { %1326 = vlog2.f32 %v773_v3  ;;  %904 = vst [vmem:[#allocation5 + $0x30] sm:$0xff] %v888_v4 }
 0x269   :  { %v804_v31 = vadd.f32 %v793_v2, %v1850_v23  ;;  %905 = vst [vmem:[#allocation5 + $0x38] sm:$0xff] %v889_v45 }
 0x26b   :  { %v824_v32 = vsub.f32 %v1747_v42, %v804_v31  ;;  %v825_v33 = vsub.f32 %v1750_v43, %v804_v31  ;;  %v826_v37 = vsub.f32 %v1753_v44, %v804_v31  ;;  %v827_v6 = vsub.f32 %v1758_v47, %v804_v31 }
 0x26d   :  { %v866_v7 = vadd.f32 %v1893_v24, %v824_v32  ;;  %v867_v14 = vadd.f32 %v1895_v28, %v825_v33  ;;  %v868_v18 = vadd.f32 %v1897_v30, %v826_v37  ;;  %v869_v19 = vadd.f32 %v1899_v35, %v827_v6 }
 0x26e   :  { %v1327_v46 = vpop.eup %1326  ;;  %v778_v57 = vpop.xlane.xlu2 %777 }
 0x26f   :  { %v890_v23 = vpack.c.bf16 %v867_v14, %v866_v7  ;;  %v891_v58 = vpack.c.bf16 %v869_v19, %v868_v18  ;;  %v795_v9 = vmul.f32 0.6931472, %v1327_v46  ;;  %1328 = vlog2.f32 %v778_v57 }
 0x271   :  { %906 = vst [vmem:[#allocation5 + $0x40] sm:$0xff] %v890_v23  ;;  %v805_v42 = vadd.f32 %v795_v9, %v1860_v51 }
 0x272   :  { %907 = vst [vmem:[#allocation5 + $0x48] sm:$0xff] %v891_v58 }
 0x273   :  { %v828_v43 = vsub.f32 %v1763_v53, %v805_v42  ;;  %v829_v44 = vsub.f32 %v1766_v54, %v805_v42  ;;  %v830_v47 = vsub.f32 %v1769_v55, %v805_v42  ;;  %v831_v10 = vsub.f32 %v1774_v60, %v805_v42 }
 0x275   :  { %v1329_v11 = vpop.eup %1328  ;;  %v870_v15 = vadd.f32 %v1893_v24, %v828_v43  ;;  %v871_v38 = vadd.f32 %v1895_v28, %v829_v44  ;;  %v872_v61 = vadd.f32 %v1897_v30, %v830_v47  ;;  %v873_v39 = vadd.f32 %v1899_v35, %v831_v10 }
 0x276   :  { %v797_v40 = vmul.f32 0.6931472, %v1329_v11  ;;  %v783_v51 = vpop.xlane.xlu0 %782 }
 0x277   :  { %v892_v41 = vpack.c.bf16 %v871_v38, %v870_v15  ;;  %v893_v48 = vpack.c.bf16 %v873_v39, %v872_v61  ;;  %1330 = vlog2.f32 %v783_v51 }
 0x278   :  { %v806_v53 = vadd.f32 %v797_v40, %v1870_v36 }
 0x279   :  { %908 = vst [vmem:[#allocation5 + $0x50] sm:$0xff] %v892_v41 }
 0x27a   :  { %909 = vst [vmem:[#allocation5 + $0x58] sm:$0xff] %v893_v48  ;;  %v832_v54 = vsub.f32 %v1779_v8, %v806_v53  ;;  %v833_v55 = vsub.f32 %v1782_v12, %v806_v53  ;;  %v834_v60 = vsub.f32 %v1785_v13, %v806_v53  ;;  %v835_v49 = vsub.f32 %v1790_v16, %v806_v53 }
 0x27c   :  { %v874_v17 = vadd.f32 %v1893_v24, %v832_v54  ;;  %v875_v50 = vadd.f32 %v1895_v28, %v833_v55  ;;  %v876_v52 = vadd.f32 %v1897_v30, %v834_v60  ;;  %v877_v20 = vadd.f32 %v1899_v35, %v835_v49 }
 0x27d   :  { %v1331_v21 = vpop.eup %1330 }
 0x27e   :  { %v894_v36 = vpack.c.bf16 %v875_v50, %v874_v17  ;;  %v895_v22 = vpack.c.bf16 %v877_v20, %v876_v52  ;;  %v799_v26 = vmul.f32 0.6931472, %v1331_v21 }
 0x280   :  { %910 = vst [vmem:[#allocation5 + $0x60] sm:$0xff] %v894_v36  ;;  %v807_v8 = vadd.f32 %v799_v26, %v1880_v5 }
 0x281   :  { %911 = vst [vmem:[#allocation5 + $0x68] sm:$0xff] %v895_v22 }
 0x282   :  { %v836_v12 = vsub.f32 %v1795_v25, %v807_v8  ;;  %v837_v13 = vsub.f32 %v1798_v27, %v807_v8  ;;  %v838_v16 = vsub.f32 %v1801_v29, %v807_v8  ;;  %v839_v59 = vsub.f32 %v1806_v34, %v807_v8 }
 0x284   :  { %v878_v56 = vadd.f32 %v1893_v24, %v836_v12  ;;  %v879_v1 = vadd.f32 %v1895_v28, %v837_v13  ;;  %v880_v5 = vadd.f32 %v1897_v30, %v838_v16  ;;  %v881_v25 = vadd.f32 %v1899_v35, %v839_v59 }
 0x286   :  { %v896_v62 = vpack.c.bf16 %v879_v1, %v878_v56  ;;  %v897_v27 = vpack.c.bf16 %v881_v25, %v880_v5 }
 0x288   :  { %912 = vst [vmem:[#allocation5 + $0x70] sm:$0xff] %v896_v62 }
 0x289   :  { %913 = vst [vmem:[#allocation5 + $0x78] sm:$0xff] %v897_v27 }
 0x28a   :  { %926 = dma.vmem_to_hbm [thread:$0]  %s919_s0, 2048, %s921_s15, [#allocation4], %s1388_s16, %s1388_s16, %s1389_s17  }
 0x28b   :  { %1382 = dma.done.wait [#allocation4], 2048  }
 0x28c   :  { %1383 = vsyncadd [#allocation4], 4294965248 }
 0x28d   :  { %931 = vsyncpa [#allocation3], 1 }
 0x28e   :  { %932 = vsyncpa [#allocation4], 1 }

// kernel: rnn_decoder_forward.2
= control target key start
LH: loop header
LB: loop body
LE: loop exit
PB: predicated region body
PF: predicated region fallthrough
CT: control target
= control target key end

     0   :  { %v2484_v28 = vmov 0   ;;  %s2477_s2 = inlined_call_operand.vmem [shape: bf16[128,384], index: 2, kind: input, shape index: {}]   ;;  %s2478_s3 = inlined_call_operand.vmem [shape: bf16[128,384], index: 3, kind: input, shape index: {}]   ;;  %s2479_s0 = inlined_call_operand.vmem [shape: bf16[64,128], index: 0, kind: input, shape index: {}]   ;;  %s2480_s1 = inlined_call_operand.vmem [shape: f32[64,1], index: 1, kind: input, shape index: {}]   ;;  %s2481_s5 = inlined_call_operand.vmem [shape: f32[1,128], index: 5, kind: input, shape index: {}]   ;;  %s2482_s4 = inlined_call_operand.vmem [shape: f32[1,384], index: 4, kind: input, shape index: {}]   ;;  %s2483_s6 = inlined_call_operand.vmem [shape: bf16[64,128], index: 6, kind: output, shape index: {}]  }
   0x1   :  { %v1417_v0 = vld [vmem:[%s2477_s2 + $0xa8] sm:$0xf]  ;;  %v1580_v1 = vld [vmem:[%s2477_s2 + $0xb0] sm:$0xf0]  ;;  %v1405_v5 = vld [vmem:[%s2477_s2 + $0x90] sm:$0xf]  ;;  %1607 = vset.pattern.permute.xlu0 %v2484_v28  ;;  %1608 = vset.pattern.permute.xlu1 %v2484_v28 }
   0x2   :  { %v1513_v2 = vld [vmem:[%s2478_s3 + $0xa8] sm:$0xf]  ;;  %v1418_v3 = vor.u32 %v1580_v1, %v1417_v0  ;;  %v1604_v4 = vld [vmem:[%s2478_s3 + $0xb0] sm:$0xf0]  ;;  %v1577_v6 = vld [vmem:[%s2477_s2 + $0x98] sm:$0xf0]  ;;  %1609 = vset.pattern.permute.xlu2 %v2484_v28 }
   0x3   :  { %v1746_v7 = vor.u32 %v1604_v4, %v1513_v2  ;;  %v1501_v8 = vld [vmem:[%s2478_s3 + $0x90] sm:$0xf]  ;;  %v1601_v9 = vld [vmem:[%s2478_s3 + $0x98] sm:$0xf0]  ;;  %v1406_v10 = vor.u32 %v1577_v6, %v1405_v5  ;;  %v1393_v12 = vld [vmem:[%s2477_s2 + $0x78] sm:$0xf] }
   0x4   :  { %224 = vmatpush.bf16.msra.mxu0 %v1418_v3  ;;  %v1755_v11 = vor.u32 %v1601_v9, %v1501_v8  ;;  %v1574_v13 = vld [vmem:[%s2477_s2 + $0x80] sm:$0xf0]  ;;  %v1489_v14 = vld [vmem:[%s2478_s3 + $0x78] sm:$0xf]  ;;  %v1381_v18 = vld [vmem:[%s2477_s2 + $0x60] sm:$0xf] }
   0x5   :  { %500 = vmatpush.bf16.msra.mxu3 %v1746_v7  ;;  %v1598_v15 = vld [vmem:[%s2478_s3 + $0x80] sm:$0xf0]  ;;  %v1394_v16 = vor.u32 %v1574_v13, %v1393_v12  ;;  %v1571_v19 = vld [vmem:[%s2477_s2 + $0x68] sm:$0xf0]  ;;  %v1477_v20 = vld [vmem:[%s2478_s3 + $0x60] sm:$0xf] }
   0x6   :  { %v1770_v17 = vor.u32 %v1598_v15, %v1489_v14  ;;  %v1595_v21 = vld [vmem:[%s2478_s3 + $0x68] sm:$0xf0]  ;;  %v1382_v22 = vor.u32 %v1571_v19, %v1381_v18  ;;  %v1369_v23 = vld [vmem:[%s2477_s2 + $0x48] sm:$0xf]  ;;  %v1568_v25 = vld [vmem:[%s2477_s2 + $0x50] sm:$0xf0] }
   0x7   :  { %v1788_v24 = vor.u32 %v1595_v21, %v1477_v20  ;;  %v1579_v26 = vld [vmem:[%s2477_s2 + $0xac] sm:$0xf]  ;;  %v1419_v27 = vld [vmem:[%s2477_s2 + $0xb4] sm:$0xf0]  ;;  %v1465_v29 = vld [vmem:[%s2478_s3 + $0x48] sm:$0xf]  ;;  %v1370_v34 = vor.u32 %v1568_v25, %v1369_v23 }
   0x8   :  { %225 = vmatpush.bf16.msra.mxu0 %v1406_v10  ;;  %v1592_v30 = vld [vmem:[%s2478_s3 + $0x50] sm:$0xf0]  ;;  %v1422_v31 = vor.u32 %v1579_v26, %v1419_v27  ;;  %v1407_v33 = vld [vmem:[%s2477_s2 + $0x9c] sm:$0xf0]  ;;  %v1357_v35 = vld [vmem:[%s2477_s2 + $0x30] sm:$0xf] }
   0x9   :  { %501 = vmatpush.bf16.msra.mxu3 %v1755_v11  ;;  %v1576_v32 = vld [vmem:[%s2477_s2 + $0x94] sm:$0xf]  ;;  %v1818_v37 = vor.u32 %v1592_v30, %v1465_v29  ;;  %v1565_v38 = vld [vmem:[%s2477_s2 + $0x38] sm:$0xf0]  ;;  %v1395_v40 = vld [vmem:[%s2477_s2 + $0x84] sm:$0xf0] }
   0xa   :  { %253 = vmatpush.bf16.msra.mxu1 %v1422_v31  ;;  %v1410_v36 = vor.u32 %v1576_v32, %v1407_v33  ;;  %v1573_v39 = vld [vmem:[%s2477_s2 + $0x7c] sm:$0xf]  ;;  %v1453_v41 = vld [vmem:[%s2478_s3 + $0x30] sm:$0xf]  ;;  %v1358_v43 = vor.u32 %v1565_v38, %v1357_v35  ;;  %v1345_v44 = vld [vmem:[%s2477_s2 + $0x18] sm:$0xf] }
   0xb   :  { %v1589_v42 = vld [vmem:[%s2478_s3 + $0x38] sm:$0xf0]  ;;  %v1562_v45 = vld [vmem:[%s2477_s2 + $0x20] sm:$0xf0]  ;;  %v1398_v46 = vor.u32 %v1573_v39, %v1395_v40  ;;  %v1441_v48 = vld [vmem:[%s2478_s3 + $0x18] sm:$0xf] }
   0xc   :  { %226 = vmatpush.bf16.msra.mxu0 %v1394_v16  ;;  %v1842_v47 = vor.u32 %v1589_v42, %v1453_v41  ;;  %v1570_v49 = vld [vmem:[%s2477_s2 + $0x64] sm:$0xf]  ;;  %v1383_v50 = vld [vmem:[%s2477_s2 + $0x6c] sm:$0xf0]  ;;  %v1581_v53 = vld [vmem:[%s2477_s2 + $0xb8] sm:$0xf0]  ;;  %v1346_v55 = vor.u32 %v1562_v45, %v1345_v44 }
   0xd   :  { %502 = vmatpush.bf16.msra.mxu3 %v1770_v17  ;;  %v1586_v51 = vld [vmem:[%s2478_s3 + $0x20] sm:$0xf0]  ;;  %v1425_v52 = vld [vmem:[%s2477_s2 + $0xb0] sm:$0xf]  ;;  %v1333_v56 = vld [vmem:[%s2477_s2] sm:$0xf]  ;;  %v1386_v59 = vor.u32 %v1570_v49, %v1383_v50 }
   0xe   :  { %254 = vmatpush.bf16.msra.mxu1 %v1410_v36  ;;  %v1426_v54 = vor.u32 %v1581_v53, %v1425_v52  ;;  %v1559_v57 = vld [vmem:[%s2477_s2 + $0x8] sm:$0xf0]  ;;  %v1429_v58 = vld [vmem:[%s2478_s3] sm:$0xf]  ;;  %v1872_v60 = vor.u32 %v1586_v51, %v1441_v48  ;;  %v1371_v63 = vld [vmem:[%s2477_s2 + $0x54] sm:$0xf0] }
   0xf   :  { %v1583_v61 = vld [vmem:[%s2478_s3 + $0x8] sm:$0xf0]  ;;  %v1521_v0 = vld [vmem:[%s2478_s3 + $0xb0] sm:$0xf]  ;;  %v1605_v1 = vld [vmem:[%s2478_s3 + $0xb8] sm:$0xf0]  ;;  %v1334_v6 = vor.u32 %v1559_v57, %v1333_v56 }
  0x10   :  { %227 = vmatpush.bf16.msra.mxu0 %v1382_v22  ;;  %v1567_v62 = vld [vmem:[%s2477_s2 + $0x4c] sm:$0xf]  ;;  %282 = vmatpush.bf16.msra.mxu2 %v1426_v54  ;;  %v1413_v2 = vld [vmem:[%s2477_s2 + $0x98] sm:$0xf]  ;;  %v1578_v5 = vld [vmem:[%s2477_s2 + $0xa0] sm:$0xf0]  ;;  %v1902_v10 = vor.u32 %v1583_v61, %v1429_v58  ;;  %v1904_v12 = vor.u32 %v1605_v1, %v1521_v0 }
  0x11   :  { %503 = vmatpush.bf16.msra.mxu3 %v1788_v24  ;;  %v1603_v3 = vld [vmem:[%s2478_s3 + $0xac] sm:$0xf]  ;;  %v1515_v4 = vld [vmem:[%s2478_s3 + $0xb4] sm:$0xf0]  ;;  %v1374_v8 = vor.u32 %v1567_v62, %v1371_v63  ;;  %v1414_v9 = vor.u32 %v1578_v5, %v1413_v2  ;;  %v1564_v14 = vld [vmem:[%s2477_s2 + $0x34] sm:$0xf] }
  0x12   :  { %255 = vmatpush.bf16.msra.mxu1 %v1398_v46  ;;  %v1509_v13 = vld [vmem:[%s2478_s3 + $0x98] sm:$0xf]  ;;  %v1359_v15 = vld [vmem:[%s2477_s2 + $0x3c] sm:$0xf0]  ;;  %v1915_v16 = vor.u32 %v1603_v3, %v1515_v4  ;;  %v1602_v18 = vld [vmem:[%s2478_s3 + $0xa0] sm:$0xf0] }
  0x13   :  { %v1401_v19 = vld [vmem:[%s2477_s2 + $0x80] sm:$0xf]  ;;  %v1575_v20 = vld [vmem:[%s2477_s2 + $0x88] sm:$0xf0]  ;;  %v1600_v22 = vld [vmem:[%s2478_s3 + $0x94] sm:$0xf]  ;;  %v1362_v26 = vor.u32 %v1564_v14, %v1359_v15  ;;  %v1939_v27 = vor.u32 %v1602_v18, %v1509_v13 }
  0x14   :  { %228 = vmatpush.bf16.msra.mxu0 %v1370_v34  ;;  %283 = vmatpush.bf16.msra.mxu2 %v1414_v9  ;;  %v1929_v21 = vld [vmem:[%s2479_s0] sm:$0xff]  ;;  %v1402_v25 = vor.u32 %v1575_v20, %v1401_v19  ;;  %v1561_v30 = vld [vmem:[%s2477_s2 + $0x1c] sm:$0xf]  ;;  %v1347_v31 = vld [vmem:[%s2477_s2 + $0x24] sm:$0xf0] }
  0x15   :  { %504 = vmatpush.bf16.msra.mxu3 %v1818_v37  ;;  %v1503_v23 = vld [vmem:[%s2478_s3 + $0x9c] sm:$0xf0]  ;;  %v1599_v33 = vld [vmem:[%s2478_s3 + $0x88] sm:$0xf0]  ;;  %v1389_v34 = vld [vmem:[%s2477_s2 + $0x68] sm:$0xf]  ;;  %v1350_v41 = vor.u32 %v1561_v30, %v1347_v31 }
  0x16   :  { %256 = vmatpush.bf16.msra.mxu1 %v1386_v59  ;;  %v1497_v29 = vld [vmem:[%s2478_s3 + $0x80] sm:$0xf]  ;;  %v1951_v32 = vor.u32 %v1600_v22, %v1503_v23  ;;  %v1572_v35 = vld [vmem:[%s2477_s2 + $0x70] sm:$0xf0]  ;;  %v1597_v36 = vld [vmem:[%s2478_s3 + $0x7c] sm:$0xf] }
  0x17   :  { %v1491_v38 = vld [vmem:[%s2478_s3 + $0x84] sm:$0xf0]  ;;  %v1390_v39 = vor.u32 %v1572_v35, %v1389_v34  ;;  %v1377_v40 = vld [vmem:[%s2477_s2 + $0x50] sm:$0xf]  ;;  %v1569_v42 = vld [vmem:[%s2477_s2 + $0x58] sm:$0xf0] }
  0x18   :  { %229 = vmatpush.bf16.msra.mxu0 %v1358_v43  ;;  %284 = vmatpush.bf16.msra.mxu2 %v1402_v25  ;;  %v1977_v43 = vor.u32 %v1599_v33, %v1497_v29  ;;  %v1558_v44 = vld [vmem:[%s2477_s2 + $0x4] sm:$0xf]  ;;  %v1335_v45 = vld [vmem:[%s2477_s2 + $0xc] sm:$0xf0]  ;;  %v1986_v46 = vor.u32 %v1597_v36, %v1491_v38  ;;  %v1485_v49 = vld [vmem:[%s2478_s3 + $0x68] sm:$0xf]  ;;  %v1378_v51 = vor.u32 %v1569_v42, %v1377_v40 }
  0x19   :  { %505 = vmatpush.bf16.msra.mxu3 %v1842_v47  ;;  %v1594_v48 = vld [vmem:[%s2478_s3 + $0x64] sm:$0xf]  ;;  %v1596_v50 = vld [vmem:[%s2478_s3 + $0x70] sm:$0xf0]  ;;  %v1479_v52 = vld [vmem:[%s2478_s3 + $0x6c] sm:$0xf0] }
  0x1a   :  { %257 = vmatpush.bf16.msra.mxu1 %v1374_v8  ;;  %v1365_v53 = vld [vmem:[%s2477_s2 + $0x38] sm:$0xf]  ;;  %v1566_v54 = vld [vmem:[%s2477_s2 + $0x40] sm:$0xf0]  ;;  %v2007_v56 = vor.u32 %v1596_v50, %v1485_v49  ;;  %v2010_v57 = vor.u32 %v1594_v48, %v1479_v52  ;;  %v1591_v58 = vld [vmem:[%s2478_s3 + $0x4c] sm:$0xf] }
  0x1b   :  { %v1473_v59 = vld [vmem:[%s2478_s3 + $0x50] sm:$0xf]  ;;  %v1593_v61 = vld [vmem:[%s2478_s3 + $0x58] sm:$0xf0]  ;;  %v1366_v62 = vor.u32 %v1566_v54, %v1365_v53  ;;  %v1467_v63 = vld [vmem:[%s2478_s3 + $0x54] sm:$0xf0] }
  0x1c   :  { %230 = vmatpush.bf16.msra.mxu0 %v1346_v55  ;;  %285 = vmatpush.bf16.msra.mxu2 %v1390_v39  ;;  %v1338_v55 = vor.u32 %v1558_v44, %v1335_v45  ;;  %v1353_v0 = vld [vmem:[%s2477_s2 + $0x20] sm:$0xf]  ;;  %v1563_v1 = vld [vmem:[%s2477_s2 + $0x28] sm:$0xf0]  ;;  %v2031_v2 = vor.u32 %v1593_v61, %v1473_v59  ;;  %v2035_v3 = vor.u32 %v1591_v58, %v1467_v63  ;;  %v1461_v4 = vld [vmem:[%s2478_s3 + $0x38] sm:$0xf] }
  0x1d   :  { %506 = vmatpush.bf16.msra.mxu3 %v1872_v60  ;;  %v1590_v5 = vld [vmem:[%s2478_s3 + $0x40] sm:$0xf0]  ;;  %v1555_v8 = vld [vmem:[%s2479_s0 + $0x8] sm:$0xff]  ;;  %v1588_v9 = vld [vmem:[%s2478_s3 + $0x34] sm:$0xf] }
  0x1e   :  { %258 = vmatpush.bf16.msra.mxu1 %v1362_v26  ;;  %v1455_v13 = vld [vmem:[%s2478_s3 + $0x3c] sm:$0xf0]  ;;  %v2054_v14 = vor.u32 %v1590_v5, %v1461_v4  ;;  %v1585_v18 = vld [vmem:[%s2478_s3 + $0x1c] sm:$0xf]  ;;  %v1341_v19 = vld [vmem:[%s2477_s2 + $0x8] sm:$0xf] }
  0x1f   :  { %v2058_v15 = vor.u32 %v1588_v9, %v1455_v13  ;;  %v1560_v20 = vld [vmem:[%s2477_s2 + $0x10] sm:$0xf0]  ;;  %v1443_v22 = vld [vmem:[%s2478_s3 + $0x24] sm:$0xf0]  ;;  %v1449_v23 = vld [vmem:[%s2478_s3 + $0x20] sm:$0xf] }
  0x20   :  { %231 = vmatpush.bf16.msra.mxu0 %v1334_v6  ;;  %286 = vmatpush.bf16.msra.mxu2 %v1378_v51  ;;  %v1354_v6 = vor.u32 %v1563_v1, %v1353_v0  ;;  %v1587_v25 = vld [vmem:[%s2478_s3 + $0x28] sm:$0xf0]  ;;  %v1342_v26 = vor.u32 %v1560_v20, %v1341_v19  ;;  %v2083_v30 = vor.u32 %v1585_v18, %v1443_v22  ;;  %v1437_v31 = vld [vmem:[%s2478_s3 + $0x8] sm:$0xf]  ;;  %v1584_v33 = vld [vmem:[%s2478_s3 + $0x10] sm:$0xf0] }
  0x21   :  { %507 = vmatpush.bf16.msra.mxu3 %v1902_v10  ;;  %v2079_v29 = vor.u32 %v1587_v25, %v1449_v23  ;;  %v1582_v34 = vld [vmem:[%s2478_s3 + $0x4] sm:$0xf]  ;;  %v1431_v35 = vld [vmem:[%s2478_s3 + $0xc] sm:$0xf0]  ;;  %v2100_v36 = vor.u32 %v1584_v33, %v1437_v31  ;;  %v1557_v45 = vld [vmem:[%s2479_s0 + $0x18] sm:$0xff] }
  0x22   :  { %259 = vmatpush.bf16.msra.mxu1 %v1350_v41  ;;  %v2103_v38 = vor.u32 %v1582_v34, %v1431_v35  ;;  %v371_v39 = vld [vmem:[%s2480_s1] sm:$0xff]  ;;  %v602_v41 = vld [vmem:[%s2480_s1 + $0x8] sm:$0xff]  ;;  %v1111_v44 = vld [vmem:[%s2480_s1 + $0x30] sm:$0xff] }
  0x23   :  { %232 = vmatmul.bf16.vlgmr.msra.gmra.mxu0 %v1929_v21  ;;  %vm590_vm0 = vcmp.gt.f32.partialorder %v371_v39, 0.0  ;;  %vm690_vm1 = vcmp.gt.f32.partialorder %v602_v41, 0.0  ;;  %vm1200_vm2 = vcmp.gt.f32.partialorder %v1111_v44, 0.0  ;;  %v64_v50 = vld [vmem:[%s2482_s4] sm:$0x7] }
  0x24   :  { %526 = vmatpush.bf16.msrb.mxu0 %v1904_v12  ;;  %508 = vmatmul.bf16.vlgmr.msra.gmra.mxu3 %v2484_v28  ;;  %v591_v40 = vsel %vm590_vm0, 1, %v2484_v28  ;;  %v691_v42 = vsel %vm690_vm1, 1, %v2484_v28  ;;  %v1201_v48 = vsel %vm1200_vm2, 1, %v2484_v28  ;;  %v66_v51 = vperm.slane %v64_v50, 0 }
  0x25   :  { %513 = vmatpush.bf16.msrb.mxu3 %v1915_v16  ;;  %287 = vmatpush.bf16.msra.mxu2 %v1366_v62  ;;  %v2196_v5 = vperm.slane %v64_v50, 1  ;;  %v2201_v19 = vperm.slane %v64_v50, 2 }
  0x26   :  { %260 = vmatpush.bf16.msra.mxu1 %v1338_v55  ;;  %593 = vperm.xlu0 %1607, %v591_v40  }
  0x27   :  { %2487 = vst [vmem:[#allocation3_spill] sm:$0xff] %v2201_v19 }
  0x28   :  { %527 = vmatpush.bf16.msrb.mxu0 %v1939_v27 }
  0x29   :  { %514 = vmatpush.bf16.msrb.mxu3 %v1951_v32  ;;  %261 = vmatmul.bf16.vlgmr.msra.gmra.mxu1 %v1929_v21 }
  0x2a   :  { %603 = vmatpush.bf16.msrb.mxu1 %v1746_v7  ;;  %288 = vmatpush.bf16.msra.mxu2 %v1354_v6 }
  0x2c   :  { %528 = vmatpush.bf16.msrb.mxu0 %v1977_v43 }
  0x2d   :  { %515 = vmatpush.bf16.msrb.mxu3 %v1986_v46 }
  0x2e   :  { %604 = vmatpush.bf16.msrb.mxu1 %v1755_v11  ;;  %289 = vmatpush.bf16.msra.mxu2 %v1342_v26 }
  0x2f   :  { %693 = vperm.xlu0 %1607, %v691_v42  }
  0x30   :  { %529 = vmatpush.bf16.msrb.mxu0 %v2007_v56 }
  0x31   :  { %516 = vmatpush.bf16.msrb.mxu3 %v2010_v57  ;;  %290 = vmatmul.bf16.vlgmr.msra.gmra.mxu2 %v1929_v21  ;;  %v1556_v21 = vld [vmem:[%s2479_s0 + $0x10] sm:$0xff] }
  0x32   :  { %605 = vmatpush.bf16.msrb.mxu1 %v1770_v17  ;;  %616 = vmatpush.bf16.msrb.mxu2 %v1915_v16 }
  0x33   :  { %237 = vmatmul.bf16.gmra.mxu0 %v1555_v8 }
  0x34   :  { %530 = vmatpush.bf16.msrb.mxu0 %v2031_v2 }
  0x35   :  { %517 = vmatpush.bf16.msrb.mxu3 %v2035_v3 }
  0x36   :  { %606 = vmatpush.bf16.msrb.mxu1 %v1788_v24  ;;  %617 = vmatpush.bf16.msrb.mxu2 %v1951_v32 }
  0x37   :  { %1203 = vperm.xlu0 %1607, %v1201_v48  }
  0x38   :  { %531 = vmatpush.bf16.msrb.mxu0 %v2054_v14 }
  0x39   :  { %518 = vmatpush.bf16.msrb.mxu3 %v2058_v15  ;;  %266 = vmatmul.bf16.gmra.mxu1 %v1555_v8 }
  0x3a   :  { %607 = vmatpush.bf16.msrb.mxu1 %v1818_v37  ;;  %618 = vmatpush.bf16.msrb.mxu2 %v1986_v46 }
  0x3c   :  { %532 = vmatpush.bf16.msrb.mxu0 %v2079_v29 }
  0x3d   :  { %519 = vmatpush.bf16.msrb.mxu3 %v2083_v30 }
  0x3e   :  { %608 = vmatpush.bf16.msrb.mxu1 %v1842_v47  ;;  %619 = vmatpush.bf16.msrb.mxu2 %v2010_v57 }
  0x40   :  { %533 = vmatpush.bf16.msrb.mxu0 %v2100_v36 }
  0x41   :  { %520 = vmatpush.bf16.msrb.mxu3 %v2103_v38  ;;  %295 = vmatmul.bf16.gmra.mxu2 %v1555_v8 }
  0x42   :  { %609 = vmatpush.bf16.msrb.mxu1 %v1872_v60  ;;  %620 = vmatpush.bf16.msrb.mxu2 %v2035_v3 }
  0x43   :  { %242 = vmatmul.bf16.gmra.mxu0 %v1556_v21 }
  0x44   :  { %705 = vmatpush.bf16.msra.mxu0 %v1746_v7  ;;  %521 = vmatmul.bf16.vlgmr.msrb.gmra.mxu3 %v2484_v28 }
  0x45   :  { %629 = vmatpush.bf16.msra.mxu3 %v1904_v12 }
  0x46   :  { %610 = vmatpush.bf16.msrb.mxu1 %v1902_v10  ;;  %621 = vmatpush.bf16.msrb.mxu2 %v2058_v15 }
  0x48   :  { %706 = vmatpush.bf16.msra.mxu0 %v1755_v11 }
  0x49   :  { %630 = vmatpush.bf16.msra.mxu3 %v1939_v27  ;;  %271 = vmatmul.bf16.gmra.mxu1 %v1556_v21 }
  0x4a   :  { %718 = vmatpush.bf16.msra.mxu1 %v1915_v16  ;;  %622 = vmatpush.bf16.msrb.mxu2 %v2083_v30 }
  0x4c   :  { %707 = vmatpush.bf16.msra.mxu0 %v1770_v17 }
  0x4d   :  { %631 = vmatpush.bf16.msra.mxu3 %v1977_v43 }
  0x4e   :  { %719 = vmatpush.bf16.msra.mxu1 %v1951_v32  ;;  %623 = vmatpush.bf16.msrb.mxu2 %v2103_v38 }
  0x50   :  { %708 = vmatpush.bf16.msra.mxu0 %v1788_v24 }
  0x51   :  { %632 = vmatpush.bf16.msra.mxu3 %v2007_v56  ;;  %300 = vmatmul.bf16.gmra.mxu2 %v1556_v21 }
  0x52   :  { %731 = vmatpush.bf16.msra.mxu2 %v1904_v12  ;;  %720 = vmatpush.bf16.msra.mxu1 %v1986_v46 }
  0x53   :  { %247 = vmatmul.bf16.gmra.mxu0 %v1557_v45 }
  0x54   :  { %709 = vmatpush.bf16.msra.mxu0 %v1818_v37 }
  0x55   :  { %633 = vmatpush.bf16.msra.mxu3 %v2031_v2 }
  0x56   :  { %732 = vmatpush.bf16.msra.mxu2 %v1939_v27  ;;  %721 = vmatpush.bf16.msra.mxu1 %v2010_v57 }
  0x58   :  { %710 = vmatpush.bf16.msra.mxu0 %v1842_v47 }
  0x59   :  { %634 = vmatpush.bf16.msra.mxu3 %v2054_v14  ;;  %276 = vmatmul.bf16.gmra.mxu1 %v1557_v45 }
  0x5a   :  { %733 = vmatpush.bf16.msra.mxu2 %v1977_v43  ;;  %722 = vmatpush.bf16.msra.mxu1 %v2035_v3 }
  0x5c   :  { %711 = vmatpush.bf16.msra.mxu0 %v1872_v60 }
  0x5d   :  { %635 = vmatpush.bf16.msra.mxu3 %v2079_v29 }
  0x5e   :  { %734 = vmatpush.bf16.msra.mxu2 %v2007_v56  ;;  %723 = vmatpush.bf16.msra.mxu1 %v2058_v15 }
  0x60   :  { %712 = vmatpush.bf16.msra.mxu0 %v1902_v10 }
  0x61   :  { %636 = vmatpush.bf16.msra.mxu3 %v2100_v36  ;;  %305 = vmatmul.bf16.gmra.mxu2 %v1557_v45 }
  0x62   :  { %735 = vmatpush.bf16.msra.mxu2 %v2031_v2  ;;  %724 = vmatpush.bf16.msra.mxu1 %v2083_v30 }
  0x63   :  { %534 = vmatmul.bf16.vlgmr.msrb.gmra.mxu0 %v2484_v28 }
  0x64   :  { %820 = vmatpush.bf16.msrb.mxu0 %v1915_v16 }
  0x65   :  { %807 = vmatpush.bf16.msrb.mxu3 %v1746_v7 }
  0x66   :  { %736 = vmatpush.bf16.msra.mxu2 %v2054_v14  ;;  %725 = vmatpush.bf16.msra.mxu1 %v2103_v38 }
  0x68   :  { %821 = vmatpush.bf16.msrb.mxu0 %v1951_v32 }
  0x69   :  { %808 = vmatpush.bf16.msrb.mxu3 %v1755_v11 }
  0x6a   :  { %737 = vmatpush.bf16.msra.mxu2 %v2079_v29 }
  0x6c   :  { %822 = vmatpush.bf16.msrb.mxu0 %v1986_v46 }
  0x6d   :  { %809 = vmatpush.bf16.msrb.mxu3 %v1770_v17 }
  0x6e   :  { %738 = vmatpush.bf16.msra.mxu2 %v2100_v36 }
  0x70   :  { %823 = vmatpush.bf16.msrb.mxu0 %v2010_v57 }
  0x71   :  { %810 = vmatpush.bf16.msrb.mxu3 %v1788_v24 }
  0x74   :  { %824 = vmatpush.bf16.msrb.mxu0 %v2035_v3 }
  0x75   :  { %811 = vmatpush.bf16.msrb.mxu3 %v1818_v37 }
  0x78   :  { %825 = vmatpush.bf16.msrb.mxu0 %v2058_v15 }
  0x79   :  { %812 = vmatpush.bf16.msrb.mxu3 %v1842_v47 }
  0x7c   :  { %826 = vmatpush.bf16.msrb.mxu0 %v2083_v30 }
  0x7d   :  { %813 = vmatpush.bf16.msrb.mxu3 %v1872_v60 }
  0x80   :  { %827 = vmatpush.bf16.msrb.mxu0 %v2103_v38 }
  0x81   :  { %814 = vmatpush.bf16.msrb.mxu3 %v1902_v10 }
  0xa0   :  { %v233_v49 = vpop.f32.mrf.mxu0 }
  0xa1   :  { %v234_v55 = vadd.f32 %v233_v49, %v66_v51 }
  0xa6   :  { %v262_v6 = vpop.f32.mrf.mxu1 }
  0xa7   :  { %v509_v52 = vpop.f32.mrf.mxu3  ;;  %v263_v18 = vadd.f32 %v262_v6, %v2196_v5  ;;  %v2218_v6 = vld [vmem:[%s2481_s5] ss:$0 sm:$0xff] }
  0xa8   :  { %v235_v53 = vpop.f32.mrf.mxu0  ;;  %v539_v61 = vadd.f32 %v509_v52, %v234_v55 }
  0xa9   :  { %v2190_v54 = vadd.f32 %v235_v53, %v66_v51 }
  0xaa   :  { %v1523_v63 = vmul.f32 -1.442695, %v539_v61 }
  0xac   :  { %1611 = vpow2.f32 %v1523_v63 }
  0xaf   :  { %v511_v58 = vpop.f32.mrf.mxu3 }
  0xb0   :  { %v238_v59 = vpop.f32.mrf.mxu0 }
  0xb1   :  { %v2192_v62 = vadd.f32 %v238_v59, %v66_v51 }
  0xb2   :  { %v1612_v8 = vpop.eup %1611 }
  0xb3   :  { %v543_v20 = vadd.f32 1.0, %v1612_v8 }
  0xb4   :  { %v291_v4 = vpop.f32.mrf.mxu2 }
  0xb5   :  { %1613 = vrcp.f32 %v543_v20  ;;  %v555_v63 = vand.u32 2147483648, %v543_v20  ;;  %vm549_vm4 = vweird.f32 %v543_v20 }
  0xb8   :  { %v240_v0 = vpop.f32.mrf.mxu0 }
  0xb9   :  { %v2194_v1 = vadd.f32 %v240_v0, %v66_v51  ;;  %v553_v0 = vand.u32 2147483647, %v543_v20 }
  0xbb   :  { %v1614_v35 = vpop.eup %1613  ;;  %vm554_vm6 = vcmp.eq.f32.partialorder %v553_v0, 8.507059e+37 }
  0xbc   :  { %v293_v23 = vpop.f32.mrf.mxu2  ;;  %v545_v40 = vmul.f32 %v1614_v35, %v543_v20  ;;  %vm550_vm3 = vweird.f32 %v1614_v35 }
  0xbd   :  { %v2204_v26 = vadd.f32 %v293_v23, %v2201_v19  ;;  %vm551_vm5 = vmor %vm549_vm4, %vm550_vm3  ;;  %v556_v23 = vor.u32 1.1754944e-38, %v555_v63 }
  0xbe   :  { %v546_v45 = vsub.f32 1.0, %v545_v40 }
  0xc0   :  { %v243_v9 = vpop.f32.mrf.mxu0  ;;  %v547_v50 = vmul.f32 %v1614_v35, %v546_v45 }
  0xc1   :  { %v2198_v13 = vadd.f32 %v243_v9, %v66_v51 }
  0xc2   :  { %v548_v61 = vadd.f32 %v1614_v35, %v547_v50 }
  0xc4   :  { %v296_v48 = vpop.f32.mrf.mxu2 }
  0xc5   :  { %v2211_v49 = vadd.f32 %v296_v48, %v2201_v19 }
  0xc7   :  { %v522_v22 = vpop.f32.mrf.mxu3 }
  0xc8   :  { %v559_v25 = vadd.f32 %v522_v22, %v263_v18  ;;  %v245_v33 = vpop.f32.mrf.mxu0  ;;  %v552_v22 = vsel %vm551_vm5, %v1614_v35, %v548_v61 }
  0xc9   :  { %v2206_v34 = vadd.f32 %v245_v33, %v66_v51  ;;  %v557_v20 = vsel %vm554_vm6, %v556_v23, %v552_v22 }
  0xca   :  { %v1524_v31 = vmul.f32 -1.442695, %v559_v25  ;;  %v292_v25 = vadd.f32 %v291_v4, %v2201_v19 }
  0xcc   :  { %1615 = vpow2.f32 %v1524_v31  ;;  %v298_v8 = vpop.f32.mrf.mxu2 }
  0xcd   :  { %v2221_v18 = vadd.f32 %v298_v8, %v2201_v19 }
  0xcf   :  { %v524_v21 = vpop.f32.mrf.mxu3 }
  0xd0   :  { %v248_v42 = vpop.f32.mrf.mxu0 }
  0xd1   :  { %v2208_v44 = vadd.f32 %v248_v42, %v66_v51 }
  0xd2   :  { %v1616_v39 = vpop.eup %1615 }
  0xd3   :  { %v563_v41 = vadd.f32 1.0, %v1616_v39 }
  0xd4   :  { %v301_v45 = vpop.f32.mrf.mxu2 }
  0xd5   :  { %1617 = vrcp.f32 %v563_v41  ;;  %vm569_vm7 = vweird.f32 %v563_v41  ;;  %v575_v21 = vand.u32 2147483648, %v563_v41  ;;  %v573_v40 = vand.u32 2147483647, %v563_v41 }
  0xd6   :  { %v2226_v35 = vadd.f32 %v301_v45, %v2201_v19 }
  0xd7   :  { %v576_v50 = vor.u32 1.1754944e-38, %v575_v21  ;;  %vm574_vm10 = vcmp.eq.f32.partialorder %v573_v40, 8.507059e+37 }
  0xd8   :  { %v250_v53 = vpop.f32.mrf.mxu0 }
  0xd9   :  { %v2213_v58 = vadd.f32 %v250_v53, %v66_v51 }
  0xdb   :  { %v1618_v52 = vpop.eup %1617  ;;  %2488 = vst [vmem:[#allocation4_spill] sm:$0xff] %v2213_v58 }
  0xdc   :  { %v565_v55 = vmul.f32 %v1618_v52, %v563_v41  ;;  %vm570_vm8 = vweird.f32 %v1618_v52  ;;  %v303_v63 = vpop.f32.mrf.mxu2 }
  0xdd   :  { %vm571_vm9 = vmor %vm569_vm7, %vm570_vm8  ;;  %v2229_v8 = vadd.f32 %v303_v63, %v2201_v19 }
  0xde   :  { %v566_v59 = vsub.f32 1.0, %v565_v55  ;;  %v594_v55 = vpop.permute.xlu0 %593 }
  0xdf   :  { %vm595_vm11 = vcmp.eq.s32.totalorder %v594_v55, 1 }
  0xe0   :  { %v567_v9 = vmul.f32 %v1618_v52, %v566_v59  ;;  %v535_v51 = vpop.f32.mrf.mxu0  ;;  %vm1525_vm12 = vmneg %vm595_vm11 }
  0xe1   :  { %v582_v31 = vadd.f32 %v2218_v6, %v535_v51  ;;  %vm1527_vm13 = vmpackc.low %vm1525_vm12, %vm1525_vm12 }
  0xe2   :  { %v568_v33 = vadd.f32 %v1618_v52, %v567_v9 }
  0xe3   :  { %v583_v39 = vmul.f32 %v582_v31, %v557_v20  ;;  %v264_v31 = vpop.f32.mrf.mxu1 }
  0xe4   :  { %v572_v48 = vsel %vm571_vm9, %v1618_v52, %v568_v33  ;;  %v306_v23 = vpop.f32.mrf.mxu2 }
  0xe5   :  { %v584_v42 = vadd.f32 %v583_v39, %v292_v25  ;;  %v577_v53 = vsel %vm574_vm10, %v576_v50, %v572_v48  ;;  %v2240_v25 = vadd.f32 %v306_v23, %v2201_v19 }
  0xe6   :  { %v586_v59 = vsub.f32 1.0, %v577_v53  ;;  %v588_v41 = vmul.f32 0.0, %v577_v53  ;;  %v265_v53 = vadd.f32 %v264_v31, %v2196_v5 }
  0xe7   :  { %1619 = vtanh.f32 %v584_v42 }
  0xe8   :  { %v537_v4 = vpop.f32.mrf.mxu0 }
  0xeb   :  { %v2265_v20 = vpop.f32.mrf.mxu1 }
  0xec   :  { %v2277_v45 = vpop.f32.mrf.mxu2 }
  0xed   :  { %v1620_v61 = vpop.eup %1619  ;;  %2490 = vst [vmem:[#allocation6_spill] sm:$0xff] %v2277_v45 }
  0xee   :  { %v587_v0 = vmul.f32 %v1620_v61, %v586_v59 }
  0xf0   :  { %v589_v52 = vadd.f32 %v588_v41, %v587_v0 }
  0xf2   :  { %v2231_v9 = vsel %vm595_vm11, 0.0, %v589_v52  ;;  %v1528_v22 = vpack.c.bf16 %v589_v52, %v589_v52 }
  0xf3   :  { %v597_v51 = vpack.c.bf16 %v2231_v9, %v2231_v9  ;;  %v2267_v33 = vpop.f32.mrf.mxu1 }
  0xf4   :  { %1529 = vmatmul.msk.bf16.vlgmr.msrb.gmra.mxu1 %vm1527_vm13, %v1528_v22  ;;  %1534 = vmatmul.msk.bf16.vlgmr.msrb.gmra.mxu2 %vm1527_vm13, %v1528_v22 }
  0xf5   :  { %598 = vst [vmem:[%s2483_s6] sm:$0xf] %v597_v51  ;;  %1539 = vmatmul.msk.bf16.vlgmr.msra.gmra.mxu3 %vm1527_vm13, %v1528_v22  ;;  %833 = vmatpush.bf16.msrb.mxu1 %v1904_v12 }
  0xf6   :  { %909 = vmatpush.bf16.msrb.mxu2 %v1746_v7  ;;  %922 = vmatpush.bf16.msra.mxu3 %v1915_v16 }
  0xf9   :  { %834 = vmatpush.bf16.msrb.mxu1 %v1939_v27 }
  0xfa   :  { %910 = vmatpush.bf16.msrb.mxu2 %v1755_v11  ;;  %923 = vmatpush.bf16.msra.mxu3 %v1951_v32 }
  0xfb   :  { %v2269_v21 = vpop.f32.mrf.mxu1 }
  0xfd   :  { %835 = vmatpush.bf16.msrb.mxu1 %v1977_v43 }
  0xfe   :  { %911 = vmatpush.bf16.msrb.mxu2 %v1770_v17  ;;  %924 = vmatpush.bf16.msra.mxu3 %v1986_v46 }
 0x101   :  { %836 = vmatpush.bf16.msrb.mxu1 %v2007_v56 }
 0x102   :  { %912 = vmatpush.bf16.msrb.mxu2 %v1788_v24  ;;  %925 = vmatpush.bf16.msra.mxu3 %v2010_v57 }
 0x103   :  { %v2271_v39 = vpop.f32.mrf.mxu1 }
 0x105   :  { %837 = vmatpush.bf16.msrb.mxu1 %v2031_v2 }
 0x106   :  { %913 = vmatpush.bf16.msrb.mxu2 %v1818_v37  ;;  %926 = vmatpush.bf16.msra.mxu3 %v2035_v3 }
 0x109   :  { %838 = vmatpush.bf16.msrb.mxu1 %v2054_v14 }
 0x10a   :  { %914 = vmatpush.bf16.msrb.mxu2 %v1842_v47  ;;  %927 = vmatpush.bf16.msra.mxu3 %v2058_v15 }
 0x10b   :  { %v2273_v40 = vpop.f32.mrf.mxu1 }
 0x10d   :  { %839 = vmatpush.bf16.msrb.mxu1 %v2079_v29 }
 0x10e   :  { %915 = vmatpush.bf16.msrb.mxu2 %v1872_v60  ;;  %928 = vmatpush.bf16.msra.mxu3 %v2083_v30 }
 0x111   :  { %840 = vmatpush.bf16.msrb.mxu1 %v2100_v36 }
 0x112   :  { %916 = vmatpush.bf16.msrb.mxu2 %v1902_v10  ;;  %929 = vmatpush.bf16.msra.mxu3 %v2103_v38 }
 0x113   :  { %v2275_v42 = vpop.f32.mrf.mxu1 }
 0x114   :  { %2489 = vst [vmem:[#allocation5_spill] sm:$0xff] %v2275_v42 }
 0x171   :  { %v612_v48 = vpop.f32.mrf.mxu1 }
 0x172   :  { %v642_v50 = vadd.f32 %v612_v48, %v2190_v54  ;;  %v703_v54 = vld [vmem:[%s2480_s1 + $0x10] sm:$0xff] }
 0x173   :  { %vm792_vm14 = vcmp.gt.f32.partialorder %v703_v54, 0.0 }
 0x174   :  { %v1540_v4 = vmul.f32 -1.442695, %v642_v50  ;;  %v2491_v50 = vmov 0  }
 0x176   :  { %1621 = vpow2.f32 %v1540_v4  ;;  %v793_v4 = vsel %vm792_vm14, 1, %v2491_v50 }
 0x177   :  { %v625_v55 = vpop.f32.mrf.mxu2  ;;  %795 = vperm.xlu1 %1608, %v793_v4  }
 0x178   :  { %v662_v59 = vadd.f32 %v625_v55, %v265_v53  ;;  %v638_v61 = vpop.f32.mrf.mxu3  ;;  %v805_v53 = vld [vmem:[%s2480_s1 + $0x18] sm:$0xff] }
 0x179   :  { %v614_v63 = vpop.f32.mrf.mxu1  ;;  %vm894_vm15 = vcmp.gt.f32.partialorder %v805_v53, 0.0  ;;  %v682_v58 = vadd.f32 %v2218_v6, %v638_v61 }
 0x17a   :  { %v1541_v0 = vmul.f32 -1.442695, %v662_v59 }
 0x17c   :  { %v1622_v41 = vpop.eup %1621  ;;  %1623 = vpow2.f32 %v1541_v0 }
 0x17d   :  { %v646_v52 = vadd.f32 1.0, %v1622_v41 }
 0x17f   :  { %1625 = vrcp.f32 %v646_v52  ;;  %v627_v22 = vpop.f32.mrf.mxu2  ;;  %v658_v59 = vand.u32 2147483648, %v646_v52  ;;  %v656_v0 = vand.u32 2147483647, %v646_v52  ;;  %vm652_vm1 = vweird.f32 %v646_v52 }
 0x180   :  { %v640_v51 = vpop.f32.mrf.mxu3 }
 0x181   :  { %v659_v54 = vor.u32 1.1754944e-38, %v658_v59  ;;  %vm657_vm3 = vcmp.eq.f32.partialorder %v656_v0, 8.507059e+37 }
 0x182   :  { %v1624_v23 = vpop.eup %1623 }
 0x183   :  { %v666_v28 = vadd.f32 1.0, %v1624_v23  ;;  %v895_v23 = vsel %vm894_vm15, 1, %v2491_v50 }
 0x184   :  { %897 = vperm.xlu1 %1608, %v895_v23   ;;  %v694_v23 = vpop.permute.xlu0 %693 }
 0x185   :  { %v1626_v31 = vpop.eup %1625  ;;  %1627 = vrcp.f32 %v666_v28  ;;  %vm672_vm6 = vweird.f32 %v666_v28  ;;  %vm695_vm9 = vcmp.eq.s32.totalorder %v694_v23, 1 }
 0x186   :  { %v648_v48 = vmul.f32 %v1626_v31, %v646_v52  ;;  %vm653_vm0 = vweird.f32 %v1626_v31  ;;  %v676_v52 = vand.u32 2147483647, %v666_v28 }
 0x187   :  { %vm654_vm2 = vmor %vm652_vm1, %vm653_vm0 }
 0x188   :  { %v649_v55 = vsub.f32 1.0, %v648_v48  ;;  %v1213_v48 = vld [vmem:[%s2480_s1 + $0x38] sm:$0xff]  ;;  %vm677_vm8 = vcmp.eq.f32.partialorder %v676_v52, 8.507059e+37 }
 0x189   :  { %vm1302_vm5 = vcmp.gt.f32.partialorder %v1213_v48, 0.0 }
 0x18a   :  { %v650_v63 = vmul.f32 %v1626_v31, %v649_v55  ;;  %v678_v55 = vand.u32 2147483648, %v666_v28  ;;  %v1303_v61 = vsel %vm1302_vm5, 1, %v2491_v50 }
 0x18b   :  { %v1628_v41 = vpop.eup %1627 }
 0x18c   :  { %v668_v22 = vmul.f32 %v1628_v41, %v666_v28  ;;  %v651_v51 = vadd.f32 %v1626_v31, %v650_v63  ;;  %vm673_vm4 = vweird.f32 %v1628_v41  ;;  %1305 = vperm.xlu1 %1608, %v1303_v61  }
 0x18d   :  { %vm674_vm7 = vmor %vm672_vm6, %vm673_vm4 }
 0x18e   :  { %v669_v45 = vsub.f32 1.0, %v668_v22  ;;  %v655_v19 = vsel %vm654_vm2, %v1626_v31, %v651_v51  ;;  %v679_v31 = vor.u32 1.1754944e-38, %v678_v55 }
 0x18f   :  { %v660_v4 = vsel %vm657_vm3, %v659_v54, %v655_v19 }
 0x190   :  { %v670_v53 = vmul.f32 %v1628_v41, %v669_v45  ;;  %v683_v63 = vmul.f32 %v682_v58, %v660_v4 }
 0x192   :  { %v671_v42 = vadd.f32 %v1628_v41, %v670_v53  ;;  %v684_v59 = vadd.f32 %v683_v63, %v2204_v26 }
 0x194   :  { %v675_v0 = vsel %vm674_vm7, %v1628_v41, %v671_v42  ;;  %1629 = vtanh.f32 %v684_v59 }
 0x195   :  { %v680_v22 = vsel %vm677_vm8, %v679_v31, %v675_v0 }
 0x196   :  { %v686_v19 = vsub.f32 1.0, %v680_v22  ;;  %v688_v58 = vmul.f32 %v680_v22, %v2231_v9 }
 0x19a   :  { %v1630_v45 = vpop.eup %1629 }
 0x19b   :  { %v687_v51 = vmul.f32 %v1630_v45, %v686_v19 }
 0x19d   :  { %v689_v54 = vadd.f32 %v688_v58, %v687_v51 }
 0x19f   :  { %v697_v28 = vsel %vm695_vm9, 0.0, %v689_v54  ;;  %v2297_v26 = vsel %vm695_vm9, %v2231_v9, %v689_v54  ;;  %v268_v9 = vadd.f32 %v2265_v20, %v2196_v5 }
 0x1a0   :  { %v698_v48 = vpack.c.bf16 %v697_v28, %v697_v28  ;;  %v704_v42 = vpack.c.bf16 %v2297_v26, %v2297_v26 }
 0x1a2   :  { %699 = vst [vmem:[%s2483_s6 + $0x4] sm:$0xf] %v698_v48  ;;  %713 = vmatmul.bf16.vlgmr.msra.gmra.mxu0 %v704_v42  ;;  %726 = vmatmul.bf16.vlgmr.msra.gmra.mxu1 %v704_v42 }
 0x1a3   :  { %739 = vmatmul.bf16.vlgmr.msra.gmra.mxu2 %v704_v42  ;;  %935 = vmatpush.bf16.msra.mxu0 %v1904_v12 }
 0x1a4   :  { %1011 = vmatpush.bf16.msra.mxu1 %v1746_v7  ;;  %1024 = vmatpush.bf16.msra.mxu2 %v1915_v16 }
 0x1a7   :  { %936 = vmatpush.bf16.msra.mxu0 %v1939_v27 }
 0x1a8   :  { %1012 = vmatpush.bf16.msra.mxu1 %v1755_v11  ;;  %1025 = vmatpush.bf16.msra.mxu2 %v1951_v32 }
 0x1ab   :  { %937 = vmatpush.bf16.msra.mxu0 %v1977_v43 }
 0x1ac   :  { %1013 = vmatpush.bf16.msra.mxu1 %v1770_v17  ;;  %1026 = vmatpush.bf16.msra.mxu2 %v1986_v46 }
 0x1af   :  { %938 = vmatpush.bf16.msra.mxu0 %v2007_v56 }
 0x1b0   :  { %1014 = vmatpush.bf16.msra.mxu1 %v1788_v24  ;;  %1027 = vmatpush.bf16.msra.mxu2 %v2010_v57 }
 0x1b3   :  { %939 = vmatpush.bf16.msra.mxu0 %v2031_v2 }
 0x1b4   :  { %1015 = vmatpush.bf16.msra.mxu1 %v1818_v37  ;;  %1028 = vmatpush.bf16.msra.mxu2 %v2035_v3 }
 0x1b7   :  { %940 = vmatpush.bf16.msra.mxu0 %v2054_v14 }
 0x1b8   :  { %1016 = vmatpush.bf16.msra.mxu1 %v1842_v47  ;;  %1029 = vmatpush.bf16.msra.mxu2 %v2058_v15 }
 0x1bb   :  { %941 = vmatpush.bf16.msra.mxu0 %v2079_v29 }
 0x1bc   :  { %1017 = vmatpush.bf16.msra.mxu1 %v1872_v60  ;;  %1030 = vmatpush.bf16.msra.mxu2 %v2083_v30 }
 0x1bf   :  { %942 = vmatpush.bf16.msra.mxu0 %v2100_v36 }
 0x1c0   :  { %1018 = vmatpush.bf16.msra.mxu1 %v1902_v10  ;;  %1031 = vmatpush.bf16.msra.mxu2 %v2103_v38 }
 0x21f   :  { %v714_v41 = vpop.f32.mrf.mxu0  ;;  %v727_v4 = vpop.f32.mrf.mxu1 }
 0x220   :  { %v744_v53 = vadd.f32 %v714_v41, %v2192_v62  ;;  %v764_v55 = vadd.f32 %v727_v4, %v268_v9 }
 0x222   :  { %v1542_v63 = vmul.f32 -1.442695, %v744_v53  ;;  %v1543_v52 = vmul.f32 -1.442695, %v764_v55 }
 0x224   :  { %1631 = vpow2.f32 %v1542_v63 }
 0x225   :  { %1633 = vpow2.f32 %v1543_v52 }
 0x226   :  { %v740_v59 = vpop.f32.mrf.mxu2 }
 0x227   :  { %v716_v31 = vpop.f32.mrf.mxu0  ;;  %v729_v0 = vpop.f32.mrf.mxu1  ;;  %v784_v63 = vadd.f32 %v2218_v6, %v740_v59 }
 0x22a   :  { %v1632_v61 = vpop.eup %1631 }
 0x22b   :  { %v1634_v22 = vpop.eup %1633  ;;  %v748_v19 = vadd.f32 1.0, %v1632_v61 }
 0x22c   :  { %v768_v45 = vadd.f32 1.0, %v1634_v22 }
 0x22d   :  { %1635 = vrcp.f32 %v748_v19  ;;  %v760_v48 = vand.u32 2147483648, %v748_v19  ;;  %v758_v9 = vand.u32 2147483647, %v748_v19  ;;  %vm754_vm11 = vweird.f32 %v748_v19 }
 0x22e   :  { %1637 = vrcp.f32 %v768_v45  ;;  %v742_v51 = vpop.f32.mrf.mxu2  ;;  %v780_v61 = vand.u32 2147483648, %v768_v45  ;;  %vm774_vm15 = vweird.f32 %v768_v45  ;;  %v778_v22 = vand.u32 2147483647, %v768_v45 }
 0x22f   :  { %v761_v53 = vor.u32 1.1754944e-38, %v760_v48  ;;  %vm759_vm13 = vcmp.eq.f32.partialorder %v758_v9, 8.507059e+37 }
 0x230   :  { %vm779_vm1 = vcmp.eq.f32.partialorder %v778_v22, 8.507059e+37 }
 0x233   :  { %v1636_v20 = vpop.eup %1635 }
 0x234   :  { %v1638_v58 = vpop.eup %1637  ;;  %v750_v23 = vmul.f32 %v1636_v20, %v748_v19  ;;  %vm755_vm10 = vweird.f32 %v1636_v20 }
 0x235   :  { %v770_v54 = vmul.f32 %v1638_v58, %v768_v45  ;;  %vm756_vm12 = vmor %vm754_vm11, %vm755_vm10  ;;  %vm775_vm14 = vweird.f32 %v1638_v58 }
 0x236   :  { %v751_v62 = vsub.f32 1.0, %v750_v23  ;;  %vm776_vm0 = vmor %vm774_vm15, %vm775_vm14 }
 0x237   :  { %v771_v28 = vsub.f32 1.0, %v770_v54  ;;  %v781_v54 = vor.u32 1.1754944e-38, %v780_v61 }
 0x238   :  { %v752_v42 = vmul.f32 %v1636_v20, %v751_v62 }
 0x239   :  { %v772_v41 = vmul.f32 %v1638_v58, %v771_v28  ;;  %v796_v28 = vpop.permute.xlu1 %795 }
 0x23a   :  { %v753_v4 = vadd.f32 %v1636_v20, %v752_v42  ;;  %vm797_vm2 = vcmp.eq.s32.totalorder %v796_v28, 1 }
 0x23b   :  { %v773_v31 = vadd.f32 %v1638_v58, %v772_v41 }
 0x23c   :  { %v757_v55 = vsel %vm756_vm12, %v1636_v20, %v753_v4 }
 0x23d   :  { %v762_v52 = vsel %vm759_vm13, %v761_v53, %v757_v55  ;;  %v777_v23 = vsel %vm776_vm0, %v1638_v58, %v773_v31 }
 0x23e   :  { %v785_v0 = vmul.f32 %v784_v63, %v762_v52  ;;  %v782_v19 = vsel %vm779_vm1, %v781_v54, %v777_v23 }
 0x23f   :  { %v788_v62 = vsub.f32 1.0, %v782_v19  ;;  %v790_v59 = vmul.f32 %v782_v19, %v2297_v26 }
 0x240   :  { %v786_v51 = vadd.f32 %v785_v0, %v2211_v49 }
 0x242   :  { %1639 = vtanh.f32 %v786_v51 }
 0x248   :  { %v1640_v20 = vpop.eup %1639 }
 0x249   :  { %v789_v48 = vmul.f32 %v1640_v20, %v788_v62  ;;  %v907_v20 = vld [vmem:[%s2480_s1 + $0x20] sm:$0xff] }
 0x24a   :  { %vm996_vm3 = vcmp.gt.f32.partialorder %v907_v20, 0.0 }
 0x24b   :  { %v791_v42 = vadd.f32 %v790_v59, %v789_v48  ;;  %v1009_v48 = vld [vmem:[%s2480_s1 + $0x28] sm:$0xff] }
 0x24c   :  { %vm1098_vm4 = vcmp.gt.f32.partialorder %v1009_v48, 0.0 }
 0x24d   :  { %v2335_v9 = vsel %vm797_vm2, %v2297_v26, %v791_v42  ;;  %v799_v45 = vsel %vm797_vm2, 0.0, %v791_v42  ;;  %v270_v26 = vadd.f32 %v2267_v33, %v2196_v5 }
 0x24e   :  { %v800_v41 = vpack.c.bf16 %v799_v45, %v799_v45  ;;  %v806_v49 = vpack.c.bf16 %v2335_v9, %v2335_v9 }
 0x250   :  { %801 = vst [vmem:[%s2483_s6 + $0x8] sm:$0xf] %v800_v41  ;;  %815 = vmatmul.bf16.vlgmr.msrb.gmra.mxu3 %v806_v49  ;;  %828 = vmatmul.bf16.vlgmr.msrb.gmra.mxu0 %v806_v49 }
 0x251   :  { %841 = vmatmul.bf16.vlgmr.msrb.gmra.mxu1 %v806_v49  ;;  %1037 = vmatpush.bf16.msrb.mxu3 %v1904_v12 }
 0x252   :  { %1113 = vmatpush.bf16.msrb.mxu0 %v1746_v7  ;;  %1126 = vmatpush.bf16.msrb.mxu1 %v1915_v16 }
 0x255   :  { %1038 = vmatpush.bf16.msrb.mxu3 %v1939_v27 }
 0x256   :  { %1114 = vmatpush.bf16.msrb.mxu0 %v1755_v11  ;;  %1127 = vmatpush.bf16.msrb.mxu1 %v1951_v32 }
 0x259   :  { %1039 = vmatpush.bf16.msrb.mxu3 %v1977_v43 }
 0x25a   :  { %1115 = vmatpush.bf16.msrb.mxu0 %v1770_v17  ;;  %1128 = vmatpush.bf16.msrb.mxu1 %v1986_v46 }
 0x25d   :  { %1040 = vmatpush.bf16.msrb.mxu3 %v2007_v56 }
 0x25e   :  { %1116 = vmatpush.bf16.msrb.mxu0 %v1788_v24  ;;  %1129 = vmatpush.bf16.msrb.mxu1 %v2010_v57 }
 0x261   :  { %1041 = vmatpush.bf16.msrb.mxu3 %v2031_v2 }
 0x262   :  { %1117 = vmatpush.bf16.msrb.mxu0 %v1818_v37  ;;  %1130 = vmatpush.bf16.msrb.mxu1 %v2035_v3 }
 0x265   :  { %1042 = vmatpush.bf16.msrb.mxu3 %v2054_v14 }
 0x266   :  { %1118 = vmatpush.bf16.msrb.mxu0 %v1842_v47  ;;  %1131 = vmatpush.bf16.msrb.mxu1 %v2058_v15 }
 0x269   :  { %1043 = vmatpush.bf16.msrb.mxu3 %v2079_v29 }
 0x26a   :  { %1119 = vmatpush.bf16.msrb.mxu0 %v1872_v60  ;;  %1132 = vmatpush.bf16.msrb.mxu1 %v2083_v30 }
 0x26d   :  { %1044 = vmatpush.bf16.msrb.mxu3 %v2100_v36 }
 0x26e   :  { %1120 = vmatpush.bf16.msrb.mxu0 %v1902_v10  ;;  %1133 = vmatpush.bf16.msrb.mxu1 %v2103_v38 }
 0x2cd   :  { %v829_v58 = vpop.f32.mrf.mxu0 }
 0x2ce   :  { %v866_v4 = vadd.f32 %v829_v58, %v270_v26  ;;  %v842_v53 = vpop.f32.mrf.mxu1 }
 0x2d0   :  { %v1545_v55 = vmul.f32 -1.442695, %v866_v4  ;;  %v1099_v4 = vsel %vm1098_vm4, 1, %v2491_v50 }
 0x2d2   :  { %1641 = vpow2.f32 %v1545_v55 }
 0x2d3   :  { %v816_v63 = vpop.f32.mrf.mxu3 }
 0x2d4   :  { %v846_v52 = vadd.f32 %v816_v63, %v2194_v1  ;;  %v997_v1 = vsel %vm996_vm3, 1, %v2491_v50 }
 0x2d5   :  { %v831_v31 = vpop.f32.mrf.mxu0  ;;  %999 = vperm.xlu2 %1609, %v997_v1  }
 0x2d6   :  { %v1544_v0 = vmul.f32 -1.442695, %v846_v52  ;;  %v844_v61 = vpop.f32.mrf.mxu1  ;;  %v886_v52 = vadd.f32 %v2218_v6, %v842_v53 }
 0x2d8   :  { %v1642_v22 = vpop.eup %1641  ;;  %1643 = vpow2.f32 %v1544_v0 }
 0x2d9   :  { %v870_v51 = vadd.f32 1.0, %v1642_v22 }
 0x2db   :  { %v818_v23 = vpop.f32.mrf.mxu3  ;;  %1645 = vrcp.f32 %v870_v51  ;;  %v882_v22 = vand.u32 2147483648, %v870_v51  ;;  %vm876_vm10 = vweird.f32 %v870_v51 }
 0x2dd   :  { %1101 = vperm.xlu2 %1609, %v1099_v4   ;;  %v883_v20 = vor.u32 1.1754944e-38, %v882_v22 }
 0x2de   :  { %v1644_v54 = vpop.eup %1643 }
 0x2df   :  { %v850_v19 = vadd.f32 1.0, %v1644_v54  ;;  %v880_v54 = vand.u32 2147483647, %v870_v51 }
 0x2e1   :  { %1647 = vrcp.f32 %v850_v19  ;;  %v1646_v33 = vpop.eup %1645  ;;  %v862_v41 = vand.u32 2147483648, %v850_v19  ;;  %v860_v26 = vand.u32 2147483647, %v850_v19  ;;  %vm856_vm6 = vweird.f32 %v850_v19 }
 0x2e2   :  { %v872_v62 = vmul.f32 %v1646_v33, %v870_v51  ;;  %vm877_vm9 = vweird.f32 %v1646_v33  ;;  %vm881_vm12 = vcmp.eq.f32.partialorder %v880_v54, 8.507059e+37 }
 0x2e3   :  { %v863_v63 = vor.u32 1.1754944e-38, %v862_v41  ;;  %vm861_vm8 = vcmp.eq.f32.partialorder %v860_v26, 8.507059e+37  ;;  %vm878_vm11 = vmor %vm876_vm10, %vm877_vm9 }
 0x2e4   :  { %v873_v42 = vsub.f32 1.0, %v872_v62 }
 0x2e6   :  { %v874_v58 = vmul.f32 %v1646_v33, %v873_v42 }
 0x2e7   :  { %v1648_v28 = vpop.eup %1647 }
 0x2e8   :  { %v852_v59 = vmul.f32 %v1648_v28, %v850_v19  ;;  %vm857_vm5 = vweird.f32 %v1648_v28  ;;  %v875_v0 = vadd.f32 %v1646_v33, %v874_v58 }
 0x2e9   :  { %vm858_vm7 = vmor %vm856_vm6, %vm857_vm5 }
 0x2ea   :  { %v853_v45 = vsub.f32 1.0, %v852_v59  ;;  %v879_v50 = vsel %vm878_vm11, %v1646_v33, %v875_v0  ;;  %v898_v59 = vpop.permute.xlu1 %897 }
 0x2eb   :  { %v884_v19 = vsel %vm881_vm12, %v883_v20, %v879_v50  ;;  %vm899_vm13 = vcmp.eq.s32.totalorder %v898_v59, 1 }
 0x2ec   :  { %v854_v49 = vmul.f32 %v1648_v28, %v853_v45  ;;  %v890_v1 = vsub.f32 1.0, %v884_v19  ;;  %v892_v48 = vmul.f32 %v884_v19, %v2335_v9 }
 0x2ee   :  { %v855_v55 = vadd.f32 %v1648_v28, %v854_v49 }
 0x2f0   :  { %v859_v31 = vsel %vm858_vm7, %v1648_v28, %v855_v55 }
 0x2f1   :  { %v864_v61 = vsel %vm861_vm8, %v863_v63, %v859_v31 }
 0x2f2   :  { %v887_v23 = vmul.f32 %v886_v52, %v864_v61 }
 0x2f4   :  { %v888_v62 = vadd.f32 %v887_v23, %v2221_v18 }
 0x2f6   :  { %1649 = vtanh.f32 %v888_v62 }
 0x2fc   :  { %v1650_v53 = vpop.eup %1649 }
 0x2fd   :  { %v891_v28 = vmul.f32 %v1650_v53, %v890_v1 }
 0x2ff   :  { %v893_v42 = vadd.f32 %v892_v48, %v891_v28 }
 0x301   :  { %v2381_v45 = vsel %vm899_vm13, %v2335_v9, %v893_v42  ;;  %v901_v51 = vsel %vm899_vm13, 0.0, %v893_v42 }
 0x302   :  { %v902_v41 = vpack.c.bf16 %v901_v51, %v901_v51  ;;  %v908_v18 = vpack.c.bf16 %v2381_v45, %v2381_v45 }
 0x304   :  { %903 = vst [vmem:[%s2483_s6 + $0xc] sm:$0xf] %v902_v41  ;;  %917 = vmatmul.bf16.vlgmr.msrb.gmra.mxu2 %v908_v18  ;;  %930 = vmatmul.bf16.vlgmr.msra.gmra.mxu3 %v908_v18 }
 0x305   :  { %943 = vmatmul.bf16.vlgmr.msra.gmra.mxu0 %v908_v18  ;;  %1139 = vmatpush.bf16.msrb.mxu2 %v1904_v12 }
 0x306   :  { %1215 = vmatpush.bf16.msra.mxu3 %v1746_v7  ;;  %1228 = vmatpush.bf16.msra.mxu0 %v1915_v16 }
 0x309   :  { %1140 = vmatpush.bf16.msrb.mxu2 %v1939_v27 }
 0x30a   :  { %1216 = vmatpush.bf16.msra.mxu3 %v1755_v11  ;;  %1229 = vmatpush.bf16.msra.mxu0 %v1951_v32  ;;  %v273_v11 = vadd.f32 %v2269_v21, %v2196_v5 }
 0x30d   :  { %1141 = vmatpush.bf16.msrb.mxu2 %v1977_v43 }
 0x30e   :  { %1217 = vmatpush.bf16.msra.mxu3 %v1770_v17  ;;  %1230 = vmatpush.bf16.msra.mxu0 %v1986_v46 }
 0x311   :  { %1142 = vmatpush.bf16.msrb.mxu2 %v2007_v56 }
 0x312   :  { %1218 = vmatpush.bf16.msra.mxu3 %v1788_v24  ;;  %1231 = vmatpush.bf16.msra.mxu0 %v2010_v57 }
 0x315   :  { %1143 = vmatpush.bf16.msrb.mxu2 %v2031_v2 }
 0x316   :  { %1219 = vmatpush.bf16.msra.mxu3 %v1818_v37  ;;  %1232 = vmatpush.bf16.msra.mxu0 %v2035_v3 }
 0x319   :  { %1144 = vmatpush.bf16.msrb.mxu2 %v2054_v14 }
 0x31a   :  { %1220 = vmatpush.bf16.msra.mxu3 %v1842_v47  ;;  %1233 = vmatpush.bf16.msra.mxu0 %v2058_v15 }
 0x31d   :  { %1145 = vmatpush.bf16.msrb.mxu2 %v2079_v29 }
 0x31e   :  { %1221 = vmatpush.bf16.msra.mxu3 %v1872_v60  ;;  %1234 = vmatpush.bf16.msra.mxu0 %v2083_v30 }
 0x321   :  { %1146 = vmatpush.bf16.msrb.mxu2 %v2100_v36 }
 0x322   :  { %1222 = vmatpush.bf16.msra.mxu3 %v1902_v10  ;;  %1235 = vmatpush.bf16.msra.mxu0 %v2103_v38 }
 0x32f   :  { %v1000_v48 = vpop.permute.xlu2 %999 }
 0x330   :  { %vm1001_vm6 = vcmp.eq.s32.totalorder %v1000_v48, 1 }
 0x382   :  { %v944_v7 = vpop.f32.mrf.mxu0 }
 0x383   :  { %v988_v31 = vadd.f32 %v2218_v6, %v944_v7 }
 0x387   :  { %v918_v17 = vpop.f32.mrf.mxu2  ;;  %v931_v24 = vpop.f32.mrf.mxu3 }
 0x388   :  { %v948_v37 = vadd.f32 %v918_v17, %v2198_v13  ;;  %v968_v47 = vadd.f32 %v931_v24, %v273_v11 }
 0x38a   :  { %v1546_v16 = vmul.f32 -1.442695, %v948_v37  ;;  %v1547_v32 = vmul.f32 -1.442695, %v968_v47  ;;  %v946_v60 = vpop.f32.mrf.mxu0 }
 0x38c   :  { %1651 = vpow2.f32 %v1546_v16 }
 0x38d   :  { %1653 = vpow2.f32 %v1547_v32 }
 0x38f   :  { %v920_v46 = vpop.f32.mrf.mxu2  ;;  %v933_v57 = vpop.f32.mrf.mxu3 }
 0x392   :  { %v1652_v3 = vpop.eup %1651 }
 0x393   :  { %v1654_v10 = vpop.eup %1653  ;;  %v952_v15 = vadd.f32 1.0, %v1652_v3 }
 0x394   :  { %v972_v30 = vadd.f32 1.0, %v1654_v10 }
 0x395   :  { %1655 = vrcp.f32 %v952_v15  ;;  %v964_v13 = vand.u32 2147483648, %v952_v15  ;;  %v962_v4 = vand.u32 2147483647, %v952_v15  ;;  %vm958_vm15 = vweird.f32 %v952_v15 }
 0x396   :  { %1657 = vrcp.f32 %v972_v30  ;;  %v984_v23 = vand.u32 2147483648, %v972_v30  ;;  %vm978_vm3 = vweird.f32 %v972_v30  ;;  %v982_v62 = vand.u32 2147483647, %v972_v30 }
 0x397   :  { %v965_v52 = vor.u32 1.1754944e-38, %v964_v13  ;;  %vm963_vm1 = vcmp.eq.f32.partialorder %v962_v4, 8.507059e+37 }
 0x398   :  { %v985_v19 = vor.u32 1.1754944e-38, %v984_v23  ;;  %vm983_vm5 = vcmp.eq.f32.partialorder %v982_v62, 8.507059e+37 }
 0x39b   :  { %v1656_v38 = vpop.eup %1655 }
 0x39c   :  { %v1658_v21 = vpop.eup %1657  ;;  %v954_v9 = vmul.f32 %v1656_v38, %v952_v15  ;;  %vm959_vm14 = vweird.f32 %v1656_v38 }
 0x39d   :  { %v974_v33 = vmul.f32 %v1658_v21, %v972_v30  ;;  %vm960_vm0 = vmor %vm958_vm15, %vm959_vm14  ;;  %vm979_vm2 = vweird.f32 %v1658_v21 }
 0x39e   :  { %v955_v49 = vsub.f32 1.0, %v954_v9  ;;  %vm980_vm4 = vmor %vm978_vm3, %vm979_vm2 }
 0x39f   :  { %v975_v26 = vsub.f32 1.0, %v974_v33 }
 0x3a0   :  { %v956_v58 = vmul.f32 %v1656_v38, %v955_v49 }
 0x3a1   :  { %v976_v55 = vmul.f32 %v1658_v21, %v975_v26 }
 0x3a2   :  { %v957_v63 = vadd.f32 %v1656_v38, %v956_v58 }
 0x3a3   :  { %v977_v22 = vadd.f32 %v1658_v21, %v976_v55 }
 0x3a4   :  { %v961_v0 = vsel %vm960_vm0, %v1656_v38, %v957_v63 }
 0x3a5   :  { %v966_v61 = vsel %vm963_vm1, %v965_v52, %v961_v0  ;;  %v981_v20 = vsel %vm980_vm4, %v1658_v21, %v977_v22  ;;  %v1102_v22 = vpop.permute.xlu2 %1101 }
 0x3a6   :  { %v989_v54 = vmul.f32 %v988_v31, %v966_v61  ;;  %v986_v1 = vsel %vm983_vm5, %v985_v19, %v981_v20  ;;  %vm1103_vm15 = vcmp.eq.s32.totalorder %v1102_v22, 1  ;;  %v278_v19 = vadd.f32 %v2273_v40, %v2196_v5 }
 0x3a7   :  { %v992_v53 = vsub.f32 1.0, %v986_v1  ;;  %v994_v42 = vmul.f32 %v986_v1, %v2381_v45 }
 0x3a8   :  { %v990_v50 = vadd.f32 %v989_v54, %v2226_v35 }
 0x3aa   :  { %1659 = vtanh.f32 %v990_v50 }
 0x3b0   :  { %v1660_v28 = vpop.eup %1659 }
 0x3b1   :  { %v993_v59 = vmul.f32 %v1660_v28, %v992_v53 }
 0x3b3   :  { %v995_v51 = vadd.f32 %v994_v42, %v993_v59 }
 0x3b5   :  { %v2419_v41 = vsel %vm1001_vm6, %v2381_v45, %v995_v51  ;;  %v1003_v18 = vsel %vm1001_vm6, 0.0, %v995_v51 }
 0x3b6   :  { %v1004_v7 = vpack.c.bf16 %v1003_v18, %v1003_v18  ;;  %v1010_v35 = vpack.c.bf16 %v2419_v41, %v2419_v41 }
 0x3b8   :  { %1005 = vst [vmem:[%s2483_s6 + $0x10] sm:$0xf] %v1004_v7  ;;  %1019 = vmatmul.bf16.vlgmr.msra.gmra.mxu1 %v1010_v35  ;;  %1032 = vmatmul.bf16.vlgmr.msra.gmra.mxu2 %v1010_v35 }
 0x3b9   :  { %1045 = vmatmul.bf16.vlgmr.msrb.gmra.mxu3 %v1010_v35  ;;  %1241 = vmatpush.bf16.msra.mxu1 %v1904_v12  ;;  %v275_v12 = vadd.f32 %v2271_v39, %v2196_v5 }
 0x3bd   :  { %1242 = vmatpush.bf16.msra.mxu1 %v1939_v27 }
 0x3c1   :  { %1243 = vmatpush.bf16.msra.mxu1 %v1977_v43 }
 0x3c5   :  { %1244 = vmatpush.bf16.msra.mxu1 %v2007_v56 }
 0x3c9   :  { %1245 = vmatpush.bf16.msra.mxu1 %v2031_v2 }
 0x3cd   :  { %1246 = vmatpush.bf16.msra.mxu1 %v2054_v14 }
 0x3d1   :  { %1247 = vmatpush.bf16.msra.mxu1 %v2079_v29 }
 0x3d5   :  { %1248 = vmatpush.bf16.msra.mxu1 %v2100_v36 }
 0x435   :  { %v1020_v45 = vpop.f32.mrf.mxu1 }
 0x436   :  { %v1050_v11 = vadd.f32 %v1020_v45, %v2206_v34 }
 0x438   :  { %v1548_v17 = vmul.f32 -1.442695, %v1050_v11 }
 0x43a   :  { %1661 = vpow2.f32 %v1548_v17 }
 0x43b   :  { %v1033_v27 = vpop.f32.mrf.mxu2 }
 0x43c   :  { %v1070_v43 = vadd.f32 %v1033_v27, %v275_v12  ;;  %v1046_v24 = vpop.f32.mrf.mxu3 }
 0x43d   :  { %v1022_v56 = vpop.f32.mrf.mxu1  ;;  %v1090_v9 = vadd.f32 %v2218_v6, %v1046_v24 }
 0x43e   :  { %v1549_v37 = vmul.f32 -1.442695, %v1070_v43 }
 0x440   :  { %v1662_v2 = vpop.eup %1661  ;;  %1663 = vpow2.f32 %v1549_v37 }
 0x441   :  { %v1054_v14 = vadd.f32 1.0, %v1662_v2 }
 0x443   :  { %1665 = vrcp.f32 %v1054_v14  ;;  %v1035_v29 = vpop.f32.mrf.mxu2  ;;  %v1066_v46 = vand.u32 2147483648, %v1054_v14  ;;  %v1064_v57 = vand.u32 2147483647, %v1054_v14  ;;  %vm1060_vm8 = vweird.f32 %v1054_v14 }
 0x444   :  { %v1048_v47 = vpop.f32.mrf.mxu3 }
 0x445   :  { %v1067_v30 = vor.u32 1.1754944e-38, %v1066_v46  ;;  %vm1065_vm10 = vcmp.eq.f32.partialorder %v1064_v57, 8.507059e+37 }
 0x446   :  { %v1664_v36 = vpop.eup %1663 }
 0x447   :  { %v1074_v16 = vadd.f32 1.0, %v1664_v36 }
 0x449   :  { %v1666_v32 = vpop.eup %1665  ;;  %1667 = vrcp.f32 %v1074_v16  ;;  %v1086_v13 = vand.u32 2147483648, %v1074_v16  ;;  %v1084_v58 = vand.u32 2147483647, %v1074_v16  ;;  %vm1080_vm12 = vweird.f32 %v1074_v16 }
 0x44a   :  { %v1056_v34 = vmul.f32 %v1666_v32, %v1054_v14  ;;  %vm1061_vm7 = vweird.f32 %v1666_v32 }
 0x44b   :  { %vm1062_vm9 = vmor %vm1060_vm8, %vm1061_vm7  ;;  %v1087_v63 = vor.u32 1.1754944e-38, %v1086_v13  ;;  %vm1085_vm14 = vcmp.eq.f32.partialorder %v1084_v58, 8.507059e+37 }
 0x44c   :  { %v1057_v60 = vsub.f32 1.0, %v1056_v34 }
 0x44e   :  { %v1058_v39 = vmul.f32 %v1666_v32, %v1057_v60 }
 0x44f   :  { %v1668_v3 = vpop.eup %1667 }
 0x450   :  { %v1076_v10 = vmul.f32 %v1668_v3, %v1074_v16  ;;  %v1059_v15 = vadd.f32 %v1666_v32, %v1058_v39  ;;  %vm1081_vm11 = vweird.f32 %v1668_v3  ;;  %v2454_v16 = vld [vmem:[%s2481_s5] ss:$0 sm:$0xff] }
 0x451   :  { %vm1082_vm13 = vmor %vm1080_vm12, %vm1081_vm11 }
 0x452   :  { %v1077_v38 = vsub.f32 1.0, %v1076_v10  ;;  %v1063_v21 = vsel %vm1062_vm9, %v1666_v32, %v1059_v15 }
 0x453   :  { %v1068_v33 = vsel %vm1065_vm10, %v1067_v30, %v1063_v21 }
 0x454   :  { %v1078_v49 = vmul.f32 %v1668_v3, %v1077_v38  ;;  %v1091_v26 = vmul.f32 %v1090_v9, %v1068_v33  ;;  %v1204_v9 = vpop.permute.xlu0 %1203 }
 0x455   :  { %vm1205_vm8 = vcmp.eq.s32.totalorder %v1204_v9, 1 }
 0x456   :  { %v1079_v4 = vadd.f32 %v1668_v3, %v1078_v49  ;;  %v1092_v55 = vadd.f32 %v1091_v26, %v2229_v8 }
 0x458   :  { %v1083_v52 = vsel %vm1082_vm13, %v1668_v3, %v1079_v4  ;;  %1669 = vtanh.f32 %v1092_v55  ;;  %v2492_v55 = vld [vmem:[#allocation5_spill] sm:$0xff] }
 0x459   :  { %v1088_v31 = vsel %vm1085_vm14, %v1087_v63, %v1083_v52  ;;  %v280_v63 = vadd.f32 %v2492_v55, %v2196_v5 }
 0x45a   :  { %v1094_v0 = vsub.f32 1.0, %v1088_v31  ;;  %v1096_v23 = vmul.f32 %v1088_v31, %v2419_v41 }
 0x45e   :  { %v1670_v61 = vpop.eup %1669 }
 0x45f   :  { %v1095_v6 = vmul.f32 %v1670_v61, %v1094_v0 }
 0x461   :  { %v1097_v54 = vadd.f32 %v1096_v23, %v1095_v6  ;;  %v2493_v6 = vld [vmem:[#allocation4_spill] sm:$0xff] }
 0x463   :  { %v1105_v62 = vsel %vm1103_vm15, 0.0, %v1097_v54  ;;  %v2441_v50 = vsel %vm1103_vm15, %v2419_v41, %v1097_v54 }
 0x464   :  { %v1106_v20 = vpack.c.bf16 %v1105_v62, %v1105_v62  ;;  %v1112_v8 = vpack.c.bf16 %v2441_v50, %v2441_v50 }
 0x466   :  { %1107 = vst [vmem:[%s2483_s6 + $0x14] sm:$0xf] %v1106_v20  ;;  %1121 = vmatmul.bf16.vlgmr.msrb.gmra.mxu0 %v1112_v8  ;;  %1134 = vmatmul.bf16.vlgmr.msrb.gmra.mxu1 %v1112_v8 }
 0x467   :  { %1147 = vmatmul.bf16.vlgmr.msrb.gmra.mxu2 %v1112_v8 }
 0x4e3   :  { %v1122_v1 = vpop.f32.mrf.mxu0  ;;  %v1135_v53 = vpop.f32.mrf.mxu1 }
 0x4e4   :  { %v1152_v28 = vadd.f32 %v1122_v1, %v2208_v44  ;;  %v1172_v48 = vadd.f32 %v1135_v53, %v278_v19 }
 0x4e6   :  { %v1550_v59 = vmul.f32 -1.442695, %v1152_v28  ;;  %v1551_v42 = vmul.f32 -1.442695, %v1172_v48 }
 0x4e8   :  { %1671 = vpow2.f32 %v1550_v59 }
 0x4e9   :  { %1673 = vpow2.f32 %v1551_v42 }
 0x4ea   :  { %v1148_v51 = vpop.f32.mrf.mxu2 }
 0x4eb   :  { %v1124_v41 = vpop.f32.mrf.mxu0  ;;  %v1137_v18 = vpop.f32.mrf.mxu1  ;;  %v1192_v32 = vadd.f32 %v2454_v16, %v1148_v51 }
 0x4ee   :  { %v1672_v7 = vpop.eup %1671 }
 0x4ef   :  { %v1674_v35 = vpop.eup %1673  ;;  %v1156_v45 = vadd.f32 1.0, %v1672_v7 }
 0x4f0   :  { %v1176_v11 = vadd.f32 1.0, %v1674_v35 }
 0x4f1   :  { %1675 = vrcp.f32 %v1156_v45  ;;  %v1168_v56 = vand.u32 2147483648, %v1156_v45  ;;  %v1166_v2 = vand.u32 2147483647, %v1156_v45  ;;  %vm1162_vm1 = vweird.f32 %v1156_v45 }
 0x4f2   :  { %1677 = vrcp.f32 %v1176_v11  ;;  %v1150_v17 = vpop.f32.mrf.mxu2  ;;  %v1188_v46 = vand.u32 2147483648, %v1176_v11  ;;  %vm1182_vm5 = vweird.f32 %v1176_v11  ;;  %v1186_v57 = vand.u32 2147483647, %v1176_v11 }
 0x4f3   :  { %v1169_v47 = vor.u32 1.1754944e-38, %v1168_v56  ;;  %vm1167_vm3 = vcmp.eq.f32.partialorder %v1166_v2, 8.507059e+37 }
 0x4f4   :  { %v1189_v15 = vor.u32 1.1754944e-38, %v1188_v46  ;;  %vm1187_vm7 = vcmp.eq.f32.partialorder %v1186_v57, 8.507059e+37 }
 0x4f7   :  { %v1676_v40 = vpop.eup %1675 }
 0x4f8   :  { %v1678_v12 = vpop.eup %1677  ;;  %v1158_v27 = vmul.f32 %v1676_v40, %v1156_v45  ;;  %vm1163_vm0 = vweird.f32 %v1676_v40 }
 0x4f9   :  { %v1178_v43 = vmul.f32 %v1678_v12, %v1176_v11  ;;  %vm1164_vm2 = vmor %vm1162_vm1, %vm1163_vm0  ;;  %vm1183_vm4 = vweird.f32 %v1678_v12 }
 0x4fa   :  { %v1159_v44 = vsub.f32 1.0, %v1158_v27  ;;  %vm1184_vm6 = vmor %vm1182_vm5, %vm1183_vm4 }
 0x4fb   :  { %v1179_v24 = vsub.f32 1.0, %v1178_v43  ;;  %v2494_v43 = vld [vmem:[#allocation3_spill] sm:$0xff] }
 0x4fc   :  { %v1160_v37 = vmul.f32 %v1676_v40, %v1159_v44  ;;  %v2495_v44 = vld [vmem:[#allocation6_spill] sm:$0xff] }
 0x4fd   :  { %v1180_v14 = vmul.f32 %v1678_v12, %v1179_v24  ;;  %v309_v24 = vadd.f32 %v2495_v44, %v2494_v43 }
 0x4fe   :  { %v1161_v29 = vadd.f32 %v1676_v40, %v1160_v37 }
 0x4ff   :  { %v1181_v34 = vadd.f32 %v1678_v12, %v1180_v14 }
 0x500   :  { %v1165_v36 = vsel %vm1164_vm2, %v1676_v40, %v1161_v29 }
 0x501   :  { %v1170_v60 = vsel %vm1167_vm3, %v1169_v47, %v1165_v36  ;;  %v1185_v10 = vsel %vm1184_vm6, %v1678_v12, %v1181_v34  ;;  %v1306_v34 = vpop.permute.xlu1 %1305 }
 0x502   :  { %v1193_v39 = vmul.f32 %v1192_v32, %v1170_v60  ;;  %v1190_v30 = vsel %vm1187_vm7, %v1189_v15, %v1185_v10  ;;  %vm1307_vm1 = vcmp.eq.s32.totalorder %v1306_v34, 1 }
 0x503   :  { %v1196_v38 = vsub.f32 1.0, %v1190_v30  ;;  %v1198_v49 = vmul.f32 %v1190_v30, %v2441_v50 }
 0x504   :  { %v1194_v3 = vadd.f32 %v1193_v39, %v2240_v25 }
 0x506   :  { %1679 = vtanh.f32 %v1194_v3 }
 0x50c   :  { %v1680_v21 = vpop.eup %1679 }
 0x50d   :  { %v1197_v33 = vmul.f32 %v1680_v21, %v1196_v38 }
 0x50f   :  { %v1199_v13 = vadd.f32 %v1198_v49, %v1197_v33 }
 0x511   :  { %v2460_v26 = vsel %vm1205_vm8, %v2441_v50, %v1199_v13  ;;  %v1207_v58 = vsel %vm1205_vm8, 0.0, %v1199_v13 }
 0x512   :  { %v1208_v4 = vpack.c.bf16 %v1207_v58, %v1207_v58  ;;  %v1214_v25 = vpack.c.bf16 %v2460_v26, %v2460_v26 }
 0x514   :  { %1209 = vst [vmem:[%s2483_s6 + $0x18] sm:$0xf] %v1208_v4  ;;  %1223 = vmatmul.bf16.vlgmr.msra.gmra.mxu3 %v1214_v25  ;;  %1236 = vmatmul.bf16.vlgmr.msra.gmra.mxu0 %v1214_v25 }
 0x515   :  { %1249 = vmatmul.bf16.vlgmr.msra.gmra.mxu1 %v1214_v25 }
 0x591   :  { %v1237_v52 = vpop.f32.mrf.mxu0 }
 0x592   :  { %v1274_v31 = vadd.f32 %v1237_v52, %v280_v63  ;;  %v1250_v0 = vpop.f32.mrf.mxu1 }
 0x593   :  { %v1294_v17 = vadd.f32 %v2454_v16, %v1250_v0 }
 0x594   :  { %v1553_v61 = vmul.f32 -1.442695, %v1274_v31 }
 0x596   :  { %1681 = vpow2.f32 %v1553_v61 }
 0x597   :  { %v1224_v22 = vpop.f32.mrf.mxu3 }
 0x598   :  { %v1254_v23 = vadd.f32 %v1224_v22, %v2493_v6 }
 0x599   :  { %v1239_v54 = vpop.f32.mrf.mxu0 }
 0x59a   :  { %v1552_v62 = vmul.f32 -1.442695, %v1254_v23  ;;  %v1252_v50 = vpop.f32.mrf.mxu1 }
 0x59c   :  { %v1682_v20 = vpop.eup %1681  ;;  %1683 = vpow2.f32 %v1552_v62 }
 0x59d   :  { %v1278_v8 = vadd.f32 1.0, %v1682_v20 }
 0x59f   :  { %v1226_v19 = vpop.f32.mrf.mxu3  ;;  %1685 = vrcp.f32 %v1278_v8  ;;  %v1290_v56 = vand.u32 2147483648, %v1278_v8  ;;  %vm1284_vm14 = vweird.f32 %v1278_v8  ;;  %v1288_v2 = vand.u32 2147483647, %v1278_v8 }
 0x5a1   :  { %v1291_v47 = vor.u32 1.1754944e-38, %v1290_v56  ;;  %vm1289_vm0 = vcmp.eq.f32.partialorder %v1288_v2, 8.507059e+37 }
 0x5a2   :  { %v1684_v1 = vpop.eup %1683 }
 0x5a3   :  { %v1258_v53 = vadd.f32 1.0, %v1684_v1 }
 0x5a5   :  { %1687 = vrcp.f32 %v1258_v53  ;;  %v1686_v5 = vpop.eup %1685  ;;  %v1270_v41 = vand.u32 2147483648, %v1258_v53  ;;  %v1268_v7 = vand.u32 2147483647, %v1258_v53  ;;  %vm1264_vm10 = vweird.f32 %v1258_v53 }
 0x5a6   :  { %v1280_v28 = vmul.f32 %v1686_v5, %v1278_v8  ;;  %vm1285_vm13 = vweird.f32 %v1686_v5 }
 0x5a7   :  { %v1271_v11 = vor.u32 1.1754944e-38, %v1270_v41  ;;  %vm1269_vm12 = vcmp.eq.f32.partialorder %v1268_v7, 8.507059e+37  ;;  %vm1286_vm15 = vmor %vm1284_vm14, %vm1285_vm13 }
 0x5a8   :  { %v1281_v42 = vsub.f32 1.0, %v1280_v28 }
 0x5aa   :  { %v1282_v35 = vmul.f32 %v1686_v5, %v1281_v42 }
 0x5ab   :  { %v1688_v48 = vpop.eup %1687 }
 0x5ac   :  { %v1260_v59 = vmul.f32 %v1688_v48, %v1258_v53  ;;  %vm1265_vm9 = vweird.f32 %v1688_v48  ;;  %v1283_v12 = vadd.f32 %v1686_v5, %v1282_v35 }
 0x5ad   :  { %vm1266_vm11 = vmor %vm1264_vm10, %vm1265_vm9 }
 0x5ae   :  { %v1261_v51 = vsub.f32 1.0, %v1260_v59  ;;  %v1287_v29 = vsel %vm1286_vm15, %v1686_v5, %v1283_v12 }
 0x5af   :  { %v1292_v36 = vsel %vm1289_vm0, %v1291_v47, %v1287_v29 }
 0x5b0   :  { %v1262_v18 = vmul.f32 %v1688_v48, %v1261_v51  ;;  %v1298_v16 = vsub.f32 1.0, %v1292_v36  ;;  %v1300_v60 = vmul.f32 %v1292_v36, %v2460_v26 }
 0x5b2   :  { %v1263_v45 = vadd.f32 %v1688_v48, %v1262_v18 }
 0x5b4   :  { %v1267_v40 = vsel %vm1266_vm11, %v1688_v48, %v1263_v45 }
 0x5b5   :  { %v1272_v27 = vsel %vm1269_vm12, %v1271_v11, %v1267_v40 }
 0x5b6   :  { %v1295_v37 = vmul.f32 %v1294_v17, %v1272_v27 }
 0x5b8   :  { %v1296_v14 = vadd.f32 %v1295_v37, %v309_v24 }
 0x5ba   :  { %1689 = vtanh.f32 %v1296_v14 }
 0x5c0   :  { %v1690_v32 = vpop.eup %1689 }
 0x5c1   :  { %v1299_v46 = vmul.f32 %v1690_v32, %v1298_v16 }
 0x5c3   :  { %v1301_v39 = vadd.f32 %v1300_v60, %v1299_v46 }
 0x5c5   :  { %v1308_v57 = vsel %vm1307_vm1, 0.0, %v1301_v39 }
 0x5c6   :  { %v1309_v3 = vpack.c.bf16 %v1308_v57, %v1308_v57 }
 0x5c8   :  { %1310 = vst [vmem:[%s2483_s6 + $0x1c] sm:$0xf] %v1309_v3 }

</bundles_post_ra>
